<compile_context>
chip_gen: v7x
topology: tpu7x:2x2x1
jax: 0.10.0
libtpu: 0.0.40
codegen_flags: <defaults>
</compile_context>

<pallas_src>
import jax
import jax.numpy as jnp
from jax.experimental import pallas as pl
from jax.experimental.pallas import tpu as pltpu

LDIM = 512
EDIM = 1024
IMG_SIZE = 3 * 64 * 64      # 12288
EPS = 0.8                   # nn.BatchNorm1d(dim, 0.8) -> eps = 0.8
NEG_SLOPE = 0.2


def _decoder_kernel(z_ref, g1_ref, b1_ref, w1_ref, g2_ref, b2_ref, w2_ref, o_ref):
    """Fused decoder forward for one W2 column tile.

    Stage 1 (BN1 -> Linear(512,1024) -> LeakyReLU -> BN2) is recomputed per
    grid step; it is a few-vreg reduction plus an 8x512x1024 MXU GEMM and is
    fully hidden under the 6 MiB W2 tile DMA. Stage 2 is the HBM-bound bf16
    column-tile GEMM + tanh.
    """
    # ---- Stage 1 prologue (f32 stats, bf16 MXU inputs, f32 accumulation).
    x = z_ref[...].astype(jnp.float32)
    mu = jnp.mean(x, axis=0, keepdims=True)
    var = jnp.mean((x - mu) ** 2, axis=0, keepdims=True)
    xbn = (x - mu) * jax.lax.rsqrt(var + EPS) * g1_ref[...] + b1_ref[...]

    h = jnp.dot(xbn.astype(jnp.bfloat16), w1_ref[...],
                preferred_element_type=jnp.float32)
    # LeakyReLU(0.2): single VPU max (valid because 0 < slope < 1).
    h = jnp.maximum(h, NEG_SLOPE * h)

    mu2 = jnp.mean(h, axis=0, keepdims=True)
    var2 = jnp.mean((h - mu2) ** 2, axis=0, keepdims=True)
    h = (h - mu2) * jax.lax.rsqrt(var2 + EPS) * g2_ref[...] + b2_ref[...]

    # ---- Stage 2: Linear(EDIM, IMG_SIZE, bias=False) column tile -> tanh.
    acc = jnp.dot(h.astype(jnp.bfloat16), w2_ref[...],
                  preferred_element_type=jnp.float32)
    o_ref[...] = jnp.tanh(acc).astype(o_ref.dtype)


def decoder_forward(z, g1, b1, w1_bf16, g2, b2, w2_bf16, *, tile_n=3072):
    """z: (B, 512) f32; w1_bf16: (512, 1024) bf16; w2_bf16: (1024, 12288) bf16."""
    B = z.shape[0]
    assert IMG_SIZE % tile_n == 0
    n_tiles = IMG_SIZE // tile_n  # 4 with tile_n=3072 -> even split on v7x

    cost = pl.CostEstimate(
        flops=2 * B * EDIM * IMG_SIZE + n_tiles * 2 * B * LDIM * EDIM,
        transcendentals=B * IMG_SIZE,
        bytes_accessed=(EDIM * IMG_SIZE * 2     # W2 in bf16 (dominant stream)
                        + LDIM * EDIM * 2       # W1 in bf16 (resident)
                        + B * LDIM * 4          # z
                        + B * IMG_SIZE * 4),    # f32 output
    )

    return pl.pallas_call(
        _decoder_kernel,
        out_shape=jax.ShapeDtypeStruct((B, IMG_SIZE), jnp.float32),
        grid_spec=pltpu.PrefetchScalarGridSpec(
            num_scalar_prefetch=0,
            grid=(n_tiles,),
            in_specs=[
                pl.BlockSpec((B, LDIM), lambda j: (0, 0)),       # z (resident)
                pl.BlockSpec((1, LDIM), lambda j: (0, 0)),       # bn1 gamma
                pl.BlockSpec((1, LDIM), lambda j: (0, 0)),       # bn1 beta
                pl.BlockSpec((LDIM, EDIM), lambda j: (0, 0)),    # W1 bf16 (resident)
                pl.BlockSpec((1, EDIM), lambda j: (0, 0)),       # bn2 gamma
                pl.BlockSpec((1, EDIM), lambda j: (0, 0)),       # bn2 beta
                pl.BlockSpec((EDIM, tile_n), lambda j: (0, j)),  # W2 column tile (bf16)
            ],
            out_specs=pl.BlockSpec((B, tile_n), lambda j: (0, j)),
        ),
        compiler_params=pltpu.CompilerParams(
            # Every grid step is independent (stage 1 recomputed per step, no
            # scratch carry) -> column axis shards across v7x's two TCs; no-op
            # on v5e/v6e.
            dimension_semantics=("parallel",),
            # Pipeline needs ~14.5 MiB (2x6 MiB W2 tiles + 2 MiB W1 + misc);
            # 24 MiB covers it with headroom on all of v5e/v6e/v7x.
            vmem_limit_bytes=24 * 1024 * 1024,
        ),
        cost_estimate=cost,
    )(z, g1, b1, w1_bf16, g2, b2, w2_bf16)


def decoder_reference(z, g1, b1, w1, g2, b2, w2):
    x = z.astype(jnp.float32)
    mu = jnp.mean(x, axis=0, keepdims=True)
    var = jnp.mean((x - mu) ** 2, axis=0, keepdims=True)
    x = (x - mu) * jax.lax.rsqrt(var + EPS) * g1 + b1
    h = x @ w1
    h = jnp.where(h >= 0, h, NEG_SLOPE * h)
    mu2 = jnp.mean(h, axis=0, keepdims=True)
    var2 = jnp.mean((h - mu2) ** 2, axis=0, keepdims=True)
    h = (h - mu2) * jax.lax.rsqrt(var2 + EPS) * g2 + b2
    return jnp.tanh(h @ w2)


if __name__ == "__main__":
    key = jax.random.PRNGKey(0)
    kz, kw1, kw2, kg1, kb1, kg2, kb2 = jax.random.split(key, 7)

    B = 8  # small batch (>1 required for BatchNorm1d training semantics)
    z = jax.random.normal(kz, (B, LDIM), dtype=jnp.float32)

    # Deterministic synthetic parameters (shapes dictated by the module).
    w1 = jax.random.normal(kw1, (LDIM, EDIM), dtype=jnp.float32) * 0.02
    w2 = jax.random.normal(kw2, (EDIM, IMG_SIZE), dtype=jnp.float32) * 0.02
    g1 = 1.0 + 0.1 * jax.random.normal(kg1, (1, LDIM), dtype=jnp.float32)
    b1 = 0.1 * jax.random.normal(kb1, (1, LDIM), dtype=jnp.float32)
    g2 = 1.0 + 0.1 * jax.random.normal(kg2, (1, EDIM), dtype=jnp.float32)
    b2 = 0.1 * jax.random.normal(kb2, (1, EDIM), dtype=jnp.float32)

    # One-time parameter prep: store the Linear weights in bf16 (done at init,
    # NOT per forward call -> no per-call f32->bf16 HBM round trip).
    w1_bf16 = jax.block_until_ready(w1.astype(jnp.bfloat16))
    w2_bf16 = jax.block_until_ready(w2.astype(jnp.bfloat16))

    fwd = jax.jit(decoder_forward)
    out = fwd(z, g1, b1, w1_bf16, g2, b2, w2_bf16)
    out = jax.block_until_ready(out)

    ref = decoder_reference(z, g1, b1, w1, g2, b2, w2)
    assert out.shape == (B, IMG_SIZE)
    # Both GEMMs run with bf16 operands (f32 accumulation), so tolerance is
    # loosened slightly vs the pure-f32 reference; tanh saturation helps.
    assert jnp.allclose(out, ref, rtol=2e-2, atol=2e-2), "mismatch vs JAX reference"

    print("KERNEL_OK")
</pallas_src>

<mosaic_0001>
module attributes {stable_mosaic.version = 11 : i64} {
  func.func @_decoder_kernel(%arg0: i32, %arg1: memref<8x512xf32, #tpu.memory_space<vmem>>, %arg2: memref<1x512xf32, #tpu.memory_space<vmem>>, %arg3: memref<1x512xf32, #tpu.memory_space<vmem>>, %arg4: memref<512x1024xbf16, #tpu.memory_space<vmem>>, %arg5: memref<1x1024xf32, #tpu.memory_space<vmem>>, %arg6: memref<1x1024xf32, #tpu.memory_space<vmem>>, %arg7: memref<1024x3072xbf16, #tpu.memory_space<vmem>>, %arg8: memref<8x3072xf32, #tpu.memory_space<vmem>>) attributes {dimension_semantics = [#tpu.dimension_semantics<parallel>], iteration_bounds = array<i64: 4>, scalar_prefetch = 0 : i64, scratch_operands = 0 : i64, tpu.core_type = #tpu.core_type<tc>, window_params = [{pipeline_mode = #tpu.pipeline_mode<synchronous>, transform_indices = @transform_0, window_bounds = array<i64: 8, 512>}, {pipeline_mode = #tpu.pipeline_mode<synchronous>, transform_indices = @transform_1, window_bounds = array<i64: 1, 512>}, {pipeline_mode = #tpu.pipeline_mode<synchronous>, transform_indices = @transform_2, window_bounds = array<i64: 1, 512>}, {pipeline_mode = #tpu.pipeline_mode<synchronous>, transform_indices = @transform_3, window_bounds = array<i64: 512, 1024>}, {pipeline_mode = #tpu.pipeline_mode<synchronous>, transform_indices = @transform_4, window_bounds = array<i64: 1, 1024>}, {pipeline_mode = #tpu.pipeline_mode<synchronous>, transform_indices = @transform_5, window_bounds = array<i64: 1, 1024>}, {transform_indices = @transform_6, window_bounds = array<i64: 1024, 3072>}, {transform_indices = @transform_7, window_bounds = array<i64: 8, 3072>}]} {
    %c0 = arith.constant 0 : index
    %c0_0 = arith.constant 0 : index
    %0 = vector.load %arg1[%c0, %c0_0] : memref<8x512xf32, #tpu.memory_space<vmem>>, vector<8x512xf32>
    %cst = arith.constant dense<0.000000e+00> : vector<512xf32>
    %1 = vector.multi_reduction <add>, %0, %cst [0] : vector<8x512xf32> to vector<512xf32>
    %2 = vector.shape_cast %1 : vector<512xf32> to vector<1x512xf32>
    %cst_1 = arith.constant 8.000000e+00 : f32
    %3 = vector.broadcast %cst_1 : f32 to vector<1x512xf32>
    %4 = arith.divf %2, %3 : vector<1x512xf32>
    %5 = vector.broadcast %4 : vector<1x512xf32> to vector<8x512xf32>
    %6 = arith.subf %0, %5 : vector<8x512xf32>
    %7 = arith.mulf %6, %6 : vector<8x512xf32>
    %cst_2 = arith.constant dense<0.000000e+00> : vector<512xf32>
    %8 = vector.multi_reduction <add>, %7, %cst_2 [0] : vector<8x512xf32> to vector<512xf32>
    %9 = vector.shape_cast %8 : vector<512xf32> to vector<1x512xf32>
    %cst_3 = arith.constant 8.000000e+00 : f32
    %10 = vector.broadcast %cst_3 : f32 to vector<1x512xf32>
    %11 = arith.divf %9, %10 : vector<1x512xf32>
    %12 = vector.broadcast %4 : vector<1x512xf32> to vector<8x512xf32>
    %13 = arith.subf %0, %12 : vector<8x512xf32>
    %cst_4 = arith.constant 8.000000e-01 : f32
    %14 = vector.broadcast %cst_4 : f32 to vector<1x512xf32>
    %15 = arith.addf %11, %14 : vector<1x512xf32>
    %16 = math.rsqrt %15 : vector<1x512xf32>
    %17 = vector.broadcast %16 : vector<1x512xf32> to vector<8x512xf32>
    %18 = arith.mulf %13, %17 : vector<8x512xf32>
    %c0_5 = arith.constant 0 : index
    %c0_6 = arith.constant 0 : index
    %19 = vector.load %arg2[%c0_5, %c0_6] : memref<1x512xf32, #tpu.memory_space<vmem>>, vector<1x512xf32>
    %20 = vector.broadcast %19 : vector<1x512xf32> to vector<8x512xf32>
    %21 = arith.mulf %18, %20 : vector<8x512xf32>
    %c0_7 = arith.constant 0 : index
    %c0_8 = arith.constant 0 : index
    %22 = vector.load %arg3[%c0_7, %c0_8] : memref<1x512xf32, #tpu.memory_space<vmem>>, vector<1x512xf32>
    %23 = vector.broadcast %22 : vector<1x512xf32> to vector<8x512xf32>
    %24 = arith.addf %21, %23 : vector<8x512xf32>
    %25 = arith.truncf %24 : vector<8x512xf32> to vector<8x512xbf16>
    %c0_9 = arith.constant 0 : index
    %c0_10 = arith.constant 0 : index
    %26 = vector.load %arg4[%c0_9, %c0_10] : memref<512x1024xbf16, #tpu.memory_space<vmem>>, vector<512x1024xbf16>
    %cst_11 = arith.constant dense<0.000000e+00> : vector<8x1024xf32>
    %27 = tpu.matmul %25, %26, %cst_11 {dimension_numbers = #tpu.dot_dimension_numbers<[1], [0], [0], [1], [0, 0, 1, 1], [], []>} : vector<8x512xbf16>, vector<512x1024xbf16>, vector<8x1024xf32> -> vector<8x1024xf32>
    %cst_12 = arith.constant 2.000000e-01 : f32
    %28 = vector.broadcast %cst_12 : f32 to vector<8x1024xf32>
    %29 = arith.mulf %28, %27 : vector<8x1024xf32>
    %30 = arith.maximumf %27, %29 : vector<8x1024xf32>
    %cst_13 = arith.constant dense<0.000000e+00> : vector<1024xf32>
    %31 = vector.multi_reduction <add>, %30, %cst_13 [0] : vector<8x1024xf32> to vector<1024xf32>
    %32 = vector.shape_cast %31 : vector<1024xf32> to vector<1x1024xf32>
    %cst_14 = arith.constant 8.000000e+00 : f32
    %33 = vector.broadcast %cst_14 : f32 to vector<1x1024xf32>
    %34 = arith.divf %32, %33 : vector<1x1024xf32>
    %35 = vector.broadcast %34 : vector<1x1024xf32> to vector<8x1024xf32>
    %36 = arith.subf %30, %35 : vector<8x1024xf32>
    %37 = arith.mulf %36, %36 : vector<8x1024xf32>
    %cst_15 = arith.constant dense<0.000000e+00> : vector<1024xf32>
    %38 = vector.multi_reduction <add>, %37, %cst_15 [0] : vector<8x1024xf32> to vector<1024xf32>
    %39 = vector.shape_cast %38 : vector<1024xf32> to vector<1x1024xf32>
    %cst_16 = arith.constant 8.000000e+00 : f32
    %40 = vector.broadcast %cst_16 : f32 to vector<1x1024xf32>
    %41 = arith.divf %39, %40 : vector<1x1024xf32>
    %42 = vector.broadcast %34 : vector<1x1024xf32> to vector<8x1024xf32>
    %43 = arith.subf %30, %42 : vector<8x1024xf32>
    %cst_17 = arith.constant 8.000000e-01 : f32
    %44 = vector.broadcast %cst_17 : f32 to vector<1x1024xf32>
    %45 = arith.addf %41, %44 : vector<1x1024xf32>
    %46 = math.rsqrt %45 : vector<1x1024xf32>
    %47 = vector.broadcast %46 : vector<1x1024xf32> to vector<8x1024xf32>
    %48 = arith.mulf %43, %47 : vector<8x1024xf32>
    %c0_18 = arith.constant 0 : index
    %c0_19 = arith.constant 0 : index
    %49 = vector.load %arg5[%c0_18, %c0_19] : memref<1x1024xf32, #tpu.memory_space<vmem>>, vector<1x1024xf32>
    %50 = vector.broadcast %49 : vector<1x1024xf32> to vector<8x1024xf32>
    %51 = arith.mulf %48, %50 : vector<8x1024xf32>
    %c0_20 = arith.constant 0 : index
    %c0_21 = arith.constant 0 : index
    %52 = vector.load %arg6[%c0_20, %c0_21] : memref<1x1024xf32, #tpu.memory_space<vmem>>, vector<1x1024xf32>
    %53 = vector.broadcast %52 : vector<1x1024xf32> to vector<8x1024xf32>
    %54 = arith.addf %51, %53 : vector<8x1024xf32>
    %55 = arith.truncf %54 : vector<8x1024xf32> to vector<8x1024xbf16>
    %c0_22 = arith.constant 0 : index
    %c0_23 = arith.constant 0 : index
    %56 = vector.load %arg7[%c0_22, %c0_23] : memref<1024x3072xbf16, #tpu.memory_space<vmem>>, vector<1024x3072xbf16>
    %cst_24 = arith.constant dense<0.000000e+00> : vector<8x3072xf32>
    %57 = tpu.matmul %55, %56, %cst_24 {dimension_numbers = #tpu.dot_dimension_numbers<[1], [0], [0], [1], [0, 0, 1, 1], [], []>} : vector<8x1024xbf16>, vector<1024x3072xbf16>, vector<8x3072xf32> -> vector<8x3072xf32>
    %58 = math.tanh %57 : vector<8x3072xf32>
    %c0_25 = arith.constant 0 : index
    %c0_26 = arith.constant 0 : index
    %59 = vector.load %arg8[%c0_25, %c0_26] : memref<8x3072xf32, #tpu.memory_space<vmem>>, vector<8x3072xf32>
    tpu.vector_store %arg8[%c0_25, %c0_26], %58 {strides = array<i32>} : memref<8x3072xf32, #tpu.memory_space<vmem>>, vector<8x3072xf32>,
    return
  }
  func.func @transform_0(%arg0: i32) -> (i32, i32) {
    %c0_i32 = arith.constant 0 : i32
    %c0_i32_0 = arith.constant 0 : i32
    %c0_i32_1 = arith.constant 0 : i32
    return %c0_i32, %c0_i32_0 : i32, i32
  }
  func.func @transform_1(%arg0: i32) -> (i32, i32) {
    %c0_i32 = arith.constant 0 : i32
    %c0_i32_0 = arith.constant 0 : i32
    %c0_i32_1 = arith.constant 0 : i32
    return %c0_i32, %c0_i32_0 : i32, i32
  }
  func.func @transform_2(%arg0: i32) -> (i32, i32) {
    %c0_i32 = arith.constant 0 : i32
    %c0_i32_0 = arith.constant 0 : i32
    %c0_i32_1 = arith.constant 0 : i32
    return %c0_i32, %c0_i32_0 : i32, i32
  }
  func.func @transform_3(%arg0: i32) -> (i32, i32) {
    %c0_i32 = arith.constant 0 : i32
    %c0_i32_0 = arith.constant 0 : i32
    %c0_i32_1 = arith.constant 0 : i32
    return %c0_i32, %c0_i32_0 : i32, i32
  }
  func.func @transform_4(%arg0: i32) -> (i32, i32) {
    %c0_i32 = arith.constant 0 : i32
    %c0_i32_0 = arith.constant 0 : i32
    %c0_i32_1 = arith.constant 0 : i32
    return %c0_i32, %c0_i32_0 : i32, i32
  }
  func.func @transform_5(%arg0: i32) -> (i32, i32) {
    %c0_i32 = arith.constant 0 : i32
    %c0_i32_0 = arith.constant 0 : i32
    %c0_i32_1 = arith.constant 0 : i32
    return %c0_i32, %c0_i32_0 : i32, i32
  }
  func.func @transform_6(%arg0: i32) -> (i32, i32) {
    %c0_i32 = arith.constant 0 : i32
    %c0_i32_0 = arith.constant 0 : i32
    return %c0_i32, %arg0 : i32, i32
  }
  func.func @transform_7(%arg0: i32) -> (i32, i32) {
    %c0_i32 = arith.constant 0 : i32
    %c0_i32_0 = arith.constant 0 : i32
    return %c0_i32, %arg0 : i32, i32
  }
}

</mosaic_0001>

<bundles_post_ra>
// kernel: decoder_forward.1
= control target key start
LH: loop header
LB: loop body
LE: loop exit
PB: predicated region body
PF: predicated region fallthrough
CT: control target
= control target key end

     0   :  { %s18723_s0 = inlined_call_operand.hbm [shape: f32[8,512], index: 0, kind: input, shape index: {}]   ;;  %s18724_s1 = inlined_call_operand.hbm [shape: f32[1,512], index: 1, kind: input, shape index: {}]   ;;  %s18725_s2 = inlined_call_operand.hbm [shape: f32[1,512], index: 2, kind: input, shape index: {}]   ;;  %s18726_s3 = inlined_call_operand.hbm [shape: bf16[512,1024], index: 3, kind: input, shape index: {}]   ;;  %s18727_s4 = inlined_call_operand.hbm [shape: f32[1,1024], index: 4, kind: input, shape index: {}]   ;;  %s18728_s5 = inlined_call_operand.hbm [shape: f32[1,1024], index: 5, kind: input, shape index: {}]   ;;  %s18729_s6 = inlined_call_operand.hbm [shape: bf16[1024,12288], index: 6, kind: input, shape index: {}]   ;;  %s18730_s7 = inlined_call_operand.hbm [shape: f32[8,12288], index: 7, kind: output, shape index: {}]  }
   0x1   :  { %18734 = sst [smem:[#allocation21_spill]] %s18723_s0 }
   0x2   :  { %12 = vsyncpa [#allocation3], 0 }
   0x3   :  { %13 = vsyncpa [#allocation6], 0 }
   0x4   :  { %14 = vsyncpa [#allocation9], 0 }
   0x5   :  { %15 = vsyncpa [#allocation12], 0 }
   0x6   :  { %16 = vsyncpa [#allocation4], 0 }
   0x7   :  { %18 = vsyncpa [#allocation4 + $0x1], 0  ;;  %s16523_s24 = smov 0   ;;  %s16525_s25 = smov 0  }
   0x8   :  { %s16527_s26 = smov 0   ;;  %s16529_s27 = smov 0  }
   0x9 LB: > { %s16470_s28 = smov [#allocation2]   ;;  %s16544_s30 = sadd.s32 4294967295, %s16468_s27   ;;  %s16468_s27 = sphi %s16529_s27, %s18758_s27   ;;  %s16464_s26 = sphi %s16527_s26, %s18757_s26   ;;  %s16460_s25 = sphi %s16525_s25, %s18756_s25   ;;  %s16456_s24 = sphi %s16523_s24, %s18755_s24  }
   0xa   : > { %s220_s29 = sshll.u32 %s16470_s28, 4  ;;  %p14026_p0 = scmp.ge.s32.totalorder %s16468_s27, 1  ;;  %s221_s29 = int_to_ptr.vmem [resolvable:$true] %s220_s29 }
   0xb   : > { %p18731_p1 = scmp.eq.s32.totalorder %s16544_s30, 0  ;;  %p207_p2 = scmp.lt.s32.totalorder %s16468_s27, 5 }
   0xc   : > { %s16471_s9 = smov [#allocation5]   ;;  %s16472_s11 = smov [#allocation8]  }
   0xd   : > { %p16549_p3 = pnand %p14026_p0, %p207_p2  ;;  %s231_s10 = sshll.u32 %s16471_s9, 4  ;;  %s16555_s10 = int_to_ptr.vmem [resolvable:$true] %s231_s10 }
   0xe   : > { %s252_s12 = sshll.u32 %s16472_s11, 4  ;;  %s18737_s0 = sld [smem:[#allocation21_spill]]  ;;  %s16563_s12 = int_to_ptr.vmem [resolvable:$true] %s252_s12 }
   0xf   : > { %s18735_s8 = scalar_select %p16549_p3, 1, 0 }
  0x10   : > { %p16030_p4 = pneg %p16549_p3 }
  0x12   : > { %p16559_p5 = pnand %p16030_p4, %p18731_p1 }
  0x14   : > { %s16188_s16 = scalar_lea.hbm %s18737_s0, 512  ;;  %p16573_p7 = pneg %p16559_p5 }
  0x15   : > { %p16189_p6 = scmp.ne.s32.totalorder %s18737_s0, %s16188_s16  ;;  %p16195_p10 = scmp.lt.u32.totalorder %s16188_s16, %s18737_s0 }
  0x17   : > { %p16191_p8 = pnand %p16573_p7, %p16189_p6 }
  0x19   : > { %p16192_p9 = pneg %p16191_p8 }
  0x1b   : > { %p16197_p11 = pnand %p16195_p10, %p16192_p9 }
  0x1d   : > { %16200 = shalt.err (!%p16197_p11)
}
  0x1e   : > { %s16201_s22 = scalar_lea.vmem %s221_s29, 512  ;;  %p16209_p2 = scmp.lt.s32.totalorder %s221_s29, %s221_s29 }
  0x1f   : > { %p16202_p12 = scmp.ne.s32.totalorder %s221_s29, %s16201_s22  ;;  %p16210_p4 = scmp.lt.s32.totalorder %s16201_s22, %s16201_s22 }
  0x21   : > { %p16204_p13 = pnand %p16202_p12, %p16573_p7  ;;  %p16211_p1 = por %p16210_p4, %p16209_p2 }
  0x23   : > { %p16205_p0 = pneg %p16204_p13 }
  0x25   : > { %p16212_p3 = pnand %p16211_p1, %p16205_p0 }
  0x27   : > { %16215 = shalt.err (!%p16212_p3)
}
  0x28   : > { %16033 = dma.hbm_to_vmem [thread:$0]  (!%p16559_p5), %s18737_s0, 512, %s221_s29, [#allocation3]  }
  0x29   : > { %s16216_s14 = scalar_lea.hbm %s18724_s1, 64 }
  0x2a   : > { %p16217_p6 = scmp.ne.s32.totalorder %s18724_s1, %s16216_s14  ;;  %p16223_p1 = scmp.lt.u32.totalorder %s16216_s14, %s18724_s1 }
  0x2c   : > { %p16219_p8 = pnand %p16217_p6, %p16573_p7 }
  0x2e   : > { %p16220_p9 = pneg %p16219_p8 }
  0x30   : > { %p16225_p3 = pnand %p16223_p1, %p16220_p9 }
  0x32   : > { %16228 = shalt.err (!%p16225_p3)
}
  0x33   : > { %s16229_s29 = scalar_lea.vmem %s16555_s10, 64  ;;  %p16237_p13 = scmp.lt.s32.totalorder %s16555_s10, %s16555_s10 }
  0x34   : > { %p16230_p10 = scmp.ne.s32.totalorder %s16555_s10, %s16229_s29  ;;  %p16238_p0 = scmp.lt.s32.totalorder %s16229_s29, %s16229_s29 }
  0x36   : > { %p16232_p11 = pnand %p16230_p10, %p16573_p7  ;;  %p16239_p2 = por %p16238_p0, %p16237_p13 }
  0x38   : > { %p16233_p12 = pneg %p16232_p11 }
  0x3a   : > { %p16240_p4 = pnand %p16239_p2, %p16233_p12 }
  0x3c   : > { %16243 = shalt.err (!%p16240_p4)
}
  0x3d   : > { %16036 = dma.hbm_to_vmem [thread:$0]  (!%p16559_p5), %s18724_s1, 64, %s16555_s10, [#allocation6]  }
  0x3e   : > { %s16244_s28 = scalar_lea.hbm %s18726_s3, 32768 }
  0x3f   : > { %p16245_p6 = scmp.ne.s32.totalorder %s18726_s3, %s16244_s28  ;;  %p16251_p1 = scmp.lt.u32.totalorder %s16244_s28, %s18726_s3 }
  0x41   : > { %p16247_p8 = pnand %p16245_p6, %p16573_p7 }
  0x43   : > { %p16248_p9 = pneg %p16247_p8 }
  0x45   : > { %p16253_p3 = pnand %p16251_p1, %p16248_p9 }
  0x47   : > { %16256 = shalt.err (!%p16253_p3)
}
  0x48   : > { %s16257_s10 = scalar_lea.vmem %s16563_s12, 32768  ;;  %p16265_p13 = scmp.lt.s32.totalorder %s16563_s12, %s16563_s12 }
  0x49   : > { %p16258_p10 = scmp.ne.s32.totalorder %s16563_s12, %s16257_s10  ;;  %p16266_p0 = scmp.lt.s32.totalorder %s16257_s10, %s16257_s10 }
  0x4b   : > { %p16260_p11 = pnand %p16258_p10, %p16573_p7  ;;  %p16267_p2 = por %p16266_p0, %p16265_p13 }
  0x4d   : > { %p16261_p12 = pneg %p16260_p11 }
  0x4f   : > { %p16268_p4 = pnand %p16267_p2, %p16261_p12 }
  0x51   : > { %16271 = shalt.err (!%p16268_p4)
}
  0x52   : > { %s16473_s16 = smov 512   ;;  %s16474_s17 = smov 32  }
  0x53   : > { %16042 = dma.hbm_to_vmem [thread:$0]  (!%p16559_p5), %s18726_s3, 32768, %s16563_s12, [#allocation9], %s16473_s16, %s16473_s16, %s16474_s17  }
  0x54   : > { %s16475_s20 = smov [#allocation7]   ;;  %s16476_s22 = smov [#allocation10]  }
  0x55   : > { %s242_s21 = sshll.u32 %s16475_s20, 4  ;;  %s266_s23 = sshll.u32 %s16476_s22, 4  ;;  %s243_s21 = int_to_ptr.vmem [resolvable:$true] %s242_s21  ;;  %s267_s23 = int_to_ptr.vmem [resolvable:$true] %s266_s23 }
  0x56   : > { %s16272_s11 = scalar_lea.hbm %s18725_s2, 64 }
  0x57   : > { %p16273_p6 = scmp.ne.s32.totalorder %s18725_s2, %s16272_s11  ;;  %p16279_p1 = scmp.lt.u32.totalorder %s16272_s11, %s18725_s2 }
  0x59   : > { %p16275_p8 = pnand %p16273_p6, %p16573_p7 }
  0x5b   : > { %p16276_p9 = pneg %p16275_p8 }
  0x5d   : > { %p16281_p3 = pnand %p16279_p1, %p16276_p9 }
  0x5f   : > { %16284 = shalt.err (!%p16281_p3)
}
  0x60   : > { %s16285_s12 = scalar_lea.vmem %s243_s21, 64  ;;  %p16293_p13 = scmp.lt.s32.totalorder %s243_s21, %s243_s21 }
  0x61   : > { %p16286_p10 = scmp.ne.s32.totalorder %s243_s21, %s16285_s12  ;;  %p16294_p0 = scmp.lt.s32.totalorder %s16285_s12, %s16285_s12 }
  0x63   : > { %p16288_p11 = pnand %p16286_p10, %p16573_p7  ;;  %p16295_p2 = por %p16294_p0, %p16293_p13 }
  0x65   : > { %p16289_p12 = pneg %p16288_p11 }
  0x67   : > { %p16296_p4 = pnand %p16295_p2, %p16289_p12 }
  0x69   : > { %16299 = shalt.err (!%p16296_p4)
}
  0x6a   : > { %16039 = dma.hbm_to_vmem [thread:$0]  (!%p16559_p5), %s18725_s2, 64, %s243_s21, [#allocation6]  }
  0x6b   : > { %s16300_s29 = scalar_lea.hbm %s18727_s4, 128 }
  0x6c   : > { %p16301_p6 = scmp.ne.s32.totalorder %s18727_s4, %s16300_s29  ;;  %p16307_p1 = scmp.lt.u32.totalorder %s16300_s29, %s18727_s4 }
  0x6e   : > { %p16303_p8 = pnand %p16301_p6, %p16573_p7 }
  0x70   : > { %p16304_p9 = pneg %p16303_p8 }
  0x72   : > { %p16309_p3 = pnand %p16307_p1, %p16304_p9 }
  0x74   : > { %16312 = shalt.err (!%p16309_p3)
}
  0x75   : > { %s16313_s11 = scalar_lea.vmem %s267_s23, 128  ;;  %p16321_p13 = scmp.lt.s32.totalorder %s267_s23, %s267_s23 }
  0x76   : > { %p16314_p10 = scmp.ne.s32.totalorder %s267_s23, %s16313_s11  ;;  %p16322_p0 = scmp.lt.s32.totalorder %s16313_s11, %s16313_s11 }
  0x78   : > { %p16316_p11 = pnand %p16314_p10, %p16573_p7  ;;  %p16323_p2 = por %p16322_p0, %p16321_p13 }
  0x7a   : > { %p16317_p12 = pneg %p16316_p11 }
  0x7c   : > { %p16324_p4 = pnand %p16323_p2, %p16317_p12 }
  0x7e   : > { %16327 = shalt.err (!%p16324_p4)
}
  0x7f   : > { %16045 = dma.hbm_to_vmem [thread:$0]  (!%p16559_p5), %s18727_s4, 128, %s267_s23, [#allocation9]  }
  0x80   : > { %s16477_s15 = smov [#allocation11]   ;;  %s16328_s17 = scalar_lea.hbm %s18728_s5, 128 }
  0x81   : > { %s277_s10 = sshll.u32 %s16477_s15, 4  ;;  %p16329_p6 = scmp.ne.s32.totalorder %s18728_s5, %s16328_s17  ;;  %s278_s10 = int_to_ptr.vmem [resolvable:$true] %s277_s10 }
  0x82   : > { %p16335_p1 = scmp.lt.u32.totalorder %s16328_s17, %s18728_s5 }
  0x83   : > { %p16331_p8 = pnand %p16329_p6, %p16573_p7 }
  0x85   : > { %p16332_p9 = pneg %p16331_p8 }
  0x87   : > { %p16337_p3 = pnand %p16335_p1, %p16332_p9 }
  0x89   : > { %16340 = shalt.err (!%p16337_p3)
}
  0x8a   : > { %s16341_s23 = scalar_lea.vmem %s278_s10, 128  ;;  %p16349_p13 = scmp.lt.s32.totalorder %s278_s10, %s278_s10 }
  0x8b   : > { %p16342_p10 = scmp.ne.s32.totalorder %s278_s10, %s16341_s23  ;;  %p16350_p0 = scmp.lt.s32.totalorder %s16341_s23, %s16341_s23 }
  0x8d   : > { %p16344_p11 = pnand %p16342_p10, %p16573_p7  ;;  %p16351_p2 = por %p16350_p0, %p16349_p13 }
  0x8f   : > { %p16345_p12 = pneg %p16344_p11 }
  0x91   : > { %p16352_p4 = pnand %p16351_p2, %p16345_p12 }
  0x93   : > { %16355 = shalt.err (!%p16352_p4)
}
  0x94   : > { %16048 = dma.hbm_to_vmem [thread:$0]  (!%p16559_p5), %s18728_s5, 128, %s278_s10, [#allocation12]  }
  0x95   : > { %s14025_s19 = sadd.s32 4294967294, %s16468_s27   ;;  %s16691_s13 = sadd.s32 1, %s16468_s27  }
  0x96   : > { %s154_s9 = ssub.s32 %s16468_s27, %s16691_s13  ;;  %s157_s11 = sadd.s32 1, %s16464_s26 }
  0x97   : > { %p155_p7 = scmp.eq.s32.totalorder %s154_s9, 0  ;;  %p164_p6 = scmp.ne.s32.totalorder %s16464_s26, %s16460_s25 }
  0x98   : > { %p165_p8 = scmp.eq.s32.totalorder %s16468_s27, 0  ;;  %p170_p9 = scmp.ne.s32.totalorder %s16460_s25, %s16456_s24 }
  0x99   : > { %s16702_s21 = scalar_select %p155_p7, %s16464_s26, %s157_s11  }
  0x9a   : > { %p166_p1 = por %p165_p8, %p164_p6  ;;  %p18739_p3 = scmp.eq.s32.totalorder %s16544_s30, 0 }
  0x9b   : > { %p194_p5 = scmp.eq.s32.totalorder %s16544_s30, 3  ;;  %p200_p11 = scmp.eq.s32.totalorder %s14025_s19, 3 }
  0x9c   : > { %p16706_p10 = por %p18739_p3, %p170_p9  ;;  %p16063_p12 = scmp.lt.s32.totalorder %s16468_s27, 4 }
  0x9d   : > { %s288_s15 = sand.u32 1, %s16468_s27   ;;  %p16713_p13 = por %p194_p5, %p164_p6 }
  0x9e   : > { %p16717_p0 = por %p200_p11, %p170_p9  ;;  %s290_s16 = sand.u32 1, %s16464_s26  }
  0x9f   : > { %s18741_s10 = scalar_select %p16713_p13, 1, 0 }
  0xa0   : > { %s18742_s12 = scalar_select %p16717_p0, 1, 0 }
  0xa1   : > { %s15999_s17 = smul.u32 12288, %s290_s16  ;;  %p16722_p2 = pnand %p16063_p12, %p166_p1 }
  0xa2   : > { %s15837_s18 = smul.u32 1536, %s16468_s27  ;;  %s16734_s19 = scalar_lea.sflag [#allocation3], %s288_s15 }
  0xa3   : > { %s292_s22 = scalar_lea.vmem [#allocation13], %s15999_s17  ;;  %p16358_p7 = pneg %p16722_p2 }
  0xa4   : > { %s16730_s23 = scalar_lea.hbm %s18729_s6, %s15837_s18  ;;  %s299_s28 = sshll.u32 %s292_s22, 4  ;;  %s16732_s28 = int_to_ptr.vmem [resolvable:$true] %s299_s28 }
  0xa5   : > { %s16356_s9 = scalar_lea.hbm %s16730_s23, 196608  ;;  %s16361_s18 = scalar_lea.hbm %s18729_s6, 786432 }
  0xa6   : > { %p16357_p4 = scmp.ne.s32.totalorder %s16730_s23, %s16356_s9  ;;  %p16362_p9 = scmp.lt.u32.totalorder %s16730_s23, %s18729_s6 }
  0xa7   : > { %p16363_p1 = scmp.lt.u32.totalorder %s16361_s18, %s16356_s9  ;;  %p16365_p5 = scmp.lt.u32.totalorder %s16356_s9, %s16730_s23 }
  0xa8   : > { %p16359_p6 = pnand %p16358_p7, %p16357_p4 }
  0xa9   : > { %p16364_p3 = por %p16363_p1, %p16362_p9 }
  0xaa   : > { %p16360_p8 = pneg %p16359_p6 }
  0xab   : > { %p16366_p11 = por %p16365_p5, %p16364_p3 }
  0xad   : > { %p16367_p12 = pnand %p16366_p11, %p16360_p8 }
  0xaf   : > { %16370 = shalt.err (!%p16367_p12)
}
  0xb0   : > { %s16371_s15 = scalar_lea.vmem %s16732_s28, 196608  ;;  %s16478_s17 = smov [#allocation13]  }
  0xb1   : > { %p16372_p4 = scmp.ne.s32.totalorder %s16732_s28, %s16371_s15  ;;  %s16376_s22 = sshll.u32 %s16478_s17, 4  ;;  %s16377_s22 = int_to_ptr.vmem [resolvable:$false] %s16376_s22 }
  0xb2   : > { %s16378_s11 = scalar_lea.vmem %s16377_s22, 393216  ;;  %p16379_p13 = scmp.lt.s32.totalorder %s16732_s28, %s16377_s22 }
  0xb3   : > { %p16374_p6 = pnand %p16372_p4, %p16358_p7  ;;  %p16380_p9 = scmp.lt.s32.totalorder %s16378_s11, %s16371_s15 }
  0xb5   : > { %p16375_p0 = pneg %p16374_p6  ;;  %p16381_p1 = por %p16380_p9, %p16379_p13 }
  0xb7   : > { %p16382_p3 = pnand %p16381_p1, %p16375_p0 }
  0xb9   : > { %16385 = shalt.err (!%p16382_p3)
}
  0xba   : > { %s16479_s9 = smov 6144   ;;  %s16480_s16 = smov 1536  }
  0xbb   : > { %s16481_s18 = smov 96   ;;  %p18744_p7 = scmp.ne.s32.totalorder %s18735_s8, 0 }
  0xbc   : > { %16052 = dma.hbm_to_vmem [thread:$0]  (!%p16722_p2), %s16730_s23, 196608, %s16732_s28, %s16734_s19, %s16479_s9, %s16480_s16, %s16481_s18  }
  0xbd   : > { %311 = sbr.rel (%p18744_p7) target bundleno = 2328 (0x918), region = 48  ;;  %p18745_p8 = scmp.eq.s32.totalorder (!%p18744_p7), %s16544_s30, 0 }
  0xc4   : > { %16431 = dma.done.wait (%p18745_p8), [#allocation3], 512   ;;  %p18746_p5 = pmov %p18745_p8 }
  0xc6   : > { %16433 = vsyncadd (%p18746_p5), [#allocation3], 4294966784  ;;  %p18747_p13 = pmov %p18746_p5 }
  0xc7   : > { %p18748_p0 = pmov %p18746_p5 }
  0xc8   : > { %16435 = dma.done.wait (%p18747_p13), [#allocation6], 128  }
  0xc9   : > { %16437 = vsyncadd (%p18748_p0), [#allocation6], 4294967168  ;;  %p18749_p11 = pmov %p18748_p0 }
  0xca   : > { %p18750_p2 = pmov %p18748_p0 }
  0xcb   : > { %16439 = dma.done.wait (%p18749_p11), [#allocation9], 32896  }
  0xcc   : > { %16441 = vsyncadd (%p18750_p2), [#allocation9], 4294934400  ;;  %p18751_p12 = pmov %p18748_p0 }
  0xcd   : > { %p18752_p4 = pmov %p18748_p0 }
  0xce   : > { %16443 = dma.done.wait (%p18751_p12), [#allocation12], 128  }
  0xcf   : > { %16445 = vsyncadd (%p18752_p4), [#allocation12], 4294967168  ;;  %s337_s8 = sand.u32 1, %s16544_s30   ;;  %s16782_s0 = sand.u32 1, %s16460_s25  }
  0xd0   : > { %s16000_s23 = smul.u32 12288, %s16782_s0  ;;  %s338_s28 = scalar_lea.sflag [#allocation3], %s337_s8 }
  0xd2   : > { %s16785_s19 = scalar_lea.vmem [#allocation13], %s16000_s23 }
  0xd3   : > { %16447 = dma.done.wait (%p16706_p10), %s338_s28, 196608  }
  0xd4   : > { %16449 = vsyncadd (%p16706_p10), %s338_s28, 4294770688  ;;  %v511_v0 = vld [vmem:[#allocation8] sm:$0xff]  ;;  %v512_v2 = vld [vmem:[#allocation8 + $0x8] sm:$0xff]  ;;  %s16001_s14 = smul.u32 192, %s16782_s0  ;;  %p18753_p6 = scmp.ne.s32.totalorder %s18741_s10, 0 }
  0xd5   : > { %v515_v1 = vld [vmem:[#allocation8 + $0x20] sm:$0xff]  ;;  %v516_v4 = vld [vmem:[#allocation8 + $0x28] sm:$0xff]  ;;  %v374_v60 = vld [vmem:[#allocation2] sm:$0xff]  ;;  %s15838_s20 = smul.u32 3072, %s16544_s30  ;;  %s13884_s30 = scalar_lea.sflag [#allocation4], %s16782_s0 }
  0xd6   : > { %v14043_v3 = vcombine.high %v511_v0, %v515_v1  ;;  %v14042_v5 = vcombine.low %v511_v0, %v515_v1  ;;  %v519_v6 = vld [vmem:[#allocation8 + $0x40] sm:$0xff]  ;;  %v14045_v8 = vcombine.high %v512_v2, %v516_v4  ;;  %v14044_v9 = vcombine.low %v512_v2, %v516_v4  ;;  %v520_v11 = vld [vmem:[#allocation8 + $0x48] sm:$0xff]  ;;  %s17535_s29 = scalar_lea.vmem [#allocation14], %s16001_s14  ;;  %s16482_s16 = smov [#allocation14]  }
  0xd7   : > { %v523_v7 = vld [vmem:[#allocation8 + $0x60] sm:$0xff]  ;;  %v524_v12 = vld [vmem:[#allocation8 + $0x68] sm:$0xff]  ;;  %v378_v63 = vrot.slane %v374_v60, 4  ;;  %s13898_s15 = sshll.u32 %s17535_s29, 4  ;;  %s18678_s11 = scalar_lea.hbm %s18730_s7, %s15838_s20  ;;  %s18680_s15 = int_to_ptr.vmem [resolvable:$true] %s13898_s15 }
  0xd8   : > { %v14051_v10 = vcombine.high %v519_v6, %v523_v7  ;;  %v527_v13 = vld [vmem:[#allocation8 + $0x80] sm:$0xff]  ;;  %2047 = vmatprep.subr.bf16.mxu0 %v14043_v3  ;;  %v14053_v14 = vcombine.high %v520_v11, %v524_v12  ;;  %v528_v16 = vld [vmem:[#allocation8 + $0x88] sm:$0xff]  ;;  %2129 = vmatprep.subr.bf16.mxu1 %v14045_v8  ;;  %v14050_v18 = vcombine.low %v519_v6, %v523_v7  ;;  %s16386_s9 = scalar_lea.vmem %s18680_s15, 3072  ;;  %s16390_s18 = sshll.u32 %s16482_s16, 4  ;;  %s16391_s18 = int_to_ptr.vmem [resolvable:$false] %s16390_s18 }
  0xd9   : > { %v531_v15 = vld [vmem:[#allocation8 + $0xa0] sm:$0xff]  ;;  %v532_v17 = vld [vmem:[#allocation8 + $0xa8] sm:$0xff]  ;;  %2048 = vmatpush1.bf16.msra.mxu0 %v14042_v5  ;;  %2130 = vmatpush1.bf16.msra.mxu1 %v14044_v9  ;;  %v14052_v19 = vcombine.low %v520_v11, %v524_v12  ;;  %v379_v6 = vadd.f32 %v378_v63, %v374_v60  ;;  %p16387_p10 = scmp.ne.s32.totalorder %s18680_s15, %s16386_s9  ;;  %s16392_s8 = scalar_lea.vmem %s16391_s18, 6144 }
  0xda   : > { %2049 = vmatprep.subr.bf16.mxu0 %v14051_v10  ;;  %v14059_v20 = vcombine.high %v527_v13, %v531_v15  ;;  %2131 = vmatprep.subr.bf16.mxu1 %v14053_v14  ;;  %v14061_v21 = vcombine.high %v528_v16, %v532_v17  ;;  %v535_v22 = vld [vmem:[#allocation8 + $0xc0] sm:$0xff]  ;;  %v536_v24 = vld [vmem:[#allocation8 + $0xc8] sm:$0xff]  ;;  %v14058_v26 = vcombine.low %v527_v13, %v531_v15  ;;  %p16393_p3 = scmp.lt.s32.totalorder %s18680_s15, %s16391_s18  ;;  %p16394_p7 = scmp.lt.s32.totalorder %s16392_s8, %s16386_s9 }
  0xdb   : > { %v539_v23 = vld [vmem:[#allocation8 + $0xe0] sm:$0xff]  ;;  %v540_v25 = vld [vmem:[#allocation8 + $0xe8] sm:$0xff]  ;;  %v14060_v27 = vcombine.low %v528_v16, %v532_v17  ;;  %v380_v11 = vrot.slane %v379_v6, 2  ;;  %p16388_p9 = pnand %p16387_p10, %p18753_p6 }
  0xdc   : > { %v14067_v28 = vcombine.high %v535_v22, %v539_v23  ;;  %v14069_v29 = vcombine.high %v536_v24, %v540_v25  ;;  %v543_v30 = vld [vmem:[#allocation8 + $0x100] sm:$0xff]  ;;  %v544_v32 = vld [vmem:[#allocation8 + $0x108] sm:$0xff]  ;;  %v14066_v34 = vcombine.low %v535_v22, %v539_v23  ;;  %v14068_v35 = vcombine.low %v536_v24, %v540_v25  ;;  %p16395_p8 = por %p16394_p7, %p16393_p3 }
  0xdd   : > { %2050 = vmatpush1.bf16.msra.mxu0 %v14050_v18  ;;  %2132 = vmatpush1.bf16.msra.mxu1 %v14052_v19  ;;  %v547_v31 = vld [vmem:[#allocation8 + $0x120] sm:$0xff]  ;;  %v548_v33 = vld [vmem:[#allocation8 + $0x128] sm:$0xff]  ;;  %v381_v18 = vadd.f32 %v380_v11, %v379_v6  ;;  %p16389_p1 = pneg %p16388_p9 }
  0xde   : > { %2051 = vmatprep.subr.bf16.mxu0 %v14059_v20  ;;  %2133 = vmatprep.subr.bf16.mxu1 %v14061_v21  ;;  %v14075_v36 = vcombine.high %v543_v30, %v547_v31  ;;  %v14077_v37 = vcombine.high %v544_v32, %v548_v33  ;;  %v551_v38 = vld [vmem:[#allocation8 + $0x140] sm:$0xff]  ;;  %v552_v40 = vld [vmem:[#allocation8 + $0x148] sm:$0xff]  ;;  %v14074_v42 = vcombine.low %v543_v30, %v547_v31 }
  0xdf   : > { %v555_v39 = vld [vmem:[#allocation8 + $0x160] sm:$0xff]  ;;  %v556_v41 = vld [vmem:[#allocation8 + $0x168] sm:$0xff]  ;;  %v14076_v43 = vcombine.low %v544_v32, %v548_v33  ;;  %v382_v23 = vrot.slane %v381_v18, 1  ;;  %p16396_p5 = pnand %p16395_p8, %p16389_p1 }
  0xe0   : > { %v14083_v44 = vcombine.high %v551_v38, %v555_v39  ;;  %v14085_v45 = vcombine.high %v552_v40, %v556_v41  ;;  %v559_v46 = vld [vmem:[#allocation8 + $0x180] sm:$0xff]  ;;  %v560_v48 = vld [vmem:[#allocation8 + $0x188] sm:$0xff]  ;;  %v14082_v50 = vcombine.low %v551_v38, %v555_v39  ;;  %v14084_v51 = vcombine.low %v552_v40, %v556_v41 }
  0xe1   : > { %2052 = vmatpush1.bf16.msra.mxu0 %v14058_v26  ;;  %2134 = vmatpush1.bf16.msra.mxu1 %v14060_v27  ;;  %v563_v47 = vld [vmem:[#allocation8 + $0x1a0] sm:$0xff]  ;;  %v564_v49 = vld [vmem:[#allocation8 + $0x1a8] sm:$0xff]  ;;  %v383_v30 = vadd.f32 %v382_v23, %v381_v18 }
  0xe2   : > { %2053 = vmatprep.subr.bf16.mxu0 %v14067_v28  ;;  %2135 = vmatprep.subr.bf16.mxu1 %v14069_v29  ;;  %v14091_v52 = vcombine.high %v559_v46, %v563_v47  ;;  %v375_v53 = vld [vmem:[#allocation2 + $0x8] sm:$0xff]  ;;  %v14093_v54 = vcombine.high %v560_v48, %v564_v49  ;;  %v568_v58 = vld [vmem:[#allocation8 + $0x1c8] sm:$0xff]  ;;  %v14090_v61 = vcombine.low %v559_v46, %v563_v47 }
  0xe3   : > { %v567_v55 = vld [vmem:[#allocation8 + $0x1c0] sm:$0xff]  ;;  %v384_v57 = vrot.slane %v375_v53, 4  ;;  %v572_v59 = vld [vmem:[#allocation8 + $0x1e8] sm:$0xff]  ;;  %v14092_v0 = vcombine.low %v560_v48, %v564_v49 }
  0xe4   : > { %v571_v56 = vld [vmem:[#allocation8 + $0x1e0] sm:$0xff]  ;;  %v14101_v2 = vcombine.high %v568_v58, %v572_v59  ;;  %v576_v7 = vld [vmem:[#allocation8 + $0x208] sm:$0xff]  ;;  %v14100_v12 = vcombine.low %v568_v58, %v572_v59 }
  0xe5   : > { %2054 = vmatpush1.bf16.msra.mxu0 %v14066_v34  ;;  %2136 = vmatpush1.bf16.msra.mxu1 %v14068_v35  ;;  %v385_v62 = vadd.f32 %v384_v57, %v375_v53  ;;  %v14099_v1 = vcombine.high %v567_v55, %v571_v56  ;;  %v575_v3 = vld [vmem:[#allocation8 + $0x200] sm:$0xff]  ;;  %v580_v8 = vld [vmem:[#allocation8 + $0x228] sm:$0xff]  ;;  %v14098_v9 = vcombine.low %v567_v55, %v571_v56  ;;  %v403_v35 = vmul.f32 0.125, %v383_v30 }
  0xe6   : > { %2055 = vmatprep.subr.bf16.mxu0 %v14075_v36  ;;  %2137 = vmatprep.subr.bf16.mxu1 %v14077_v37  ;;  %v579_v4 = vld [vmem:[#allocation8 + $0x220] sm:$0xff]  ;;  %v14109_v14 = vcombine.high %v576_v7, %v580_v8  ;;  %v584_v19 = vld [vmem:[#allocation8 + $0x248] sm:$0xff]  ;;  %v14108_v24 = vcombine.low %v576_v7, %v580_v8 }
  0xe7   : > { %v386_v5 = vrot.slane %v385_v62, 2  ;;  %v14107_v13 = vcombine.high %v575_v3, %v579_v4  ;;  %v583_v15 = vld [vmem:[#allocation8 + $0x240] sm:$0xff]  ;;  %v588_v20 = vld [vmem:[#allocation8 + $0x268] sm:$0xff]  ;;  %v14106_v21 = vcombine.low %v575_v3, %v579_v4 }
  0xe8   : > { %v587_v16 = vld [vmem:[#allocation8 + $0x260] sm:$0xff]  ;;  %v14117_v26 = vcombine.high %v584_v19, %v588_v20  ;;  %v592_v31 = vld [vmem:[#allocation8 + $0x288] sm:$0xff]  ;;  %v14116_v36 = vcombine.low %v584_v19, %v588_v20 }
  0xe9   : > { %2056 = vmatpush1.bf16.msra.mxu0 %v14074_v42  ;;  %2138 = vmatpush1.bf16.msra.mxu1 %v14076_v43  ;;  %v387_v10 = vadd.f32 %v386_v5, %v385_v62  ;;  %v14115_v25 = vcombine.high %v583_v15, %v587_v16  ;;  %v591_v27 = vld [vmem:[#allocation8 + $0x280] sm:$0xff]  ;;  %v596_v32 = vld [vmem:[#allocation8 + $0x2a8] sm:$0xff]  ;;  %v14114_v33 = vcombine.low %v583_v15, %v587_v16 }
  0xea   : > { %2057 = vmatprep.subr.bf16.mxu0 %v14083_v44  ;;  %2139 = vmatprep.subr.bf16.mxu1 %v14085_v45  ;;  %v595_v28 = vld [vmem:[#allocation8 + $0x2a0] sm:$0xff]  ;;  %v14125_v38 = vcombine.high %v592_v31, %v596_v32  ;;  %v16795_v42 = vsub.f32 %v374_v60, %v403_v35  ;;  %v600_v43 = vld [vmem:[#allocation8 + $0x2c8] sm:$0xff]  ;;  %v14124_v48 = vcombine.low %v592_v31, %v596_v32  ;;  %v16799_v60 = vld [vmem:[#allocation2 + $0x18] sm:$0xff]  ;;  %v457_v31 = vlaneseq }
  0xeb   : > { %v388_v17 = vrot.slane %v387_v10, 1  ;;  %v14123_v37 = vcombine.high %v591_v27, %v595_v28  ;;  %v599_v39 = vld [vmem:[#allocation8 + $0x2c0] sm:$0xff]  ;;  %v604_v44 = vld [vmem:[#allocation8 + $0x2e8] sm:$0xff]  ;;  %v14122_v45 = vcombine.low %v591_v27, %v595_v28  ;;  %v396_v63 = vrot.slane %v16799_v60, 4 }
  0xec   : > { %v603_v40 = vld [vmem:[#allocation8 + $0x2e0] sm:$0xff]  ;;  %v411_v47 = vmul.f32 %v16795_v42, %v16795_v42  ;;  %v608_v55 = vld [vmem:[#allocation8 + $0x308] sm:$0xff] }
  0xed   : > { %2058 = vmatpush1.bf16.msra.mxu0 %v14082_v50  ;;  %2140 = vmatpush1.bf16.msra.mxu1 %v14084_v51  ;;  %v389_v22 = vadd.f32 %v388_v17, %v387_v10  ;;  %v14131_v49 = vcombine.high %v599_v39, %v603_v40  ;;  %v14133_v50 = vcombine.high %v600_v43, %v604_v44  ;;  %v607_v51 = vld [vmem:[#allocation8 + $0x300] sm:$0xff]  ;;  %v612_v56 = vld [vmem:[#allocation8 + $0x328] sm:$0xff] }
  0xee   : > { %2059 = vmatprep.subr.bf16.mxu0 %v14091_v52  ;;  %2141 = vmatprep.subr.bf16.mxu1 %v14093_v54  ;;  %v611_v52 = vld [vmem:[#allocation8 + $0x320] sm:$0xff]  ;;  %v415_v54 = vrot.slane %v411_v47, 4  ;;  %v14130_v57 = vcombine.low %v599_v39, %v603_v40  ;;  %v616_v6 = vld [vmem:[#allocation8 + $0x348] sm:$0xff]  ;;  %v397_v8 = vadd.f32 %v396_v63, %v16799_v60 }
  0xef   : > { %v404_v29 = vmul.f32 0.125, %v389_v22  ;;  %v14139_v62 = vcombine.high %v607_v51, %v611_v52  ;;  %v619_v3 = vld [vmem:[#allocation8 + $0x360] sm:$0xff]  ;;  %v620_v7 = vld [vmem:[#allocation8 + $0x368] sm:$0xff] }
  0xf0   : > { %v416_v59 = vadd.f32 %v415_v54, %v411_v47  ;;  %v398_v15 = vrot.slane %v397_v8, 2  ;;  %v14149_v16 = vcombine.high %v616_v6, %v620_v7  ;;  %v623_v17 = vld [vmem:[#allocation8 + $0x380] sm:$0xff]  ;;  %v624_v22 = vld [vmem:[#allocation8 + $0x388] sm:$0xff] }
  0xf1   : > { %2060 = vmatpush1.bf16.msra.mxu0 %v14090_v61  ;;  %2142 = vmatpush1.bf16.msra.mxu1 %v14092_v0  ;;  %v16791_v34 = vsub.f32 %v375_v53, %v404_v29  ;;  %v14132_v61 = vcombine.low %v600_v43, %v604_v44  ;;  %v16802_v0 = vld [vmem:[#allocation2 + $0x10] sm:$0xff]  ;;  %v627_v18 = vld [vmem:[#allocation8 + $0x3a0] sm:$0xff]  ;;  %v14148_v29 = vcombine.low %v616_v6, %v620_v7  ;;  %v16837_v6 = vld [vmem:[#allocation7] sm:$0xf] }
  0xf2   : > { %2061 = vmatprep.subr.bf16.mxu0 %v14099_v1  ;;  %2143 = vmatprep.subr.bf16.mxu1 %v14101_v2  ;;  %v14141_v1 = vcombine.high %v608_v55, %v612_v56  ;;  %v615_v2 = vld [vmem:[#allocation8 + $0x340] sm:$0xff]  ;;  %v417_v5 = vrot.slane %v416_v59, 2  ;;  %v628_v23 = vld [vmem:[#allocation8 + $0x3a8] sm:$0xff]  ;;  %v14155_v30 = vcombine.high %v623_v17, %v627_v18  ;;  %v14154_v44 = vcombine.low %v623_v17, %v627_v18 }
  0xf3   : > { %v412_v41 = vmul.f32 %v16791_v34, %v16791_v34  ;;  %v631_v35 = vld [vmem:[#allocation8 + $0x3c0] sm:$0xff]  ;;  %v632_v40 = vld [vmem:[#allocation8 + $0x3c8] sm:$0xff]  ;;  %v14156_v47 = vcombine.low %v624_v22, %v628_v23 }
  0xf4   : > { %v418_v11 = vadd.f32 %v417_v5, %v416_v59 }
  0xf5   : > { %2062 = vmatpush1.bf16.msra.mxu0 %v14098_v9  ;;  %2144 = vmatpush1.bf16.msra.mxu1 %v14100_v12  ;;  %v421_v46 = vrot.slane %v412_v41, 4  ;;  %v14138_v9 = vcombine.low %v607_v51, %v611_v52  ;;  %v390_v12 = vrot.slane %v16802_v0, 4  ;;  %v16809_v52 = vld [vmem:[#allocation8 + $0x400] sm:$0xff] }
  0xf6   : > { %2063 = vmatprep.subr.bf16.mxu0 %v14107_v13  ;;  %2145 = vmatprep.subr.bf16.mxu1 %v14109_v14  ;;  %v14140_v13 = vcombine.low %v608_v55, %v612_v56  ;;  %v14147_v14 = vcombine.high %v615_v2, %v619_v3  ;;  %v419_v20 = vrot.slane %v418_v11, 1  ;;  %v16813_v55 = vld [vmem:[#allocation8 + $0x408] sm:$0xff] }
  0xf7   : > { %v422_v53 = vadd.f32 %v421_v46, %v412_v41  ;;  %v636_v41 = vld [vmem:[#allocation8 + $0x3e8] sm:$0xff] }
  0xf8   : > { %v420_v27 = vadd.f32 %v419_v20, %v418_v11  ;;  %v14165_v51 = vcombine.high %v632_v40, %v636_v41  ;;  %v16815_v56 = vld [vmem:[#allocation8 + $0x428] sm:$0xff] }
  0xf9   : > { %2064 = vmatpush1.bf16.msra.mxu0 %v14106_v21  ;;  %2146 = vmatpush1.bf16.msra.mxu1 %v14108_v24  ;;  %v423_v58 = vrot.slane %v422_v53, 2  ;;  %v391_v21 = vadd.f32 %v390_v12, %v16802_v0  ;;  %v399_v24 = vadd.f32 %v398_v15, %v397_v8 }
  0xfa   : > { %2065 = vmatprep.subr.bf16.mxu0 %v14115_v25  ;;  %2147 = vmatprep.subr.bf16.mxu1 %v14117_v26  ;;  %v14146_v25 = vcombine.low %v615_v2, %v619_v3  ;;  %v16827_v2 = vld [vmem:[#allocation5] sm:$0xf] }
  0xfb   : > { %v424_v4 = vadd.f32 %v423_v58, %v422_v53  ;;  %v392_v28 = vrot.slane %v391_v21, 2  ;;  %v400_v32 = vrot.slane %v399_v24, 1  ;;  %v16811_v53 = vld [vmem:[#allocation8 + $0x420] sm:$0xff] }
  0xfc   : > { %v14171_v63 = vcombine.high %v16809_v52, %v16811_v53 }
  0xfd   : > { %2066 = vmatpush1.bf16.msra.mxu0 %v14114_v33  ;;  %2148 = vmatpush1.bf16.msra.mxu1 %v14116_v36  ;;  %v425_v10 = vrot.slane %v424_v4, 1  ;;  %v14157_v33 = vcombine.high %v624_v22, %v628_v23  ;;  %v635_v36 = vld [vmem:[#allocation8 + $0x3e0] sm:$0xff]  ;;  %v393_v39 = vadd.f32 %v392_v28, %v391_v21  ;;  %v401_v43 = vadd.f32 %v400_v32, %v399_v24 }
  0xfe   : > { %2067 = vmatprep.subr.bf16.mxu0 %v14123_v37  ;;  %2149 = vmatprep.subr.bf16.mxu1 %v14125_v38  ;;  %v439_v38 = vmul.f32 0.125, %v420_v27  ;;  %v14162_v58 = vcombine.low %v631_v35, %v635_v36  ;;  %v652_v27 = vld [vmem:[#allocation8 + $0x468] sm:$0xff]  ;;  %v14172_v32 = vcombine.low %v16813_v55, %v16815_v56 }
  0xff   : > { %v426_v19 = vadd.f32 %v425_v10, %v424_v4  ;;  %v394_v46 = vrot.slane %v393_v39, 1 }
 0x101   : > { %2068 = vmatpush1.bf16.msra.mxu0 %v14122_v45  ;;  %2150 = vmatpush1.bf16.msra.mxu1 %v14124_v48  ;;  %v440_v26 = vmul.f32 0.125, %v426_v19  ;;  %v443_v45 = vadd.f32 0.8, %v439_v38  ;;  %v14163_v48 = vcombine.high %v631_v35, %v635_v36  ;;  %v395_v54 = vadd.f32 %v394_v46, %v393_v39  ;;  %v655_v38 = vld [vmem:[#allocation8 + $0x480] sm:$0xff] }
 0x102   : > { %2069 = vmatprep.subr.bf16.mxu0 %v14131_v49  ;;  %2151 = vmatprep.subr.bf16.mxu1 %v14133_v50  ;;  %v16807_v49 = vshrl.u32 %v457_v31, 7  ;;  %v406_v50 = vmul.f32 0.125, %v401_v43  ;;  %v660_v43 = vld [vmem:[#allocation8 + $0x4a8] sm:$0xff] }
 0x103   : > { %v444_v37 = vadd.f32 0.8, %v440_v26  ;;  %v405_v59 = vmul.f32 0.125, %v395_v54  ;;  %v648_v26 = vld [vmem:[#allocation8 + $0x448] sm:$0xff] }
 0x104   : > { %v16835_v4 = vsub.s32 0, %v16807_v49  ;;  %v664_v54 = vld [vmem:[#allocation8 + $0x4c8] sm:$0xff] }
 0x105   : > { %2070 = vmatpush1.bf16.msra.mxu0 %v14130_v57  ;;  %2152 = vmatpush1.bf16.msra.mxu1 %v14132_v61  ;;  %16114 = vrsqrt.f32 %v444_v37  ;;  %v16818_v57 = vsub.f32 %v16799_v60, %v406_v50  ;;  %v14164_v61 = vcombine.low %v632_v40, %v636_v41  ;;  %v14173_v60 = vcombine.high %v16813_v55, %v16815_v56  ;;  %v659_v40 = vld [vmem:[#allocation8 + $0x4a0] sm:$0xff]  ;;  %v656_v41 = vld [vmem:[#allocation8 + $0x488] sm:$0xff] }
 0x106   : > { %2071 = vmatprep.subr.bf16.mxu0 %v14139_v62  ;;  %2153 = vmatprep.subr.bf16.mxu1 %v14141_v1  ;;  %16116 = vrsqrt.f32 %v443_v45  ;;  %v16821_v62 = vsub.s32 1, %v16807_v49  ;;  %v16832_v3 = vsub.f32 %v16802_v0, %v405_v59  ;;  %v486_v19 = vrot.slane %v16837_v6, %v16835_v4  ;;  %v668_v55 = vld [vmem:[#allocation8 + $0x4e8] sm:$0xff] }
 0x107   : > { %v414_v1 = vmul.f32 %v16818_v57, %v16818_v57  ;;  %v14181_v37 = vcombine.high %v648_v26, %v652_v27  ;;  %v14187_v50 = vcombine.high %v655_v38, %v659_v40  ;;  %v14188_v59 = vcombine.low %v656_v41, %v660_v43 }
 0x108   : > { %v413_v7 = vmul.f32 %v16832_v3, %v16832_v3  ;;  %v464_v8 = vrot.slane %v16827_v2, %v16821_v62  ;;  %v490_v12 = vrot.slane %v16837_v6, %v16821_v62 }
 0x109   : > { %2072 = vmatpush1.bf16.msra.mxu0 %v14138_v9  ;;  %2154 = vmatpush1.bf16.msra.mxu1 %v14140_v13  ;;  %v433_v5 = vrot.slane %v414_v1, 4  ;;  %v460_v13 = vrot.slane %v16827_v2, %v16835_v4 }
 0x10a   : > { %2073 = vmatprep.subr.bf16.mxu0 %v14147_v14  ;;  %2155 = vmatprep.subr.bf16.mxu1 %v14149_v16  ;;  %v427_v0 = vrot.slane %v413_v7, 4 }
 0x10b   : > { %v434_v9 = vadd.f32 %v433_v5, %v414_v1  ;;  %v671_v1 = vld [vmem:[#allocation8 + $0x500] sm:$0xff]  ;;  %v672_v5 = vld [vmem:[#allocation8 + $0x508] sm:$0xff] }
 0x10c   : > { %v428_v16 = vadd.f32 %v427_v0, %v413_v7  ;;  %v676_v7 = vld [vmem:[#allocation8 + $0x528] sm:$0xff] }
 0x10d   : > { %2074 = vmatpush1.bf16.msra.mxu0 %v14146_v25  ;;  %2156 = vmatpush1.bf16.msra.mxu1 %v14148_v29  ;;  %v435_v14 = vrot.slane %v434_v9, 2  ;;  %v651_v25 = vld [vmem:[#allocation8 + $0x460] sm:$0xff] }
 0x10e   : > { %2075 = vmatprep.subr.bf16.mxu0 %v14155_v30  ;;  %2157 = vmatprep.subr.bf16.mxu1 %v14157_v33  ;;  %v429_v21 = vrot.slane %v428_v16, 2 }
 0x10f   : > { %v16115_v10 = vpop.eup %16114  ;;  %v436_v20 = vadd.f32 %v435_v14, %v434_v9  ;;  %v683_v14 = vld [vmem:[#allocation8 + $0x560] sm:$0xff] }
 0x110   : > { %v452_v11 = vmul.f32 %v16115_v10, %v16791_v34  ;;  %v16117_v15 = vpop.eup %16116  ;;  %v647_v34 = vld [vmem:[#allocation8 + $0x440] sm:$0xff]  ;;  %v430_v28 = vadd.f32 %v429_v21, %v428_v16  ;;  %v14196_v10 = vcombine.low %v664_v54, %v668_v55  ;;  %v684_v16 = vld [vmem:[#allocation8 + $0x568] sm:$0xff] }
 0x111   : > { %2076 = vmatpush1.bf16.msra.mxu0 %v14154_v44  ;;  %2158 = vmatpush1.bf16.msra.mxu1 %v14156_v47  ;;  %v451_v18 = vmul.f32 %v16117_v15, %v16795_v42  ;;  %v437_v24 = vrot.slane %v436_v20, 1  ;;  %v14170_v42 = vcombine.low %v16809_v52, %v16811_v53  ;;  %v14179_v36 = vcombine.high %v647_v34, %v651_v25  ;;  %v663_v52 = vld [vmem:[#allocation8 + $0x4c0] sm:$0xff]  ;;  %v680_v15 = vld [vmem:[#allocation8 + $0x548] sm:$0xff] }
 0x112   : > { %2077 = vmatprep.subr.bf16.mxu0 %v14163_v48  ;;  %2159 = vmatprep.subr.bf16.mxu1 %v14165_v51  ;;  %v478_v17 = vmul.f32 %v464_v8, %v452_v11  ;;  %v431_v33 = vrot.slane %v430_v28, 1  ;;  %v14178_v46 = vcombine.low %v647_v34, %v651_v25  ;;  %v14180_v47 = vcombine.low %v648_v26, %v652_v27  ;;  %v667_v53 = vld [vmem:[#allocation8 + $0x4e0] sm:$0xff] }
 0x113   : > { %v477_v23 = vmul.f32 %v460_v13, %v451_v18  ;;  %v438_v31 = vadd.f32 %v437_v24, %v436_v20  ;;  %v14189_v51 = vcombine.high %v656_v41, %v660_v43  ;;  %v16864_v8 = vsub.s32 3, %v16807_v49  ;;  %v687_v24 = vld [vmem:[#allocation8 + $0x580] sm:$0xff]  ;;  %v696_v41 = vld [vmem:[#allocation8 + $0x5c8] sm:$0xff] }
 0x114   : > { %v504_v22 = vadd.f32 %v490_v12, %v478_v17  ;;  %v432_v44 = vadd.f32 %v431_v33, %v430_v28  ;;  %v14194_v9 = vcombine.low %v663_v52, %v667_v53  ;;  %v14205_v11 = vcombine.high %v672_v5, %v676_v7  ;;  %v679_v12 = vld [vmem:[#allocation8 + $0x540] sm:$0xff]  ;;  %v688_v28 = vld [vmem:[#allocation8 + $0x588] sm:$0xff] }
 0x115   : > { %2078 = vmatpush1.bf16.msra.mxu0 %v14162_v58  ;;  %2160 = vmatpush1.bf16.msra.mxu1 %v14164_v61  ;;  %v503_v30 = vadd.f32 %v486_v19, %v477_v23  ;;  %v442_v39 = vmul.f32 0.125, %v438_v31  ;;  %v14186_v58 = vcombine.low %v655_v38, %v659_v40  ;;  %v14195_v61 = vcombine.high %v663_v52, %v667_v53  ;;  %v691_v27 = vld [vmem:[#allocation8 + $0x5a0] sm:$0xff]  ;;  %v700_v43 = vld [vmem:[#allocation8 + $0x5e8] sm:$0xff] }
 0x116   : > { %2088 = vmatprep.subr.bf16.mxu0 %v14171_v63  ;;  %2170 = vmatprep.subr.bf16.mxu1 %v14173_v60  ;;  %v16851_v29 = vpack.c.bf16 %v504_v22, %v504_v22  ;;  %v441_v48 = vmul.f32 0.125, %v432_v44  ;;  %v14197_v63 = vcombine.high %v664_v54, %v668_v55  ;;  %v675_v60 = vld [vmem:[#allocation8 + $0x520] sm:$0xff]  ;;  %v16867_v13 = vsub.s32 2, %v16807_v49  ;;  %v708_v52 = vld [vmem:[#allocation8 + $0x628] sm:$0xff] }
 0x117   : > { %v16859_v35 = vpack.c.bf16 %v503_v30, %v503_v30  ;;  %v446_v45 = vadd.f32 0.8, %v442_v39  ;;  %v14203_v0 = vcombine.high %v671_v1, %v675_v60  ;;  %v472_v17 = vrot.slane %v16827_v2, %v16864_v8  ;;  %v692_v30 = vld [vmem:[#allocation8 + $0x5a8] sm:$0xff]  ;;  %v699_v40 = vld [vmem:[#allocation8 + $0x5e0] sm:$0xff] }
 0x118   : > { %2079 = vmatprep.mubr.bf16.mxu0 %v16851_v29  ;;  %2161 = vmatprep.mubr.bf16.mxu1 %v16851_v29  ;;  %v445_v56 = vadd.f32 0.8, %v441_v48  ;;  %v14202_v19 = vcombine.low %v671_v1, %v675_v60  ;;  %v14204_v20 = vcombine.low %v672_v5, %v676_v7  ;;  %v498_v22 = vrot.slane %v16837_v6, %v16864_v8  ;;  %v703_v48 = vld [vmem:[#allocation8 + $0x600] sm:$0xff] }
 0x119   : > { %2080 = vmatmul.mubr.bf16.vlgmr.msra.gmra.mrb[0].mxu0 %v16859_v35  ;;  %2162 = vmatmul.mubr.bf16.vlgmr.msra.gmra.mrb[0].mxu1 %v16859_v35  ;;  %16118 = vrsqrt.f32 %v446_v45  ;;  %v14211_v23 = vcombine.high %v679_v12, %v683_v14  ;;  %v14213_v34 = vcombine.high %v680_v15, %v684_v16  ;;  %v468_v25 = vrot.slane %v16827_v2, %v16867_v13  ;;  %v695_v2 = vld [vmem:[#allocation8 + $0x5c0] sm:$0xff] }
 0x11a   : > { %2089 = vmatpush1.bf16.msra.mxu0 %v14170_v42  ;;  %2171 = vmatpush1.bf16.msra.mxu1 %v14172_v32  ;;  %16120 = vrsqrt.f32 %v445_v56  ;;  %v14210_v32 = vcombine.low %v679_v12, %v683_v14  ;;  %v14212_v33 = vcombine.low %v680_v15, %v684_v16  ;;  %v14221_v38 = vcombine.high %v688_v28, %v692_v30 }
 0x11b   : > { %2090 = vmatprep.subr.bf16.mxu0 %v14179_v36  ;;  %2172 = vmatprep.subr.bf16.mxu1 %v14181_v37  ;;  %v14219_v37 = vcombine.high %v687_v24, %v691_v27  ;;  %v14220_v45 = vcombine.low %v688_v28, %v692_v30  ;;  %v14226_v53 = vcombine.low %v695_v2, %v699_v40 }
 0x11c   : > { %v14228_v54 = vcombine.low %v696_v41, %v700_v43 }
 0x11e   : > { %2091 = vmatpush1.bf16.msra.mxu0 %v14178_v46  ;;  %2173 = vmatpush1.bf16.msra.mxu1 %v14180_v47  ;;  %v14227_v46 = vcombine.high %v695_v2, %v699_v40  ;;  %v14229_v47 = vcombine.high %v696_v41, %v700_v43  ;;  %v751_v40 = vld [vmem:[#allocation8 + $0x780] sm:$0xff]  ;;  %v752_v43 = vld [vmem:[#allocation8 + $0x788] sm:$0xff] }
 0x11f   : > { %2092 = vmatprep.subr.bf16.mxu0 %v14187_v50  ;;  %2174 = vmatprep.subr.bf16.mxu1 %v14189_v51  ;;  %v707_v50 = vld [vmem:[#allocation8 + $0x620] sm:$0xff]  ;;  %v704_v51 = vld [vmem:[#allocation8 + $0x608] sm:$0xff] }
 0x120   : > { %v14235_v55 = vcombine.high %v703_v48, %v707_v50  ;;  %v14237_v56 = vcombine.high %v704_v51, %v708_v52  ;;  %v14234_v1 = vcombine.low %v703_v48, %v707_v50  ;;  %v14236_v60 = vcombine.low %v704_v51, %v708_v52  ;;  %v755_v41 = vld [vmem:[#allocation8 + $0x7a0] sm:$0xff]  ;;  %v760_v52 = vld [vmem:[#allocation8 + $0x7c8] sm:$0xff] }
 0x121   : > { %v759_v50 = vld [vmem:[#allocation8 + $0x7c0] sm:$0xff] }
 0x122   : > { %2093 = vmatpush1.bf16.msra.mxu0 %v14186_v58  ;;  %2175 = vmatpush1.bf16.msra.mxu1 %v14188_v59  ;;  %v711_v58 = vld [vmem:[#allocation8 + $0x640] sm:$0xff] }
 0x123   : > { %2094 = vmatprep.subr.bf16.mxu0 %v14195_v61  ;;  %2176 = vmatprep.subr.bf16.mxu1 %v14197_v63  ;;  %v16119_v18 = vpop.eup %16118  ;;  %v715_v59 = vld [vmem:[#allocation8 + $0x660] sm:$0xff]  ;;  %v712_v61 = vld [vmem:[#allocation8 + $0x648] sm:$0xff] }
 0x124   : > { %v454_v21 = vmul.f32 %v16119_v18, %v16818_v57  ;;  %v16121_v26 = vpop.eup %16120  ;;  %v494_v57 = vrot.slane %v16837_v6, %v16867_v13  ;;  %v14218_v6 = vcombine.low %v687_v24, %v691_v27  ;;  %v716_v63 = vld [vmem:[#allocation8 + $0x668] sm:$0xff]  ;;  %v14243_v5 = vcombine.high %v711_v58, %v715_v59  ;;  %v731_v18 = vld [vmem:[#allocation8 + $0x6e0] sm:$0xff] }
 0x125   : > { %v453_v42 = vmul.f32 %v16121_v26, %v16832_v3  ;;  %v14245_v7 = vcombine.high %v712_v61, %v716_v63  ;;  %v14242_v12 = vcombine.low %v711_v58, %v715_v59  ;;  %v14244_v14 = vcombine.low %v712_v61, %v716_v63  ;;  %v735_v24 = vld [vmem:[#allocation8 + $0x700] sm:$0xff]  ;;  %v736_v26 = vld [vmem:[#allocation8 + $0x708] sm:$0xff]  ;;  %v513_v59 = vld [vmem:[#allocation8 + $0x10] sm:$0xff] }
 0x126   : > { %2095 = vmatpush1.bf16.msra.mxu0 %v14194_v9  ;;  %2177 = vmatpush1.bf16.msra.mxu1 %v14196_v10  ;;  %v480_v31 = vmul.f32 %v472_v17, %v454_v21  ;;  %v719_v9 = vld [vmem:[#allocation8 + $0x680] sm:$0xff]  ;;  %v740_v27 = vld [vmem:[#allocation8 + $0x728] sm:$0xff]  ;;  %v517_v61 = vld [vmem:[#allocation8 + $0x30] sm:$0xff] }
 0x127   : > { %2096 = vmatprep.subr.bf16.mxu0 %v14203_v0  ;;  %2178 = vmatprep.subr.bf16.mxu1 %v14205_v11  ;;  %v479_v39 = vmul.f32 %v468_v25, %v453_v42  ;;  %v723_v10 = vld [vmem:[#allocation8 + $0x6a0] sm:$0xff]  ;;  %v720_v0 = vld [vmem:[#allocation8 + $0x688] sm:$0xff]  ;;  %v14269_v42 = vcombine.high %v736_v26, %v740_v27  ;;  %v514_v63 = vld [vmem:[#allocation8 + $0x18] sm:$0xff] }
 0x128   : > { %v506_v36 = vadd.f32 %v498_v22, %v480_v31  ;;  %v724_v11 = vld [vmem:[#allocation8 + $0x6a8] sm:$0xff]  ;;  %v14251_v15 = vcombine.high %v719_v9, %v723_v10  ;;  %v727_v17 = vld [vmem:[#allocation8 + $0x6c0] sm:$0xff]  ;;  %v14250_v21 = vcombine.low %v719_v9, %v723_v10  ;;  %v521_v10 = vld [vmem:[#allocation8 + $0x50] sm:$0xff] }
 0x129   : > { %v16881_v3 = vadd.f32 %v494_v57, %v479_v39  ;;  %v14253_v16 = vcombine.high %v720_v0, %v724_v11  ;;  %v14252_v22 = vcombine.low %v720_v0, %v724_v11  ;;  %v739_v25 = vld [vmem:[#allocation8 + $0x720] sm:$0xff]  ;;  %v14258_v28 = vcombine.low %v727_v17, %v731_v18  ;;  %v525_v0 = vld [vmem:[#allocation8 + $0x70] sm:$0xff]  ;;  %v522_v11 = vld [vmem:[#allocation8 + $0x58] sm:$0xff] }
 0x12a   : > { %2097 = vmatpush1.bf16.msra.mxu0 %v14202_v19  ;;  %2179 = vmatpush1.bf16.msra.mxu1 %v14204_v20  ;;  %v16879_v44 = vpack.c.bf16 %v506_v36, %v506_v36  ;;  %v728_v19 = vld [vmem:[#allocation8 + $0x6c8] sm:$0xff]  ;;  %v14267_v31 = vcombine.high %v735_v24, %v739_v25  ;;  %v743_v57 = vld [vmem:[#allocation8 + $0x740] sm:$0xff] }
 0x12b   : > { %2098 = vmatprep.subr.bf16.mxu0 %v14211_v23  ;;  %2180 = vmatprep.subr.bf16.mxu1 %v14213_v34  ;;  %v732_v20 = vld [vmem:[#allocation8 + $0x6e8] sm:$0xff]  ;;  %v14259_v23 = vcombine.high %v727_v17, %v731_v18  ;;  %v763_v51 = vld [vmem:[#allocation8 + $0x7e0] sm:$0xff]  ;;  %v14055_v17 = vcombine.high %v521_v10, %v525_v0 }
 0x12c   : > { %2120 = vmatprep.mubr.bf16.mxu0 %v16879_v44  ;;  %2202 = vmatprep.mubr.bf16.mxu1 %v16879_v44  ;;  %v14261_v34 = vcombine.high %v728_v19, %v732_v20  ;;  %v14260_v30 = vcombine.low %v728_v19, %v732_v20  ;;  %v748_v36 = vld [vmem:[#allocation8 + $0x768] sm:$0xff]  ;;  %v529_v19 = vld [vmem:[#allocation8 + $0x90] sm:$0xff] }
 0x12d   : > { %v533_v20 = vld [vmem:[#allocation8 + $0xb0] sm:$0xff] }
 0x12e   : > { %2099 = vmatpush1.bf16.msra.mxu0 %v14210_v32  ;;  %2181 = vmatpush1.bf16.msra.mxu1 %v14212_v33  ;;  %v747_v32 = vld [vmem:[#allocation8 + $0x760] sm:$0xff]  ;;  %v744_v33 = vld [vmem:[#allocation8 + $0x748] sm:$0xff] }
 0x12f   : > { %2100 = vmatprep.subr.bf16.mxu0 %v14219_v37  ;;  %2182 = vmatprep.subr.bf16.mxu1 %v14221_v38  ;;  %v14266_v37 = vcombine.low %v735_v24, %v739_v25  ;;  %v14268_v38 = vcombine.low %v736_v26, %v740_v27  ;;  %v14275_v2 = vcombine.high %v743_v57, %v747_v32  ;;  %v537_v25 = vld [vmem:[#allocation8 + $0xd0] sm:$0xff]  ;;  %v538_v27 = vld [vmem:[#allocation8 + $0xd8] sm:$0xff] }
 0x130   : > { %v14277_v39 = vcombine.high %v744_v33, %v748_v36  ;;  %v541_v26 = vld [vmem:[#allocation8 + $0xf0] sm:$0xff] }
 0x132   : > { %2101 = vmatpush1.bf16.msra.mxu0 %v14218_v6  ;;  %2183 = vmatpush1.bf16.msra.mxu1 %v14220_v45  ;;  %v756_v6 = vld [vmem:[#allocation8 + $0x7a8] sm:$0xff]  ;;  %v14274_v45 = vcombine.low %v743_v57, %v747_v32  ;;  %v545_v32 = vld [vmem:[#allocation8 + $0x110] sm:$0xff] }
 0x133   : > { %2102 = vmatprep.subr.bf16.mxu0 %v14227_v46  ;;  %2184 = vmatprep.subr.bf16.mxu1 %v14229_v47  ;;  %v14276_v46 = vcombine.low %v744_v33, %v748_v36  ;;  %v14283_v47 = vcombine.high %v751_v40, %v755_v41  ;;  %v14285_v48 = vcombine.high %v752_v43, %v756_v6  ;;  %v549_v33 = vld [vmem:[#allocation8 + $0x130] sm:$0xff]  ;;  %v546_v36 = vld [vmem:[#allocation8 + $0x118] sm:$0xff] }
 0x136   : > { %2103 = vmatpush1.bf16.msra.mxu0 %v14226_v53  ;;  %2185 = vmatpush1.bf16.msra.mxu1 %v14228_v54  ;;  %v764_v53 = vld [vmem:[#allocation8 + $0x7e8] sm:$0xff]  ;;  %v14282_v54 = vcombine.low %v751_v40, %v755_v41  ;;  %v553_v40 = vld [vmem:[#allocation8 + $0x150] sm:$0xff] }
 0x137   : > { %2104 = vmatprep.subr.bf16.mxu0 %v14235_v55  ;;  %2186 = vmatprep.subr.bf16.mxu1 %v14237_v56  ;;  %v14284_v55 = vcombine.low %v752_v43, %v756_v6  ;;  %v14291_v56 = vcombine.high %v759_v50, %v763_v51  ;;  %v14293_v58 = vcombine.high %v760_v52, %v764_v53  ;;  %v557_v41 = vld [vmem:[#allocation8 + $0x170] sm:$0xff]  ;;  %v554_v43 = vld [vmem:[#allocation8 + $0x158] sm:$0xff] }
 0x138   : > { %v558_v6 = vld [vmem:[#allocation8 + $0x178] sm:$0xff] }
 0x13a   : > { %2105 = vmatpush1.bf16.msra.mxu0 %v14234_v1  ;;  %2187 = vmatpush1.bf16.msra.mxu1 %v14236_v60  ;;  %v518_v1 = vld [vmem:[#allocation8 + $0x38] sm:$0xff]  ;;  %v14290_v60 = vcombine.low %v759_v50, %v763_v51  ;;  %v561_v50 = vld [vmem:[#allocation8 + $0x190] sm:$0xff] }
 0x13b   : > { %2106 = vmatprep.subr.bf16.mxu0 %v14243_v5  ;;  %2188 = vmatprep.subr.bf16.mxu1 %v14245_v7  ;;  %v14292_v5 = vcombine.low %v760_v52, %v764_v53  ;;  %v14047_v7 = vcombine.high %v513_v59, %v517_v61  ;;  %v14049_v9 = vcombine.high %v514_v63, %v518_v1  ;;  %v565_v51 = vld [vmem:[#allocation8 + $0x1b0] sm:$0xff]  ;;  %v562_v52 = vld [vmem:[#allocation8 + $0x198] sm:$0xff] }
 0x13c   : > { %v566_v53 = vld [vmem:[#allocation8 + $0x1b8] sm:$0xff] }
 0x13e   : > { %2107 = vmatpush1.bf16.msra.mxu0 %v14242_v12  ;;  %2189 = vmatpush1.bf16.msra.mxu1 %v14244_v14  ;;  %v526_v12 = vld [vmem:[#allocation8 + $0x78] sm:$0xff]  ;;  %v16887_v14 = vpack.c.bf16 %v16881_v3, %v16881_v3  ;;  %v14054_v3 = vcombine.low %v521_v10, %v525_v0  ;;  %v577_v10 = vld [vmem:[#allocation8 + $0x210] sm:$0xff] }
 0x13f   : > { %2108 = vmatprep.subr.bf16.mxu0 %v14251_v15  ;;  %2190 = vmatprep.subr.bf16.mxu1 %v14253_v16  ;;  %v14046_v15 = vcombine.low %v513_v59, %v517_v61  ;;  %v14048_v16 = vcombine.low %v514_v63, %v518_v1  ;;  %v14057_v18 = vcombine.high %v522_v11, %v526_v12  ;;  %v569_v59 = vld [vmem:[#allocation8 + $0x1d0] sm:$0xff]  ;;  %v570_v63 = vld [vmem:[#allocation8 + $0x1d8] sm:$0xff] }
 0x140   : > { %v573_v61 = vld [vmem:[#allocation8 + $0x1f0] sm:$0xff]  ;;  %v574_v1 = vld [vmem:[#allocation8 + $0x1f8] sm:$0xff] }
 0x141   : > { %v581_v0 = vld [vmem:[#allocation8 + $0x230] sm:$0xff] }
 0x142   : > { %2109 = vmatpush1.bf16.msra.mxu0 %v14250_v21  ;;  %2191 = vmatpush1.bf16.msra.mxu1 %v14252_v22  ;;  %v530_v21 = vld [vmem:[#allocation8 + $0x98] sm:$0xff] }
 0x143   : > { %2110 = vmatprep.subr.bf16.mxu0 %v14259_v23  ;;  %2192 = vmatprep.subr.bf16.mxu1 %v14261_v34  ;;  %v534_v22 = vld [vmem:[#allocation8 + $0xb8] sm:$0xff]  ;;  %v14056_v23 = vcombine.low %v522_v11, %v526_v12  ;;  %v14063_v34 = vcombine.high %v529_v19, %v533_v20 }
 0x144   : > { %v14065_v24 = vcombine.high %v530_v21, %v534_v22  ;;  %v578_v11 = vld [vmem:[#allocation8 + $0x218] sm:$0xff] }
 0x145   : > { %v582_v12 = vld [vmem:[#allocation8 + $0x238] sm:$0xff] }
 0x146   : > { %2111 = vmatpush1.bf16.msra.mxu0 %v14258_v28  ;;  %2193 = vmatpush1.bf16.msra.mxu1 %v14260_v30  ;;  %v542_v28 = vld [vmem:[#allocation8 + $0xf8] sm:$0xff]  ;;  %v14062_v30 = vcombine.low %v529_v19, %v533_v20  ;;  %v585_v19 = vld [vmem:[#allocation8 + $0x250] sm:$0xff] }
 0x147   : > { %2112 = vmatprep.subr.bf16.mxu0 %v14267_v31  ;;  %2194 = vmatprep.subr.bf16.mxu1 %v14269_v42  ;;  %v14064_v31 = vcombine.low %v530_v21, %v534_v22  ;;  %v14071_v42 = vcombine.high %v537_v25, %v541_v26  ;;  %v14073_v57 = vcombine.high %v538_v27, %v542_v28  ;;  %v589_v20 = vld [vmem:[#allocation8 + $0x270] sm:$0xff]  ;;  %v586_v21 = vld [vmem:[#allocation8 + $0x258] sm:$0xff] }
 0x148   : > { %v590_v22 = vld [vmem:[#allocation8 + $0x278] sm:$0xff] }
 0x14a   : > { %2113 = vmatpush1.bf16.msra.mxu0 %v14266_v37  ;;  %2195 = vmatpush1.bf16.msra.mxu1 %v14268_v38  ;;  %v550_v37 = vld [vmem:[#allocation8 + $0x138] sm:$0xff]  ;;  %v14070_v38 = vcombine.low %v537_v25, %v541_v26  ;;  %v593_v25 = vld [vmem:[#allocation8 + $0x290] sm:$0xff] }
 0x14b   : > { %2114 = vmatprep.subr.bf16.mxu0 %v14275_v2  ;;  %2196 = vmatprep.subr.bf16.mxu1 %v14277_v39  ;;  %v14072_v2 = vcombine.low %v538_v27, %v542_v28  ;;  %v14079_v39 = vcombine.high %v545_v32, %v549_v33  ;;  %v597_v26 = vld [vmem:[#allocation8 + $0x2b0] sm:$0xff]  ;;  %v594_v27 = vld [vmem:[#allocation8 + $0x298] sm:$0xff] }
 0x14c   : > { %v598_v28 = vld [vmem:[#allocation8 + $0x2b8] sm:$0xff] }
 0x14e   : > { %2115 = vmatpush1.bf16.msra.mxu0 %v14274_v45  ;;  %2197 = vmatpush1.bf16.msra.mxu1 %v14276_v46  ;;  %v14078_v45 = vcombine.low %v545_v32, %v549_v33  ;;  %v14080_v46 = vcombine.low %v546_v36, %v550_v37  ;;  %v601_v32 = vld [vmem:[#allocation8 + $0x2d0] sm:$0xff] }
 0x14f   : > { %2116 = vmatprep.subr.bf16.mxu0 %v14283_v47  ;;  %2198 = vmatprep.subr.bf16.mxu1 %v14285_v48  ;;  %v14087_v47 = vcombine.high %v553_v40, %v557_v41  ;;  %v14089_v48 = vcombine.high %v554_v43, %v558_v6  ;;  %v605_v33 = vld [vmem:[#allocation8 + $0x2f0] sm:$0xff] }
 0x152   : > { %2117 = vmatpush1.bf16.msra.mxu0 %v14282_v54  ;;  %2199 = vmatpush1.bf16.msra.mxu1 %v14284_v55  ;;  %v14086_v54 = vcombine.low %v553_v40, %v557_v41  ;;  %v14088_v55 = vcombine.low %v554_v43, %v558_v6  ;;  %v609_v40 = vld [vmem:[#allocation8 + $0x310] sm:$0xff]  ;;  %v610_v43 = vld [vmem:[#allocation8 + $0x318] sm:$0xff] }
 0x153   : > { %2118 = vmatprep.subr.bf16.mxu0 %v14291_v56  ;;  %2200 = vmatprep.subr.bf16.mxu1 %v14293_v58  ;;  %v14095_v56 = vcombine.high %v561_v50, %v565_v51  ;;  %v14097_v58 = vcombine.high %v562_v52, %v566_v53  ;;  %v613_v41 = vld [vmem:[#allocation8 + $0x330] sm:$0xff]  ;;  %v614_v6 = vld [vmem:[#allocation8 + $0x338] sm:$0xff] }
 0x156   : > { %2119 = vmatpush1.bf16.msra.mxu0 %v14290_v60  ;;  %2201 = vmatpush1.bf16.msra.mxu1 %v14292_v5  ;;  %v14094_v60 = vcombine.low %v561_v50, %v565_v51  ;;  %v14096_v5 = vcombine.low %v562_v52, %v566_v53  ;;  %v617_v50 = vld [vmem:[#allocation8 + $0x350] sm:$0xff]  ;;  %v618_v52 = vld [vmem:[#allocation8 + $0x358] sm:$0xff] }
 0x157   : > { %2211 = vmatprep.subr.bf16.mxu0 %v14047_v7  ;;  %2293 = vmatprep.subr.bf16.mxu1 %v14049_v9  ;;  %v14103_v7 = vcombine.high %v569_v59, %v573_v61  ;;  %v14105_v9 = vcombine.high %v570_v63, %v574_v1  ;;  %v621_v51 = vld [vmem:[#allocation8 + $0x370] sm:$0xff]  ;;  %v622_v53 = vld [vmem:[#allocation8 + $0x378] sm:$0xff] }
 0x159   : > { %2121 = vmatmul.mubr.bf16.vlgmr.msra.gmra.mrb[0].mxu0 %v16887_v14  ;;  %2203 = vmatmul.mubr.bf16.vlgmr.msra.gmra.mrb[0].mxu1 %v16887_v14 }
 0x15a   : > { %2212 = vmatpush1.bf16.msra.mxu0 %v14046_v15  ;;  %2294 = vmatpush1.bf16.msra.mxu1 %v14048_v16  ;;  %v14102_v15 = vcombine.low %v569_v59, %v573_v61  ;;  %v14104_v16 = vcombine.low %v570_v63, %v574_v1  ;;  %v625_v59 = vld [vmem:[#allocation8 + $0x390] sm:$0xff]  ;;  %v626_v63 = vld [vmem:[#allocation8 + $0x398] sm:$0xff] }
 0x15b   : > { %2213 = vmatprep.subr.bf16.mxu0 %v14055_v17  ;;  %2295 = vmatprep.subr.bf16.mxu1 %v14057_v18  ;;  %v14111_v17 = vcombine.high %v577_v10, %v581_v0  ;;  %v14113_v18 = vcombine.high %v578_v11, %v582_v12  ;;  %v629_v61 = vld [vmem:[#allocation8 + $0x3b0] sm:$0xff]  ;;  %v630_v1 = vld [vmem:[#allocation8 + $0x3b8] sm:$0xff] }
 0x15c   : > { %2243 = vmatprep.mubr.bf16.mxu0 %v16851_v29  ;;  %2325 = vmatprep.mubr.bf16.mxu1 %v16851_v29  ;;  %v14081_v29 = vcombine.high %v546_v36, %v550_v37  ;;  %v602_v36 = vld [vmem:[#allocation8 + $0x2d8] sm:$0xff] }
 0x15d   : > { %v606_v37 = vld [vmem:[#allocation8 + $0x2f8] sm:$0xff] }
 0x15e   : > { %2214 = vmatpush1.bf16.msra.mxu0 %v14054_v3  ;;  %2296 = vmatpush1.bf16.msra.mxu1 %v14056_v23  ;;  %v14110_v3 = vcombine.low %v577_v10, %v581_v0  ;;  %v14112_v23 = vcombine.low %v578_v11, %v582_v12  ;;  %v633_v10 = vld [vmem:[#allocation8 + $0x3d0] sm:$0xff]  ;;  %v634_v11 = vld [vmem:[#allocation8 + $0x3d8] sm:$0xff] }
 0x15f   : > { %2215 = vmatprep.subr.bf16.mxu0 %v14063_v34  ;;  %2297 = vmatprep.subr.bf16.mxu1 %v14065_v24  ;;  %v14119_v34 = vcombine.high %v585_v19, %v589_v20  ;;  %v14121_v24 = vcombine.high %v586_v21, %v590_v22  ;;  %v637_v0 = vld [vmem:[#allocation8 + $0x3f0] sm:$0xff]  ;;  %v638_v12 = vld [vmem:[#allocation8 + $0x3f8] sm:$0xff] }
 0x162   : > { %2216 = vmatpush1.bf16.msra.mxu0 %v14062_v30  ;;  %2298 = vmatpush1.bf16.msra.mxu1 %v14064_v31  ;;  %v14118_v30 = vcombine.low %v585_v19, %v589_v20  ;;  %v14120_v31 = vcombine.low %v586_v21, %v590_v22  ;;  %v641_v19 = vld [vmem:[#allocation8 + $0x410] sm:$0xff]  ;;  %v642_v21 = vld [vmem:[#allocation8 + $0x418] sm:$0xff] }
 0x163   : > { %2217 = vmatprep.subr.bf16.mxu0 %v14071_v42  ;;  %2299 = vmatprep.subr.bf16.mxu1 %v14073_v57  ;;  %v14127_v42 = vcombine.high %v593_v25, %v597_v26  ;;  %v14129_v57 = vcombine.high %v594_v27, %v598_v28  ;;  %v645_v20 = vld [vmem:[#allocation8 + $0x430] sm:$0xff]  ;;  %v646_v22 = vld [vmem:[#allocation8 + $0x438] sm:$0xff] }
 0x166   : > { %2218 = vmatpush1.bf16.msra.mxu0 %v14070_v38  ;;  %2300 = vmatpush1.bf16.msra.mxu1 %v14072_v2  ;;  %v14126_v38 = vcombine.low %v593_v25, %v597_v26  ;;  %v14128_v2 = vcombine.low %v594_v27, %v598_v28  ;;  %v649_v25 = vld [vmem:[#allocation8 + $0x450] sm:$0xff]  ;;  %v650_v27 = vld [vmem:[#allocation8 + $0x458] sm:$0xff] }
 0x167   : > { %2219 = vmatprep.subr.bf16.mxu0 %v14079_v39  ;;  %2301 = vmatprep.subr.bf16.mxu1 %v14081_v29  ;;  %v14135_v39 = vcombine.high %v601_v32, %v605_v33  ;;  %v14137_v29 = vcombine.high %v602_v36, %v606_v37  ;;  %v653_v26 = vld [vmem:[#allocation8 + $0x470] sm:$0xff]  ;;  %v654_v28 = vld [vmem:[#allocation8 + $0x478] sm:$0xff] }
 0x16a   : > { %2220 = vmatpush1.bf16.msra.mxu0 %v14078_v45  ;;  %2302 = vmatpush1.bf16.msra.mxu1 %v14080_v46  ;;  %v14134_v45 = vcombine.low %v601_v32, %v605_v33  ;;  %v14136_v46 = vcombine.low %v602_v36, %v606_v37  ;;  %v657_v32 = vld [vmem:[#allocation8 + $0x490] sm:$0xff]  ;;  %v658_v36 = vld [vmem:[#allocation8 + $0x498] sm:$0xff] }
 0x16b   : > { %2221 = vmatprep.subr.bf16.mxu0 %v14087_v47  ;;  %2303 = vmatprep.subr.bf16.mxu1 %v14089_v48  ;;  %v14143_v47 = vcombine.high %v609_v40, %v613_v41  ;;  %v14145_v48 = vcombine.high %v610_v43, %v614_v6  ;;  %v661_v33 = vld [vmem:[#allocation8 + $0x4b0] sm:$0xff]  ;;  %v662_v37 = vld [vmem:[#allocation8 + $0x4b8] sm:$0xff] }
 0x16e   : > { %2222 = vmatpush1.bf16.msra.mxu0 %v14086_v54  ;;  %2304 = vmatpush1.bf16.msra.mxu1 %v14088_v55  ;;  %v14142_v54 = vcombine.low %v609_v40, %v613_v41  ;;  %v14144_v55 = vcombine.low %v610_v43, %v614_v6  ;;  %v665_v40 = vld [vmem:[#allocation8 + $0x4d0] sm:$0xff]  ;;  %v666_v43 = vld [vmem:[#allocation8 + $0x4d8] sm:$0xff] }
 0x16f   : > { %2223 = vmatprep.subr.bf16.mxu0 %v14095_v56  ;;  %2305 = vmatprep.subr.bf16.mxu1 %v14097_v58  ;;  %v14151_v56 = vcombine.high %v617_v50, %v621_v51  ;;  %v14153_v58 = vcombine.high %v618_v52, %v622_v53  ;;  %v669_v41 = vld [vmem:[#allocation8 + $0x4f0] sm:$0xff]  ;;  %v670_v6 = vld [vmem:[#allocation8 + $0x4f8] sm:$0xff] }
 0x172   : > { %2224 = vmatpush1.bf16.msra.mxu0 %v14094_v60  ;;  %2306 = vmatpush1.bf16.msra.mxu1 %v14096_v5  ;;  %v14150_v60 = vcombine.low %v617_v50, %v621_v51  ;;  %v14152_v5 = vcombine.low %v618_v52, %v622_v53  ;;  %v677_v50 = vld [vmem:[#allocation8 + $0x530] sm:$0xff]  ;;  %v674_v51 = vld [vmem:[#allocation8 + $0x518] sm:$0xff]  ;;  %v14198_v53 = vcombine.low %v665_v40, %v669_v41 }
 0x173   : > { %2225 = vmatprep.subr.bf16.mxu0 %v14103_v7  ;;  %2307 = vmatprep.subr.bf16.mxu1 %v14105_v9  ;;  %v14159_v7 = vcombine.high %v625_v59, %v629_v61  ;;  %v14161_v9 = vcombine.high %v626_v63, %v630_v1  ;;  %v678_v52 = vld [vmem:[#allocation8 + $0x538] sm:$0xff] }
 0x176   : > { %2226 = vmatpush1.bf16.msra.mxu0 %v14102_v15  ;;  %2308 = vmatpush1.bf16.msra.mxu1 %v14104_v16  ;;  %v14158_v15 = vcombine.low %v625_v59, %v629_v61  ;;  %v14160_v16 = vcombine.low %v626_v63, %v630_v1  ;;  %v682_v59 = vld [vmem:[#allocation8 + $0x558] sm:$0xff]  ;;  %v14208_v1 = vcombine.low %v674_v51, %v678_v52 }
 0x177   : > { %2227 = vmatprep.subr.bf16.mxu0 %v14111_v17  ;;  %2309 = vmatprep.subr.bf16.mxu1 %v14113_v18  ;;  %v14167_v17 = vcombine.high %v633_v10, %v637_v0  ;;  %v14169_v18 = vcombine.high %v634_v11, %v638_v12  ;;  %v686_v61 = vld [vmem:[#allocation8 + $0x578] sm:$0xff] }
 0x17a   : > { %2228 = vmatpush1.bf16.msra.mxu0 %v14110_v3  ;;  %2310 = vmatpush1.bf16.msra.mxu1 %v14112_v23  ;;  %v14166_v3 = vcombine.low %v633_v10, %v637_v0  ;;  %v14168_v23 = vcombine.low %v634_v11, %v638_v12  ;;  %v690_v10 = vld [vmem:[#allocation8 + $0x598] sm:$0xff]  ;;  %v14216_v12 = vcombine.low %v682_v59, %v686_v61 }
 0x17b   : > { %2229 = vmatprep.subr.bf16.mxu0 %v14119_v34  ;;  %2311 = vmatprep.subr.bf16.mxu1 %v14121_v24  ;;  %v14175_v34 = vcombine.high %v641_v19, %v645_v20  ;;  %v14177_v24 = vcombine.high %v642_v21, %v646_v22  ;;  %v694_v0 = vld [vmem:[#allocation8 + $0x5b8] sm:$0xff] }
 0x17e   : > { %2230 = vmatpush1.bf16.msra.mxu0 %v14118_v30  ;;  %2312 = vmatpush1.bf16.msra.mxu1 %v14120_v31  ;;  %v14174_v30 = vcombine.low %v641_v19, %v645_v20  ;;  %v14176_v31 = vcombine.low %v642_v21, %v646_v22  ;;  %v698_v19 = vld [vmem:[#allocation8 + $0x5d8] sm:$0xff]  ;;  %v14224_v22 = vcombine.low %v690_v10, %v694_v0 }
 0x17f   : > { %2231 = vmatprep.subr.bf16.mxu0 %v14127_v42  ;;  %2313 = vmatprep.subr.bf16.mxu1 %v14129_v57  ;;  %v14183_v42 = vcombine.high %v649_v25, %v653_v26  ;;  %v14185_v57 = vcombine.high %v650_v27, %v654_v28  ;;  %v702_v20 = vld [vmem:[#allocation8 + $0x5f8] sm:$0xff] }
 0x182   : > { %2232 = vmatpush1.bf16.msra.mxu0 %v14126_v38  ;;  %2314 = vmatpush1.bf16.msra.mxu1 %v14128_v2  ;;  %v14182_v38 = vcombine.low %v649_v25, %v653_v26  ;;  %v14184_v2 = vcombine.low %v650_v27, %v654_v28  ;;  %v706_v25 = vld [vmem:[#allocation8 + $0x618] sm:$0xff]  ;;  %v14232_v28 = vcombine.low %v698_v19, %v702_v20 }
 0x183   : > { %2233 = vmatprep.subr.bf16.mxu0 %v14135_v39  ;;  %2315 = vmatprep.subr.bf16.mxu1 %v14137_v29  ;;  %v14191_v39 = vcombine.high %v657_v32, %v661_v33  ;;  %v14193_v29 = vcombine.high %v658_v36, %v662_v37  ;;  %v710_v26 = vld [vmem:[#allocation8 + $0x638] sm:$0xff] }
 0x186   : > { %2234 = vmatpush1.bf16.msra.mxu0 %v14134_v45  ;;  %2316 = vmatpush1.bf16.msra.mxu1 %v14136_v46  ;;  %v14190_v45 = vcombine.low %v657_v32, %v661_v33  ;;  %v14199_v46 = vcombine.high %v665_v40, %v669_v41  ;;  %v714_v32 = vld [vmem:[#allocation8 + $0x658] sm:$0xff] }
 0x187   : > { %2235 = vmatprep.subr.bf16.mxu0 %v14143_v47  ;;  %2317 = vmatprep.subr.bf16.mxu1 %v14145_v48  ;;  %v14201_v47 = vcombine.high %v666_v43, %v670_v6  ;;  %v673_v48 = vld [vmem:[#allocation8 + $0x510] sm:$0xff]  ;;  %v718_v33 = vld [vmem:[#allocation8 + $0x678] sm:$0xff] }
 0x188   : > { %v14206_v63 = vcombine.low %v673_v48, %v677_v50  ;;  %v722_v40 = vld [vmem:[#allocation8 + $0x698] sm:$0xff] }
 0x189   : > { %v726_v41 = vld [vmem:[#allocation8 + $0x6b8] sm:$0xff] }
 0x18a   : > { %2236 = vmatpush1.bf16.msra.mxu0 %v14142_v54  ;;  %2318 = vmatpush1.bf16.msra.mxu1 %v14144_v55  ;;  %v14200_v54 = vcombine.low %v666_v43, %v670_v6  ;;  %v14207_v55 = vcombine.high %v673_v48, %v677_v50  ;;  %v14248_v6 = vcombine.low %v714_v32, %v718_v33  ;;  %v730_v48 = vld [vmem:[#allocation8 + $0x6d8] sm:$0xff] }
 0x18b   : > { %2237 = vmatprep.subr.bf16.mxu0 %v14151_v56  ;;  %2319 = vmatprep.subr.bf16.mxu1 %v14153_v58  ;;  %v681_v56 = vld [vmem:[#allocation8 + $0x550] sm:$0xff]  ;;  %v734_v50 = vld [vmem:[#allocation8 + $0x6f8] sm:$0xff] }
 0x18c   : > { %v685_v58 = vld [vmem:[#allocation8 + $0x570] sm:$0xff] }
 0x18d   : > { %v14214_v11 = vcombine.low %v681_v56, %v685_v58 }
 0x18e   : > { %2238 = vmatpush1.bf16.msra.mxu0 %v14150_v60  ;;  %2320 = vmatpush1.bf16.msra.mxu1 %v14152_v5  ;;  %v14215_v60 = vcombine.high %v681_v56, %v685_v58  ;;  %v14217_v5 = vcombine.high %v682_v59, %v686_v61  ;;  %v738_v56 = vld [vmem:[#allocation8 + $0x718] sm:$0xff]  ;;  %v14264_v61 = vcombine.low %v730_v48, %v734_v50 }
 0x18f   : > { %2239 = vmatprep.subr.bf16.mxu0 %v14159_v7  ;;  %2321 = vmatprep.subr.bf16.mxu1 %v14161_v9  ;;  %v689_v7 = vld [vmem:[#allocation8 + $0x590] sm:$0xff]  ;;  %v742_v58 = vld [vmem:[#allocation8 + $0x738] sm:$0xff] }
 0x190   : > { %v693_v9 = vld [vmem:[#allocation8 + $0x5b0] sm:$0xff] }
 0x191   : > { %v14222_v21 = vcombine.low %v689_v7, %v693_v9 }
 0x192   : > { %2240 = vmatpush1.bf16.msra.mxu0 %v14158_v15  ;;  %2322 = vmatpush1.bf16.msra.mxu1 %v14160_v16  ;;  %v14223_v15 = vcombine.high %v689_v7, %v693_v9  ;;  %v14225_v16 = vcombine.high %v690_v10, %v694_v0  ;;  %v746_v7 = vld [vmem:[#allocation8 + $0x758] sm:$0xff]  ;;  %v14272_v0 = vcombine.low %v738_v56, %v742_v58 }
 0x193   : > { %2241 = vmatprep.subr.bf16.mxu0 %v14167_v17  ;;  %2323 = vmatprep.subr.bf16.mxu1 %v14169_v18  ;;  %v697_v17 = vld [vmem:[#allocation8 + $0x5d0] sm:$0xff]  ;;  %v750_v9 = vld [vmem:[#allocation8 + $0x778] sm:$0xff] }
 0x194   : > { %v701_v18 = vld [vmem:[#allocation8 + $0x5f0] sm:$0xff] }
 0x195   : > { %v14230_v27 = vcombine.low %v697_v17, %v701_v18 }
 0x196   : > { %2242 = vmatpush1.bf16.msra.mxu0 %v14166_v3  ;;  %2324 = vmatpush1.bf16.msra.mxu1 %v14168_v23  ;;  %v14231_v3 = vcombine.high %v697_v17, %v701_v18  ;;  %v14233_v23 = vcombine.high %v698_v19, %v702_v20  ;;  %v754_v17 = vld [vmem:[#allocation8 + $0x798] sm:$0xff]  ;;  %v14280_v20 = vcombine.low %v746_v7, %v750_v9 }
 0x197   : > { %2252 = vmatprep.subr.bf16.mxu0 %v14175_v34  ;;  %2334 = vmatprep.subr.bf16.mxu1 %v14177_v24  ;;  %v705_v34 = vld [vmem:[#allocation8 + $0x610] sm:$0xff]  ;;  %v758_v18 = vld [vmem:[#allocation8 + $0x7b8] sm:$0xff] }
 0x198   : > { %v709_v24 = vld [vmem:[#allocation8 + $0x630] sm:$0xff] }
 0x199   : > { %2244 = vmatmul.mubr.bf16.vlgmr.msra.gmra.mrb[4].mxu0 %v16859_v35  ;;  %2326 = vmatmul.mubr.bf16.vlgmr.msra.gmra.mrb[4].mxu1 %v16859_v35  ;;  %v14192_v35 = vcombine.low %v658_v36, %v662_v37  ;;  %v14238_v36 = vcombine.low %v705_v34, %v709_v24  ;;  %v14240_v37 = vcombine.low %v706_v25, %v710_v26 }
 0x19a   : > { %2253 = vmatpush1.bf16.msra.mxu0 %v14174_v30  ;;  %2335 = vmatpush1.bf16.msra.mxu1 %v14176_v31  ;;  %v14239_v30 = vcombine.high %v705_v34, %v709_v24  ;;  %v14241_v31 = vcombine.high %v706_v25, %v710_v26  ;;  %v762_v34 = vld [vmem:[#allocation8 + $0x7d8] sm:$0xff]  ;;  %v14288_v26 = vcombine.low %v754_v17, %v758_v18 }
 0x19b   : > { %2254 = vmatprep.subr.bf16.mxu0 %v14183_v42  ;;  %2336 = vmatprep.subr.bf16.mxu1 %v14185_v57  ;;  %v713_v42 = vld [vmem:[#allocation8 + $0x650] sm:$0xff]  ;;  %v766_v24 = vld [vmem:[#allocation8 + $0x7f8] sm:$0xff] }
 0x19c   : > { %2284 = vmatprep.mubr.bf16.mxu0 %v16879_v44  ;;  %2366 = vmatprep.mubr.bf16.mxu1 %v16879_v44  ;;  %v14209_v44 = vcombine.high %v674_v51, %v678_v52  ;;  %v717_v57 = vld [vmem:[#allocation8 + $0x670] sm:$0xff]  ;;  %v14256_v52 = vcombine.low %v722_v40, %v726_v41 }
 0x19d   : > { %v14246_v43 = vcombine.low %v713_v42, %v717_v57 }
 0x19e   : > { %2255 = vmatpush1.bf16.msra.mxu0 %v14182_v38  ;;  %2337 = vmatpush1.bf16.msra.mxu1 %v14184_v2  ;;  %v14247_v38 = vcombine.high %v713_v42, %v717_v57  ;;  %v14249_v2 = vcombine.high %v714_v32, %v718_v33  ;;  %v2652_v42 = vld [vmem:[%s16785_s19 + $0x8] sm:$0xff]  ;;  %v14296_v33 = vcombine.low %v762_v34, %v766_v24 }
 0x19f   : > { %2256 = vmatprep.subr.bf16.mxu0 %v14191_v39  ;;  %2338 = vmatprep.subr.bf16.mxu1 %v14193_v29  ;;  %v721_v39 = vld [vmem:[#allocation8 + $0x690] sm:$0xff]  ;;  %v2664_v57 = vld [vmem:[%s16785_s19 + $0x68] sm:$0xff] }
 0x1a0   : > { %v725_v29 = vld [vmem:[#allocation8 + $0x6b0] sm:$0xff] }
 0x1a1   : > { %v14254_v51 = vcombine.low %v721_v39, %v725_v29 }
 0x1a2   : > { %2257 = vmatpush1.bf16.msra.mxu0 %v14190_v45  ;;  %2339 = vmatpush1.bf16.msra.mxu1 %v14192_v35  ;;  %v14255_v45 = vcombine.high %v721_v39, %v725_v29  ;;  %v14257_v35 = vcombine.high %v722_v40, %v726_v41  ;;  %v2676_v39 = vld [vmem:[%s16785_s19 + $0xc8] sm:$0xff]  ;;  %v14300_v41 = vcombine.low %v2652_v42, %v2664_v57 }
 0x1a3   : > { %2258 = vmatprep.subr.bf16.mxu0 %v14199_v46  ;;  %2340 = vmatprep.subr.bf16.mxu1 %v14201_v47  ;;  %v729_v46 = vld [vmem:[#allocation8 + $0x6d0] sm:$0xff]  ;;  %v2688_v29 = vld [vmem:[%s16785_s19 + $0x128] sm:$0xff] }
 0x1a4   : > { %v733_v47 = vld [vmem:[#allocation8 + $0x6f0] sm:$0xff] }
 0x1a5   : > { %v14262_v59 = vcombine.low %v729_v46, %v733_v47 }
 0x1a6   : > { %2259 = vmatpush1.bf16.msra.mxu0 %v14198_v53  ;;  %2341 = vmatpush1.bf16.msra.mxu1 %v14200_v54  ;;  %v14263_v53 = vcombine.high %v729_v46, %v733_v47  ;;  %v14265_v54 = vcombine.high %v730_v48, %v734_v50  ;;  %v2700_v46 = vld [vmem:[%s16785_s19 + $0x188] sm:$0xff]  ;;  %v14324_v50 = vcombine.low %v2676_v39, %v2688_v29 }
 0x1a7   : > { %2260 = vmatprep.subr.bf16.mxu0 %v14207_v55  ;;  %2342 = vmatprep.subr.bf16.mxu1 %v14209_v44  ;;  %v737_v55 = vld [vmem:[#allocation8 + $0x710] sm:$0xff]  ;;  %v2712_v47 = vld [vmem:[%s16785_s19 + $0x1e8] sm:$0xff] }
 0x1a8   : > { %v741_v44 = vld [vmem:[#allocation8 + $0x730] sm:$0xff] }
 0x1a9   : > { %v14270_v10 = vcombine.low %v737_v55, %v741_v44 }
 0x1aa   : > { %2261 = vmatpush1.bf16.msra.mxu0 %v14206_v63  ;;  %2343 = vmatpush1.bf16.msra.mxu1 %v14208_v1  ;;  %v14271_v63 = vcombine.high %v737_v55, %v741_v44  ;;  %v14273_v1 = vcombine.high %v738_v56, %v742_v58  ;;  %v2724_v55 = vld [vmem:[%s16785_s19 + $0x248] sm:$0xff] }
 0x1ab   : > { %2262 = vmatprep.subr.bf16.mxu0 %v14215_v60  ;;  %2344 = vmatprep.subr.bf16.mxu1 %v14217_v5  ;;  %v745_v60 = vld [vmem:[#allocation8 + $0x750] sm:$0xff]  ;;  %v2736_v44 = vld [vmem:[%s16785_s19 + $0x2a8] sm:$0xff] }
 0x1ac   : > { %v749_v5 = vld [vmem:[#allocation8 + $0x770] sm:$0xff] }
 0x1ad   : > { %v14278_v19 = vcombine.low %v745_v60, %v749_v5 }
 0x1ae   : > { %2263 = vmatpush1.bf16.msra.mxu0 %v14214_v11  ;;  %2345 = vmatpush1.bf16.msra.mxu1 %v14216_v12  ;;  %v14279_v11 = vcombine.high %v745_v60, %v749_v5  ;;  %v14281_v12 = vcombine.high %v746_v7, %v750_v9  ;;  %v2760_v60 = vld [vmem:[%s16785_s19 + $0x368] sm:$0xff]  ;;  %v14372_v7 = vcombine.low %v2724_v55, %v2736_v44 }
 0x1af   : > { %2264 = vmatprep.subr.bf16.mxu0 %v14223_v15  ;;  %2346 = vmatprep.subr.bf16.mxu1 %v14225_v16  ;;  %v753_v15 = vld [vmem:[#allocation8 + $0x790] sm:$0xff] }
 0x1b0   : > { %v757_v16 = vld [vmem:[#allocation8 + $0x7b0] sm:$0xff] }
 0x1b1   : > { %v14286_v25 = vcombine.low %v753_v15, %v757_v16 }
 0x1b2   : > { %2265 = vmatpush1.bf16.msra.mxu0 %v14222_v21  ;;  %2347 = vmatpush1.bf16.msra.mxu1 %v14224_v22  ;;  %v14287_v21 = vcombine.high %v753_v15, %v757_v16  ;;  %v14289_v22 = vcombine.high %v754_v17, %v758_v18  ;;  %v2784_v15 = vld [vmem:[%s16785_s19 + $0x428] sm:$0xff]  ;;  %v16924_v18 = vld [vmem:[%s16785_s19 + $0xc00] sm:$0xff] }
 0x1b3   : > { %2266 = vmatprep.subr.bf16.mxu0 %v14231_v3  ;;  %2348 = vmatprep.subr.bf16.mxu1 %v14233_v23  ;;  %v761_v3 = vld [vmem:[#allocation8 + $0x7d0] sm:$0xff] }
 0x1b4   : > { %v765_v23 = vld [vmem:[#allocation8 + $0x7f0] sm:$0xff] }
 0x1b5   : > { %v14294_v32 = vcombine.low %v761_v3, %v765_v23 }
 0x1b6   : > { %2267 = vmatpush1.bf16.msra.mxu0 %v14230_v27  ;;  %2349 = vmatpush1.bf16.msra.mxu1 %v14232_v28  ;;  %v14295_v27 = vcombine.high %v761_v3, %v765_v23  ;;  %v14297_v28 = vcombine.high %v762_v34, %v766_v24  ;;  %v2795_v3 = vld [vmem:[%s16785_s19 + $0x480] sm:$0xff]  ;;  %v16934_v23 = vld [vmem:[%s16785_s19 + $0xc68] sm:$0xff] }
 0x1b7   : > { %2268 = vmatprep.subr.bf16.mxu0 %v14239_v30  ;;  %2350 = vmatprep.subr.bf16.mxu1 %v14241_v31  ;;  %v2651_v30 = vld [vmem:[%s16785_s19] sm:$0xff]  ;;  %v2796_v24 = vld [vmem:[%s16785_s19 + $0x488] sm:$0xff] }
 0x1b8   : > { %v2663_v31 = vld [vmem:[%s16785_s19 + $0x60] sm:$0xff] }
 0x1b9   : > { %v14298_v40 = vcombine.low %v2651_v30, %v2663_v31  ;;  %v2807_v34 = vld [vmem:[%s16785_s19 + $0x4e0] sm:$0xff] }
 0x1ba   : > { %2269 = vmatpush1.bf16.msra.mxu0 %v14238_v36  ;;  %2351 = vmatpush1.bf16.msra.mxu1 %v14240_v37  ;;  %v14299_v36 = vcombine.high %v2651_v30, %v2663_v31  ;;  %v14301_v37 = vcombine.high %v2652_v42, %v2664_v57  ;;  %v14443_v31 = vcombine.high %v2795_v3, %v2807_v34  ;;  %v2819_v57 = vld [vmem:[%s16785_s19 + $0x540] sm:$0xff] }
 0x1bb   : > { %2270 = vmatprep.subr.bf16.mxu0 %v14247_v38  ;;  %2352 = vmatprep.subr.bf16.mxu1 %v14249_v2  ;;  %v2675_v38 = vld [vmem:[%s16785_s19 + $0xc0] sm:$0xff] }
 0x1bc   : > { %v2687_v2 = vld [vmem:[%s16785_s19 + $0x120] sm:$0xff] }
 0x1bd   : > { %v14322_v48 = vcombine.low %v2675_v38, %v2687_v2 }
 0x1be   : > { %2271 = vmatpush1.bf16.msra.mxu0 %v14246_v43  ;;  %2353 = vmatpush1.bf16.msra.mxu1 %v14248_v6  ;;  %v14323_v43 = vcombine.high %v2675_v38, %v2687_v2  ;;  %v14325_v6 = vcombine.high %v2676_v39, %v2688_v29  ;;  %v2843_v29 = vld [vmem:[%s16785_s19 + $0x600] sm:$0xff] }
 0x1bf   : > { %2272 = vmatprep.subr.bf16.mxu0 %v14255_v45  ;;  %2354 = vmatprep.subr.bf16.mxu1 %v14257_v35  ;;  %v2699_v45 = vld [vmem:[%s16785_s19 + $0x180] sm:$0xff] }
 0x1c0   : > { %v2711_v35 = vld [vmem:[%s16785_s19 + $0x1e0] sm:$0xff] }
 0x1c1   : > { %v14346_v56 = vcombine.low %v2699_v45, %v2711_v35 }
 0x1c2   : > { %2273 = vmatpush1.bf16.msra.mxu0 %v14254_v51  ;;  %2355 = vmatpush1.bf16.msra.mxu1 %v14256_v52  ;;  %v14347_v51 = vcombine.high %v2699_v45, %v2711_v35  ;;  %v14349_v52 = vcombine.high %v2700_v46, %v2712_v47 }
 0x1c3   : > { %2274 = vmatprep.subr.bf16.mxu0 %v14263_v53  ;;  %2356 = vmatprep.subr.bf16.mxu1 %v14265_v54  ;;  %v2723_v53 = vld [vmem:[%s16785_s19 + $0x240] sm:$0xff] }
 0x1c4   : > { %v2735_v54 = vld [vmem:[%s16785_s19 + $0x2a0] sm:$0xff] }
 0x1c5   : > { %v14371_v58 = vcombine.high %v2723_v53, %v2735_v54  ;;  %v14370_v5 = vcombine.low %v2723_v53, %v2735_v54 }
 0x1c6   : > { %2275 = vmatpush1.bf16.msra.mxu0 %v14262_v59  ;;  %2357 = vmatpush1.bf16.msra.mxu1 %v14264_v61  ;;  %v14373_v59 = vcombine.high %v2724_v55, %v2736_v44  ;;  %v2747_v61 = vld [vmem:[%s16785_s19 + $0x300] sm:$0xff] }
 0x1c7   : > { %2276 = vmatprep.subr.bf16.mxu0 %v14271_v63  ;;  %2358 = vmatprep.subr.bf16.mxu1 %v14273_v1  ;;  %v2759_v63 = vld [vmem:[%s16785_s19 + $0x360] sm:$0xff]  ;;  %v2748_v1 = vld [vmem:[%s16785_s19 + $0x308] sm:$0xff] }
 0x1c8   : > { %v14395_v9 = vcombine.high %v2747_v61, %v2759_v63  ;;  %v14394_v16 = vcombine.low %v2747_v61, %v2759_v63  ;;  %v14396_v17 = vcombine.low %v2748_v1, %v2760_v60  ;;  %v2891_v44 = vld [vmem:[%s16785_s19 + $0x780] sm:$0xff] }
 0x1ca   : > { %2277 = vmatpush1.bf16.msra.mxu0 %v14270_v10  ;;  %2359 = vmatpush1.bf16.msra.mxu1 %v14272_v0  ;;  %v14397_v10 = vcombine.high %v2748_v1, %v2760_v60  ;;  %v2771_v0 = vld [vmem:[%s16785_s19 + $0x3c0] sm:$0xff] }
 0x1cb   : > { %2278 = vmatprep.subr.bf16.mxu0 %v14279_v11  ;;  %2360 = vmatprep.subr.bf16.mxu1 %v14281_v12  ;;  %v2783_v11 = vld [vmem:[%s16785_s19 + $0x420] sm:$0xff]  ;;  %v2772_v12 = vld [vmem:[%s16785_s19 + $0x3c8] sm:$0xff] }
 0x1cc   : > { %v14420_v30 = vcombine.low %v2772_v12, %v2784_v15  ;;  %v2915_v60 = vld [vmem:[%s16785_s19 + $0x840] sm:$0xff] }
 0x1ce   : > { %2279 = vmatpush1.bf16.msra.mxu0 %v14278_v19  ;;  %2361 = vmatpush1.bf16.msra.mxu1 %v14280_v20  ;;  %v16927_v19 = vld [vmem:[%s16785_s19 + $0xc60] sm:$0xff]  ;;  %v16930_v20 = vld [vmem:[%s16785_s19 + $0xc08] sm:$0xff] }
 0x1cf   : > { %2280 = vmatprep.subr.bf16.mxu0 %v14287_v21  ;;  %2362 = vmatprep.subr.bf16.mxu1 %v14289_v22  ;;  %v14419_v21 = vcombine.high %v2771_v0, %v2783_v11  ;;  %v14421_v22 = vcombine.high %v2772_v12, %v2784_v15  ;;  %v2939_v15 = vld [vmem:[%s16785_s19 + $0x900] sm:$0xff] }
 0x1d2   : > { %2281 = vmatpush1.bf16.msra.mxu0 %v14286_v25  ;;  %2363 = vmatpush1.bf16.msra.mxu1 %v14288_v26  ;;  %v2808_v25 = vld [vmem:[%s16785_s19 + $0x4e8] sm:$0xff]  ;;  %v14682_v26 = vcombine.low %v16924_v18, %v16927_v19 }
 0x1d3   : > { %2282 = vmatprep.subr.bf16.mxu0 %v14295_v27  ;;  %2364 = vmatprep.subr.bf16.mxu1 %v14297_v28  ;;  %v14684_v27 = vcombine.low %v16930_v20, %v16934_v23  ;;  %v14418_v28 = vcombine.low %v2771_v0, %v2783_v11  ;;  %v14445_v42 = vcombine.high %v2796_v24, %v2808_v25 }
 0x1d4   : > { %v14444_v38 = vcombine.low %v2796_v24, %v2808_v25  ;;  %v2963_v25 = vld [vmem:[%s16785_s19 + $0x9c0] sm:$0xff] }
 0x1d6   : > { %2283 = vmatpush1.bf16.msra.mxu0 %v14294_v32  ;;  %2365 = vmatpush1.bf16.msra.mxu1 %v14296_v33  ;;  %v2831_v32 = vld [vmem:[%s16785_s19 + $0x5a0] sm:$0xff]  ;;  %v2820_v33 = vld [vmem:[%s16785_s19 + $0x548] sm:$0xff] }
 0x1d7   : > { %11867 = vmatprep.subr.bf16.mxu0 %v14299_v36  ;;  %12031 = vmatprep.subr.bf16.mxu1 %v14301_v37  ;;  %v2832_v36 = vld [vmem:[%s16785_s19 + $0x5a8] sm:$0xff]  ;;  %v14442_v37 = vcombine.low %v2795_v3, %v2807_v34  ;;  %v14467_v2 = vcombine.high %v2819_v57, %v2831_v32 }
 0x1d8   : > { %v14469_v39 = vcombine.high %v2820_v33, %v2832_v36  ;;  %v14468_v45 = vcombine.low %v2820_v33, %v2832_v36  ;;  %v2987_v36 = vld [vmem:[%s16785_s19 + $0xa80] sm:$0xff] }
 0x1d9   : > { %2285 = vmatmul.mubr.bf16.vlgmr.msra.gmra.mrb[4].mxu0 %v16887_v14  ;;  %2367 = vmatmul.mubr.bf16.vlgmr.msra.gmra.mrb[4].mxu1 %v16887_v14  ;;  %v14348_v14 = vcombine.low %v2700_v46, %v2712_v47  ;;  %v2867_v47 = vld [vmem:[%s16785_s19 + $0x6c0] sm:$0xff] }
 0x1da   : > { %11868 = vmatpush1.bf16.msra.mxu0 %v14298_v40  ;;  %12032 = vmatpush1.bf16.msra.mxu1 %v14300_v41  ;;  %v2855_v40 = vld [vmem:[%s16785_s19 + $0x660] sm:$0xff]  ;;  %v2844_v41 = vld [vmem:[%s16785_s19 + $0x608] sm:$0xff] }
 0x1db   : > { %11869 = vmatprep.subr.bf16.mxu0 %v14323_v43  ;;  %12033 = vmatprep.subr.bf16.mxu1 %v14325_v6  ;;  %v2856_v43 = vld [vmem:[%s16785_s19 + $0x668] sm:$0xff]  ;;  %v14466_v6 = vcombine.low %v2819_v57, %v2831_v32  ;;  %v14491_v35 = vcombine.high %v2843_v29, %v2855_v40 }
 0x1dc   : > { %v14493_v46 = vcombine.high %v2844_v41, %v2856_v43  ;;  %v14492_v53 = vcombine.low %v2844_v41, %v2856_v43  ;;  %v3011_v43 = vld [vmem:[%s16785_s19 + $0xb40] sm:$0xff] }
 0x1de   : > { %11870 = vmatpush1.bf16.msra.mxu0 %v14322_v48  ;;  %12034 = vmatpush1.bf16.msra.mxu1 %v14324_v50  ;;  %v2879_v48 = vld [vmem:[%s16785_s19 + $0x720] sm:$0xff]  ;;  %v2868_v50 = vld [vmem:[%s16785_s19 + $0x6c8] sm:$0xff] }
 0x1df   : > { %11871 = vmatprep.subr.bf16.mxu0 %v14347_v51  ;;  %12035 = vmatprep.subr.bf16.mxu1 %v14349_v52  ;;  %v2880_v51 = vld [vmem:[%s16785_s19 + $0x728] sm:$0xff]  ;;  %v14490_v52 = vcombine.low %v2843_v29, %v2855_v40  ;;  %v14515_v54 = vcombine.high %v2867_v47, %v2879_v48 }
 0x1e0   : > { %v14517_v55 = vcombine.high %v2868_v50, %v2880_v51  ;;  %v14516_v61 = vcombine.low %v2868_v50, %v2880_v51 }
 0x1e2   : > { %11872 = vmatpush1.bf16.msra.mxu0 %v14346_v56  ;;  %12036 = vmatpush1.bf16.msra.mxu1 %v14348_v14  ;;  %v2903_v56 = vld [vmem:[%s16785_s19 + $0x7e0] sm:$0xff]  ;;  %v2892_v14 = vld [vmem:[%s16785_s19 + $0x788] sm:$0xff] }
 0x1e3   : > { %11873 = vmatprep.subr.bf16.mxu0 %v14371_v58  ;;  %12037 = vmatprep.subr.bf16.mxu1 %v14373_v59  ;;  %v2904_v58 = vld [vmem:[%s16785_s19 + $0x7e8] sm:$0xff]  ;;  %v14514_v59 = vcombine.low %v2867_v47, %v2879_v48  ;;  %v14539_v63 = vcombine.high %v2891_v44, %v2903_v56 }
 0x1e4   : > { %v14541_v1 = vcombine.high %v2892_v14, %v2904_v58  ;;  %v14540_v0 = vcombine.low %v2892_v14, %v2904_v58 }
 0x1e6   : > { %11874 = vmatpush1.bf16.msra.mxu0 %v14370_v5  ;;  %12038 = vmatpush1.bf16.msra.mxu1 %v14372_v7  ;;  %v2927_v5 = vld [vmem:[%s16785_s19 + $0x8a0] sm:$0xff]  ;;  %v2916_v7 = vld [vmem:[%s16785_s19 + $0x848] sm:$0xff] }
 0x1e7   : > { %11875 = vmatprep.subr.bf16.mxu0 %v14395_v9  ;;  %12039 = vmatprep.subr.bf16.mxu1 %v14397_v10  ;;  %v2928_v9 = vld [vmem:[%s16785_s19 + $0x8a8] sm:$0xff]  ;;  %v14538_v10 = vcombine.low %v2891_v44, %v2903_v56  ;;  %v14563_v11 = vcombine.high %v2915_v60, %v2927_v5 }
 0x1e8   : > { %v14565_v12 = vcombine.high %v2916_v7, %v2928_v9  ;;  %v14564_v3 = vcombine.low %v2916_v7, %v2928_v9 }
 0x1ea   : > { %11876 = vmatpush1.bf16.msra.mxu0 %v14394_v16  ;;  %12040 = vmatpush1.bf16.msra.mxu1 %v14396_v17  ;;  %v2951_v16 = vld [vmem:[%s16785_s19 + $0x960] sm:$0xff]  ;;  %v2940_v17 = vld [vmem:[%s16785_s19 + $0x908] sm:$0xff] }
 0x1eb   : > { %11877 = vmatprep.subr.bf16.mxu0 %v14419_v21  ;;  %12041 = vmatprep.subr.bf16.mxu1 %v14421_v22  ;;  %v2952_v21 = vld [vmem:[%s16785_s19 + $0x968] sm:$0xff]  ;;  %v14562_v22 = vcombine.low %v2915_v60, %v2927_v5  ;;  %v14587_v34 = vcombine.high %v2939_v15, %v2951_v16 }
 0x1ec   : > { %v14589_v24 = vcombine.high %v2940_v17, %v2952_v21  ;;  %v14588_v57 = vcombine.low %v2940_v17, %v2952_v21 }
 0x1ee   : > { %11878 = vmatpush1.bf16.msra.mxu0 %v14418_v28  ;;  %12042 = vmatpush1.bf16.msra.mxu1 %v14420_v30  ;;  %v2975_v28 = vld [vmem:[%s16785_s19 + $0xa20] sm:$0xff]  ;;  %v2964_v30 = vld [vmem:[%s16785_s19 + $0x9c8] sm:$0xff] }
 0x1ef   : > { %11879 = vmatprep.subr.bf16.mxu0 %v14443_v31  ;;  %12043 = vmatprep.subr.bf16.mxu1 %v14445_v42  ;;  %v2976_v31 = vld [vmem:[%s16785_s19 + $0xa28] sm:$0xff]  ;;  %v14586_v42 = vcombine.low %v2939_v15, %v2951_v16  ;;  %v14611_v32 = vcombine.high %v2963_v25, %v2975_v28 }
 0x1f0   : > { %v14613_v33 = vcombine.high %v2964_v30, %v2976_v31  ;;  %v14612_v29 = vcombine.low %v2964_v30, %v2976_v31 }
 0x1f2   : > { %11880 = vmatpush1.bf16.msra.mxu0 %v14442_v37  ;;  %12044 = vmatpush1.bf16.msra.mxu1 %v14444_v38  ;;  %v2999_v37 = vld [vmem:[%s16785_s19 + $0xae0] sm:$0xff]  ;;  %v2988_v38 = vld [vmem:[%s16785_s19 + $0xa88] sm:$0xff] }
 0x1f3   : > { %11881 = vmatprep.subr.bf16.mxu0 %v14467_v2  ;;  %12045 = vmatprep.subr.bf16.mxu1 %v14469_v39  ;;  %v3000_v2 = vld [vmem:[%s16785_s19 + $0xae8] sm:$0xff]  ;;  %v14610_v39 = vcombine.low %v2963_v25, %v2975_v28  ;;  %v14635_v40 = vcombine.high %v2987_v36, %v2999_v37 }
 0x1f4   : > { %v14637_v41 = vcombine.high %v2988_v38, %v3000_v2  ;;  %v14636_v47 = vcombine.low %v2988_v38, %v3000_v2 }
 0x1f6   : > { %11882 = vmatpush1.bf16.msra.mxu0 %v14466_v6  ;;  %12046 = vmatpush1.bf16.msra.mxu1 %v14468_v45  ;;  %v3023_v6 = vld [vmem:[%s16785_s19 + $0xba0] sm:$0xff]  ;;  %v3012_v45 = vld [vmem:[%s16785_s19 + $0xb48] sm:$0xff] }
 0x1f7   : > { %11883 = vmatprep.subr.bf16.mxu0 %v14491_v35  ;;  %12047 = vmatprep.subr.bf16.mxu1 %v14493_v46  ;;  %v3024_v35 = vld [vmem:[%s16785_s19 + $0xba8] sm:$0xff]  ;;  %v14634_v46 = vcombine.low %v2987_v36, %v2999_v37  ;;  %v14659_v48 = vcombine.high %v3011_v43, %v3023_v6  ;;  %v14658_v51 = vcombine.low %v3011_v43, %v3023_v6 }
 0x1f8   : > { %v14661_v50 = vcombine.high %v3012_v45, %v3024_v35 }
 0x1fa   : > { %11884 = vmatpush1.bf16.msra.mxu0 %v14490_v52  ;;  %12048 = vmatpush1.bf16.msra.mxu1 %v14492_v53  ;;  %v14660_v52 = vcombine.low %v3012_v45, %v3024_v35  ;;  %v14683_v53 = vcombine.high %v16924_v18, %v16927_v19  ;;  %v3119_v18 = vld [vmem:[%s16785_s19 + $0xea0] sm:$0xff]  ;;  %v3108_v19 = vld [vmem:[%s16785_s19 + $0xe48] sm:$0xff] }
 0x1fb   : > { %11885 = vmatprep.subr.bf16.mxu0 %v14515_v54  ;;  %12049 = vmatprep.subr.bf16.mxu1 %v14517_v55  ;;  %v14685_v54 = vcombine.high %v16930_v20, %v16934_v23 }
 0x1fe   : > { %11886 = vmatpush1.bf16.msra.mxu0 %v14514_v59  ;;  %12050 = vmatpush1.bf16.msra.mxu1 %v14516_v61 }
 0x1ff   : > { %11887 = vmatprep.subr.bf16.mxu0 %v14539_v63  ;;  %12051 = vmatprep.subr.bf16.mxu1 %v14541_v1 }
 0x202   : > { %11888 = vmatpush1.bf16.msra.mxu0 %v14538_v10  ;;  %12052 = vmatpush1.bf16.msra.mxu1 %v14540_v0 }
 0x203   : > { %11889 = vmatprep.subr.bf16.mxu0 %v14563_v11  ;;  %12053 = vmatprep.subr.bf16.mxu1 %v14565_v12 }
 0x206   : > { %11890 = vmatpush1.bf16.msra.mxu0 %v14562_v22  ;;  %12054 = vmatpush1.bf16.msra.mxu1 %v14564_v3 }
 0x207   : > { %11891 = vmatprep.subr.bf16.mxu0 %v14587_v34  ;;  %12055 = vmatprep.subr.bf16.mxu1 %v14589_v24 }
 0x20a   : > { %11892 = vmatpush1.bf16.msra.mxu0 %v14586_v42  ;;  %12056 = vmatpush1.bf16.msra.mxu1 %v14588_v57 }
 0x20b   : > { %11893 = vmatprep.subr.bf16.mxu0 %v14611_v32  ;;  %12057 = vmatprep.subr.bf16.mxu1 %v14613_v33 }
 0x20e   : > { %11894 = vmatpush1.bf16.msra.mxu0 %v14610_v39  ;;  %12058 = vmatpush1.bf16.msra.mxu1 %v14612_v29 }
 0x20f   : > { %11895 = vmatprep.subr.bf16.mxu0 %v14635_v40  ;;  %12059 = vmatprep.subr.bf16.mxu1 %v14637_v41 }
 0x212   : > { %11896 = vmatpush1.bf16.msra.mxu0 %v14634_v46  ;;  %12060 = vmatpush1.bf16.msra.mxu1 %v14636_v47 }
 0x213   : > { %11897 = vmatprep.subr.bf16.mxu0 %v14659_v48  ;;  %12061 = vmatprep.subr.bf16.mxu1 %v14661_v50 }
 0x216   : > { %11898 = vmatpush1.bf16.msra.mxu0 %v14658_v51  ;;  %12062 = vmatpush1.bf16.msra.mxu1 %v14660_v52 }
 0x217   : > { %11908 = vmatprep.subr.bf16.mxu0 %v14683_v53  ;;  %12072 = vmatprep.subr.bf16.mxu1 %v14685_v54 }
 0x22c   : > { %v2122_v55 = vpop.f32.mrb[0].mxu0  ;;  %v2204_v44 = vpop.f32.mrb[0].mxu1 }
 0x22d   : > { %v2375_v56 = vmul.f32 0.2, %v2122_v55  ;;  %v2124_v14 = vpop.f32.mrb[1].mxu0  ;;  %v2206_v58 = vpop.f32.mrb[1].mxu1  ;;  %v2377_v40 = vmul.f32 0.2, %v2204_v44 }
 0x22e   : > { %v2376_v59 = vmul.f32 0.2, %v2124_v14  ;;  %v2378_v61 = vmul.f32 0.2, %v2206_v58  ;;  %v2126_v63 = vpop.f32.mrb[2].mxu0  ;;  %v2208_v1 = vpop.f32.mrb[2].mxu1 }
 0x22f   : > { %v2383_v60 = vmax.f32 %v2122_v55, %v2375_v56  ;;  %v2127_v5 = vpop.f32.mrb[3].mxu0  ;;  %v2209_v7 = vpop.f32.mrb[3].mxu1  ;;  %v2385_v47 = vmax.f32 %v2204_v44, %v2377_v40 }
 0x230   : > { %v2384_v9 = vmax.f32 %v2124_v14, %v2376_v59  ;;  %v2386_v10 = vmax.f32 %v2206_v58, %v2378_v61 }
 0x231   : > { %v2391_v0 = vrot.slane %v2383_v60, 4  ;;  %v2403_v55 = vrot.slane %v2385_v47, 4 }
 0x232   : > { %v2397_v11 = vrot.slane %v2384_v9, 4  ;;  %v2409_v12 = vrot.slane %v2386_v10, 4 }
 0x233   : > { %v2392_v15 = vadd.f32 %v2391_v0, %v2383_v60  ;;  %v2404_v1 = vadd.f32 %v2403_v55, %v2385_v47 }
 0x234   : > { %v2398_v16 = vadd.f32 %v2397_v11, %v2384_v9  ;;  %v2410_v17 = vadd.f32 %v2409_v12, %v2386_v10 }
 0x235   : > { %v2393_v21 = vrot.slane %v2392_v15, 2  ;;  %v2405_v0 = vrot.slane %v2404_v1, 2 }
 0x236   : > { %v2399_v22 = vrot.slane %v2398_v16, 2  ;;  %v2411_v3 = vrot.slane %v2410_v17, 2 }
 0x237   : > { %v2394_v34 = vadd.f32 %v2393_v21, %v2392_v15  ;;  %v2406_v15 = vadd.f32 %v2405_v0, %v2404_v1  ;;  %v3131_v1 = vld [vmem:[%s16785_s19 + $0xf00] sm:$0xff] }
 0x238   : > { %v2400_v24 = vadd.f32 %v2399_v22, %v2398_v16  ;;  %v2412_v25 = vadd.f32 %v2411_v3, %v2410_v17  ;;  %v16983_v16 = vld [vmem:[#allocation10] sm:$0xff]  ;;  %v16987_v22 = vld [vmem:[#allocation11] sm:$0xff] }
 0x239   : > { %v2395_v28 = vrot.slane %v2394_v34, 1  ;;  %v2407_v17 = vrot.slane %v2406_v15, 1  ;;  %v2548_v21 = vrot.slane %v16983_v16, %v16835_v4 }
 0x23a   : > { %v2401_v30 = vrot.slane %v2400_v24, 1  ;;  %v2413_v31 = vrot.slane %v2412_v25, 1 }
 0x23b   : > { %v2396_v42 = vadd.f32 %v2395_v28, %v2394_v34 }
 0x23c   : > { %v2402_v57 = vadd.f32 %v2401_v30, %v2400_v24  ;;  %v2414_v32 = vadd.f32 %v2413_v31, %v2412_v25  ;;  %v2408_v24 = vadd.f32 %v2407_v17, %v2406_v15  ;;  %v2552_v25 = vrot.slane %v16983_v16, %v16821_v62  ;;  %v3167_v15 = vld [vmem:[%s16785_s19 + $0x1020] sm:$0xff]  ;;  %v3156_v17 = vld [vmem:[%s16785_s19 + $0xfc8] sm:$0xff] }
 0x23d   : > { %v2439_v33 = vmul.f32 0.125, %v2396_v42  ;;  %v2598_v30 = vrot.slane %v16987_v22, %v16835_v4  ;;  %v2560_v31 = vrot.slane %v16983_v16, %v16864_v8 }
 0x23e   : > { %v2440_v36 = vmul.f32 0.125, %v2402_v57  ;;  %v2442_v37 = vmul.f32 0.125, %v2414_v32 }
 0x23f   : > { %v2447_v38 = vsub.f32 %v2383_v60, %v2439_v33  ;;  %v2602_v33 = vrot.slane %v16987_v22, %v16821_v62 }
 0x240   : > { %v2448_v2 = vsub.f32 %v2384_v9, %v2440_v36  ;;  %v2450_v39 = vsub.f32 %v2386_v10, %v2442_v37  ;;  %v2610_v37 = vrot.slane %v16987_v22, %v16864_v8  ;;  %v3083_v8 = vld [vmem:[%s16785_s19 + $0xd80] sm:$0xff] }
 0x241   : > { %v2455_v29 = vmul.f32 %v2447_v38, %v2447_v38 }
 0x242   : > { %v2456_v41 = vmul.f32 %v2448_v2, %v2448_v2  ;;  %v2458_v43 = vmul.f32 %v2450_v39, %v2450_v39 }
 0x243   : > { %v2463_v6 = vrot.slane %v2455_v29, 4 }
 0x244   : > { %v2469_v45 = vrot.slane %v2456_v41, 4  ;;  %v2481_v35 = vrot.slane %v2458_v43, 4 }
 0x245   : > { %v2464_v46 = vadd.f32 %v2463_v6, %v2455_v29 }
 0x246   : > { %v2470_v48 = vadd.f32 %v2469_v45, %v2456_v41  ;;  %v2482_v50 = vadd.f32 %v2481_v35, %v2458_v43  ;;  %v3059_v43 = vld [vmem:[%s16785_s19 + $0xcc0] sm:$0xff]  ;;  %v3072_v35 = vld [vmem:[%s16785_s19 + $0xd28] sm:$0xff] }
 0x247   : > { %v2465_v51 = vrot.slane %v2464_v46, 2  ;;  %v3071_v45 = vld [vmem:[%s16785_s19 + $0xd20] sm:$0xff] }
 0x248   : > { %v2471_v52 = vrot.slane %v2470_v48, 2  ;;  %v2483_v53 = vrot.slane %v2482_v50, 2  ;;  %v14706_v55 = vcombine.low %v3059_v43, %v3071_v45 }
 0x249   : > { %v2466_v54 = vadd.f32 %v2465_v51, %v2464_v46  ;;  %v3095_v51 = vld [vmem:[%s16785_s19 + $0xde0] sm:$0xff] }
 0x24a   : > { %v2472_v56 = vadd.f32 %v2471_v52, %v2470_v48  ;;  %v2484_v14 = vadd.f32 %v2483_v53, %v2482_v50  ;;  %v14707_v48 = vcombine.high %v3059_v43, %v3071_v45  ;;  %v3084_v52 = vld [vmem:[%s16785_s19 + $0xd88] sm:$0xff]  ;;  %v14730_v23 = vcombine.low %v3083_v8, %v3095_v51 }
 0x24b   : > { %v2467_v58 = vrot.slane %v2466_v54, 1  ;;  %v3096_v53 = vld [vmem:[%s16785_s19 + $0xde8] sm:$0xff] }
 0x24c   : > { %v2473_v59 = vrot.slane %v2472_v56, 1  ;;  %v2485_v61 = vrot.slane %v2484_v14, 1 }
 0x24d   : > { %v2468_v63 = vadd.f32 %v2467_v58, %v2466_v54  ;;  %v14733_v58 = vcombine.high %v3084_v52, %v3096_v53 }
 0x24e   : > { %v2474_v60 = vadd.f32 %v2473_v59, %v2472_v56  ;;  %v2486_v5 = vadd.f32 %v2485_v61, %v2484_v14  ;;  %v14731_v14 = vcombine.high %v3083_v8, %v3095_v51  ;;  %v3107_v59 = vld [vmem:[%s16785_s19 + $0xe40] sm:$0xff]  ;;  %v3240_v51 = vld [vmem:[%s16785_s19 + $0x1268] sm:$0xff] }
 0x24f   : > { %v2511_v7 = vmul.f32 0.125, %v2468_v63  ;;  %v14755_v61 = vcombine.high %v3107_v59, %v3119_v18  ;;  %v3227_v8 = vld [vmem:[%s16785_s19 + $0x1200] sm:$0xff] }
 0x250   : > { %v2512_v9 = vmul.f32 0.125, %v2474_v60  ;;  %v2514_v10 = vmul.f32 0.125, %v2486_v5  ;;  %v3143_v60 = vld [vmem:[%s16785_s19 + $0xf60] sm:$0xff]  ;;  %v3132_v5 = vld [vmem:[%s16785_s19 + $0xf08] sm:$0xff] }
 0x251   : > { %v2519_v44 = vadd.f32 0.8, %v2511_v7  ;;  %v3144_v7 = vld [vmem:[%s16785_s19 + $0xf68] sm:$0xff]  ;;  %v14779_v0 = vcombine.high %v3131_v1, %v3143_v60 }
 0x252   : > { %v2520_v11 = vadd.f32 0.8, %v2512_v9  ;;  %v2522_v12 = vadd.f32 0.8, %v2514_v10  ;;  %v14754_v10 = vcombine.low %v3107_v59, %v3119_v18  ;;  %v3252_v59 = vld [vmem:[%s16785_s19 + $0x12c8] sm:$0xff] }
 0x253   : > { %16122 = vrsqrt.f32 %v2519_v44  ;;  %v3264_v18 = vld [vmem:[%s16785_s19 + $0x1328] sm:$0xff] }
 0x254   : > { %16124 = vrsqrt.f32 %v2520_v11  ;;  %v14781_v11 = vcombine.high %v3132_v5, %v3144_v7 }
 0x255   : > { %16126 = vrsqrt.f32 %v2522_v12  ;;  %v3155_v12 = vld [vmem:[%s16785_s19 + $0xfc0] sm:$0xff] }
 0x25d   : > { %v16123_v3 = vpop.eup %16122 }
 0x25e   : > { %v2535_v34 = vmul.f32 %v16123_v3, %v2447_v38  ;;  %v16125_v28 = vpop.eup %16124  ;;  %v2441_v38 = vmul.f32 0.125, %v2408_v24  ;;  %v14780_v24 = vcombine.low %v3132_v5, %v3144_v7 }
 0x25f   : > { %v16127_v42 = vpop.eup %16126  ;;  %v2536_v32 = vmul.f32 %v16125_v28, %v2448_v2  ;;  %v3060_v2 = vld [vmem:[%s16785_s19 + $0xcc8] sm:$0xff] }
 0x260   : > { %v2585_v57 = vmul.f32 %v2548_v21, %v2535_v34  ;;  %v2538_v36 = vmul.f32 %v16127_v42, %v2450_v39  ;;  %v17003_v46 = vsub.f32 %v2385_v47, %v2441_v38  ;;  %v14709_v50 = vcombine.high %v3060_v2, %v3072_v35  ;;  %v3168_v21 = vld [vmem:[%s16785_s19 + $0x1028] sm:$0xff] }
 0x261   : > { %v2586_v29 = vmul.f32 %v2552_v25, %v2536_v32  ;;  %v14708_v56 = vcombine.low %v3060_v2, %v3072_v35  ;;  %v14778_v34 = vcombine.low %v3131_v1, %v3143_v60  ;;  %v14803_v25 = vcombine.high %v3155_v12, %v3167_v15  ;;  %v3180_v42 = vld [vmem:[%s16785_s19 + $0x1088] sm:$0xff] }
 0x262   : > { %v2635_v40 = vadd.f32 %v2598_v30, %v2585_v57  ;;  %v2588_v4 = vmul.f32 %v2560_v31, %v2538_v36  ;;  %v2457_v47 = vmul.f32 %v17003_v46, %v17003_v46  ;;  %v14805_v28 = vcombine.high %v3156_v17, %v3168_v21  ;;  %v3179_v30 = vld [vmem:[%s16785_s19 + $0x1080] sm:$0xff]  ;;  %v3192_v57 = vld [vmem:[%s16785_s19 + $0x10e8] sm:$0xff] }
 0x263   : > { %v2636_v41 = vadd.f32 %v2602_v33, %v2586_v29  ;;  %v3191_v31 = vld [vmem:[%s16785_s19 + $0x10e0] sm:$0xff]  ;;  %v14802_v33 = vcombine.low %v3155_v12, %v3167_v15  ;;  %v14804_v36 = vcombine.low %v3156_v17, %v3168_v21  ;;  %v14829_v38 = vcombine.high %v3180_v42, %v3192_v57  ;;  %v3276_v1 = vld [vmem:[%s16785_s19 + $0x1388] sm:$0xff] }
 0x264   : > { %v2638_v6 = vadd.f32 %v2610_v37, %v2588_v4  ;;  %v17007_v39 = vpack.c.bf16 %v2635_v40, %v2635_v40  ;;  %v2475_v20 = vrot.slane %v2457_v47, 4  ;;  %v14827_v37 = vcombine.high %v3179_v30, %v3191_v31  ;;  %v3203_v29 = vld [vmem:[%s16785_s19 + $0x1140] sm:$0xff]  ;;  %v3204_v4 = vld [vmem:[%s16785_s19 + $0x1148] sm:$0xff] }
 0x265   : > { %v17005_v62 = vpack.c.bf16 %v2636_v41, %v2636_v41  ;;  %v3215_v40 = vld [vmem:[%s16785_s19 + $0x11a0] sm:$0xff]  ;;  %v3216_v41 = vld [vmem:[%s16785_s19 + $0x11a8] sm:$0xff]  ;;  %v14828_v45 = vcombine.low %v3180_v42, %v3192_v57 }
 0x266   : > { %v17015_v54 = vpack.c.bf16 %v2638_v6, %v2638_v6  ;;  %v2476_v9 = vadd.f32 %v2475_v20, %v2457_v47  ;;  %v14826_v6 = vcombine.low %v3179_v30, %v3191_v31  ;;  %v14851_v2 = vcombine.high %v3203_v29, %v3215_v40  ;;  %v3288_v60 = vld [vmem:[%s16785_s19 + $0x13e8] sm:$0xff] }
 0x267   : > { %11899 = vmatprep.mubr.bf16.mxu0 %v17005_v62  ;;  %12063 = vmatprep.mubr.bf16.mxu1 %v17005_v62  ;;  %v14853_v35 = vcombine.high %v3204_v4, %v3216_v41  ;;  %v14852_v47 = vcombine.low %v3204_v4, %v3216_v41  ;;  %v3300_v12 = vld [vmem:[%s16785_s19 + $0x1448] sm:$0xff]  ;;  %v14924_v21 = vcombine.low %v3276_v1, %v3288_v60 }
 0x268   : > { %11900 = vmatmul.mubr.bf16.vlgmr.msra.gmra.mrb[8].mxu0 %v17007_v39  ;;  %12064 = vmatmul.mubr.bf16.vlgmr.msra.gmra.mrb[8].mxu1 %v17007_v39  ;;  %v2477_v3 = vrot.slane %v2476_v9, 2  ;;  %v3312_v15 = vld [vmem:[%s16785_s19 + $0x14a8] sm:$0xff] }
 0x269   : > { %11909 = vmatpush1.bf16.msra.mxu0 %v14682_v26  ;;  %12073 = vmatpush1.bf16.msra.mxu1 %v14684_v27  ;;  %v3120_v26 = vld [vmem:[%s16785_s19 + $0xea8] sm:$0xff]  ;;  %v14732_v27 = vcombine.low %v3084_v52, %v3096_v53  ;;  %v14850_v53 = vcombine.low %v3203_v29, %v3215_v40  ;;  %v14948_v42 = vcombine.low %v3300_v12, %v3312_v15 }
 0x26a   : > { %11940 = vmatprep.mubr.bf16.mxu0 %v17015_v54  ;;  %12104 = vmatprep.mubr.bf16.mxu1 %v17015_v54  ;;  %v14757_v63 = vcombine.high %v3108_v19, %v3120_v26  ;;  %v14756_v44 = vcombine.low %v3108_v19, %v3120_v26  ;;  %v2478_v32 = vadd.f32 %v2477_v3, %v2476_v9  ;;  %v3336_v30 = vld [vmem:[%s16785_s19 + $0x1568] sm:$0xff] }
 0x26b   : > { %11910 = vmatprep.subr.bf16.mxu0 %v14707_v48  ;;  %12074 = vmatprep.subr.bf16.mxu1 %v14709_v50  ;;  %v3239_v48 = vld [vmem:[%s16785_s19 + $0x1260] sm:$0xff]  ;;  %v3228_v50 = vld [vmem:[%s16785_s19 + $0x1208] sm:$0xff]  ;;  %v14900_v9 = vcombine.low %v3252_v59, %v3264_v18 }
 0x26c   : > { %v2479_v43 = vrot.slane %v2478_v32, 1  ;;  %v14874_v26 = vcombine.low %v3227_v8, %v3239_v48  ;;  %v14876_v20 = vcombine.low %v3228_v50, %v3240_v51 }
 0x26d   : > { %11911 = vmatpush1.bf16.msra.mxu0 %v14706_v55  ;;  %12075 = vmatpush1.bf16.msra.mxu1 %v14708_v56  ;;  %v14875_v55 = vcombine.high %v3227_v8, %v3239_v48  ;;  %v14877_v56 = vcombine.high %v3228_v50, %v3240_v51  ;;  %v2556_v8 = vrot.slane %v16983_v16, %v16867_v13 }
 0x26e   : > { %11912 = vmatprep.subr.bf16.mxu0 %v14731_v14  ;;  %12076 = vmatprep.subr.bf16.mxu1 %v14733_v58  ;;  %v2480_v52 = vadd.f32 %v2479_v43, %v2478_v32  ;;  %v3251_v14 = vld [vmem:[%s16785_s19 + $0x12c0] sm:$0xff] }
 0x26f   : > { %v3263_v58 = vld [vmem:[%s16785_s19 + $0x1320] sm:$0xff] }
 0x270   : > { %v2513_v19 = vmul.f32 0.125, %v2480_v52  ;;  %v14898_v7 = vcombine.low %v3251_v14, %v3263_v58  ;;  %v3371_v43 = vld [vmem:[%s16785_s19 + $0x1680] sm:$0xff] }
 0x271   : > { %11913 = vmatpush1.bf16.msra.mxu0 %v14730_v23  ;;  %12077 = vmatpush1.bf16.msra.mxu1 %v14732_v27  ;;  %v14899_v23 = vcombine.high %v3251_v14, %v3263_v58  ;;  %v14901_v27 = vcombine.high %v3252_v59, %v3264_v18  ;;  %v3408_v14 = vld [vmem:[%s16785_s19 + $0x17a8] sm:$0xff]  ;;  %v2606_v58 = vrot.slane %v16987_v22, %v16867_v13 }
 0x272   : > { %11914 = vmatprep.subr.bf16.mxu0 %v14755_v61  ;;  %12078 = vmatprep.subr.bf16.mxu1 %v14757_v63  ;;  %v3275_v61 = vld [vmem:[%s16785_s19 + $0x1380] sm:$0xff]  ;;  %v2521_v5 = vadd.f32 0.8, %v2513_v19 }
 0x273   : > { %v3287_v63 = vld [vmem:[%s16785_s19 + $0x13e0] sm:$0xff] }
 0x274   : > { %16128 = vrsqrt.f32 %v2521_v5  ;;  %v14922_v17 = vcombine.low %v3275_v61, %v3287_v63 }
 0x275   : > { %11915 = vmatpush1.bf16.msra.mxu0 %v14754_v10  ;;  %12079 = vmatpush1.bf16.msra.mxu1 %v14756_v44  ;;  %v14923_v10 = vcombine.high %v3275_v61, %v3287_v63  ;;  %v14925_v44 = vcombine.high %v3276_v1, %v3288_v60  ;;  %v3432_v61 = vld [vmem:[%s16785_s19 + $0x1868] sm:$0xff] }
 0x276   : > { %11916 = vmatprep.subr.bf16.mxu0 %v14779_v0  ;;  %12080 = vmatprep.subr.bf16.mxu1 %v14781_v11  ;;  %v3299_v0 = vld [vmem:[%s16785_s19 + $0x1440] sm:$0xff] }
 0x277   : > { %v3311_v11 = vld [vmem:[%s16785_s19 + $0x14a0] sm:$0xff] }
 0x278   : > { %v14947_v3 = vcombine.high %v3299_v0, %v3311_v11  ;;  %v14946_v31 = vcombine.low %v3299_v0, %v3311_v11 }
 0x279   : > { %11917 = vmatpush1.bf16.msra.mxu0 %v14778_v34  ;;  %12081 = vmatpush1.bf16.msra.mxu1 %v14780_v24  ;;  %v14949_v34 = vcombine.high %v3300_v12, %v3312_v15  ;;  %v3323_v24 = vld [vmem:[%s16785_s19 + $0x1500] sm:$0xff] }
 0x27a   : > { %11918 = vmatprep.subr.bf16.mxu0 %v14803_v25  ;;  %12082 = vmatprep.subr.bf16.mxu1 %v14805_v28  ;;  %v3335_v25 = vld [vmem:[%s16785_s19 + $0x1560] sm:$0xff]  ;;  %v3324_v28 = vld [vmem:[%s16785_s19 + $0x1508] sm:$0xff] }
 0x27b   : > { %v14971_v57 = vcombine.high %v3323_v24, %v3335_v25  ;;  %v14973_v32 = vcombine.high %v3324_v28, %v3336_v30  ;;  %v14970_v29 = vcombine.low %v3323_v24, %v3335_v25  ;;  %v14972_v40 = vcombine.low %v3324_v28, %v3336_v30  ;;  %v3480_v24 = vld [vmem:[%s16785_s19 + $0x19e8] sm:$0xff] }
 0x27d   : > { %11919 = vmatpush1.bf16.msra.mxu0 %v14802_v33  ;;  %12083 = vmatpush1.bf16.msra.mxu1 %v14804_v36  ;;  %v3347_v33 = vld [vmem:[%s16785_s19 + $0x15c0] sm:$0xff] }
 0x27e   : > { %11920 = vmatprep.subr.bf16.mxu0 %v14827_v37  ;;  %12084 = vmatprep.subr.bf16.mxu1 %v14829_v38  ;;  %v3359_v36 = vld [vmem:[%s16785_s19 + $0x1620] sm:$0xff]  ;;  %v3348_v37 = vld [vmem:[%s16785_s19 + $0x15c8] sm:$0xff] }
 0x27f   : > { %v3360_v38 = vld [vmem:[%s16785_s19 + $0x1628] sm:$0xff]  ;;  %v14995_v4 = vcombine.high %v3347_v33, %v3359_v36  ;;  %v14994_v48 = vcombine.low %v3347_v33, %v3359_v36  ;;  %v3503_v33 = vld [vmem:[%s16785_s19 + $0x1aa0] sm:$0xff] }
 0x280   : > { %v14997_v41 = vcombine.high %v3348_v37, %v3360_v38  ;;  %v14996_v50 = vcombine.low %v3348_v37, %v3360_v38  ;;  %v3492_v36 = vld [vmem:[%s16785_s19 + $0x1a48] sm:$0xff] }
 0x281   : > { %11921 = vmatpush1.bf16.msra.mxu0 %v14826_v6  ;;  %12085 = vmatpush1.bf16.msra.mxu1 %v14828_v45  ;;  %v16129_v6 = vpop.eup %16128  ;;  %v3383_v45 = vld [vmem:[%s16785_s19 + $0x16e0] sm:$0xff]  ;;  %v3504_v37 = vld [vmem:[%s16785_s19 + $0x1aa8] sm:$0xff] }
 0x282   : > { %11922 = vmatprep.subr.bf16.mxu0 %v14851_v2  ;;  %12086 = vmatprep.subr.bf16.mxu1 %v14853_v35  ;;  %v3372_v2 = vld [vmem:[%s16785_s19 + $0x1688] sm:$0xff]  ;;  %v2537_v51 = vmul.f32 %v16129_v6, %v17003_v46  ;;  %v15019_v52 = vcombine.high %v3371_v43, %v3383_v45  ;;  %v15018_v59 = vcombine.low %v3371_v43, %v3383_v45 }
 0x283   : > { %v3384_v35 = vld [vmem:[%s16785_s19 + $0x16e8] sm:$0xff] }
 0x284   : > { %v15020_v18 = vcombine.low %v3372_v2, %v3384_v35  ;;  %v2587_v46 = vmul.f32 %v2556_v8, %v2537_v51  ;;  %v15141_v51 = vcombine.high %v3492_v36, %v3504_v37 }
 0x285   : > { %11923 = vmatpush1.bf16.msra.mxu0 %v14850_v53  ;;  %12087 = vmatpush1.bf16.msra.mxu1 %v14852_v47  ;;  %v15021_v53 = vcombine.high %v3372_v2, %v3384_v35  ;;  %v3395_v47 = vld [vmem:[%s16785_s19 + $0x1740] sm:$0xff] }
 0x286   : > { %11924 = vmatprep.subr.bf16.mxu0 %v14875_v55  ;;  %12088 = vmatprep.subr.bf16.mxu1 %v14877_v56  ;;  %v3407_v55 = vld [vmem:[%s16785_s19 + $0x17a0] sm:$0xff]  ;;  %v3396_v56 = vld [vmem:[%s16785_s19 + $0x1748] sm:$0xff]  ;;  %v2637_v1 = vadd.f32 %v2606_v58, %v2587_v46 }
 0x287   : > { %v15043_v19 = vcombine.high %v3395_v47, %v3407_v55  ;;  %v15042_v13 = vcombine.low %v3395_v47, %v3407_v55  ;;  %v15044_v63 = vcombine.low %v3396_v56, %v3408_v14  ;;  %v3527_v55 = vld [vmem:[%s16785_s19 + $0x1b60] sm:$0xff] }
 0x288   : > { %v17094_v12 = vpack.c.bf16 %v2637_v1, %v2637_v1  ;;  %v3540_v1 = vld [vmem:[%s16785_s19 + $0x1bc8] sm:$0xff] }
 0x289   : > { %11925 = vmatpush1.bf16.msra.mxu0 %v14874_v26  ;;  %12089 = vmatpush1.bf16.msra.mxu1 %v14876_v20  ;;  %v15045_v26 = vcombine.high %v3396_v56, %v3408_v14  ;;  %v3419_v20 = vld [vmem:[%s16785_s19 + $0x1800] sm:$0xff]  ;;  %v3516_v56 = vld [vmem:[%s16785_s19 + $0x1b08] sm:$0xff] }
 0x28a   : > { %11926 = vmatprep.subr.bf16.mxu0 %v14899_v23  ;;  %12090 = vmatprep.subr.bf16.mxu1 %v14901_v27  ;;  %v3431_v23 = vld [vmem:[%s16785_s19 + $0x1860] sm:$0xff]  ;;  %v3420_v27 = vld [vmem:[%s16785_s19 + $0x1808] sm:$0xff] }
 0x28b   : > { %v15067_v60 = vcombine.high %v3419_v20, %v3431_v23  ;;  %v15069_v5 = vcombine.high %v3420_v27, %v3432_v61  ;;  %v15066_v0 = vcombine.low %v3419_v20, %v3431_v23  ;;  %v15068_v11 = vcombine.low %v3420_v27, %v3432_v61  ;;  %v3528_v14 = vld [vmem:[%s16785_s19 + $0x1b68] sm:$0xff]  ;;  %v3539_v27 = vld [vmem:[%s16785_s19 + $0x1bc0] sm:$0xff] }
 0x28c   : > { %v15165_v23 = vcombine.high %v3516_v56, %v3528_v14 }
 0x28d   : > { %11927 = vmatpush1.bf16.msra.mxu0 %v14898_v7  ;;  %12091 = vmatpush1.bf16.msra.mxu1 %v14900_v9  ;;  %v3443_v7 = vld [vmem:[%s16785_s19 + $0x18c0] sm:$0xff] }
 0x28e   : > { %11928 = vmatprep.subr.bf16.mxu0 %v14923_v10  ;;  %12092 = vmatprep.subr.bf16.mxu1 %v14925_v44  ;;  %v3455_v9 = vld [vmem:[%s16785_s19 + $0x1920] sm:$0xff]  ;;  %v3444_v10 = vld [vmem:[%s16785_s19 + $0x18c8] sm:$0xff] }
 0x28f   : > { %v3456_v44 = vld [vmem:[%s16785_s19 + $0x1928] sm:$0xff]  ;;  %v15091_v15 = vcombine.high %v3443_v7, %v3455_v9  ;;  %v15090_v25 = vcombine.low %v3443_v7, %v3455_v9 }
 0x290   : > { %v15092_v28 = vcombine.low %v3444_v10, %v3456_v44 }
 0x291   : > { %11929 = vmatpush1.bf16.msra.mxu0 %v14922_v17  ;;  %12093 = vmatpush1.bf16.msra.mxu1 %v14924_v21  ;;  %v15093_v17 = vcombine.high %v3444_v10, %v3456_v44  ;;  %v3467_v21 = vld [vmem:[%s16785_s19 + $0x1980] sm:$0xff]  ;;  %v15164_v44 = vcombine.low %v3516_v56, %v3528_v14 }
 0x292   : > { %11930 = vmatprep.subr.bf16.mxu0 %v14947_v3  ;;  %12094 = vmatprep.subr.bf16.mxu1 %v14949_v34  ;;  %v3479_v3 = vld [vmem:[%s16785_s19 + $0x19e0] sm:$0xff]  ;;  %v3468_v34 = vld [vmem:[%s16785_s19 + $0x1988] sm:$0xff] }
 0x293   : > { %v15115_v30 = vcombine.high %v3467_v21, %v3479_v3  ;;  %v15114_v45 = vcombine.low %v3467_v21, %v3479_v3  ;;  %v15116_v2 = vcombine.low %v3468_v34, %v3480_v24 }
 0x295   : > { %11931 = vmatpush1.bf16.msra.mxu0 %v14946_v31  ;;  %12095 = vmatpush1.bf16.msra.mxu1 %v14948_v42  ;;  %v15117_v31 = vcombine.high %v3468_v34, %v3480_v24  ;;  %v3491_v42 = vld [vmem:[%s16785_s19 + $0x1a40] sm:$0xff]  ;;  %v3564_v24 = vld [vmem:[%s16785_s19 + $0x1c88] sm:$0xff] }
 0x296   : > { %11932 = vmatprep.subr.bf16.mxu0 %v14971_v57  ;;  %12096 = vmatprep.subr.bf16.mxu1 %v14973_v32  ;;  %v15138_v46 = vcombine.low %v3491_v42, %v3503_v33  ;;  %v3575_v34 = vld [vmem:[%s16785_s19 + $0x1ce0] sm:$0xff] }
 0x299   : > { %11933 = vmatpush1.bf16.msra.mxu0 %v14970_v29  ;;  %12097 = vmatpush1.bf16.msra.mxu1 %v14972_v40 }
 0x29a   : > { %11934 = vmatprep.subr.bf16.mxu0 %v14995_v4  ;;  %12098 = vmatprep.subr.bf16.mxu1 %v14997_v41 }
 0x29d   : > { %11935 = vmatpush1.bf16.msra.mxu0 %v14994_v48  ;;  %12099 = vmatpush1.bf16.msra.mxu1 %v14996_v50  ;;  %v15139_v50 = vcombine.high %v3491_v42, %v3503_v33 }
 0x29e   : > { %11936 = vmatprep.subr.bf16.mxu0 %v15019_v52  ;;  %12100 = vmatprep.subr.bf16.mxu1 %v15021_v53  ;;  %v3515_v52 = vld [vmem:[%s16785_s19 + $0x1b00] sm:$0xff] }
 0x29f   : > { %v15163_v20 = vcombine.high %v3515_v52, %v3527_v55  ;;  %v15162_v10 = vcombine.low %v3515_v52, %v3527_v55  ;;  %v3611_v55 = vld [vmem:[%s16785_s19 + $0x1e00] sm:$0xff] }
 0x2a1   : > { %11937 = vmatpush1.bf16.msra.mxu0 %v15018_v59  ;;  %12101 = vmatpush1.bf16.msra.mxu1 %v15020_v18 }
 0x2a2   : > { %11938 = vmatprep.subr.bf16.mxu0 %v15043_v19  ;;  %12102 = vmatprep.subr.bf16.mxu1 %v15045_v26  ;;  %v15140_v19 = vcombine.low %v3492_v36, %v3504_v37 }
 0x2a5   : > { %11939 = vmatpush1.bf16.msra.mxu0 %v15042_v13  ;;  %12103 = vmatpush1.bf16.msra.mxu1 %v15044_v63  ;;  %v3551_v63 = vld [vmem:[%s16785_s19 + $0x1c20] sm:$0xff] }
 0x2a6   : > { %11949 = vmatprep.subr.bf16.mxu0 %v15067_v60  ;;  %12113 = vmatprep.subr.bf16.mxu1 %v15069_v5  ;;  %v3552_v60 = vld [vmem:[%s16785_s19 + $0x1c28] sm:$0xff]  ;;  %v15186_v42 = vcombine.low %v3539_v27, %v3551_v63 }
 0x2a8   : > { %11941 = vmatmul.mubr.bf16.vlgmr.msra.gmra.mrb[8].mxu0 %v17094_v12  ;;  %12105 = vmatmul.mubr.bf16.vlgmr.msra.gmra.mrb[8].mxu1 %v17094_v12 }
 0x2a9   : > { %11950 = vmatpush1.bf16.msra.mxu0 %v15066_v0  ;;  %12114 = vmatpush1.bf16.msra.mxu1 %v15068_v11  ;;  %v15187_v11 = vcombine.high %v3539_v27, %v3551_v63 }
 0x2aa   : > { %11951 = vmatprep.subr.bf16.mxu0 %v15091_v15  ;;  %12115 = vmatprep.subr.bf16.mxu1 %v15093_v17  ;;  %v15189_v15 = vcombine.high %v3540_v1, %v3552_v60  ;;  %v3563_v17 = vld [vmem:[%s16785_s19 + $0x1c80] sm:$0xff] }
 0x2ab   : > { %v15211_v36 = vcombine.high %v3563_v17, %v3575_v34 }
 0x2ac   : > { %v2286_v57 = vpop.f32.mrb[4].mxu0  ;;  %v17103_v32 = vpop.f32.mrb[4].mxu1 }
 0x2ad   : > { %v2379_v38 = vmul.f32 0.2, %v2286_v57  ;;  %v2288_v29 = vpop.f32.mrb[5].mxu0  ;;  %v2370_v40 = vpop.f32.mrb[5].mxu1  ;;  %11952 = vmatpush1.bf16.msra.mxu0 %v15090_v25  ;;  %12116 = vmatpush1.bf16.msra.mxu1 %v15092_v28  ;;  %v3576_v25 = vld [vmem:[%s16785_s19 + $0x1ce8] sm:$0xff] }
 0x2ae   : > { %v2380_v4 = vmul.f32 0.2, %v2288_v29  ;;  %v2382_v41 = vmul.f32 0.2, %v2370_v40  ;;  %v2290_v43 = vpop.f32.mrb[6].mxu0  ;;  %v2372_v6 = vpop.f32.mrb[6].mxu1  ;;  %11953 = vmatprep.subr.bf16.mxu0 %v15115_v30  ;;  %12117 = vmatprep.subr.bf16.mxu1 %v15117_v31  ;;  %v15213_v37 = vcombine.high %v3564_v24, %v3576_v25 }
 0x2af   : > { %v17108_v35 = vmax.f32 %v2286_v57, %v2379_v38  ;;  %v2291_v8 = vpop.f32.mrb[7].mxu0  ;;  %v2373_v48 = vpop.f32.mrb[7].mxu1  ;;  %v15188_v57 = vcombine.low %v3540_v1, %v3552_v60  ;;  %v3587_v38 = vld [vmem:[%s16785_s19 + $0x1d40] sm:$0xff]  ;;  %v3600_v43 = vld [vmem:[%s16785_s19 + $0x1da8] sm:$0xff] }
 0x2b0   : > { %v17111_v53 = vmax.f32 %v2288_v29, %v2380_v4  ;;  %v17113_v47 = vmax.f32 %v2370_v40, %v2382_v41  ;;  %v3599_v4 = vld [vmem:[%s16785_s19 + $0x1da0] sm:$0xff]  ;;  %v3588_v41 = vld [vmem:[%s16785_s19 + $0x1d48] sm:$0xff]  ;;  %v15210_v8 = vcombine.low %v3563_v17, %v3575_v34  ;;  %v15212_v48 = vcombine.low %v3564_v24, %v3576_v25 }
 0x2b1   : > { %v2415_v58 = vrot.slane %v17108_v35, 4  ;;  %11954 = vmatpush1.bf16.msra.mxu0 %v15114_v45  ;;  %12118 = vmatpush1.bf16.msra.mxu1 %v15116_v2  ;;  %v15237_v52 = vcombine.high %v3588_v41, %v3600_v43  ;;  %v3647_v1 = vld [vmem:[%s16785_s19 + $0x1f20] sm:$0xff]  ;;  %v3636_v60 = vld [vmem:[%s16785_s19 + $0x1ec8] sm:$0xff] }
 0x2b2   : > { %v2421_v59 = vrot.slane %v17111_v53, 4  ;;  %v2433_v18 = vrot.slane %v17113_v47, 4  ;;  %11955 = vmatprep.subr.bf16.mxu0 %v15139_v50  ;;  %12119 = vmatprep.subr.bf16.mxu1 %v15141_v51  ;;  %v15235_v51 = vcombine.high %v3587_v38, %v3599_v4  ;;  %v3671_v25 = vld [vmem:[%s16785_s19 + $0x1fe0] sm:$0xff] }
 0x2b3   : > { %v2416_v26 = vadd.f32 %v2415_v58, %v17108_v35  ;;  %v3623_v58 = vld [vmem:[%s16785_s19 + $0x1e60] sm:$0xff] }
 0x2b4   : > { %v2422_v61 = vadd.f32 %v2421_v59, %v17111_v53  ;;  %v2434_v13 = vadd.f32 %v2433_v18, %v17113_v47  ;;  %v3612_v59 = vld [vmem:[%s16785_s19 + $0x1e08] sm:$0xff] }
 0x2b5   : > { %v2417_v5 = vrot.slane %v2416_v26, 2  ;;  %11956 = vmatpush1.bf16.msra.mxu0 %v15138_v46  ;;  %12120 = vmatpush1.bf16.msra.mxu1 %v15140_v19  ;;  %v3624_v18 = vld [vmem:[%s16785_s19 + $0x1e68] sm:$0xff]  ;;  %v2381_v19 = vmul.f32 0.2, %v17103_v32 }
 0x2b6   : > { %v2423_v7 = vrot.slane %v2422_v61, 2  ;;  %v2435_v9 = vrot.slane %v2434_v13, 2  ;;  %11957 = vmatprep.subr.bf16.mxu0 %v15163_v20  ;;  %12121 = vmatprep.subr.bf16.mxu1 %v15165_v23  ;;  %v15259_v23 = vcombine.high %v3611_v55, %v3623_v58  ;;  %v15261_v27 = vcombine.high %v3612_v59, %v3624_v18 }
 0x2b7   : > { %v2418_v0 = vadd.f32 %v2417_v5, %v2416_v26  ;;  %v15236_v26 = vcombine.low %v3588_v41, %v3600_v43  ;;  %v3648_v5 = vld [vmem:[%s16785_s19 + $0x1f28] sm:$0xff]  ;;  %v3695_v43 = vld [vmem:[%s16785_s19 + $0x20a0] sm:$0xff] }
 0x2b8   : > { %v2424_v21 = vadd.f32 %v2423_v7, %v2422_v61  ;;  %v2436_v3 = vadd.f32 %v2435_v9, %v2434_v13  ;;  %v3635_v61 = vld [vmem:[%s16785_s19 + $0x1ec0] sm:$0xff]  ;;  %v15258_v9 = vcombine.low %v3611_v55, %v3623_v58 }
 0x2b9   : > { %v2419_v28 = vrot.slane %v2418_v0, 1  ;;  %11958 = vmatpush1.bf16.msra.mxu0 %v15162_v10  ;;  %12122 = vmatpush1.bf16.msra.mxu1 %v15164_v44  ;;  %v15260_v10 = vcombine.low %v3612_v59, %v3624_v18  ;;  %v17161_v44 = vmax.f32 %v17103_v32, %v2381_v19  ;;  %v15283_v17 = vcombine.high %v3635_v61, %v3647_v1 }
 0x2ba   : > { %v2425_v30 = vrot.slane %v2424_v21, 1  ;;  %v2437_v31 = vrot.slane %v2436_v3, 1  ;;  %11959 = vmatprep.subr.bf16.mxu0 %v15187_v11  ;;  %12123 = vmatprep.subr.bf16.mxu1 %v15189_v15  ;;  %v15282_v32 = vcombine.low %v3635_v61, %v3647_v1 }
 0x2bb   : > { %v2420_v33 = vadd.f32 %v2419_v28, %v2418_v0  ;;  %v3660_v28 = vld [vmem:[%s16785_s19 + $0x1f88] sm:$0xff] }
 0x2bc   : > { %v2426_v29 = vadd.f32 %v2425_v30, %v2424_v21  ;;  %v2438_v40 = vadd.f32 %v2437_v31, %v2436_v3  ;;  %v15285_v21 = vcombine.high %v3636_v60, %v3648_v5  ;;  %v3659_v3 = vld [vmem:[%s16785_s19 + $0x1f80] sm:$0xff]  ;;  %v3672_v30 = vld [vmem:[%s16785_s19 + $0x1fe8] sm:$0xff] }
 0x2bd   : > { %v2443_v6 = vmul.f32 0.125, %v2420_v33  ;;  %11960 = vmatpush1.bf16.msra.mxu0 %v15186_v42  ;;  %12124 = vmatpush1.bf16.msra.mxu1 %v15188_v57  ;;  %v2427_v42 = vrot.slane %v17161_v44, 4 }
 0x2be   : > { %v2444_v45 = vmul.f32 0.125, %v2426_v29  ;;  %v2446_v2 = vmul.f32 0.125, %v2438_v40  ;;  %11961 = vmatprep.subr.bf16.mxu0 %v15211_v36  ;;  %12125 = vmatprep.subr.bf16.mxu1 %v15213_v37  ;;  %v15284_v36 = vcombine.low %v3636_v60, %v3648_v5  ;;  %v15309_v29 = vcombine.high %v3660_v28, %v3672_v30  ;;  %v3683_v40 = vld [vmem:[%s16785_s19 + $0x2040] sm:$0xff] }
 0x2bf   : > { %v17137_v50 = vsub.f32 %v17108_v35, %v2443_v6  ;;  %v15234_v35 = vcombine.low %v3587_v38, %v3599_v4  ;;  %v15307_v38 = vcombine.high %v3659_v3, %v3671_v25  ;;  %v3684_v6 = vld [vmem:[%s16785_s19 + $0x2048] sm:$0xff]  ;;  %v15331_v59 = vcombine.high %v3683_v40, %v3695_v43  ;;  %v3731_v5 = vld [vmem:[%s16785_s19 + $0x21c0] sm:$0xff] }
 0x2c0   : > { %v17141_v56 = vsub.f32 %v17111_v53, %v2444_v45  ;;  %v17144_v14 = vsub.f32 %v17113_v47, %v2446_v2  ;;  %v3696_v45 = vld [vmem:[%s16785_s19 + $0x20a8] sm:$0xff] }
 0x2c1   : > { %v2459_v46 = vmul.f32 %v17137_v50, %v17137_v50  ;;  %11962 = vmatpush1.bf16.msra.mxu0 %v15210_v8  ;;  %12126 = vmatpush1.bf16.msra.mxu1 %v15212_v48  ;;  %v15306_v8 = vcombine.low %v3659_v3, %v3671_v25  ;;  %v15308_v48 = vcombine.low %v3660_v28, %v3672_v30  ;;  %v3755_v3 = vld [vmem:[%s16785_s19 + $0x2280] sm:$0xff]  ;;  %v3756_v25 = vld [vmem:[%s16785_s19 + $0x2288] sm:$0xff]  ;;  %v2567_v30 = vsub.s32 5, %v16807_v49 }
 0x2c2   : > { %v2460_v53 = vmul.f32 %v17141_v56, %v17141_v56  ;;  %v2462_v47 = vmul.f32 %v17144_v14, %v17144_v14  ;;  %11963 = vmatprep.subr.bf16.mxu0 %v15235_v51  ;;  %12127 = vmatprep.subr.bf16.mxu1 %v15237_v52  ;;  %v2428_v51 = vadd.f32 %v2427_v42, %v17161_v44  ;;  %v3768_v28 = vld [vmem:[%s16785_s19 + $0x22e8] sm:$0xff] }
 0x2c3   : > { %v2487_v20 = vrot.slane %v2459_v46, 4  ;;  %v15333_v18 = vcombine.high %v3684_v6, %v3696_v45 }
 0x2c4   : > { %v2493_v13 = vrot.slane %v2460_v53, 4  ;;  %v2505_v63 = vrot.slane %v2462_v47, 4 }
 0x2c5   : > { %v2488_v7 = vadd.f32 %v2487_v20, %v2459_v46  ;;  %11964 = vmatpush1.bf16.msra.mxu0 %v15234_v35  ;;  %12128 = vmatpush1.bf16.msra.mxu1 %v15236_v26  ;;  %v3707_v46 = vld [vmem:[%s16785_s19 + $0x2100] sm:$0xff]  ;;  %v3720_v26 = vld [vmem:[%s16785_s19 + $0x2168] sm:$0xff] }
 0x2c6   : > { %v2494_v0 = vadd.f32 %v2493_v13, %v2460_v53  ;;  %v2506_v11 = vadd.f32 %v2505_v63, %v2462_v47  ;;  %11965 = vmatprep.subr.bf16.mxu0 %v15259_v23  ;;  %12129 = vmatprep.subr.bf16.mxu1 %v15261_v27  ;;  %v3719_v53 = vld [vmem:[%s16785_s19 + $0x2160] sm:$0xff]  ;;  %v3708_v47 = vld [vmem:[%s16785_s19 + $0x2108] sm:$0xff]  ;;  %v15330_v23 = vcombine.low %v3683_v40, %v3695_v43  ;;  %v2429_v27 = vrot.slane %v2428_v51, 2 }
 0x2c7   : > { %v2489_v15 = vrot.slane %v2488_v7, 2  ;;  %v15332_v63 = vcombine.low %v3684_v6, %v3696_v45  ;;  %v15355_v1 = vcombine.high %v3707_v46, %v3719_v53  ;;  %v15357_v60 = vcombine.high %v3708_v47, %v3720_v26  ;;  %v3780_v40 = vld [vmem:[%s16785_s19 + $0x2348] sm:$0xff] }
 0x2c8   : > { %v2495_v34 = vrot.slane %v2494_v0, 2  ;;  %v2507_v24 = vrot.slane %v2506_v11, 2  ;;  %v2568_v6 = vrot.slane %v16983_v16, %v2567_v30 }
 0x2c9   : > { %v2490_v31 = vadd.f32 %v2489_v15, %v2488_v7  ;;  %11966 = vmatpush1.bf16.msra.mxu0 %v15258_v9  ;;  %12130 = vmatpush1.bf16.msra.mxu1 %v15260_v10  ;;  %v3743_v7 = vld [vmem:[%s16785_s19 + $0x2220] sm:$0xff]  ;;  %v3732_v9 = vld [vmem:[%s16785_s19 + $0x21c8] sm:$0xff]  ;;  %v15356_v15 = vcombine.low %v3708_v47, %v3720_v26 }
 0x2ca   : > { %v2496_v57 = vadd.f32 %v2495_v34, %v2494_v0  ;;  %v2508_v33 = vadd.f32 %v2507_v24, %v2506_v11  ;;  %11967 = vmatprep.subr.bf16.mxu0 %v15283_v17  ;;  %12131 = vmatprep.subr.bf16.mxu1 %v15285_v21  ;;  %v3744_v10 = vld [vmem:[%s16785_s19 + $0x2228] sm:$0xff]  ;;  %v2430_v0 = vadd.f32 %v2429_v27, %v2428_v51  ;;  %v2563_v34 = vsub.s32 4, %v16807_v49  ;;  %v3767_v24 = vld [vmem:[%s16785_s19 + $0x22e0] sm:$0xff] }
 0x2cb   : > { %v2491_v37 = vrot.slane %v2490_v31, 1  ;;  %v15354_v11 = vcombine.low %v3707_v46, %v3719_v53  ;;  %v15379_v17 = vcombine.high %v3731_v5, %v3743_v7  ;;  %v15381_v21 = vcombine.high %v3732_v9, %v3744_v10  ;;  %v3804_v53 = vld [vmem:[%s16785_s19 + $0x2408] sm:$0xff] }
 0x2cc   : > { %v2497_v4 = vrot.slane %v2496_v57, 1  ;;  %v2509_v41 = vrot.slane %v2508_v33, 1  ;;  %v15380_v42 = vcombine.low %v3732_v9, %v3744_v10  ;;  %v2614_v43 = vrot.slane %v16987_v22, %v2563_v34  ;;  %v3816_v47 = vld [vmem:[%s16785_s19 + $0x2468] sm:$0xff] }
 0x2cd   : > { %v2492_v2 = vadd.f32 %v2491_v37, %v2490_v31  ;;  %11968 = vmatpush1.bf16.msra.mxu0 %v15282_v32  ;;  %12132 = vmatpush1.bf16.msra.mxu1 %v15284_v36  ;;  %v2431_v31 = vrot.slane %v2430_v0, 1  ;;  %v15378_v32 = vcombine.low %v3731_v5, %v3743_v7  ;;  %v15405_v36 = vcombine.high %v3756_v25, %v3768_v28  ;;  %v3779_v37 = vld [vmem:[%s16785_s19 + $0x2340] sm:$0xff]  ;;  %v3828_v9 = vld [vmem:[%s16785_s19 + $0x24c8] sm:$0xff] }
 0x2ce   : > { %v2498_v52 = vadd.f32 %v2497_v4, %v2496_v57  ;;  %v2510_v55 = vadd.f32 %v2509_v41, %v2508_v33  ;;  %11969 = vmatprep.subr.bf16.mxu0 %v15307_v38  ;;  %12133 = vmatprep.subr.bf16.mxu1 %v15309_v29  ;;  %v2575_v57 = vsub.s32 7, %v16807_v49  ;;  %v15403_v33 = vcombine.high %v3755_v3, %v3767_v24  ;;  %v3791_v29 = vld [vmem:[%s16785_s19 + $0x23a0] sm:$0xff]  ;;  %v3792_v4 = vld [vmem:[%s16785_s19 + $0x23a8] sm:$0xff] }
 0x2cf   : > { %v2515_v58 = vmul.f32 0.125, %v2492_v2  ;;  %v2564_v38 = vrot.slane %v16983_v16, %v2563_v34  ;;  %v15402_v45 = vcombine.low %v3755_v3, %v3767_v24  ;;  %v3839_v7 = vld [vmem:[%s16785_s19 + $0x2520] sm:$0xff]  ;;  %v3840_v10 = vld [vmem:[%s16785_s19 + $0x2528] sm:$0xff] }
 0x2d0   : > { %v2516_v35 = vmul.f32 0.125, %v2498_v52  ;;  %v2518_v19 = vmul.f32 0.125, %v2510_v55  ;;  %v2576_v52 = vrot.slane %v16983_v16, %v2575_v57  ;;  %v15427_v55 = vcombine.high %v3779_v37, %v3791_v29  ;;  %v3863_v24 = vld [vmem:[%s16785_s19 + $0x25e0] sm:$0xff] }
 0x2d1   : > { %v2523_v20 = vadd.f32 0.8, %v2515_v58  ;;  %11970 = vmatpush1.bf16.msra.mxu0 %v15306_v8  ;;  %12134 = vmatpush1.bf16.msra.mxu1 %v15308_v48  ;;  %v2432_v8 = vadd.f32 %v2431_v31, %v2430_v0  ;;  %v15404_v48 = vcombine.low %v3756_v25, %v3768_v28  ;;  %v15429_v58 = vcombine.high %v3780_v40, %v3792_v4  ;;  %v3864_v25 = vld [vmem:[%s16785_s19 + $0x25e8] sm:$0xff] }
 0x2d2   : > { %v2524_v61 = vadd.f32 0.8, %v2516_v35  ;;  %v2526_v13 = vadd.f32 0.8, %v2518_v19  ;;  %11971 = vmatprep.subr.bf16.mxu0 %v15331_v59  ;;  %12135 = vmatprep.subr.bf16.mxu1 %v15333_v18  ;;  %v3803_v59 = vld [vmem:[%s16785_s19 + $0x2400] sm:$0xff]  ;;  %v15426_v16 = vcombine.low %v3779_v37, %v3791_v29  ;;  %v15477_v34 = vcombine.high %v3828_v9, %v3840_v10  ;;  %v3876_v37 = vld [vmem:[%s16785_s19 + $0x2648] sm:$0xff] }
 0x2d3   : > { %16130 = vrsqrt.f32 %v2523_v20  ;;  %v3815_v18 = vld [vmem:[%s16785_s19 + $0x2460] sm:$0xff]  ;;  %v2626_v20 = vrot.slane %v16987_v22, %v2575_v57 }
 0x2d4   : > { %16132 = vrsqrt.f32 %v2524_v61  ;;  %v15428_v61 = vcombine.low %v3780_v40, %v3792_v4 }
 0x2d5   : > { %16134 = vrsqrt.f32 %v2526_v13  ;;  %11972 = vmatpush1.bf16.msra.mxu0 %v15330_v23  ;;  %12136 = vmatpush1.bf16.msra.mxu1 %v15332_v63  ;;  %v2445_v23 = vmul.f32 0.125, %v2432_v8  ;;  %v15451_v13 = vcombine.high %v3803_v59, %v3815_v18  ;;  %v3912_v8 = vld [vmem:[%s16785_s19 + $0x2768] sm:$0xff] }
 0x2d6   : > { %11973 = vmatprep.subr.bf16.mxu0 %v15355_v1  ;;  %12137 = vmatprep.subr.bf16.mxu1 %v15357_v60  ;;  %v15453_v1 = vcombine.high %v3804_v53, %v3816_v47 }
 0x2d7   : > { %v17210_v0 = vsub.f32 %v17161_v44, %v2445_v23  ;;  %v3852_v44 = vld [vmem:[%s16785_s19 + $0x2588] sm:$0xff] }
 0x2d8   : > { %v15501_v57 = vcombine.high %v3852_v44, %v3864_v25  ;;  %v15500_v4 = vcombine.low %v3852_v44, %v3864_v25  ;;  %v3948_v23 = vld [vmem:[%s16785_s19 + $0x2888] sm:$0xff] }
 0x2d9   : > { %11974 = vmatpush1.bf16.msra.mxu0 %v15354_v11  ;;  %12138 = vmatpush1.bf16.msra.mxu1 %v15356_v15  ;;  %v15452_v15 = vcombine.low %v3804_v53, %v3816_v47  ;;  %v4008_v44 = vld [vmem:[%s16785_s19 + $0x2a68] sm:$0xff] }
 0x2da   : > { %11975 = vmatprep.subr.bf16.mxu0 %v15379_v17  ;;  %12139 = vmatprep.subr.bf16.mxu1 %v15381_v21  ;;  %v3851_v21 = vld [vmem:[%s16785_s19 + $0x2580] sm:$0xff] }
 0x2db   : > { %v15498_v40 = vcombine.low %v3851_v21, %v3863_v24 }
 0x2dd   : > { %v16131_v41 = vpop.eup %16130  ;;  %11976 = vmatpush1.bf16.msra.mxu0 %v15378_v32  ;;  %12140 = vmatpush1.bf16.msra.mxu1 %v15380_v42  ;;  %v15476_v32 = vcombine.low %v3828_v9, %v3840_v10  ;;  %v15499_v42 = vcombine.high %v3851_v21, %v3863_v24  ;;  %v3996_v24 = vld [vmem:[%s16785_s19 + $0x2a08] sm:$0xff] }
 0x2de   : > { %v2539_v2 = vmul.f32 %v16131_v41, %v17137_v50  ;;  %v16133_v51 = vpop.eup %16132  ;;  %11977 = vmatprep.subr.bf16.mxu0 %v15403_v33  ;;  %12141 = vmatprep.subr.bf16.mxu1 %v15405_v36  ;;  %v2618_v50 = vrot.slane %v16987_v22, %v2567_v30  ;;  %v15450_v22 = vcombine.low %v3803_v59, %v3815_v18  ;;  %v3875_v33 = vld [vmem:[%s16785_s19 + $0x2640] sm:$0xff] }
 0x2df   : > { %v16135_v46 = vpop.eup %16134  ;;  %v2540_v19 = vmul.f32 %v16133_v51, %v17141_v56  ;;  %v2461_v30 = vmul.f32 %v17210_v0, %v17210_v0  ;;  %v3887_v36 = vld [vmem:[%s16785_s19 + $0x26a0] sm:$0xff] }
 0x2e0   : > { %v2589_v35 = vmul.f32 %v2564_v38, %v2539_v2  ;;  %v2542_v26 = vmul.f32 %v16135_v46, %v17144_v14  ;;  %v3827_v14 = vld [vmem:[%s16785_s19 + $0x24c0] sm:$0xff]  ;;  %v3888_v38 = vld [vmem:[%s16785_s19 + $0x26a8] sm:$0xff]  ;;  %v15523_v41 = vcombine.high %v3875_v33, %v3887_v36  ;;  %v15522_v51 = vcombine.low %v3875_v33, %v3887_v36 }
 0x2e1   : > { %v2590_v27 = vmul.f32 %v2568_v6, %v2540_v19  ;;  %11978 = vmatpush1.bf16.msra.mxu0 %v15402_v45  ;;  %12142 = vmatpush1.bf16.msra.mxu1 %v15404_v48  ;;  %v15475_v3 = vcombine.high %v3827_v14, %v3839_v7  ;;  %v15474_v31 = vcombine.low %v3827_v14, %v3839_v7  ;;  %v2499_v29 = vrot.slane %v2461_v30, 4  ;;  %v3899_v6 = vld [vmem:[%s16785_s19 + $0x2700] sm:$0xff]  ;;  %v3900_v2 = vld [vmem:[%s16785_s19 + $0x2708] sm:$0xff] }
 0x2e2   : > { %v2639_v56 = vadd.f32 %v2614_v43, %v2589_v35  ;;  %v2592_v63 = vmul.f32 %v2576_v52, %v2542_v26  ;;  %11979 = vmatprep.subr.bf16.mxu0 %v15427_v55  ;;  %12143 = vmatprep.subr.bf16.mxu1 %v15429_v58  ;;  %v15525_v43 = vcombine.high %v3876_v37, %v3888_v38  ;;  %v3911_v45 = vld [vmem:[%s16785_s19 + $0x2760] sm:$0xff]  ;;  %v3924_v46 = vld [vmem:[%s16785_s19 + $0x27c8] sm:$0xff] }
 0x2e3   : > { %v2640_v60 = vadd.f32 %v2618_v50, %v2590_v27  ;;  %v2500_v48 = vadd.f32 %v2499_v29, %v2461_v30  ;;  %v15524_v52 = vcombine.low %v3876_v37, %v3888_v38  ;;  %v15547_v55 = vcombine.high %v3899_v6, %v3911_v45  ;;  %v3923_v59 = vld [vmem:[%s16785_s19 + $0x27c0] sm:$0xff]  ;;  %v3936_v35 = vld [vmem:[%s16785_s19 + $0x2828] sm:$0xff] }
 0x2e4   : > { %v2642_v5 = vadd.f32 %v2626_v20, %v2592_v63  ;;  %v17214_v17 = vpack.c.bf16 %v2639_v56, %v2639_v56  ;;  %v15549_v58 = vcombine.high %v3900_v2, %v3912_v8  ;;  %v3935_v18 = vld [vmem:[%s16785_s19 + $0x2820] sm:$0xff]  ;;  %v15546_v50 = vcombine.low %v3899_v6, %v3911_v45  ;;  %v3960_v27 = vld [vmem:[%s16785_s19 + $0x28e8] sm:$0xff] }
 0x2e5   : > { %v17212_v11 = vpack.c.bf16 %v2640_v60, %v2640_v60  ;;  %11980 = vmatpush1.bf16.msra.mxu0 %v15426_v16  ;;  %12144 = vmatpush1.bf16.msra.mxu1 %v15428_v61  ;;  %v2501_v19 = vrot.slane %v2500_v48, 2  ;;  %v15548_v53 = vcombine.low %v3900_v2, %v3912_v8  ;;  %v15571_v47 = vcombine.high %v3923_v59, %v3935_v18  ;;  %v3947_v20 = vld [vmem:[%s16785_s19 + $0x2880] sm:$0xff]  ;;  %v4020_v36 = vld [vmem:[%s16785_s19 + $0x2ac8] sm:$0xff] }
 0x2e6   : > { %11990 = vmatprep.subr.bf16.mxu0 %v15451_v13  ;;  %12154 = vmatprep.subr.bf16.mxu1 %v15453_v1  ;;  %v17222_v28 = vpack.c.bf16 %v2642_v5, %v2642_v5  ;;  %v15573_v26 = vcombine.high %v3924_v46, %v3936_v35  ;;  %v3959_v16 = vld [vmem:[%s16785_s19 + $0x28e0] sm:$0xff]  ;;  %v15570_v13 = vcombine.low %v3923_v59, %v3935_v18  ;;  %v3972_v5 = vld [vmem:[%s16785_s19 + $0x2948] sm:$0xff] }
 0x2e7   : > { %11981 = vmatprep.mubr.bf16.mxu0 %v17212_v11  ;;  %12145 = vmatprep.mubr.bf16.mxu1 %v17212_v11  ;;  %v2502_v61 = vadd.f32 %v2501_v19, %v2500_v48  ;;  %v15572_v56 = vcombine.low %v3924_v46, %v3936_v35  ;;  %v15595_v63 = vcombine.high %v3947_v20, %v3959_v16  ;;  %v3971_v60 = vld [vmem:[%s16785_s19 + $0x2940] sm:$0xff]  ;;  %v4032_v37 = vld [vmem:[%s16785_s19 + $0x2b28] sm:$0xff] }
 0x2e8   : > { %11982 = vmatmul.mubr.bf16.vlgmr.msra.gmra.mrb[8].mxu0 %v17214_v17  ;;  %12146 = vmatmul.mubr.bf16.vlgmr.msra.gmra.mrb[8].mxu1 %v17214_v17  ;;  %v15597_v1 = vcombine.high %v3948_v23, %v3960_v27  ;;  %v3983_v14 = vld [vmem:[%s16785_s19 + $0x29a0] sm:$0xff]  ;;  %v15594_v9 = vcombine.low %v3947_v20, %v3959_v16  ;;  %v15596_v10 = vcombine.low %v3948_v23, %v3960_v27  ;;  %v4044_v45 = vld [vmem:[%s16785_s19 + $0x2b88] sm:$0xff] }
 0x2e9   : > { %11991 = vmatpush1.bf16.msra.mxu0 %v15450_v22  ;;  %12155 = vmatpush1.bf16.msra.mxu1 %v15452_v15  ;;  %v3984_v22 = vld [vmem:[%s16785_s19 + $0x29a8] sm:$0xff]  ;;  %v2503_v7 = vrot.slane %v2502_v61, 1  ;;  %v15619_v15 = vcombine.high %v3971_v60, %v3983_v14  ;;  %v15618_v30 = vcombine.low %v3971_v60, %v3983_v14  ;;  %v4031_v33 = vld [vmem:[%s16785_s19 + $0x2b20] sm:$0xff]  ;;  %v2571_v14 = vsub.s32 6, %v16807_v49 }
 0x2ea   : > { %12022 = vmatprep.mubr.bf16.mxu0 %v17222_v28  ;;  %12186 = vmatprep.mubr.bf16.mxu1 %v17222_v28  ;;  %v15621_v21 = vcombine.high %v3972_v5, %v3984_v22  ;;  %v4055_v6 = vld [vmem:[%s16785_s19 + $0x2be0] sm:$0xff]  ;;  %v4056_v2 = vld [vmem:[%s16785_s19 + $0x2be8] sm:$0xff] }
 0x2eb   : > { %11992 = vmatprep.subr.bf16.mxu0 %v15475_v3  ;;  %12156 = vmatprep.subr.bf16.mxu1 %v15477_v34  ;;  %v3995_v3 = vld [vmem:[%s16785_s19 + $0x2a00] sm:$0xff]  ;;  %v2504_v25 = vadd.f32 %v2503_v7, %v2502_v61  ;;  %v4068_v18 = vld [vmem:[%s16785_s19 + $0x2c48] sm:$0xff]  ;;  %v15692_v19 = vcombine.low %v4044_v45, %v4056_v2 }
 0x2ec   : > { %v4007_v34 = vld [vmem:[%s16785_s19 + $0x2a60] sm:$0xff]  ;;  %v4080_v46 = vld [vmem:[%s16785_s19 + $0x2ca8] sm:$0xff] }
 0x2ed   : > { %11993 = vmatpush1.bf16.msra.mxu0 %v15474_v31  ;;  %12157 = vmatpush1.bf16.msra.mxu1 %v15476_v32  ;;  %v15620_v31 = vcombine.low %v3972_v5, %v3984_v22  ;;  %v15643_v32 = vcombine.high %v3995_v3, %v4007_v34  ;;  %v2517_v38 = vmul.f32 0.125, %v2504_v25  ;;  %v15642_v29 = vcombine.low %v3995_v3, %v4007_v34  ;;  %v4079_v59 = vld [vmem:[%s16785_s19 + $0x2ca0] sm:$0xff]  ;;  %v4092_v20 = vld [vmem:[%s16785_s19 + $0x2d08] sm:$0xff] }
 0x2ee   : > { %11994 = vmatprep.subr.bf16.mxu0 %v15499_v42  ;;  %12158 = vmatprep.subr.bf16.mxu1 %v15501_v57  ;;  %v15645_v42 = vcombine.high %v3996_v24, %v4008_v44  ;;  %v4019_v57 = vld [vmem:[%s16785_s19 + $0x2ac0] sm:$0xff]  ;;  %v4104_v16 = vld [vmem:[%s16785_s19 + $0x2d68] sm:$0xff]  ;;  %v15716_v27 = vcombine.low %v4068_v18, %v4080_v46 }
 0x2ef   : > { %v2525_v8 = vadd.f32 0.8, %v2517_v38  ;;  %v15666_v48 = vcombine.low %v4019_v57, %v4031_v33  ;;  %v4128_v60 = vld [vmem:[%s16785_s19 + $0x2e28] sm:$0xff]  ;;  %v15740_v22 = vcombine.low %v4092_v20, %v4104_v16 }
 0x2f0   : > { %v4140_v3 = vld [vmem:[%s16785_s19 + $0x2e88] sm:$0xff] }
 0x2f1   : > { %11995 = vmatpush1.bf16.msra.mxu0 %v15498_v40  ;;  %12159 = vmatpush1.bf16.msra.mxu1 %v15500_v4  ;;  %v15644_v40 = vcombine.low %v3996_v24, %v4008_v44  ;;  %v15667_v4 = vcombine.high %v4019_v57, %v4031_v33  ;;  %16136 = vrsqrt.f32 %v2525_v8  ;;  %v4152_v34 = vld [vmem:[%s16785_s19 + $0x2ee8] sm:$0xff]  ;;  %v16186_v24 = vld [vmem:[#allocation10] sm:$0xff]  ;;  %v4175_v57 = vld [vmem:[%s16785_s19 + $0x2fa0] sm:$0xff] }
 0x2f2   : > { %11996 = vmatprep.subr.bf16.mxu0 %v15523_v41  ;;  %12160 = vmatprep.subr.bf16.mxu1 %v15525_v43  ;;  %v15669_v41 = vcombine.high %v4020_v36, %v4032_v37  ;;  %v4043_v43 = vld [vmem:[%s16785_s19 + $0x2b80] sm:$0xff]  ;;  %v2572_v44 = vrot.slane %v16186_v24, %v2571_v14  ;;  %v4164_v33 = vld [vmem:[%s16785_s19 + $0x2f48] sm:$0xff] }
 0x2f3   : > { %v15690_v35 = vcombine.low %v4043_v43, %v4055_v6 }
 0x2f5   : > { %11997 = vmatpush1.bf16.msra.mxu0 %v15522_v51  ;;  %12161 = vmatpush1.bf16.msra.mxu1 %v15524_v52  ;;  %v15668_v51 = vcombine.low %v4020_v36, %v4032_v37  ;;  %v15691_v52 = vcombine.high %v4043_v43, %v4055_v6  ;;  %v4176_v36 = vld [vmem:[%s16785_s19 + $0x2fa8] sm:$0xff]  ;;  %v16187_v37 = vld [vmem:[#allocation11] sm:$0xff]  ;;  %v2653_v43 = vld [vmem:[%s16785_s19 + $0x10] sm:$0xff] }
 0x2f6   : > { %11998 = vmatprep.subr.bf16.mxu0 %v15547_v55  ;;  %12162 = vmatprep.subr.bf16.mxu1 %v15549_v58  ;;  %v15693_v55 = vcombine.high %v4044_v45, %v4056_v2  ;;  %v4067_v58 = vld [vmem:[%s16785_s19 + $0x2c40] sm:$0xff]  ;;  %v2622_v38 = vrot.slane %v16187_v37, %v2571_v14  ;;  %v2665_v6 = vld [vmem:[%s16785_s19 + $0x70] sm:$0xff]  ;;  %v2654_v45 = vld [vmem:[%s16785_s19 + $0x18] sm:$0xff] }
 0x2f7   : > { %v15714_v23 = vcombine.low %v4067_v58, %v4079_v59  ;;  %v2666_v2 = vld [vmem:[%s16785_s19 + $0x78] sm:$0xff]  ;;  %v2797_v37 = vld [vmem:[%s16785_s19 + $0x490] sm:$0xff] }
 0x2f8   : > { %v2738_v14 = vld [vmem:[%s16785_s19 + $0x2b8] sm:$0xff] }
 0x2f9   : > { %11999 = vmatpush1.bf16.msra.mxu0 %v15546_v50  ;;  %12163 = vmatpush1.bf16.msra.mxu1 %v15548_v53  ;;  %v15715_v50 = vcombine.high %v4067_v58, %v4079_v59  ;;  %v15717_v53 = vcombine.high %v4068_v18, %v4080_v46  ;;  %v2677_v58 = vld [vmem:[%s16785_s19 + $0xd0] sm:$0xff]  ;;  %v2678_v18 = vld [vmem:[%s16785_s19 + $0xd8] sm:$0xff] }
 0x2fa   : > { %12000 = vmatprep.subr.bf16.mxu0 %v15571_v47  ;;  %12164 = vmatprep.subr.bf16.mxu1 %v15573_v26  ;;  %v4091_v47 = vld [vmem:[%s16785_s19 + $0x2d00] sm:$0xff]  ;;  %v2689_v59 = vld [vmem:[%s16785_s19 + $0x130] sm:$0xff]  ;;  %v2690_v46 = vld [vmem:[%s16785_s19 + $0x138] sm:$0xff] }
 0x2fb   : > { %v4103_v26 = vld [vmem:[%s16785_s19 + $0x2d60] sm:$0xff] }
 0x2fc   : > { %v15739_v61 = vcombine.high %v4091_v47, %v4103_v26  ;;  %v15738_v5 = vcombine.low %v4091_v47, %v4103_v26  ;;  %v14329_v47 = vcombine.high %v2678_v18, %v2690_v46  ;;  %v2701_v26 = vld [vmem:[%s16785_s19 + $0x190] sm:$0xff] }
 0x2fd   : > { %12001 = vmatpush1.bf16.msra.mxu0 %v15570_v13  ;;  %12165 = vmatpush1.bf16.msra.mxu1 %v15572_v56  ;;  %v15741_v13 = vcombine.high %v4092_v20, %v4104_v16  ;;  %v4115_v56 = vld [vmem:[%s16785_s19 + $0x2dc0] sm:$0xff]  ;;  %v2713_v20 = vld [vmem:[%s16785_s19 + $0x1f0] sm:$0xff]  ;;  %v2702_v16 = vld [vmem:[%s16785_s19 + $0x198] sm:$0xff] }
 0x2fe   : > { %12002 = vmatprep.subr.bf16.mxu0 %v15595_v63  ;;  %12166 = vmatprep.subr.bf16.mxu1 %v15597_v1  ;;  %v4127_v63 = vld [vmem:[%s16785_s19 + $0x2e20] sm:$0xff]  ;;  %v4116_v1 = vld [vmem:[%s16785_s19 + $0x2dc8] sm:$0xff] }
 0x2ff   : > { %v15763_v7 = vcombine.high %v4115_v56, %v4127_v63  ;;  %v15762_v49 = vcombine.low %v4115_v56, %v4127_v63  ;;  %v15764_v25 = vcombine.low %v4116_v1, %v4128_v60  ;;  %v2725_v63 = vld [vmem:[%s16785_s19 + $0x250] sm:$0xff] }
 0x301   : > { %12003 = vmatpush1.bf16.msra.mxu0 %v15594_v9  ;;  %12167 = vmatpush1.bf16.msra.mxu1 %v15596_v10  ;;  %v15765_v9 = vcombine.high %v4116_v1, %v4128_v60  ;;  %v4139_v10 = vld [vmem:[%s16785_s19 + $0x2e80] sm:$0xff]  ;;  %v2737_v1 = vld [vmem:[%s16785_s19 + $0x2b0] sm:$0xff]  ;;  %v2726_v60 = vld [vmem:[%s16785_s19 + $0x258] sm:$0xff] }
 0x302   : > { %12004 = vmatprep.subr.bf16.mxu0 %v15619_v15  ;;  %12168 = vmatprep.subr.bf16.mxu1 %v15621_v21  ;;  %v16137_v15 = vpop.eup %16136  ;;  %v4151_v21 = vld [vmem:[%s16785_s19 + $0x2ee0] sm:$0xff]  ;;  %v14376_v24 = vcombine.low %v2726_v60, %v2738_v14 }
 0x305   : > { %12005 = vmatpush1.bf16.msra.mxu0 %v15618_v30  ;;  %12169 = vmatpush1.bf16.msra.mxu1 %v15620_v31  ;;  %v2541_v30 = vmul.f32 %v16137_v15, %v17210_v0  ;;  %v15787_v31 = vcombine.high %v4139_v10, %v4151_v21  ;;  %v2761_v15 = vld [vmem:[%s16785_s19 + $0x370] sm:$0xff] }
 0x306   : > { %12006 = vmatprep.subr.bf16.mxu0 %v15643_v32  ;;  %12170 = vmatprep.subr.bf16.mxu1 %v15645_v42  ;;  %v15789_v32 = vcombine.high %v4140_v3, %v4152_v34  ;;  %v4163_v42 = vld [vmem:[%s16785_s19 + $0x2f40] sm:$0xff] }
 0x307   : > { %v15811_v0 = vcombine.high %v4163_v42, %v4175_v57  ;;  %v15810_v8 = vcombine.low %v4163_v42, %v4175_v57 }
 0x309   : > { %12007 = vmatpush1.bf16.msra.mxu0 %v15642_v29  ;;  %12171 = vmatpush1.bf16.msra.mxu1 %v15644_v40  ;;  %v15786_v29 = vcombine.low %v4139_v10, %v4151_v21  ;;  %v15788_v40 = vcombine.low %v4140_v3, %v4152_v34  ;;  %v2749_v10 = vld [vmem:[%s16785_s19 + $0x310] sm:$0xff]  ;;  %v2750_v21 = vld [vmem:[%s16785_s19 + $0x318] sm:$0xff]  ;;  %v14374_v34 = vcombine.low %v2725_v63, %v2737_v1 }
 0x30a   : > { %12008 = vmatprep.subr.bf16.mxu0 %v15667_v4  ;;  %12172 = vmatprep.subr.bf16.mxu1 %v15669_v41  ;;  %v2591_v4 = vmul.f32 %v2572_v44, %v2541_v30  ;;  %v15813_v41 = vcombine.high %v4164_v33, %v4176_v36  ;;  %v2762_v3 = vld [vmem:[%s16785_s19 + $0x378] sm:$0xff]  ;;  %v14399_v44 = vcombine.high %v2749_v10, %v2761_v15  ;;  %v2785_v30 = vld [vmem:[%s16785_s19 + $0x430] sm:$0xff] }
 0x30b   : > { %v14398_v42 = vcombine.low %v2749_v10, %v2761_v15  ;;  %v14400_v57 = vcombine.low %v2750_v21, %v2762_v3  ;;  %v2917_v10 = vld [vmem:[%s16785_s19 + $0x850] sm:$0xff] }
 0x30c   : > { %v2929_v15 = vld [vmem:[%s16785_s19 + $0x8b0] sm:$0xff] }
 0x30d   : > { %12009 = vmatpush1.bf16.msra.mxu0 %v15666_v48  ;;  %12173 = vmatpush1.bf16.msra.mxu1 %v15668_v51  ;;  %v15812_v48 = vcombine.low %v4164_v33, %v4176_v36  ;;  %v2641_v51 = vadd.f32 %v2622_v38, %v2591_v4  ;;  %v2809_v38 = vld [vmem:[%s16785_s19 + $0x4f0] sm:$0xff] }
 0x30e   : > { %12010 = vmatprep.subr.bf16.mxu0 %v15691_v52  ;;  %12174 = vmatprep.subr.bf16.mxu1 %v15693_v55  ;;  %v14303_v52 = vcombine.high %v2653_v43, %v2665_v6  ;;  %v14305_v55 = vcombine.high %v2654_v45, %v2666_v2 }
 0x311   : > { %12011 = vmatpush1.bf16.msra.mxu0 %v15690_v35  ;;  %12175 = vmatpush1.bf16.msra.mxu1 %v15692_v19  ;;  %v14302_v35 = vcombine.low %v2653_v43, %v2665_v6  ;;  %v17292_v19 = vpack.c.bf16 %v2641_v51, %v2641_v51  ;;  %v2821_v6 = vld [vmem:[%s16785_s19 + $0x550] sm:$0xff] }
 0x312   : > { %12012 = vmatprep.subr.bf16.mxu0 %v15715_v50  ;;  %12176 = vmatprep.subr.bf16.mxu1 %v15717_v53  ;;  %v14304_v50 = vcombine.low %v2654_v45, %v2666_v2  ;;  %v14327_v53 = vcombine.high %v2677_v58, %v2689_v59  ;;  %v2833_v45 = vld [vmem:[%s16785_s19 + $0x5b0] sm:$0xff]  ;;  %v2822_v2 = vld [vmem:[%s16785_s19 + $0x558] sm:$0xff] }
 0x315   : > { %12013 = vmatpush1.bf16.msra.mxu0 %v15714_v23  ;;  %12177 = vmatpush1.bf16.msra.mxu1 %v15716_v27  ;;  %v2714_v23 = vld [vmem:[%s16785_s19 + $0x1f8] sm:$0xff]  ;;  %v14326_v27 = vcombine.low %v2677_v58, %v2689_v59  ;;  %v2845_v58 = vld [vmem:[%s16785_s19 + $0x610] sm:$0xff] }
 0x316   : > { %12014 = vmatprep.subr.bf16.mxu0 %v15739_v61  ;;  %12178 = vmatprep.subr.bf16.mxu1 %v15741_v13  ;;  %v14328_v61 = vcombine.low %v2678_v18, %v2690_v46  ;;  %v14351_v13 = vcombine.high %v2701_v26, %v2713_v20  ;;  %v14353_v56 = vcombine.high %v2702_v16, %v2714_v23  ;;  %v2857_v59 = vld [vmem:[%s16785_s19 + $0x670] sm:$0xff]  ;;  %v2846_v18 = vld [vmem:[%s16785_s19 + $0x618] sm:$0xff] }
 0x317   : > { %v2858_v46 = vld [vmem:[%s16785_s19 + $0x678] sm:$0xff] }
 0x319   : > { %12015 = vmatpush1.bf16.msra.mxu0 %v15738_v5  ;;  %12179 = vmatpush1.bf16.msra.mxu1 %v15740_v22  ;;  %v14350_v5 = vcombine.low %v2701_v26, %v2713_v20  ;;  %v14352_v22 = vcombine.low %v2702_v16, %v2714_v23  ;;  %v2869_v26 = vld [vmem:[%s16785_s19 + $0x6d0] sm:$0xff]  ;;  %v2870_v16 = vld [vmem:[%s16785_s19 + $0x6d8] sm:$0xff] }
 0x31a   : > { %12016 = vmatprep.subr.bf16.mxu0 %v15763_v7  ;;  %12180 = vmatprep.subr.bf16.mxu1 %v15765_v9  ;;  %v14375_v7 = vcombine.high %v2725_v63, %v2737_v1  ;;  %v14377_v9 = vcombine.high %v2726_v60, %v2738_v14  ;;  %v2881_v20 = vld [vmem:[%s16785_s19 + $0x730] sm:$0xff]  ;;  %v2882_v23 = vld [vmem:[%s16785_s19 + $0x738] sm:$0xff] }
 0x31b   : > { %v2893_v63 = vld [vmem:[%s16785_s19 + $0x790] sm:$0xff]  ;;  %v2894_v60 = vld [vmem:[%s16785_s19 + $0x798] sm:$0xff] }
 0x31c   : > { %v2905_v1 = vld [vmem:[%s16785_s19 + $0x7f0] sm:$0xff]  ;;  %v2906_v14 = vld [vmem:[%s16785_s19 + $0x7f8] sm:$0xff] }
 0x31d   : > { %12017 = vmatpush1.bf16.msra.mxu0 %v15762_v49  ;;  %12181 = vmatpush1.bf16.msra.mxu1 %v15764_v25  ;;  %v14401_v49 = vcombine.high %v2750_v21, %v2762_v3  ;;  %v2773_v25 = vld [vmem:[%s16785_s19 + $0x3d0] sm:$0xff]  ;;  %v2918_v21 = vld [vmem:[%s16785_s19 + $0x858] sm:$0xff] }
 0x31e   : > { %12018 = vmatprep.subr.bf16.mxu0 %v15787_v31  ;;  %12182 = vmatprep.subr.bf16.mxu1 %v15789_v32  ;;  %v2774_v31 = vld [vmem:[%s16785_s19 + $0x3d8] sm:$0xff]  ;;  %v14423_v33 = vcombine.high %v2773_v25, %v2785_v30  ;;  %v14422_v4 = vcombine.low %v2773_v25, %v2785_v30  ;;  %v2941_v25 = vld [vmem:[%s16785_s19 + $0x910] sm:$0xff] }
 0x31f   : > { %v2786_v32 = vld [vmem:[%s16785_s19 + $0x438] sm:$0xff]  ;;  %v2953_v30 = vld [vmem:[%s16785_s19 + $0x970] sm:$0xff] }
 0x320   : > { %v14425_v36 = vcombine.high %v2774_v31, %v2786_v32  ;;  %v2930_v3 = vld [vmem:[%s16785_s19 + $0x8b8] sm:$0xff] }
 0x321   : > { %12019 = vmatpush1.bf16.msra.mxu0 %v15786_v29  ;;  %12183 = vmatpush1.bf16.msra.mxu1 %v15788_v40  ;;  %v2798_v29 = vld [vmem:[%s16785_s19 + $0x498] sm:$0xff] }
 0x322   : > { %12020 = vmatprep.subr.bf16.mxu0 %v15811_v0  ;;  %12184 = vmatprep.subr.bf16.mxu1 %v15813_v41  ;;  %v2810_v40 = vld [vmem:[%s16785_s19 + $0x4f8] sm:$0xff]  ;;  %v14424_v0 = vcombine.low %v2774_v31, %v2786_v32  ;;  %v14447_v41 = vcombine.high %v2797_v37, %v2809_v38 }
 0x323   : > { %v14449_v43 = vcombine.high %v2798_v29, %v2810_v40  ;;  %v14448_v51 = vcombine.low %v2798_v29, %v2810_v40  ;;  %v2942_v31 = vld [vmem:[%s16785_s19 + $0x918] sm:$0xff] }
 0x324   : > { %v2954_v32 = vld [vmem:[%s16785_s19 + $0x978] sm:$0xff] }
 0x325   : > { %12021 = vmatpush1.bf16.msra.mxu0 %v15810_v8  ;;  %12185 = vmatpush1.bf16.msra.mxu1 %v15812_v48  ;;  %v2834_v8 = vld [vmem:[%s16785_s19 + $0x5b8] sm:$0xff]  ;;  %v14446_v48 = vcombine.low %v2797_v37, %v2809_v38  ;;  %v2965_v37 = vld [vmem:[%s16785_s19 + $0x9d0] sm:$0xff] }
 0x326   : > { %12195 = vmatprep.subr.bf16.mxu0 %v14303_v52  ;;  %12359 = vmatprep.subr.bf16.mxu1 %v14305_v55  ;;  %v14471_v52 = vcombine.high %v2821_v6, %v2833_v45  ;;  %v14473_v55 = vcombine.high %v2822_v2, %v2834_v8  ;;  %v2977_v38 = vld [vmem:[%s16785_s19 + $0xa30] sm:$0xff]  ;;  %v2966_v29 = vld [vmem:[%s16785_s19 + $0x9d8] sm:$0xff] }
 0x327   : > { %v2978_v40 = vld [vmem:[%s16785_s19 + $0xa38] sm:$0xff] }
 0x328   : > { %12023 = vmatmul.mubr.bf16.vlgmr.msra.gmra.mrb[8].mxu0 %v17292_v19  ;;  %12187 = vmatmul.mubr.bf16.vlgmr.msra.gmra.mrb[8].mxu1 %v17292_v19 }
 0x329   : > { %12196 = vmatpush1.bf16.msra.mxu0 %v14302_v35  ;;  %12227 = vmatprep.mubr.bf16.mxu0 %v17005_v62  ;;  %v14470_v35 = vcombine.low %v2821_v6, %v2833_v45  ;;  %v2989_v6 = vld [vmem:[%s16785_s19 + $0xa90] sm:$0xff] }
 0x32a   : > { %12360 = vmatpush1.bf16.msra.mxu1 %v14304_v50  ;;  %12391 = vmatprep.mubr.bf16.mxu1 %v17005_v62  ;;  %v14472_v50 = vcombine.low %v2822_v2, %v2834_v8  ;;  %v3001_v45 = vld [vmem:[%s16785_s19 + $0xaf0] sm:$0xff]  ;;  %v2990_v2 = vld [vmem:[%s16785_s19 + $0xa98] sm:$0xff] }
 0x32b   : > { %12197 = vmatprep.subr.bf16.mxu0 %v14327_v53  ;;  %12361 = vmatprep.subr.bf16.mxu1 %v14329_v47  ;;  %v14495_v53 = vcombine.high %v2845_v58, %v2857_v59  ;;  %v14497_v47 = vcombine.high %v2846_v18, %v2858_v46  ;;  %v3002_v8 = vld [vmem:[%s16785_s19 + $0xaf8] sm:$0xff] }
 0x32d   : > { %12198 = vmatpush1.bf16.msra.mxu0 %v14326_v27  ;;  %v14494_v27 = vcombine.low %v2845_v58, %v2857_v59  ;;  %v3013_v58 = vld [vmem:[%s16785_s19 + $0xb50] sm:$0xff] }
 0x32e   : > { %12362 = vmatpush1.bf16.msra.mxu1 %v14328_v61  ;;  %12199 = vmatprep.subr.bf16.mxu0 %v14351_v13  ;;  %v14496_v61 = vcombine.low %v2846_v18, %v2858_v46  ;;  %v14519_v13 = vcombine.high %v2869_v26, %v2881_v20  ;;  %v3025_v59 = vld [vmem:[%s16785_s19 + $0xbb0] sm:$0xff]  ;;  %v3014_v18 = vld [vmem:[%s16785_s19 + $0xb58] sm:$0xff] }
 0x32f   : > { %12363 = vmatprep.subr.bf16.mxu1 %v14353_v56  ;;  %v14521_v56 = vcombine.high %v2870_v16, %v2882_v23  ;;  %v3026_v46 = vld [vmem:[%s16785_s19 + $0xbb8] sm:$0xff] }
 0x331   : > { %12200 = vmatpush1.bf16.msra.mxu0 %v14350_v5  ;;  %v14518_v5 = vcombine.low %v2869_v26, %v2881_v20  ;;  %v3037_v26 = vld [vmem:[%s16785_s19 + $0xc10] sm:$0xff] }
 0x332   : > { %12364 = vmatpush1.bf16.msra.mxu1 %v14352_v22  ;;  %12201 = vmatprep.subr.bf16.mxu0 %v14375_v7  ;;  %v14520_v22 = vcombine.low %v2870_v16, %v2882_v23  ;;  %v14543_v7 = vcombine.high %v2893_v63, %v2905_v1  ;;  %v3049_v20 = vld [vmem:[%s16785_s19 + $0xc70] sm:$0xff]  ;;  %v3038_v16 = vld [vmem:[%s16785_s19 + $0xc18] sm:$0xff] }
 0x333   : > { %12365 = vmatprep.subr.bf16.mxu1 %v14377_v9  ;;  %v14545_v9 = vcombine.high %v2894_v60, %v2906_v14  ;;  %v3050_v23 = vld [vmem:[%s16785_s19 + $0xc78] sm:$0xff] }
 0x335   : > { %12202 = vmatpush1.bf16.msra.mxu0 %v14374_v34  ;;  %v14542_v34 = vcombine.low %v2893_v63, %v2905_v1  ;;  %v3061_v63 = vld [vmem:[%s16785_s19 + $0xcd0] sm:$0xff] }
 0x336   : > { %12366 = vmatpush1.bf16.msra.mxu1 %v14376_v24  ;;  %12203 = vmatprep.subr.bf16.mxu0 %v14399_v44  ;;  %v14544_v24 = vcombine.low %v2894_v60, %v2906_v14  ;;  %v14567_v44 = vcombine.high %v2917_v10, %v2929_v15  ;;  %v3073_v1 = vld [vmem:[%s16785_s19 + $0xd30] sm:$0xff]  ;;  %v14686_v60 = vcombine.low %v3037_v26, %v3049_v20  ;;  %v3062_v14 = vld [vmem:[%s16785_s19 + $0xcd8] sm:$0xff] }
 0x337   : > { %12367 = vmatprep.subr.bf16.mxu1 %v14401_v49  ;;  %v14569_v49 = vcombine.high %v2918_v21, %v2930_v3 }
 0x339   : > { %12204 = vmatpush1.bf16.msra.mxu0 %v14398_v42  ;;  %v14566_v42 = vcombine.low %v2917_v10, %v2929_v15  ;;  %v3097_v10 = vld [vmem:[%s16785_s19 + $0xdf0] sm:$0xff] }
 0x33a   : > { %12368 = vmatpush1.bf16.msra.mxu1 %v14400_v57  ;;  %12205 = vmatprep.subr.bf16.mxu0 %v14423_v33  ;;  %v14568_v57 = vcombine.low %v2918_v21, %v2930_v3  ;;  %v14591_v33 = vcombine.high %v2941_v25, %v2953_v30  ;;  %v3086_v21 = vld [vmem:[%s16785_s19 + $0xd98] sm:$0xff] }
 0x33b   : > { %12369 = vmatprep.subr.bf16.mxu1 %v14425_v36  ;;  %v14593_v36 = vcombine.high %v2942_v31, %v2954_v32  ;;  %v3098_v3 = vld [vmem:[%s16785_s19 + $0xdf8] sm:$0xff] }
 0x33d   : > { %12206 = vmatpush1.bf16.msra.mxu0 %v14422_v4  ;;  %v14590_v4 = vcombine.low %v2941_v25, %v2953_v30  ;;  %v3109_v25 = vld [vmem:[%s16785_s19 + $0xe50] sm:$0xff] }
 0x33e   : > { %12370 = vmatpush1.bf16.msra.mxu1 %v14424_v0  ;;  %12207 = vmatprep.subr.bf16.mxu0 %v14447_v41  ;;  %v14592_v0 = vcombine.low %v2942_v31, %v2954_v32  ;;  %v14615_v41 = vcombine.high %v2965_v37, %v2977_v38  ;;  %v3121_v30 = vld [vmem:[%s16785_s19 + $0xeb0] sm:$0xff]  ;;  %v3110_v31 = vld [vmem:[%s16785_s19 + $0xe58] sm:$0xff] }
 0x33f   : > { %12371 = vmatprep.subr.bf16.mxu1 %v14449_v43  ;;  %v14617_v43 = vcombine.high %v2966_v29, %v2978_v40  ;;  %v3122_v32 = vld [vmem:[%s16785_s19 + $0xeb8] sm:$0xff] }
 0x341   : > { %12208 = vmatpush1.bf16.msra.mxu0 %v14446_v48  ;;  %v14614_v48 = vcombine.low %v2965_v37, %v2977_v38  ;;  %v3133_v37 = vld [vmem:[%s16785_s19 + $0xf10] sm:$0xff] }
 0x342   : > { %12372 = vmatpush1.bf16.msra.mxu1 %v14448_v51  ;;  %12209 = vmatprep.subr.bf16.mxu0 %v14471_v52  ;;  %v14616_v51 = vcombine.low %v2966_v29, %v2978_v40  ;;  %v14639_v52 = vcombine.high %v2989_v6, %v3001_v45  ;;  %v3145_v38 = vld [vmem:[%s16785_s19 + $0xf70] sm:$0xff]  ;;  %v3134_v29 = vld [vmem:[%s16785_s19 + $0xf18] sm:$0xff] }
 0x343   : > { %12373 = vmatprep.subr.bf16.mxu1 %v14473_v55  ;;  %v14641_v55 = vcombine.high %v2990_v2, %v3002_v8  ;;  %v3146_v40 = vld [vmem:[%s16785_s19 + $0xf78] sm:$0xff] }
 0x345   : > { %12210 = vmatpush1.bf16.msra.mxu0 %v14470_v35  ;;  %v14638_v35 = vcombine.low %v2989_v6, %v3001_v45  ;;  %v3157_v6 = vld [vmem:[%s16785_s19 + $0xfd0] sm:$0xff] }
 0x346   : > { %12374 = vmatpush1.bf16.msra.mxu1 %v14472_v50  ;;  %12211 = vmatprep.subr.bf16.mxu0 %v14495_v53  ;;  %v14640_v50 = vcombine.low %v2990_v2, %v3002_v8  ;;  %v14663_v53 = vcombine.high %v3013_v58, %v3025_v59  ;;  %v3169_v45 = vld [vmem:[%s16785_s19 + $0x1030] sm:$0xff]  ;;  %v3158_v2 = vld [vmem:[%s16785_s19 + $0xfd8] sm:$0xff] }
 0x347   : > { %12375 = vmatprep.subr.bf16.mxu1 %v14497_v47  ;;  %v14665_v47 = vcombine.high %v3014_v18, %v3026_v46  ;;  %v3170_v8 = vld [vmem:[%s16785_s19 + $0x1038] sm:$0xff] }
 0x349   : > { %12212 = vmatpush1.bf16.msra.mxu0 %v14494_v27  ;;  %v14662_v27 = vcombine.low %v3013_v58, %v3025_v59  ;;  %v3181_v58 = vld [vmem:[%s16785_s19 + $0x1090] sm:$0xff] }
 0x34a   : > { %12376 = vmatpush1.bf16.msra.mxu1 %v14496_v61  ;;  %12213 = vmatprep.subr.bf16.mxu0 %v14519_v13  ;;  %v14664_v61 = vcombine.low %v3014_v18, %v3026_v46  ;;  %v14687_v13 = vcombine.high %v3037_v26, %v3049_v20  ;;  %v3193_v59 = vld [vmem:[%s16785_s19 + $0x10f0] sm:$0xff]  ;;  %v3182_v18 = vld [vmem:[%s16785_s19 + $0x1098] sm:$0xff] }
 0x34b   : > { %12377 = vmatprep.subr.bf16.mxu1 %v14521_v56  ;;  %v14689_v56 = vcombine.high %v3038_v16, %v3050_v23  ;;  %v3194_v46 = vld [vmem:[%s16785_s19 + $0x10f8] sm:$0xff]  ;;  %v3205_v26 = vld [vmem:[%s16785_s19 + $0x1150] sm:$0xff] }
 0x34c   : > { %v3217_v20 = vld [vmem:[%s16785_s19 + $0x11b0] sm:$0xff] }
 0x34d   : > { %12214 = vmatpush1.bf16.msra.mxu0 %v14518_v5  ;;  %v3074_v5 = vld [vmem:[%s16785_s19 + $0xd38] sm:$0xff] }
 0x34e   : > { %12378 = vmatpush1.bf16.msra.mxu1 %v14520_v22  ;;  %12215 = vmatprep.subr.bf16.mxu0 %v14543_v7  ;;  %v14688_v22 = vcombine.low %v3038_v16, %v3050_v23  ;;  %v14711_v7 = vcombine.high %v3061_v63, %v3073_v1  ;;  %v14713_v15 = vcombine.high %v3062_v14, %v3074_v5  ;;  %v3206_v16 = vld [vmem:[%s16785_s19 + $0x1158] sm:$0xff] }
 0x34f   : > { %12379 = vmatprep.subr.bf16.mxu1 %v14545_v9  ;;  %v3085_v9 = vld [vmem:[%s16785_s19 + $0xd90] sm:$0xff]  ;;  %v3218_v23 = vld [vmem:[%s16785_s19 + $0x11b8] sm:$0xff] }
 0x351   : > { %12216 = vmatpush1.bf16.msra.mxu0 %v14542_v34  ;;  %v14710_v34 = vcombine.low %v3061_v63, %v3073_v1  ;;  %v3229_v63 = vld [vmem:[%s16785_s19 + $0x1210] sm:$0xff] }
 0x352   : > { %12380 = vmatpush1.bf16.msra.mxu1 %v14544_v24  ;;  %12217 = vmatprep.subr.bf16.mxu0 %v14567_v44  ;;  %v14712_v24 = vcombine.low %v3062_v14, %v3074_v5  ;;  %v14735_v44 = vcombine.high %v3085_v9, %v3097_v10  ;;  %v3241_v1 = vld [vmem:[%s16785_s19 + $0x1270] sm:$0xff]  ;;  %v3242_v14 = vld [vmem:[%s16785_s19 + $0x1278] sm:$0xff]  ;;  %v14854_v5 = vcombine.low %v3205_v26, %v3217_v20 }
 0x353   : > { %12381 = vmatprep.subr.bf16.mxu1 %v14569_v49  ;;  %v14737_v49 = vcombine.high %v3086_v21, %v3098_v3 }
 0x355   : > { %12218 = vmatpush1.bf16.msra.mxu0 %v14566_v42  ;;  %v14734_v42 = vcombine.low %v3085_v9, %v3097_v10  ;;  %v3253_v10 = vld [vmem:[%s16785_s19 + $0x12d0] sm:$0xff] }
 0x356   : > { %12382 = vmatpush1.bf16.msra.mxu1 %v14568_v57  ;;  %12219 = vmatprep.subr.bf16.mxu0 %v14591_v33  ;;  %v14736_v57 = vcombine.low %v3086_v21, %v3098_v3  ;;  %v14759_v33 = vcombine.high %v3109_v25, %v3121_v30  ;;  %v3254_v21 = vld [vmem:[%s16785_s19 + $0x12d8] sm:$0xff] }
 0x357   : > { %12383 = vmatprep.subr.bf16.mxu1 %v14593_v36  ;;  %v14761_v36 = vcombine.high %v3110_v31, %v3122_v32  ;;  %v3266_v3 = vld [vmem:[%s16785_s19 + $0x1338] sm:$0xff] }
 0x359   : > { %12220 = vmatpush1.bf16.msra.mxu0 %v14590_v4  ;;  %v14758_v4 = vcombine.low %v3109_v25, %v3121_v30  ;;  %v3277_v25 = vld [vmem:[%s16785_s19 + $0x1390] sm:$0xff] }
 0x35a   : > { %12384 = vmatpush1.bf16.msra.mxu1 %v14592_v0  ;;  %12221 = vmatprep.subr.bf16.mxu0 %v14615_v41  ;;  %v14760_v0 = vcombine.low %v3110_v31, %v3122_v32  ;;  %v14783_v41 = vcombine.high %v3133_v37, %v3145_v38  ;;  %v3289_v30 = vld [vmem:[%s16785_s19 + $0x13f0] sm:$0xff]  ;;  %v3278_v31 = vld [vmem:[%s16785_s19 + $0x1398] sm:$0xff] }
 0x35b   : > { %12385 = vmatprep.subr.bf16.mxu1 %v14617_v43  ;;  %v14785_v43 = vcombine.high %v3134_v29, %v3146_v40  ;;  %v3290_v32 = vld [vmem:[%s16785_s19 + $0x13f8] sm:$0xff] }
 0x35d   : > { %12222 = vmatpush1.bf16.msra.mxu0 %v14614_v48  ;;  %v14782_v48 = vcombine.low %v3133_v37, %v3145_v38  ;;  %v3301_v37 = vld [vmem:[%s16785_s19 + $0x1450] sm:$0xff] }
 0x35e   : > { %12386 = vmatpush1.bf16.msra.mxu1 %v14616_v51  ;;  %12223 = vmatprep.subr.bf16.mxu0 %v14639_v52  ;;  %v14784_v51 = vcombine.low %v3134_v29, %v3146_v40  ;;  %v14807_v52 = vcombine.high %v3157_v6, %v3169_v45  ;;  %v3313_v38 = vld [vmem:[%s16785_s19 + $0x14b0] sm:$0xff]  ;;  %v3302_v29 = vld [vmem:[%s16785_s19 + $0x1458] sm:$0xff] }
 0x35f   : > { %12387 = vmatprep.subr.bf16.mxu1 %v14641_v55  ;;  %v14809_v55 = vcombine.high %v3158_v2, %v3170_v8  ;;  %v3314_v40 = vld [vmem:[%s16785_s19 + $0x14b8] sm:$0xff] }
 0x361   : > { %12224 = vmatpush1.bf16.msra.mxu0 %v14638_v35  ;;  %v14806_v35 = vcombine.low %v3157_v6, %v3169_v45  ;;  %v3325_v6 = vld [vmem:[%s16785_s19 + $0x1510] sm:$0xff] }
 0x362   : > { %12388 = vmatpush1.bf16.msra.mxu1 %v14640_v50  ;;  %12225 = vmatprep.subr.bf16.mxu0 %v14663_v53  ;;  %v14808_v50 = vcombine.low %v3158_v2, %v3170_v8  ;;  %v14831_v53 = vcombine.high %v3181_v58, %v3193_v59  ;;  %v3337_v45 = vld [vmem:[%s16785_s19 + $0x1570] sm:$0xff]  ;;  %v3326_v2 = vld [vmem:[%s16785_s19 + $0x1518] sm:$0xff] }
 0x363   : > { %12389 = vmatprep.subr.bf16.mxu1 %v14665_v47  ;;  %v14833_v47 = vcombine.high %v3182_v18, %v3194_v46  ;;  %v3338_v8 = vld [vmem:[%s16785_s19 + $0x1578] sm:$0xff] }
 0x365   : > { %12226 = vmatpush1.bf16.msra.mxu0 %v14662_v27  ;;  %v14830_v27 = vcombine.low %v3181_v58, %v3193_v59  ;;  %v3349_v58 = vld [vmem:[%s16785_s19 + $0x15d0] sm:$0xff] }
 0x366   : > { %12390 = vmatpush1.bf16.msra.mxu1 %v14664_v61  ;;  %12236 = vmatprep.subr.bf16.mxu0 %v14687_v13  ;;  %v14832_v61 = vcombine.low %v3182_v18, %v3194_v46  ;;  %v14855_v13 = vcombine.high %v3205_v26, %v3217_v20  ;;  %v3361_v59 = vld [vmem:[%s16785_s19 + $0x1630] sm:$0xff]  ;;  %v3350_v18 = vld [vmem:[%s16785_s19 + $0x15d8] sm:$0xff] }
 0x367   : > { %12400 = vmatprep.subr.bf16.mxu1 %v14689_v56  ;;  %v14857_v56 = vcombine.high %v3206_v16, %v3218_v23  ;;  %v3362_v46 = vld [vmem:[%s16785_s19 + $0x1638] sm:$0xff]  ;;  %v3373_v26 = vld [vmem:[%s16785_s19 + $0x1690] sm:$0xff] }
 0x368   : > { %12228 = vmatmul.mubr.bf16.vlgmr.msra.gmra.mrb[12].mxu0 %v17007_v39  ;;  %v3385_v20 = vld [vmem:[%s16785_s19 + $0x16f0] sm:$0xff] }
 0x369   : > { %12392 = vmatmul.mubr.bf16.vlgmr.msra.gmra.mrb[12].mxu1 %v17007_v39  ;;  %12237 = vmatpush1.bf16.msra.mxu0 %v14686_v60  ;;  %v3230_v60 = vld [vmem:[%s16785_s19 + $0x1218] sm:$0xff] }
 0x36a   : > { %12268 = vmatprep.mubr.bf16.mxu0 %v17015_v54  ;;  %12401 = vmatpush1.bf16.msra.mxu1 %v14688_v22  ;;  %v14856_v22 = vcombine.low %v3206_v16, %v3218_v23  ;;  %v14881_v9 = vcombine.high %v3230_v60, %v3242_v14  ;;  %v3374_v16 = vld [vmem:[%s16785_s19 + $0x1698] sm:$0xff] }
 0x36b   : > { %12432 = vmatprep.mubr.bf16.mxu1 %v17015_v54  ;;  %12238 = vmatprep.subr.bf16.mxu0 %v14711_v7  ;;  %v14879_v7 = vcombine.high %v3229_v63, %v3241_v1  ;;  %v3386_v23 = vld [vmem:[%s16785_s19 + $0x16f8] sm:$0xff] }
 0x36c   : > { %12402 = vmatprep.subr.bf16.mxu1 %v14713_v15  ;;  %v3265_v15 = vld [vmem:[%s16785_s19 + $0x1330] sm:$0xff] }
 0x36d   : > { %12239 = vmatpush1.bf16.msra.mxu0 %v14710_v34  ;;  %v14878_v34 = vcombine.low %v3229_v63, %v3241_v1  ;;  %v3397_v63 = vld [vmem:[%s16785_s19 + $0x1750] sm:$0xff] }
 0x36e   : > { %12403 = vmatpush1.bf16.msra.mxu1 %v14712_v24  ;;  %12240 = vmatprep.subr.bf16.mxu0 %v14735_v44  ;;  %v14880_v24 = vcombine.low %v3230_v60, %v3242_v14  ;;  %v14903_v44 = vcombine.high %v3253_v10, %v3265_v15  ;;  %v3409_v1 = vld [vmem:[%s16785_s19 + $0x17b0] sm:$0xff]  ;;  %v3398_v60 = vld [vmem:[%s16785_s19 + $0x1758] sm:$0xff] }
 0x36f   : > { %12404 = vmatprep.subr.bf16.mxu1 %v14737_v49  ;;  %v14905_v49 = vcombine.high %v3254_v21, %v3266_v3  ;;  %v3410_v14 = vld [vmem:[%s16785_s19 + $0x17b8] sm:$0xff] }
 0x371   : > { %12241 = vmatpush1.bf16.msra.mxu0 %v14734_v42  ;;  %v14902_v42 = vcombine.low %v3253_v10, %v3265_v15  ;;  %v3421_v10 = vld [vmem:[%s16785_s19 + $0x1810] sm:$0xff] }
 0x372   : > { %12405 = vmatpush1.bf16.msra.mxu1 %v14736_v57  ;;  %12242 = vmatprep.subr.bf16.mxu0 %v14759_v33  ;;  %v14904_v57 = vcombine.low %v3254_v21, %v3266_v3  ;;  %v14927_v33 = vcombine.high %v3277_v25, %v3289_v30  ;;  %v3433_v15 = vld [vmem:[%s16785_s19 + $0x1870] sm:$0xff]  ;;  %v3422_v21 = vld [vmem:[%s16785_s19 + $0x1818] sm:$0xff] }
 0x373   : > { %12406 = vmatprep.subr.bf16.mxu1 %v14761_v36  ;;  %v14929_v36 = vcombine.high %v3278_v31, %v3290_v32  ;;  %v3434_v3 = vld [vmem:[%s16785_s19 + $0x1878] sm:$0xff] }
 0x375   : > { %12243 = vmatpush1.bf16.msra.mxu0 %v14758_v4  ;;  %v14926_v4 = vcombine.low %v3277_v25, %v3289_v30  ;;  %v3445_v25 = vld [vmem:[%s16785_s19 + $0x18d0] sm:$0xff] }
 0x376   : > { %12407 = vmatpush1.bf16.msra.mxu1 %v14760_v0  ;;  %12244 = vmatprep.subr.bf16.mxu0 %v14783_v41  ;;  %v14928_v0 = vcombine.low %v3278_v31, %v3290_v32  ;;  %v14951_v41 = vcombine.high %v3301_v37, %v3313_v38  ;;  %v3457_v30 = vld [vmem:[%s16785_s19 + $0x1930] sm:$0xff]  ;;  %v15070_v31 = vcombine.low %v3421_v10, %v3433_v15  ;;  %v3446_v32 = vld [vmem:[%s16785_s19 + $0x18d8] sm:$0xff] }
 0x377   : > { %12408 = vmatprep.subr.bf16.mxu1 %v14785_v43  ;;  %v14953_v43 = vcombine.high %v3302_v29, %v3314_v40 }
 0x379   : > { %12245 = vmatpush1.bf16.msra.mxu0 %v14782_v48  ;;  %v14950_v48 = vcombine.low %v3301_v37, %v3313_v38  ;;  %v3481_v37 = vld [vmem:[%s16785_s19 + $0x19f0] sm:$0xff] }
 0x37a   : > { %12409 = vmatpush1.bf16.msra.mxu1 %v14784_v51  ;;  %12246 = vmatprep.subr.bf16.mxu0 %v14807_v52  ;;  %v14952_v51 = vcombine.low %v3302_v29, %v3314_v40  ;;  %v14975_v52 = vcombine.high %v3325_v6, %v3337_v45  ;;  %v3470_v29 = vld [vmem:[%s16785_s19 + $0x1998] sm:$0xff] }
 0x37b   : > { %12410 = vmatprep.subr.bf16.mxu1 %v14809_v55  ;;  %v14977_v55 = vcombine.high %v3326_v2, %v3338_v8  ;;  %v3482_v40 = vld [vmem:[%s16785_s19 + $0x19f8] sm:$0xff] }
 0x37d   : > { %12247 = vmatpush1.bf16.msra.mxu0 %v14806_v35  ;;  %v14974_v35 = vcombine.low %v3325_v6, %v3337_v45  ;;  %v3493_v6 = vld [vmem:[%s16785_s19 + $0x1a50] sm:$0xff] }
 0x37e   : > { %12411 = vmatpush1.bf16.msra.mxu1 %v14808_v50  ;;  %12248 = vmatprep.subr.bf16.mxu0 %v14831_v53  ;;  %v14976_v50 = vcombine.low %v3326_v2, %v3338_v8  ;;  %v14999_v53 = vcombine.high %v3349_v58, %v3361_v59  ;;  %v3505_v45 = vld [vmem:[%s16785_s19 + $0x1ab0] sm:$0xff]  ;;  %v3494_v2 = vld [vmem:[%s16785_s19 + $0x1a58] sm:$0xff] }
 0x37f   : > { %12412 = vmatprep.subr.bf16.mxu1 %v14833_v47  ;;  %v15001_v47 = vcombine.high %v3350_v18, %v3362_v46  ;;  %v3506_v8 = vld [vmem:[%s16785_s19 + $0x1ab8] sm:$0xff] }
 0x381   : > { %12249 = vmatpush1.bf16.msra.mxu0 %v14830_v27  ;;  %v14998_v27 = vcombine.low %v3349_v58, %v3361_v59  ;;  %v3517_v58 = vld [vmem:[%s16785_s19 + $0x1b10] sm:$0xff] }
 0x382   : > { %12413 = vmatpush1.bf16.msra.mxu1 %v14832_v61  ;;  %12250 = vmatprep.subr.bf16.mxu0 %v14855_v13  ;;  %v15000_v61 = vcombine.low %v3350_v18, %v3362_v46  ;;  %v15023_v13 = vcombine.high %v3373_v26, %v3385_v20  ;;  %v3529_v59 = vld [vmem:[%s16785_s19 + $0x1b70] sm:$0xff]  ;;  %v3518_v18 = vld [vmem:[%s16785_s19 + $0x1b18] sm:$0xff] }
 0x383   : > { %12414 = vmatprep.subr.bf16.mxu1 %v14857_v56  ;;  %v15025_v56 = vcombine.high %v3374_v16, %v3386_v23  ;;  %v3530_v46 = vld [vmem:[%s16785_s19 + $0x1b78] sm:$0xff] }
 0x385   : > { %12251 = vmatpush1.bf16.msra.mxu0 %v14854_v5  ;;  %v15022_v5 = vcombine.low %v3373_v26, %v3385_v20  ;;  %v3541_v26 = vld [vmem:[%s16785_s19 + $0x1bd0] sm:$0xff] }
 0x386   : > { %12415 = vmatpush1.bf16.msra.mxu1 %v14856_v22  ;;  %12252 = vmatprep.subr.bf16.mxu0 %v14879_v7  ;;  %v15024_v22 = vcombine.low %v3374_v16, %v3386_v23  ;;  %v15047_v7 = vcombine.high %v3397_v63, %v3409_v1  ;;  %v3553_v20 = vld [vmem:[%s16785_s19 + $0x1c30] sm:$0xff]  ;;  %v3542_v16 = vld [vmem:[%s16785_s19 + $0x1bd8] sm:$0xff] }
 0x387   : > { %12416 = vmatprep.subr.bf16.mxu1 %v14881_v9  ;;  %v15049_v9 = vcombine.high %v3398_v60, %v3410_v14  ;;  %v3554_v23 = vld [vmem:[%s16785_s19 + $0x1c38] sm:$0xff] }
 0x389   : > { %12253 = vmatpush1.bf16.msra.mxu0 %v14878_v34  ;;  %v15046_v34 = vcombine.low %v3397_v63, %v3409_v1  ;;  %v3565_v63 = vld [vmem:[%s16785_s19 + $0x1c90] sm:$0xff] }
 0x38a   : > { %12417 = vmatpush1.bf16.msra.mxu1 %v14880_v24  ;;  %12254 = vmatprep.subr.bf16.mxu0 %v14903_v44  ;;  %v15048_v24 = vcombine.low %v3398_v60, %v3410_v14  ;;  %v15071_v44 = vcombine.high %v3421_v10, %v3433_v15  ;;  %v3577_v1 = vld [vmem:[%s16785_s19 + $0x1cf0] sm:$0xff]  ;;  %v3566_v60 = vld [vmem:[%s16785_s19 + $0x1c98] sm:$0xff] }
 0x38b   : > { %12418 = vmatprep.subr.bf16.mxu1 %v14905_v49  ;;  %v15073_v49 = vcombine.high %v3422_v21, %v3434_v3  ;;  %v3578_v14 = vld [vmem:[%s16785_s19 + $0x1cf8] sm:$0xff]  ;;  %v3589_v10 = vld [vmem:[%s16785_s19 + $0x1d50] sm:$0xff] }
 0x38c   : > { %v3601_v15 = vld [vmem:[%s16785_s19 + $0x1db0] sm:$0xff] }
 0x38d   : > { %12255 = vmatpush1.bf16.msra.mxu0 %v14902_v42  ;;  %v3458_v42 = vld [vmem:[%s16785_s19 + $0x1938] sm:$0xff] }
 0x38e   : > { %12419 = vmatpush1.bf16.msra.mxu1 %v14904_v57  ;;  %12256 = vmatprep.subr.bf16.mxu0 %v14927_v33  ;;  %v15072_v57 = vcombine.low %v3422_v21, %v3434_v3  ;;  %v15095_v33 = vcombine.high %v3445_v25, %v3457_v30  ;;  %v15097_v38 = vcombine.high %v3446_v32, %v3458_v42  ;;  %v3590_v21 = vld [vmem:[%s16785_s19 + $0x1d58] sm:$0xff] }
 0x38f   : > { %12420 = vmatprep.subr.bf16.mxu1 %v14929_v36  ;;  %v3469_v36 = vld [vmem:[%s16785_s19 + $0x1990] sm:$0xff]  ;;  %v3602_v3 = vld [vmem:[%s16785_s19 + $0x1db8] sm:$0xff] }
 0x391   : > { %12257 = vmatpush1.bf16.msra.mxu0 %v14926_v4  ;;  %v15094_v4 = vcombine.low %v3445_v25, %v3457_v30  ;;  %v3613_v25 = vld [vmem:[%s16785_s19 + $0x1e10] sm:$0xff] }
 0x392   : > { %12421 = vmatpush1.bf16.msra.mxu1 %v14928_v0  ;;  %12258 = vmatprep.subr.bf16.mxu0 %v14951_v41  ;;  %v15096_v0 = vcombine.low %v3446_v32, %v3458_v42  ;;  %v15119_v41 = vcombine.high %v3469_v36, %v3481_v37  ;;  %v3625_v30 = vld [vmem:[%s16785_s19 + $0x1e70] sm:$0xff]  ;;  %v3626_v32 = vld [vmem:[%s16785_s19 + $0x1e78] sm:$0xff]  ;;  %v15238_v42 = vcombine.low %v3589_v10, %v3601_v15 }
 0x393   : > { %12422 = vmatprep.subr.bf16.mxu1 %v14953_v43  ;;  %v15121_v43 = vcombine.high %v3470_v29, %v3482_v40 }
 0x395   : > { %12259 = vmatpush1.bf16.msra.mxu0 %v14950_v48  ;;  %v15118_v48 = vcombine.low %v3469_v36, %v3481_v37  ;;  %v3637_v37 = vld [vmem:[%s16785_s19 + $0x1ed0] sm:$0xff] }
 0x396   : > { %12423 = vmatpush1.bf16.msra.mxu1 %v14952_v51  ;;  %12260 = vmatprep.subr.bf16.mxu0 %v14975_v52  ;;  %v15120_v51 = vcombine.low %v3470_v29, %v3482_v40  ;;  %v15143_v52 = vcombine.high %v3493_v6, %v3505_v45  ;;  %v3638_v29 = vld [vmem:[%s16785_s19 + $0x1ed8] sm:$0xff] }
 0x397   : > { %12424 = vmatprep.subr.bf16.mxu1 %v14977_v55  ;;  %v15145_v55 = vcombine.high %v3494_v2, %v3506_v8  ;;  %v3650_v40 = vld [vmem:[%s16785_s19 + $0x1f38] sm:$0xff] }
 0x399   : > { %12261 = vmatpush1.bf16.msra.mxu0 %v14974_v35  ;;  %v15142_v35 = vcombine.low %v3493_v6, %v3505_v45  ;;  %v3661_v6 = vld [vmem:[%s16785_s19 + $0x1f90] sm:$0xff] }
 0x39a   : > { %12425 = vmatpush1.bf16.msra.mxu1 %v14976_v50  ;;  %12262 = vmatprep.subr.bf16.mxu0 %v14999_v53  ;;  %v15144_v50 = vcombine.low %v3494_v2, %v3506_v8  ;;  %v15167_v53 = vcombine.high %v3517_v58, %v3529_v59  ;;  %v3673_v45 = vld [vmem:[%s16785_s19 + $0x1ff0] sm:$0xff]  ;;  %v3662_v2 = vld [vmem:[%s16785_s19 + $0x1f98] sm:$0xff] }
 0x39b   : > { %12426 = vmatprep.subr.bf16.mxu1 %v15001_v47  ;;  %v15169_v47 = vcombine.high %v3518_v18, %v3530_v46  ;;  %v3674_v8 = vld [vmem:[%s16785_s19 + $0x1ff8] sm:$0xff] }
 0x39d   : > { %12263 = vmatpush1.bf16.msra.mxu0 %v14998_v27  ;;  %v15166_v27 = vcombine.low %v3517_v58, %v3529_v59  ;;  %v3685_v58 = vld [vmem:[%s16785_s19 + $0x2050] sm:$0xff] }
 0x39e   : > { %12427 = vmatpush1.bf16.msra.mxu1 %v15000_v61  ;;  %12264 = vmatprep.subr.bf16.mxu0 %v15023_v13  ;;  %v15168_v61 = vcombine.low %v3518_v18, %v3530_v46  ;;  %v15191_v13 = vcombine.high %v3541_v26, %v3553_v20  ;;  %v3697_v59 = vld [vmem:[%s16785_s19 + $0x20b0] sm:$0xff]  ;;  %v3686_v18 = vld [vmem:[%s16785_s19 + $0x2058] sm:$0xff] }
 0x39f   : > { %12428 = vmatprep.subr.bf16.mxu1 %v15025_v56  ;;  %v15193_v56 = vcombine.high %v3542_v16, %v3554_v23  ;;  %v3698_v46 = vld [vmem:[%s16785_s19 + $0x20b8] sm:$0xff] }
 0x3a1   : > { %12265 = vmatpush1.bf16.msra.mxu0 %v15022_v5  ;;  %v15190_v5 = vcombine.low %v3541_v26, %v3553_v20  ;;  %v3709_v26 = vld [vmem:[%s16785_s19 + $0x2110] sm:$0xff] }
 0x3a2   : > { %12429 = vmatpush1.bf16.msra.mxu1 %v15024_v22  ;;  %12266 = vmatprep.subr.bf16.mxu0 %v15047_v7  ;;  %v15192_v22 = vcombine.low %v3542_v16, %v3554_v23  ;;  %v15215_v7 = vcombine.high %v3565_v63, %v3577_v1  ;;  %v3721_v20 = vld [vmem:[%s16785_s19 + $0x2170] sm:$0xff]  ;;  %v3710_v16 = vld [vmem:[%s16785_s19 + $0x2118] sm:$0xff] }
 0x3a3   : > { %12430 = vmatprep.subr.bf16.mxu1 %v15049_v9  ;;  %v15217_v9 = vcombine.high %v3566_v60, %v3578_v14  ;;  %v3722_v23 = vld [vmem:[%s16785_s19 + $0x2178] sm:$0xff] }
 0x3a5   : > { %12267 = vmatpush1.bf16.msra.mxu0 %v15046_v34  ;;  %v15214_v34 = vcombine.low %v3565_v63, %v3577_v1  ;;  %v3733_v63 = vld [vmem:[%s16785_s19 + $0x21d0] sm:$0xff] }
 0x3a6   : > { %12431 = vmatpush1.bf16.msra.mxu1 %v15048_v24  ;;  %12277 = vmatprep.subr.bf16.mxu0 %v15071_v44  ;;  %v15216_v24 = vcombine.low %v3566_v60, %v3578_v14  ;;  %v15239_v44 = vcombine.high %v3589_v10, %v3601_v15  ;;  %v3745_v1 = vld [vmem:[%s16785_s19 + $0x2230] sm:$0xff]  ;;  %v3734_v60 = vld [vmem:[%s16785_s19 + $0x21d8] sm:$0xff] }
 0x3a7   : > { %12441 = vmatprep.subr.bf16.mxu1 %v15073_v49  ;;  %v15241_v49 = vcombine.high %v3590_v21, %v3602_v3  ;;  %v3746_v14 = vld [vmem:[%s16785_s19 + $0x2238] sm:$0xff]  ;;  %v3757_v10 = vld [vmem:[%s16785_s19 + $0x2290] sm:$0xff] }
 0x3a8   : > { %12269 = vmatmul.mubr.bf16.vlgmr.msra.gmra.mrb[12].mxu0 %v17094_v12  ;;  %v3769_v15 = vld [vmem:[%s16785_s19 + $0x22f0] sm:$0xff] }
 0x3a9   : > { %12433 = vmatmul.mubr.bf16.vlgmr.msra.gmra.mrb[12].mxu1 %v17094_v12  ;;  %12278 = vmatpush1.bf16.msra.mxu0 %v15070_v31  ;;  %v3614_v31 = vld [vmem:[%s16785_s19 + $0x1e18] sm:$0xff] }
 0x3aa   : > { %12309 = vmatprep.mubr.bf16.mxu0 %v17212_v11  ;;  %12442 = vmatpush1.bf16.msra.mxu1 %v15072_v57  ;;  %v15240_v57 = vcombine.low %v3590_v21, %v3602_v3  ;;  %v15265_v36 = vcombine.high %v3614_v31, %v3626_v32  ;;  %v3758_v21 = vld [vmem:[%s16785_s19 + $0x2298] sm:$0xff] }
 0x3ab   : > { %12473 = vmatprep.mubr.bf16.mxu1 %v17212_v11  ;;  %12279 = vmatprep.subr.bf16.mxu0 %v15095_v33  ;;  %v15263_v33 = vcombine.high %v3613_v25, %v3625_v30  ;;  %v3770_v3 = vld [vmem:[%s16785_s19 + $0x22f8] sm:$0xff] }
 0x3ac   : > { %12443 = vmatprep.subr.bf16.mxu1 %v15097_v38  ;;  %v3649_v38 = vld [vmem:[%s16785_s19 + $0x1f30] sm:$0xff] }
 0x3ad   : > { %12280 = vmatpush1.bf16.msra.mxu0 %v15094_v4  ;;  %v15262_v4 = vcombine.low %v3613_v25, %v3625_v30  ;;  %v3781_v25 = vld [vmem:[%s16785_s19 + $0x2350] sm:$0xff] }
 0x3ae   : > { %12444 = vmatpush1.bf16.msra.mxu1 %v15096_v0  ;;  %12281 = vmatprep.subr.bf16.mxu0 %v15119_v41  ;;  %v15264_v0 = vcombine.low %v3614_v31, %v3626_v32  ;;  %v15287_v41 = vcombine.high %v3637_v37, %v3649_v38  ;;  %v3793_v30 = vld [vmem:[%s16785_s19 + $0x23b0] sm:$0xff]  ;;  %v3782_v31 = vld [vmem:[%s16785_s19 + $0x2358] sm:$0xff] }
 0x3af   : > { %12445 = vmatprep.subr.bf16.mxu1 %v15121_v43  ;;  %v15289_v43 = vcombine.high %v3638_v29, %v3650_v40  ;;  %v3794_v32 = vld [vmem:[%s16785_s19 + $0x23b8] sm:$0xff] }
 0x3b1   : > { %12282 = vmatpush1.bf16.msra.mxu0 %v15118_v48  ;;  %v15286_v48 = vcombine.low %v3637_v37, %v3649_v38  ;;  %v3805_v37 = vld [vmem:[%s16785_s19 + $0x2410] sm:$0xff] }
 0x3b2   : > { %12446 = vmatpush1.bf16.msra.mxu1 %v15120_v51  ;;  %12283 = vmatprep.subr.bf16.mxu0 %v15143_v52  ;;  %v15288_v51 = vcombine.low %v3638_v29, %v3650_v40  ;;  %v15311_v52 = vcombine.high %v3661_v6, %v3673_v45  ;;  %v3817_v38 = vld [vmem:[%s16785_s19 + $0x2470] sm:$0xff]  ;;  %v3806_v29 = vld [vmem:[%s16785_s19 + $0x2418] sm:$0xff] }
 0x3b3   : > { %12447 = vmatprep.subr.bf16.mxu1 %v15145_v55  ;;  %v15313_v55 = vcombine.high %v3662_v2, %v3674_v8  ;;  %v3818_v40 = vld [vmem:[%s16785_s19 + $0x2478] sm:$0xff] }
 0x3b5   : > { %12284 = vmatpush1.bf16.msra.mxu0 %v15142_v35  ;;  %v15310_v35 = vcombine.low %v3661_v6, %v3673_v45  ;;  %v3829_v6 = vld [vmem:[%s16785_s19 + $0x24d0] sm:$0xff] }
 0x3b6   : > { %12448 = vmatpush1.bf16.msra.mxu1 %v15144_v50  ;;  %12285 = vmatprep.subr.bf16.mxu0 %v15167_v53  ;;  %v15312_v50 = vcombine.low %v3662_v2, %v3674_v8  ;;  %v15335_v53 = vcombine.high %v3685_v58, %v3697_v59  ;;  %v3841_v45 = vld [vmem:[%s16785_s19 + $0x2530] sm:$0xff]  ;;  %v15454_v2 = vcombine.low %v3805_v37, %v3817_v38  ;;  %v3830_v8 = vld [vmem:[%s16785_s19 + $0x24d8] sm:$0xff] }
 0x3b7   : > { %12449 = vmatprep.subr.bf16.mxu1 %v15169_v47  ;;  %v15337_v47 = vcombine.high %v3686_v18, %v3698_v46 }
 0x3b9   : > { %12286 = vmatpush1.bf16.msra.mxu0 %v15166_v27  ;;  %v15334_v27 = vcombine.low %v3685_v58, %v3697_v59  ;;  %v3865_v58 = vld [vmem:[%s16785_s19 + $0x25f0] sm:$0xff] }
 0x3ba   : > { %12450 = vmatpush1.bf16.msra.mxu1 %v15168_v61  ;;  %12287 = vmatprep.subr.bf16.mxu0 %v15191_v13  ;;  %v15336_v61 = vcombine.low %v3686_v18, %v3698_v46  ;;  %v15359_v13 = vcombine.high %v3709_v26, %v3721_v20  ;;  %v3854_v18 = vld [vmem:[%s16785_s19 + $0x2598] sm:$0xff] }
 0x3bb   : > { %12451 = vmatprep.subr.bf16.mxu1 %v15193_v56  ;;  %v15361_v56 = vcombine.high %v3710_v16, %v3722_v23  ;;  %v3866_v46 = vld [vmem:[%s16785_s19 + $0x25f8] sm:$0xff] }
 0x3bd   : > { %12288 = vmatpush1.bf16.msra.mxu0 %v15190_v5  ;;  %v15358_v5 = vcombine.low %v3709_v26, %v3721_v20  ;;  %v3877_v26 = vld [vmem:[%s16785_s19 + $0x2650] sm:$0xff] }
 0x3be   : > { %12452 = vmatpush1.bf16.msra.mxu1 %v15192_v22  ;;  %12289 = vmatprep.subr.bf16.mxu0 %v15215_v7  ;;  %v15360_v22 = vcombine.low %v3710_v16, %v3722_v23  ;;  %v15383_v7 = vcombine.high %v3733_v63, %v3745_v1  ;;  %v3889_v20 = vld [vmem:[%s16785_s19 + $0x26b0] sm:$0xff]  ;;  %v3878_v16 = vld [vmem:[%s16785_s19 + $0x2658] sm:$0xff] }
 0x3bf   : > { %12453 = vmatprep.subr.bf16.mxu1 %v15217_v9  ;;  %v15385_v9 = vcombine.high %v3734_v60, %v3746_v14  ;;  %v3890_v23 = vld [vmem:[%s16785_s19 + $0x26b8] sm:$0xff] }
 0x3c1   : > { %12290 = vmatpush1.bf16.msra.mxu0 %v15214_v34  ;;  %v15382_v34 = vcombine.low %v3733_v63, %v3745_v1  ;;  %v3901_v63 = vld [vmem:[%s16785_s19 + $0x2710] sm:$0xff] }
 0x3c2   : > { %12454 = vmatpush1.bf16.msra.mxu1 %v15216_v24  ;;  %12291 = vmatprep.subr.bf16.mxu0 %v15239_v44  ;;  %v15384_v24 = vcombine.low %v3734_v60, %v3746_v14  ;;  %v15407_v44 = vcombine.high %v3757_v10, %v3769_v15  ;;  %v3913_v1 = vld [vmem:[%s16785_s19 + $0x2770] sm:$0xff]  ;;  %v3902_v60 = vld [vmem:[%s16785_s19 + $0x2718] sm:$0xff] }
 0x3c3   : > { %12455 = vmatprep.subr.bf16.mxu1 %v15241_v49  ;;  %v15409_v49 = vcombine.high %v3758_v21, %v3770_v3  ;;  %v3914_v14 = vld [vmem:[%s16785_s19 + $0x2778] sm:$0xff] }
 0x3c5   : > { %12292 = vmatpush1.bf16.msra.mxu0 %v15238_v42  ;;  %v15406_v42 = vcombine.low %v3757_v10, %v3769_v15  ;;  %v3925_v10 = vld [vmem:[%s16785_s19 + $0x27d0] sm:$0xff] }
 0x3c6   : > { %12456 = vmatpush1.bf16.msra.mxu1 %v15240_v57  ;;  %12293 = vmatprep.subr.bf16.mxu0 %v15263_v33  ;;  %v15408_v57 = vcombine.low %v3758_v21, %v3770_v3  ;;  %v15431_v33 = vcombine.high %v3781_v25, %v3793_v30  ;;  %v3937_v15 = vld [vmem:[%s16785_s19 + $0x2830] sm:$0xff]  ;;  %v3926_v21 = vld [vmem:[%s16785_s19 + $0x27d8] sm:$0xff] }
 0x3c7   : > { %12457 = vmatprep.subr.bf16.mxu1 %v15265_v36  ;;  %v15433_v36 = vcombine.high %v3782_v31, %v3794_v32  ;;  %v3938_v3 = vld [vmem:[%s16785_s19 + $0x2838] sm:$0xff] }
 0x3c9   : > { %12294 = vmatpush1.bf16.msra.mxu0 %v15262_v4  ;;  %v15430_v4 = vcombine.low %v3781_v25, %v3793_v30  ;;  %v3949_v25 = vld [vmem:[%s16785_s19 + $0x2890] sm:$0xff] }
 0x3ca   : > { %12458 = vmatpush1.bf16.msra.mxu1 %v15264_v0  ;;  %12295 = vmatprep.subr.bf16.mxu0 %v15287_v41  ;;  %v15432_v0 = vcombine.low %v3782_v31, %v3794_v32  ;;  %v15455_v41 = vcombine.high %v3805_v37, %v3817_v38  ;;  %v3961_v30 = vld [vmem:[%s16785_s19 + $0x28f0] sm:$0xff]  ;;  %v3950_v31 = vld [vmem:[%s16785_s19 + $0x2898] sm:$0xff] }
 0x3cb   : > { %12459 = vmatprep.subr.bf16.mxu1 %v15289_v43  ;;  %v15457_v43 = vcombine.high %v3806_v29, %v3818_v40  ;;  %v3962_v32 = vld [vmem:[%s16785_s19 + $0x28f8] sm:$0xff] }
 0x3cc   : > { %v15601_v38 = vcombine.high %v3950_v31, %v3962_v32 }
 0x3cd   : > { %12296 = vmatpush1.bf16.msra.mxu0 %v15286_v48  ;;  %v3842_v48 = vld [vmem:[%s16785_s19 + $0x2538] sm:$0xff] }
 0x3ce   : > { %12460 = vmatpush1.bf16.msra.mxu1 %v15288_v51  ;;  %12297 = vmatprep.subr.bf16.mxu0 %v15311_v52  ;;  %v15456_v51 = vcombine.low %v3806_v29, %v3818_v40  ;;  %v15479_v52 = vcombine.high %v3829_v6, %v3841_v45  ;;  %v15481_v59 = vcombine.high %v3830_v8, %v3842_v48  ;;  %v3973_v29 = vld [vmem:[%s16785_s19 + $0x2950] sm:$0xff] }
 0x3cf   : > { %12461 = vmatprep.subr.bf16.mxu1 %v15313_v55  ;;  %v3853_v55 = vld [vmem:[%s16785_s19 + $0x2590] sm:$0xff] }
 0x3d0   : > { %v3985_v40 = vld [vmem:[%s16785_s19 + $0x29b0] sm:$0xff] }
 0x3d1   : > { %12298 = vmatpush1.bf16.msra.mxu0 %v15310_v35  ;;  %v15478_v35 = vcombine.low %v3829_v6, %v3841_v45 }
 0x3d2   : > { %12462 = vmatpush1.bf16.msra.mxu1 %v15312_v50  ;;  %12299 = vmatprep.subr.bf16.mxu0 %v15335_v53  ;;  %v15480_v50 = vcombine.low %v3830_v8, %v3842_v48  ;;  %v15503_v53 = vcombine.high %v3853_v55, %v3865_v58 }
 0x3d3   : > { %12463 = vmatprep.subr.bf16.mxu1 %v15337_v47  ;;  %v15505_v47 = vcombine.high %v3854_v18, %v3866_v46 }
 0x3d5   : > { %12300 = vmatpush1.bf16.msra.mxu0 %v15334_v27  ;;  %v15502_v27 = vcombine.low %v3853_v55, %v3865_v58  ;;  %v3997_v58 = vld [vmem:[%s16785_s19 + $0x2a10] sm:$0xff] }
 0x3d6   : > { %12464 = vmatpush1.bf16.msra.mxu1 %v15336_v61  ;;  %12301 = vmatprep.subr.bf16.mxu0 %v15359_v13  ;;  %v15504_v61 = vcombine.low %v3854_v18, %v3866_v46  ;;  %v15527_v13 = vcombine.high %v3877_v26, %v3889_v20  ;;  %v3998_v18 = vld [vmem:[%s16785_s19 + $0x2a18] sm:$0xff] }
 0x3d7   : > { %12465 = vmatprep.subr.bf16.mxu1 %v15361_v56  ;;  %v15529_v56 = vcombine.high %v3878_v16, %v3890_v23  ;;  %v4010_v46 = vld [vmem:[%s16785_s19 + $0x2a78] sm:$0xff] }
 0x3d9   : > { %12302 = vmatpush1.bf16.msra.mxu0 %v15358_v5  ;;  %v15526_v5 = vcombine.low %v3877_v26, %v3889_v20  ;;  %v4021_v26 = vld [vmem:[%s16785_s19 + $0x2ad0] sm:$0xff] }
 0x3da   : > { %12466 = vmatpush1.bf16.msra.mxu1 %v15360_v22  ;;  %12303 = vmatprep.subr.bf16.mxu0 %v15383_v7  ;;  %v15528_v22 = vcombine.low %v3878_v16, %v3890_v23  ;;  %v15551_v7 = vcombine.high %v3901_v63, %v3913_v1  ;;  %v4033_v20 = vld [vmem:[%s16785_s19 + $0x2b30] sm:$0xff]  ;;  %v4022_v16 = vld [vmem:[%s16785_s19 + $0x2ad8] sm:$0xff] }
 0x3db   : > { %12467 = vmatprep.subr.bf16.mxu1 %v15385_v9  ;;  %v15553_v9 = vcombine.high %v3902_v60, %v3914_v14  ;;  %v4034_v23 = vld [vmem:[%s16785_s19 + $0x2b38] sm:$0xff] }
 0x3dd   : > { %12304 = vmatpush1.bf16.msra.mxu0 %v15382_v34  ;;  %v15550_v34 = vcombine.low %v3901_v63, %v3913_v1  ;;  %v15673_v1 = vcombine.high %v4022_v16, %v4034_v23 }
 0x3de   : > { %12468 = vmatpush1.bf16.msra.mxu1 %v15384_v24  ;;  %12305 = vmatprep.subr.bf16.mxu0 %v15407_v44  ;;  %v15552_v24 = vcombine.low %v3902_v60, %v3914_v14  ;;  %v15575_v44 = vcombine.high %v3925_v10, %v3937_v15  ;;  %v4045_v60 = vld [vmem:[%s16785_s19 + $0x2b90] sm:$0xff] }
 0x3df   : > { %12469 = vmatprep.subr.bf16.mxu1 %v15409_v49  ;;  %v15577_v49 = vcombine.high %v3926_v21, %v3938_v3  ;;  %v4057_v14 = vld [vmem:[%s16785_s19 + $0x2bf0] sm:$0xff] }
 0x3e1   : > { %12306 = vmatpush1.bf16.msra.mxu0 %v15406_v42  ;;  %v15574_v42 = vcombine.low %v3925_v10, %v3937_v15  ;;  %v15670_v10 = vcombine.low %v4021_v26, %v4033_v20  ;;  %v15672_v15 = vcombine.low %v4022_v16, %v4034_v23 }
 0x3e2   : > { %12470 = vmatpush1.bf16.msra.mxu1 %v15408_v57  ;;  %12307 = vmatprep.subr.bf16.mxu0 %v15431_v33  ;;  %v15576_v57 = vcombine.low %v3926_v21, %v3938_v3  ;;  %v15599_v33 = vcombine.high %v3949_v25, %v3961_v30  ;;  %v15695_v21 = vcombine.high %v4045_v60, %v4057_v14 }
 0x3e3   : > { %12471 = vmatprep.subr.bf16.mxu1 %v15433_v36 }
 0x3e5   : > { %12308 = vmatpush1.bf16.msra.mxu0 %v15430_v4 }
 0x3e6   : > { %12472 = vmatpush1.bf16.msra.mxu1 %v15432_v0  ;;  %12318 = vmatprep.subr.bf16.mxu0 %v15455_v41  ;;  %v3974_v41 = vld [vmem:[%s16785_s19 + $0x2958] sm:$0xff] }
 0x3e7   : > { %12482 = vmatprep.subr.bf16.mxu1 %v15457_v43  ;;  %v3986_v43 = vld [vmem:[%s16785_s19 + $0x29b8] sm:$0xff] }
 0x3e8   : > { %12310 = vmatmul.mubr.bf16.vlgmr.msra.gmra.mrb[12].mxu0 %v17214_v17  ;;  %v15625_v55 = vcombine.high %v3974_v41, %v3986_v43 }
 0x3e9   : > { %12474 = vmatmul.mubr.bf16.vlgmr.msra.gmra.mrb[12].mxu1 %v17214_v17  ;;  %12319 = vmatpush1.bf16.msra.mxu0 %v15454_v2  ;;  %v15598_v2 = vcombine.low %v3949_v25, %v3961_v30  ;;  %v15694_v25 = vcombine.low %v4045_v60, %v4057_v14 }
 0x3ea   : > { %12350 = vmatprep.mubr.bf16.mxu0 %v17222_v28  ;;  %12483 = vmatpush1.bf16.msra.mxu1 %v15456_v51  ;;  %v15600_v51 = vcombine.low %v3950_v31, %v3962_v32 }
 0x3eb   : > { %12514 = vmatprep.mubr.bf16.mxu1 %v17222_v28  ;;  %12320 = vmatprep.subr.bf16.mxu0 %v15479_v52  ;;  %v15623_v52 = vcombine.high %v3973_v29, %v3985_v40 }
 0x3ec   : > { %12484 = vmatprep.subr.bf16.mxu1 %v15481_v59  ;;  %v4009_v59 = vld [vmem:[%s16785_s19 + $0x2a70] sm:$0xff] }
 0x3ed   : > { %12321 = vmatpush1.bf16.msra.mxu0 %v15478_v35  ;;  %v15622_v35 = vcombine.low %v3973_v29, %v3985_v40 }
 0x3ee   : > { %12485 = vmatpush1.bf16.msra.mxu1 %v15480_v50  ;;  %12322 = vmatprep.subr.bf16.mxu0 %v15503_v53  ;;  %v15624_v50 = vcombine.low %v3974_v41, %v3986_v43  ;;  %v15647_v53 = vcombine.high %v3997_v58, %v4009_v59  ;;  %v4118_v41 = vld [vmem:[%s16785_s19 + $0x2dd8] sm:$0xff] }
 0x3ef   : > { %12486 = vmatprep.subr.bf16.mxu1 %v15505_v47  ;;  %v15649_v47 = vcombine.high %v3998_v18, %v4010_v46  ;;  %v4130_v43 = vld [vmem:[%s16785_s19 + $0x2e38] sm:$0xff] }
 0x3f1   : > { %12323 = vmatpush1.bf16.msra.mxu0 %v15502_v27  ;;  %v15646_v27 = vcombine.low %v3997_v58, %v4009_v59  ;;  %v15768_v59 = vcombine.low %v4118_v41, %v4130_v43 }
 0x3f2   : > { %12487 = vmatpush1.bf16.msra.mxu1 %v15504_v61  ;;  %12324 = vmatprep.subr.bf16.mxu0 %v15527_v13  ;;  %v15648_v13 = vcombine.low %v3998_v18, %v4010_v46 }
 0x3f3   : > { %12488 = vmatprep.subr.bf16.mxu1 %v15529_v56  ;;  %v15671_v56 = vcombine.high %v4021_v26, %v4033_v20 }
 0x3f5   : > { %12325 = vmatpush1.bf16.msra.mxu0 %v15526_v5 }
 0x3f6   : > { %12489 = vmatpush1.bf16.msra.mxu1 %v15528_v22  ;;  %12326 = vmatprep.subr.bf16.mxu0 %v15551_v7  ;;  %v4046_v22 = vld [vmem:[%s16785_s19 + $0x2b98] sm:$0xff] }
 0x3f7   : > { %12490 = vmatprep.subr.bf16.mxu1 %v15553_v9  ;;  %v4058_v7 = vld [vmem:[%s16785_s19 + $0x2bf8] sm:$0xff] }
 0x3f8   : > { %v15697_v3 = vcombine.high %v4046_v22, %v4058_v7  ;;  %v15696_v30 = vcombine.low %v4046_v22, %v4058_v7  ;;  %v2691_v22 = vld [vmem:[%s16785_s19 + $0x140] sm:$0xff] }
 0x3f9   : > { %12327 = vmatpush1.bf16.msra.mxu0 %v15550_v34  ;;  %v4069_v34 = vld [vmem:[%s16785_s19 + $0x2c50] sm:$0xff] }
 0x3fa   : > { %12491 = vmatpush1.bf16.msra.mxu1 %v15552_v24  ;;  %12328 = vmatprep.subr.bf16.mxu0 %v15575_v44  ;;  %v4081_v24 = vld [vmem:[%s16785_s19 + $0x2cb0] sm:$0xff]  ;;  %v4070_v44 = vld [vmem:[%s16785_s19 + $0x2c58] sm:$0xff] }
 0x3fb   : > { %v12024_v36 = vpop.f32.mrb[8].mxu0  ;;  %v12188_v37 = vpop.f32.mrb[8].mxu1  ;;  %12492 = vmatprep.subr.bf16.mxu1 %v15577_v49  ;;  %v4082_v49 = vld [vmem:[%s16785_s19 + $0x2cb8] sm:$0xff]  ;;  %v15719_v31 = vcombine.high %v4069_v34, %v4081_v24 }
 0x3fc   : > { %16138 = vtanh.f32 %v12024_v36  ;;  %v12026_v4 = vpop.f32.mrb[9].mxu0  ;;  %v12190_v0 = vpop.f32.mrb[9].mxu1  ;;  %v15721_v32 = vcombine.high %v4070_v44, %v4082_v49  ;;  %v4106_v36 = vld [vmem:[%s16785_s19 + $0x2d78] sm:$0xff] }
 0x3fd   : > { %16140 = vtanh.f32 %v12188_v37  ;;  %v12028_v6 = vpop.f32.mrb[10].mxu0  ;;  %v12192_v45 = vpop.f32.mrb[10].mxu1  ;;  %12329 = vmatpush1.bf16.msra.mxu0 %v15574_v42  ;;  %v4093_v42 = vld [vmem:[%s16785_s19 + $0x2d10] sm:$0xff]  ;;  %v15718_v37 = vcombine.low %v4069_v34, %v4081_v24  ;;  %v2715_v34 = vld [vmem:[%s16785_s19 + $0x200] sm:$0xff] }
 0x3fe   : > { %16142 = vtanh.f32 %v12026_v4  ;;  %12493 = vmatpush1.bf16.msra.mxu1 %v15576_v57  ;;  %v12029_v8 = vpop.f32.mrb[11].mxu0  ;;  %v12193_v48 = vpop.f32.mrb[11].mxu1  ;;  %12330 = vmatprep.subr.bf16.mxu0 %v15599_v33  ;;  %v4105_v57 = vld [vmem:[%s16785_s19 + $0x2d70] sm:$0xff]  ;;  %v4094_v33 = vld [vmem:[%s16785_s19 + $0x2d18] sm:$0xff] }
 0x3ff   : > { %16144 = vtanh.f32 %v12190_v0  ;;  %12494 = vmatprep.subr.bf16.mxu1 %v15601_v38  ;;  %v15720_v38 = vcombine.low %v4070_v44, %v4082_v49  ;;  %v15743_v29 = vcombine.high %v4093_v42, %v4105_v57  ;;  %v15745_v40 = vcombine.high %v4094_v33, %v4106_v36  ;;  %v4117_v4 = vld [vmem:[%s16785_s19 + $0x2dd0] sm:$0xff]  ;;  %v2704_v44 = vld [vmem:[%s16785_s19 + $0x1a8] sm:$0xff] }
 0x400   : > { %v4129_v0 = vld [vmem:[%s16785_s19 + $0x2e30] sm:$0xff]  ;;  %v15742_v6 = vcombine.low %v4093_v42, %v4105_v57  ;;  %v15744_v45 = vcombine.low %v4094_v33, %v4106_v36  ;;  %v15769_v8 = vcombine.high %v4118_v41, %v4130_v43  ;;  %v2716_v49 = vld [vmem:[%s16785_s19 + $0x208] sm:$0xff]  ;;  %v2727_v42 = vld [vmem:[%s16785_s19 + $0x260] sm:$0xff] }
 0x401   : > { %12331 = vmatpush1.bf16.msra.mxu0 %v15598_v2  ;;  %v15767_v2 = vcombine.high %v4117_v4, %v4129_v0  ;;  %v4141_v48 = vld [vmem:[%s16785_s19 + $0x2e90] sm:$0xff]  ;;  %v15766_v58 = vcombine.low %v4117_v4, %v4129_v0  ;;  %v2739_v57 = vld [vmem:[%s16785_s19 + $0x2c0] sm:$0xff]  ;;  %v2728_v33 = vld [vmem:[%s16785_s19 + $0x268] sm:$0xff] }
 0x402   : > { %12495 = vmatpush1.bf16.msra.mxu1 %v15600_v51  ;;  %12332 = vmatprep.subr.bf16.mxu0 %v15623_v52  ;;  %v4153_v51 = vld [vmem:[%s16785_s19 + $0x2ef0] sm:$0xff]  ;;  %v4142_v52 = vld [vmem:[%s16785_s19 + $0x2e98] sm:$0xff]  ;;  %v2740_v36 = vld [vmem:[%s16785_s19 + $0x2c8] sm:$0xff] }
 0x403   : > { %12496 = vmatprep.subr.bf16.mxu1 %v15625_v55  ;;  %v4154_v55 = vld [vmem:[%s16785_s19 + $0x2ef8] sm:$0xff]  ;;  %v15791_v18 = vcombine.high %v4141_v48, %v4153_v51  ;;  %v15790_v26 = vcombine.low %v4141_v48, %v4153_v51  ;;  %v2751_v4 = vld [vmem:[%s16785_s19 + $0x320] sm:$0xff]  ;;  %v2752_v41 = vld [vmem:[%s16785_s19 + $0x328] sm:$0xff] }
 0x404   : > { %v15793_v46 = vcombine.high %v4142_v52, %v4154_v55  ;;  %v15792_v20 = vcombine.low %v4142_v52, %v4154_v55  ;;  %v2763_v0 = vld [vmem:[%s16785_s19 + $0x380] sm:$0xff]  ;;  %v2764_v43 = vld [vmem:[%s16785_s19 + $0x388] sm:$0xff] }
 0x405   : > { %12333 = vmatpush1.bf16.msra.mxu0 %v15622_v35  ;;  %v4165_v35 = vld [vmem:[%s16785_s19 + $0x2f50] sm:$0xff]  ;;  %v2775_v48 = vld [vmem:[%s16785_s19 + $0x3e0] sm:$0xff]  ;;  %v2776_v52 = vld [vmem:[%s16785_s19 + $0x3e8] sm:$0xff] }
 0x406   : > { %v16139_v61 = vpop.eup %16138  ;;  %12497 = vmatpush1.bf16.msra.mxu1 %v15624_v50  ;;  %12334 = vmatprep.subr.bf16.mxu0 %v15647_v53  ;;  %v4177_v50 = vld [vmem:[%s16785_s19 + $0x2fb0] sm:$0xff]  ;;  %v4166_v53 = vld [vmem:[%s16785_s19 + $0x2f58] sm:$0xff]  ;;  %v2787_v51 = vld [vmem:[%s16785_s19 + $0x440] sm:$0xff] }
 0x407   : > { %v16141_v63 = vpop.eup %16140  ;;  %13859 = vst [vmem:[%s17535_s29] sm:$0xff] %v16139_v61  ;;  %12498 = vmatprep.subr.bf16.mxu1 %v15649_v47  ;;  %v4178_v47 = vld [vmem:[%s16785_s19 + $0x2fb8] sm:$0xff]  ;;  %v15815_v16 = vcombine.high %v4165_v35, %v4177_v50  ;;  %v2667_v61 = vld [vmem:[%s16785_s19 + $0x80] sm:$0xff]  ;;  %v2788_v55 = vld [vmem:[%s16785_s19 + $0x448] sm:$0xff] }
 0x408   : > { %v16143_v5 = vpop.eup %16142  ;;  %13861 = vst [vmem:[%s17535_s29 + $0x10] sm:$0xff] %v16141_v63  ;;  %v15817_v23 = vcombine.high %v4166_v53, %v4178_v47  ;;  %v15814_v63 = vcombine.low %v4165_v35, %v4177_v50  ;;  %v2799_v35 = vld [vmem:[%s16785_s19 + $0x4a0] sm:$0xff] }
 0x409   : > { %v16145_v9 = vpop.eup %16144  ;;  %13860 = vst [vmem:[%s17535_s29 + $0x8] sm:$0xff] %v16143_v5  ;;  %12335 = vmatpush1.bf16.msra.mxu0 %v15646_v27  ;;  %v2655_v27 = vld [vmem:[%s16785_s19 + $0x20] sm:$0xff] }
 0x40a   : > { %13862 = vst [vmem:[%s17535_s29 + $0x18] sm:$0xff] %v16145_v9  ;;  %12499 = vmatpush1.bf16.msra.mxu1 %v15648_v13  ;;  %12336 = vmatprep.subr.bf16.mxu0 %v15671_v56  ;;  %v2656_v13 = vld [vmem:[%s16785_s19 + $0x28] sm:$0xff]  ;;  %v14307_v60 = vcombine.high %v2655_v27, %v2667_v61  ;;  %v2679_v5 = vld [vmem:[%s16785_s19 + $0xe0] sm:$0xff]  ;;  %v14306_v7 = vcombine.low %v2655_v27, %v2667_v61 }
 0x40b   : > { %12500 = vmatprep.subr.bf16.mxu1 %v15673_v1  ;;  %v2668_v56 = vld [vmem:[%s16785_s19 + $0x88] sm:$0xff]  ;;  %v15816_v1 = vcombine.low %v4166_v53, %v4178_v47  ;;  %v2811_v50 = vld [vmem:[%s16785_s19 + $0x500] sm:$0xff] }
 0x40c   : > { %v14309_v14 = vcombine.high %v2656_v13, %v2668_v56  ;;  %v2680_v9 = vld [vmem:[%s16785_s19 + $0xe8] sm:$0xff]  ;;  %v2823_v27 = vld [vmem:[%s16785_s19 + $0x560] sm:$0xff] }
 0x40d   : > { %12337 = vmatpush1.bf16.msra.mxu0 %v15670_v10  ;;  %v2692_v10 = vld [vmem:[%s16785_s19 + $0x148] sm:$0xff]  ;;  %v2835_v61 = vld [vmem:[%s16785_s19 + $0x5c0] sm:$0xff] }
 0x40e   : > { %12501 = vmatpush1.bf16.msra.mxu1 %v15672_v15  ;;  %12338 = vmatprep.subr.bf16.mxu0 %v15695_v21  ;;  %v14308_v15 = vcombine.low %v2656_v13, %v2668_v56  ;;  %v14331_v21 = vcombine.high %v2679_v5, %v2691_v22  ;;  %v14333_v24 = vcombine.high %v2680_v9, %v2692_v10  ;;  %v2800_v53 = vld [vmem:[%s16785_s19 + $0x4a8] sm:$0xff] }
 0x40f   : > { %12502 = vmatprep.subr.bf16.mxu1 %v15697_v3  ;;  %v2703_v3 = vld [vmem:[%s16785_s19 + $0x1a0] sm:$0xff]  ;;  %v2812_v47 = vld [vmem:[%s16785_s19 + $0x508] sm:$0xff] }
 0x410   : > { %v2824_v13 = vld [vmem:[%s16785_s19 + $0x568] sm:$0xff] }
 0x411   : > { %12339 = vmatpush1.bf16.msra.mxu0 %v15694_v25  ;;  %v14330_v25 = vcombine.low %v2679_v5, %v2691_v22  ;;  %v2836_v56 = vld [vmem:[%s16785_s19 + $0x5c8] sm:$0xff]  ;;  %v2847_v5 = vld [vmem:[%s16785_s19 + $0x620] sm:$0xff] }
 0x412   : > { %12503 = vmatpush1.bf16.msra.mxu1 %v15696_v30  ;;  %12340 = vmatprep.subr.bf16.mxu0 %v15719_v31  ;;  %v14332_v30 = vcombine.low %v2680_v9, %v2692_v10  ;;  %v14355_v31 = vcombine.high %v2703_v3, %v2715_v34  ;;  %v2859_v22 = vld [vmem:[%s16785_s19 + $0x680] sm:$0xff]  ;;  %v2860_v9 = vld [vmem:[%s16785_s19 + $0x688] sm:$0xff]  ;;  %v14474_v10 = vcombine.low %v2823_v27, %v2835_v61 }
 0x413   : > { %12504 = vmatprep.subr.bf16.mxu1 %v15721_v32  ;;  %v14357_v32 = vcombine.high %v2704_v44, %v2716_v49 }
 0x415   : > { %12341 = vmatpush1.bf16.msra.mxu0 %v15718_v37  ;;  %v14354_v37 = vcombine.low %v2703_v3, %v2715_v34  ;;  %v2871_v34 = vld [vmem:[%s16785_s19 + $0x6e0] sm:$0xff] }
 0x416   : > { %12505 = vmatpush1.bf16.msra.mxu1 %v15720_v38  ;;  %12342 = vmatprep.subr.bf16.mxu0 %v15743_v29  ;;  %v14356_v38 = vcombine.low %v2704_v44, %v2716_v49  ;;  %v14379_v29 = vcombine.high %v2727_v42, %v2739_v57  ;;  %v2872_v44 = vld [vmem:[%s16785_s19 + $0x6e8] sm:$0xff] }
 0x417   : > { %12506 = vmatprep.subr.bf16.mxu1 %v15745_v40  ;;  %v14381_v40 = vcombine.high %v2728_v33, %v2740_v36  ;;  %v2884_v49 = vld [vmem:[%s16785_s19 + $0x748] sm:$0xff] }
 0x419   : > { %12343 = vmatpush1.bf16.msra.mxu0 %v15742_v6  ;;  %v14378_v6 = vcombine.low %v2727_v42, %v2739_v57  ;;  %v2895_v42 = vld [vmem:[%s16785_s19 + $0x7a0] sm:$0xff] }
 0x41a   : > { %12507 = vmatpush1.bf16.msra.mxu1 %v15744_v45  ;;  %12344 = vmatprep.subr.bf16.mxu0 %v15767_v2  ;;  %v14380_v45 = vcombine.low %v2728_v33, %v2740_v36  ;;  %v14403_v2 = vcombine.high %v2751_v4, %v2763_v0  ;;  %v2907_v57 = vld [vmem:[%s16785_s19 + $0x800] sm:$0xff]  ;;  %v2896_v33 = vld [vmem:[%s16785_s19 + $0x7a8] sm:$0xff] }
 0x41b   : > { %12508 = vmatprep.subr.bf16.mxu1 %v15769_v8  ;;  %v14405_v8 = vcombine.high %v2752_v41, %v2764_v43  ;;  %v2908_v36 = vld [vmem:[%s16785_s19 + $0x808] sm:$0xff] }
 0x41d   : > { %12345 = vmatpush1.bf16.msra.mxu0 %v15766_v58  ;;  %v14402_v58 = vcombine.low %v2751_v4, %v2763_v0  ;;  %v2919_v4 = vld [vmem:[%s16785_s19 + $0x860] sm:$0xff] }
 0x41e   : > { %12509 = vmatpush1.bf16.msra.mxu1 %v15768_v59  ;;  %12346 = vmatprep.subr.bf16.mxu0 %v15791_v18  ;;  %v14404_v59 = vcombine.low %v2752_v41, %v2764_v43  ;;  %v14427_v18 = vcombine.high %v2775_v48, %v2787_v51  ;;  %v2931_v0 = vld [vmem:[%s16785_s19 + $0x8c0] sm:$0xff]  ;;  %v2920_v41 = vld [vmem:[%s16785_s19 + $0x868] sm:$0xff] }
 0x41f   : > { %12510 = vmatprep.subr.bf16.mxu1 %v15793_v46  ;;  %v14429_v46 = vcombine.high %v2776_v52, %v2788_v55  ;;  %v2932_v43 = vld [vmem:[%s16785_s19 + $0x8c8] sm:$0xff] }
 0x421   : > { %12347 = vmatpush1.bf16.msra.mxu0 %v15790_v26  ;;  %v14426_v26 = vcombine.low %v2775_v48, %v2787_v51  ;;  %v2943_v48 = vld [vmem:[%s16785_s19 + $0x920] sm:$0xff] }
 0x422   : > { %12511 = vmatpush1.bf16.msra.mxu1 %v15792_v20  ;;  %12348 = vmatprep.subr.bf16.mxu0 %v15815_v16  ;;  %v14428_v20 = vcombine.low %v2776_v52, %v2788_v55  ;;  %v14451_v16 = vcombine.high %v2799_v35, %v2811_v50  ;;  %v2955_v51 = vld [vmem:[%s16785_s19 + $0x980] sm:$0xff]  ;;  %v2944_v52 = vld [vmem:[%s16785_s19 + $0x928] sm:$0xff] }
 0x423   : > { %12512 = vmatprep.subr.bf16.mxu1 %v15817_v23  ;;  %v14453_v23 = vcombine.high %v2800_v53, %v2812_v47  ;;  %v2956_v55 = vld [vmem:[%s16785_s19 + $0x988] sm:$0xff] }
 0x425   : > { %12349 = vmatpush1.bf16.msra.mxu0 %v15814_v63  ;;  %v14450_v63 = vcombine.low %v2799_v35, %v2811_v50  ;;  %v2967_v35 = vld [vmem:[%s16785_s19 + $0x9e0] sm:$0xff] }
 0x426   : > { %12513 = vmatpush1.bf16.msra.mxu1 %v15816_v1  ;;  %12523 = vmatprep.subr.bf16.mxu0 %v14307_v60  ;;  %v14452_v1 = vcombine.low %v2800_v53, %v2812_v47  ;;  %v14475_v60 = vcombine.high %v2823_v27, %v2835_v61  ;;  %v2979_v50 = vld [vmem:[%s16785_s19 + $0xa40] sm:$0xff]  ;;  %v2968_v53 = vld [vmem:[%s16785_s19 + $0x9e8] sm:$0xff] }
 0x427   : > { %12687 = vmatprep.subr.bf16.mxu1 %v14309_v14  ;;  %v14477_v14 = vcombine.high %v2824_v13, %v2836_v56  ;;  %v2980_v47 = vld [vmem:[%s16785_s19 + $0xa48] sm:$0xff]  ;;  %v2991_v27 = vld [vmem:[%s16785_s19 + $0xaa0] sm:$0xff] }
 0x428   : > { %12351 = vmatmul.mubr.bf16.vlgmr.msra.gmra.mrb[12].mxu0 %v17292_v19  ;;  %v3003_v61 = vld [vmem:[%s16785_s19 + $0xb00] sm:$0xff] }
 0x429   : > { %12515 = vmatmul.mubr.bf16.vlgmr.msra.gmra.mrb[12].mxu1 %v17292_v19  ;;  %12524 = vmatpush1.bf16.msra.mxu0 %v14306_v7  ;;  %v2848_v7 = vld [vmem:[%s16785_s19 + $0x628] sm:$0xff] }
 0x42a   : > { %12555 = vmatprep.mubr.bf16.mxu0 %v17005_v62  ;;  %12688 = vmatpush1.bf16.msra.mxu1 %v14308_v15  ;;  %v14476_v15 = vcombine.low %v2824_v13, %v2836_v56  ;;  %v14501_v3 = vcombine.high %v2848_v7, %v2860_v9  ;;  %v2992_v13 = vld [vmem:[%s16785_s19 + $0xaa8] sm:$0xff] }
 0x42b   : > { %12719 = vmatprep.mubr.bf16.mxu1 %v17005_v62  ;;  %12525 = vmatprep.subr.bf16.mxu0 %v14331_v21  ;;  %v14499_v21 = vcombine.high %v2847_v5, %v2859_v22  ;;  %v3004_v56 = vld [vmem:[%s16785_s19 + $0xb08] sm:$0xff] }
 0x42c   : > { %12689 = vmatprep.subr.bf16.mxu1 %v14333_v24  ;;  %v2883_v24 = vld [vmem:[%s16785_s19 + $0x740] sm:$0xff] }
 0x42d   : > { %12526 = vmatpush1.bf16.msra.mxu0 %v14330_v25  ;;  %v14498_v25 = vcombine.low %v2847_v5, %v2859_v22  ;;  %v3015_v5 = vld [vmem:[%s16785_s19 + $0xb60] sm:$0xff] }
 0x42e   : > { %12690 = vmatpush1.bf16.msra.mxu1 %v14332_v30  ;;  %12527 = vmatprep.subr.bf16.mxu0 %v14355_v31  ;;  %v14500_v30 = vcombine.low %v2848_v7, %v2860_v9  ;;  %v14523_v31 = vcombine.high %v2871_v34, %v2883_v24  ;;  %v3027_v22 = vld [vmem:[%s16785_s19 + $0xbc0] sm:$0xff]  ;;  %v3016_v7 = vld [vmem:[%s16785_s19 + $0xb68] sm:$0xff] }
 0x42f   : > { %12691 = vmatprep.subr.bf16.mxu1 %v14357_v32  ;;  %v14525_v32 = vcombine.high %v2872_v44, %v2884_v49  ;;  %v3028_v9 = vld [vmem:[%s16785_s19 + $0xbc8] sm:$0xff] }
 0x431   : > { %12528 = vmatpush1.bf16.msra.mxu0 %v14354_v37  ;;  %v14522_v37 = vcombine.low %v2871_v34, %v2883_v24  ;;  %v3039_v34 = vld [vmem:[%s16785_s19 + $0xc20] sm:$0xff] }
 0x432   : > { %12692 = vmatpush1.bf16.msra.mxu1 %v14356_v38  ;;  %12529 = vmatprep.subr.bf16.mxu0 %v14379_v29  ;;  %v14524_v38 = vcombine.low %v2872_v44, %v2884_v49  ;;  %v14547_v29 = vcombine.high %v2895_v42, %v2907_v57  ;;  %v3051_v24 = vld [vmem:[%s16785_s19 + $0xc80] sm:$0xff]  ;;  %v3040_v44 = vld [vmem:[%s16785_s19 + $0xc28] sm:$0xff] }
 0x433   : > { %12693 = vmatprep.subr.bf16.mxu1 %v14381_v40  ;;  %v14549_v40 = vcombine.high %v2896_v33, %v2908_v36  ;;  %v3052_v49 = vld [vmem:[%s16785_s19 + $0xc88] sm:$0xff] }
 0x435   : > { %12530 = vmatpush1.bf16.msra.mxu0 %v14378_v6  ;;  %v14546_v6 = vcombine.low %v2895_v42, %v2907_v57  ;;  %v3063_v42 = vld [vmem:[%s16785_s19 + $0xce0] sm:$0xff] }
 0x436   : > { %12694 = vmatpush1.bf16.msra.mxu1 %v14380_v45  ;;  %12531 = vmatprep.subr.bf16.mxu0 %v14403_v2  ;;  %v14548_v45 = vcombine.low %v2896_v33, %v2908_v36  ;;  %v14571_v2 = vcombine.high %v2919_v4, %v2931_v0  ;;  %v3075_v57 = vld [vmem:[%s16785_s19 + $0xd40] sm:$0xff]  ;;  %v14690_v33 = vcombine.low %v3039_v34, %v3051_v24  ;;  %v3064_v36 = vld [vmem:[%s16785_s19 + $0xce8] sm:$0xff] }
 0x437   : > { %12695 = vmatprep.subr.bf16.mxu1 %v14405_v8  ;;  %v14573_v8 = vcombine.high %v2920_v41, %v2932_v43 }
 0x439   : > { %12532 = vmatpush1.bf16.msra.mxu0 %v14402_v58  ;;  %v14570_v58 = vcombine.low %v2919_v4, %v2931_v0  ;;  %v3099_v4 = vld [vmem:[%s16785_s19 + $0xe00] sm:$0xff] }
 0x43a   : > { %12696 = vmatpush1.bf16.msra.mxu1 %v14404_v59  ;;  %12533 = vmatprep.subr.bf16.mxu0 %v14427_v18  ;;  %v14572_v59 = vcombine.low %v2920_v41, %v2932_v43  ;;  %v14595_v18 = vcombine.high %v2943_v48, %v2955_v51  ;;  %v3088_v41 = vld [vmem:[%s16785_s19 + $0xda8] sm:$0xff] }
 0x43b   : > { %12697 = vmatprep.subr.bf16.mxu1 %v14429_v46  ;;  %v14597_v46 = vcombine.high %v2944_v52, %v2956_v55  ;;  %v3100_v43 = vld [vmem:[%s16785_s19 + $0xe08] sm:$0xff] }
 0x43d   : > { %12534 = vmatpush1.bf16.msra.mxu0 %v14426_v26  ;;  %v14594_v26 = vcombine.low %v2943_v48, %v2955_v51  ;;  %v3111_v48 = vld [vmem:[%s16785_s19 + $0xe60] sm:$0xff] }
 0x43e   : > { %12698 = vmatpush1.bf16.msra.mxu1 %v14428_v20  ;;  %12535 = vmatprep.subr.bf16.mxu0 %v14451_v16  ;;  %v14596_v20 = vcombine.low %v2944_v52, %v2956_v55  ;;  %v14619_v16 = vcombine.high %v2967_v35, %v2979_v50  ;;  %v3123_v51 = vld [vmem:[%s16785_s19 + $0xec0] sm:$0xff]  ;;  %v3112_v52 = vld [vmem:[%s16785_s19 + $0xe68] sm:$0xff] }
 0x43f   : > { %12699 = vmatprep.subr.bf16.mxu1 %v14453_v23  ;;  %v14621_v23 = vcombine.high %v2968_v53, %v2980_v47  ;;  %v3124_v55 = vld [vmem:[%s16785_s19 + $0xec8] sm:$0xff] }
 0x441   : > { %12536 = vmatpush1.bf16.msra.mxu0 %v14450_v63  ;;  %v14618_v63 = vcombine.low %v2967_v35, %v2979_v50  ;;  %v3135_v35 = vld [vmem:[%s16785_s19 + $0xf20] sm:$0xff] }
 0x442   : > { %12700 = vmatpush1.bf16.msra.mxu1 %v14452_v1  ;;  %12537 = vmatprep.subr.bf16.mxu0 %v14475_v60  ;;  %v14620_v1 = vcombine.low %v2968_v53, %v2980_v47  ;;  %v14643_v60 = vcombine.high %v2991_v27, %v3003_v61  ;;  %v3147_v50 = vld [vmem:[%s16785_s19 + $0xf80] sm:$0xff]  ;;  %v3136_v53 = vld [vmem:[%s16785_s19 + $0xf28] sm:$0xff] }
 0x443   : > { %12701 = vmatprep.subr.bf16.mxu1 %v14477_v14  ;;  %v14645_v14 = vcombine.high %v2992_v13, %v3004_v56  ;;  %v3148_v47 = vld [vmem:[%s16785_s19 + $0xf88] sm:$0xff] }
 0x445   : > { %12538 = vmatpush1.bf16.msra.mxu0 %v14474_v10  ;;  %v14642_v10 = vcombine.low %v2991_v27, %v3003_v61  ;;  %v3159_v27 = vld [vmem:[%s16785_s19 + $0xfe0] sm:$0xff] }
 0x446   : > { %12702 = vmatpush1.bf16.msra.mxu1 %v14476_v15  ;;  %12539 = vmatprep.subr.bf16.mxu0 %v14499_v21  ;;  %v14644_v15 = vcombine.low %v2992_v13, %v3004_v56  ;;  %v14667_v21 = vcombine.high %v3015_v5, %v3027_v22  ;;  %v3171_v61 = vld [vmem:[%s16785_s19 + $0x1040] sm:$0xff]  ;;  %v3160_v13 = vld [vmem:[%s16785_s19 + $0xfe8] sm:$0xff] }
 0x447   : > { %12703 = vmatprep.subr.bf16.mxu1 %v14501_v3  ;;  %v14669_v3 = vcombine.high %v3016_v7, %v3028_v9  ;;  %v3172_v56 = vld [vmem:[%s16785_s19 + $0x1048] sm:$0xff] }
 0x449   : > { %12540 = vmatpush1.bf16.msra.mxu0 %v14498_v25  ;;  %v14666_v25 = vcombine.low %v3015_v5, %v3027_v22  ;;  %v3183_v5 = vld [vmem:[%s16785_s19 + $0x10a0] sm:$0xff] }
 0x44a   : > { %12704 = vmatpush1.bf16.msra.mxu1 %v14500_v30  ;;  %12541 = vmatprep.subr.bf16.mxu0 %v14523_v31  ;;  %v14668_v30 = vcombine.low %v3016_v7, %v3028_v9  ;;  %v14691_v31 = vcombine.high %v3039_v34, %v3051_v24  ;;  %v3195_v22 = vld [vmem:[%s16785_s19 + $0x1100] sm:$0xff]  ;;  %v3184_v7 = vld [vmem:[%s16785_s19 + $0x10a8] sm:$0xff] }
 0x44b   : > { %12705 = vmatprep.subr.bf16.mxu1 %v14525_v32  ;;  %v14693_v32 = vcombine.high %v3040_v44, %v3052_v49  ;;  %v3196_v9 = vld [vmem:[%s16785_s19 + $0x1108] sm:$0xff]  ;;  %v3207_v34 = vld [vmem:[%s16785_s19 + $0x1160] sm:$0xff] }
 0x44c   : > { %v3219_v24 = vld [vmem:[%s16785_s19 + $0x11c0] sm:$0xff] }
 0x44d   : > { %12542 = vmatpush1.bf16.msra.mxu0 %v14522_v37  ;;  %v3076_v37 = vld [vmem:[%s16785_s19 + $0xd48] sm:$0xff] }
 0x44e   : > { %12706 = vmatpush1.bf16.msra.mxu1 %v14524_v38  ;;  %12543 = vmatprep.subr.bf16.mxu0 %v14547_v29  ;;  %v14692_v38 = vcombine.low %v3040_v44, %v3052_v49  ;;  %v14715_v29 = vcombine.high %v3063_v42, %v3075_v57  ;;  %v14717_v0 = vcombine.high %v3064_v36, %v3076_v37  ;;  %v3208_v44 = vld [vmem:[%s16785_s19 + $0x1168] sm:$0xff] }
 0x44f   : > { %12707 = vmatprep.subr.bf16.mxu1 %v14549_v40  ;;  %v3087_v40 = vld [vmem:[%s16785_s19 + $0xda0] sm:$0xff]  ;;  %v3220_v49 = vld [vmem:[%s16785_s19 + $0x11c8] sm:$0xff] }
 0x451   : > { %12544 = vmatpush1.bf16.msra.mxu0 %v14546_v6  ;;  %v14714_v6 = vcombine.low %v3063_v42, %v3075_v57  ;;  %v3231_v42 = vld [vmem:[%s16785_s19 + $0x1220] sm:$0xff] }
 0x452   : > { %12708 = vmatpush1.bf16.msra.mxu1 %v14548_v45  ;;  %12545 = vmatprep.subr.bf16.mxu0 %v14571_v2  ;;  %v14716_v45 = vcombine.low %v3064_v36, %v3076_v37  ;;  %v14739_v2 = vcombine.high %v3087_v40, %v3099_v4  ;;  %v3243_v57 = vld [vmem:[%s16785_s19 + $0x1280] sm:$0xff]  ;;  %v3244_v36 = vld [vmem:[%s16785_s19 + $0x1288] sm:$0xff]  ;;  %v14858_v37 = vcombine.low %v3207_v34, %v3219_v24 }
 0x453   : > { %12709 = vmatprep.subr.bf16.mxu1 %v14573_v8  ;;  %v14741_v8 = vcombine.high %v3088_v41, %v3100_v43 }
 0x455   : > { %12546 = vmatpush1.bf16.msra.mxu0 %v14570_v58  ;;  %v14738_v58 = vcombine.low %v3087_v40, %v3099_v4  ;;  %v3255_v4 = vld [vmem:[%s16785_s19 + $0x12e0] sm:$0xff] }
 0x456   : > { %12710 = vmatpush1.bf16.msra.mxu1 %v14572_v59  ;;  %12547 = vmatprep.subr.bf16.mxu0 %v14595_v18  ;;  %v14740_v59 = vcombine.low %v3088_v41, %v3100_v43  ;;  %v14763_v18 = vcombine.high %v3111_v48, %v3123_v51  ;;  %v3256_v41 = vld [vmem:[%s16785_s19 + $0x12e8] sm:$0xff] }
 0x457   : > { %12711 = vmatprep.subr.bf16.mxu1 %v14597_v46  ;;  %v14765_v46 = vcombine.high %v3112_v52, %v3124_v55  ;;  %v3268_v43 = vld [vmem:[%s16785_s19 + $0x1348] sm:$0xff] }
 0x459   : > { %12548 = vmatpush1.bf16.msra.mxu0 %v14594_v26  ;;  %v14762_v26 = vcombine.low %v3111_v48, %v3123_v51  ;;  %v3279_v48 = vld [vmem:[%s16785_s19 + $0x13a0] sm:$0xff] }
 0x45a   : > { %12712 = vmatpush1.bf16.msra.mxu1 %v14596_v20  ;;  %12549 = vmatprep.subr.bf16.mxu0 %v14619_v16  ;;  %v14764_v20 = vcombine.low %v3112_v52, %v3124_v55  ;;  %v14787_v16 = vcombine.high %v3135_v35, %v3147_v50  ;;  %v3291_v51 = vld [vmem:[%s16785_s19 + $0x1400] sm:$0xff]  ;;  %v3280_v52 = vld [vmem:[%s16785_s19 + $0x13a8] sm:$0xff] }
 0x45b   : > { %12713 = vmatprep.subr.bf16.mxu1 %v14621_v23  ;;  %v14789_v23 = vcombine.high %v3136_v53, %v3148_v47  ;;  %v3292_v55 = vld [vmem:[%s16785_s19 + $0x1408] sm:$0xff] }
 0x45d   : > { %12550 = vmatpush1.bf16.msra.mxu0 %v14618_v63  ;;  %v14786_v63 = vcombine.low %v3135_v35, %v3147_v50  ;;  %v3303_v35 = vld [vmem:[%s16785_s19 + $0x1460] sm:$0xff] }
 0x45e   : > { %12714 = vmatpush1.bf16.msra.mxu1 %v14620_v1  ;;  %12551 = vmatprep.subr.bf16.mxu0 %v14643_v60  ;;  %v14788_v1 = vcombine.low %v3136_v53, %v3148_v47  ;;  %v14811_v60 = vcombine.high %v3159_v27, %v3171_v61  ;;  %v3315_v50 = vld [vmem:[%s16785_s19 + $0x14c0] sm:$0xff]  ;;  %v3304_v53 = vld [vmem:[%s16785_s19 + $0x1468] sm:$0xff] }
 0x45f   : > { %12715 = vmatprep.subr.bf16.mxu1 %v14645_v14  ;;  %v14813_v14 = vcombine.high %v3160_v13, %v3172_v56  ;;  %v3316_v47 = vld [vmem:[%s16785_s19 + $0x14c8] sm:$0xff] }
 0x461   : > { %12552 = vmatpush1.bf16.msra.mxu0 %v14642_v10  ;;  %v14810_v10 = vcombine.low %v3159_v27, %v3171_v61  ;;  %v3327_v27 = vld [vmem:[%s16785_s19 + $0x1520] sm:$0xff] }
 0x462   : > { %12716 = vmatpush1.bf16.msra.mxu1 %v14644_v15  ;;  %12553 = vmatprep.subr.bf16.mxu0 %v14667_v21  ;;  %v14812_v15 = vcombine.low %v3160_v13, %v3172_v56  ;;  %v14835_v21 = vcombine.high %v3183_v5, %v3195_v22  ;;  %v3339_v61 = vld [vmem:[%s16785_s19 + $0x1580] sm:$0xff]  ;;  %v3328_v13 = vld [vmem:[%s16785_s19 + $0x1528] sm:$0xff] }
 0x463   : > { %12717 = vmatprep.subr.bf16.mxu1 %v14669_v3  ;;  %v14837_v3 = vcombine.high %v3184_v7, %v3196_v9  ;;  %v3340_v56 = vld [vmem:[%s16785_s19 + $0x1588] sm:$0xff] }
 0x465   : > { %12554 = vmatpush1.bf16.msra.mxu0 %v14666_v25  ;;  %v14834_v25 = vcombine.low %v3183_v5, %v3195_v22  ;;  %v3351_v5 = vld [vmem:[%s16785_s19 + $0x15e0] sm:$0xff] }
 0x466   : > { %12718 = vmatpush1.bf16.msra.mxu1 %v14668_v30  ;;  %12564 = vmatprep.subr.bf16.mxu0 %v14691_v31  ;;  %v14836_v30 = vcombine.low %v3184_v7, %v3196_v9  ;;  %v14859_v31 = vcombine.high %v3207_v34, %v3219_v24  ;;  %v3363_v22 = vld [vmem:[%s16785_s19 + $0x1640] sm:$0xff]  ;;  %v3352_v7 = vld [vmem:[%s16785_s19 + $0x15e8] sm:$0xff] }
 0x467   : > { %12728 = vmatprep.subr.bf16.mxu1 %v14693_v32  ;;  %v14861_v32 = vcombine.high %v3208_v44, %v3220_v49  ;;  %v3364_v9 = vld [vmem:[%s16785_s19 + $0x1648] sm:$0xff]  ;;  %v3375_v34 = vld [vmem:[%s16785_s19 + $0x16a0] sm:$0xff] }
 0x468   : > { %12556 = vmatmul.mubr.bf16.vlgmr.msra.gmra.mrb[16].mxu0 %v17007_v39  ;;  %v3387_v24 = vld [vmem:[%s16785_s19 + $0x1700] sm:$0xff] }
 0x469   : > { %12720 = vmatmul.mubr.bf16.vlgmr.msra.gmra.mrb[16].mxu1 %v17007_v39  ;;  %12565 = vmatpush1.bf16.msra.mxu0 %v14690_v33  ;;  %v3232_v33 = vld [vmem:[%s16785_s19 + $0x1228] sm:$0xff] }
 0x46a   : > { %12596 = vmatprep.mubr.bf16.mxu0 %v17015_v54  ;;  %12729 = vmatpush1.bf16.msra.mxu1 %v14692_v38  ;;  %v14860_v38 = vcombine.low %v3208_v44, %v3220_v49  ;;  %v14885_v40 = vcombine.high %v3232_v33, %v3244_v36  ;;  %v3376_v44 = vld [vmem:[%s16785_s19 + $0x16a8] sm:$0xff] }
 0x46b   : > { %12760 = vmatprep.mubr.bf16.mxu1 %v17015_v54  ;;  %12566 = vmatprep.subr.bf16.mxu0 %v14715_v29  ;;  %v14883_v29 = vcombine.high %v3231_v42, %v3243_v57  ;;  %v3388_v49 = vld [vmem:[%s16785_s19 + $0x1708] sm:$0xff] }
 0x46c   : > { %12730 = vmatprep.subr.bf16.mxu1 %v14717_v0  ;;  %v3267_v0 = vld [vmem:[%s16785_s19 + $0x1340] sm:$0xff] }
 0x46d   : > { %12567 = vmatpush1.bf16.msra.mxu0 %v14714_v6  ;;  %v14882_v6 = vcombine.low %v3231_v42, %v3243_v57  ;;  %v3399_v42 = vld [vmem:[%s16785_s19 + $0x1760] sm:$0xff] }
 0x46e   : > { %12731 = vmatpush1.bf16.msra.mxu1 %v14716_v45  ;;  %12568 = vmatprep.subr.bf16.mxu0 %v14739_v2  ;;  %v14884_v45 = vcombine.low %v3232_v33, %v3244_v36  ;;  %v14907_v2 = vcombine.high %v3255_v4, %v3267_v0  ;;  %v3411_v57 = vld [vmem:[%s16785_s19 + $0x17c0] sm:$0xff]  ;;  %v3400_v33 = vld [vmem:[%s16785_s19 + $0x1768] sm:$0xff] }
 0x46f   : > { %12732 = vmatprep.subr.bf16.mxu1 %v14741_v8  ;;  %v14909_v8 = vcombine.high %v3256_v41, %v3268_v43  ;;  %v3412_v36 = vld [vmem:[%s16785_s19 + $0x17c8] sm:$0xff] }
 0x471   : > { %12569 = vmatpush1.bf16.msra.mxu0 %v14738_v58  ;;  %v14906_v58 = vcombine.low %v3255_v4, %v3267_v0  ;;  %v3423_v4 = vld [vmem:[%s16785_s19 + $0x1820] sm:$0xff] }
 0x472   : > { %12733 = vmatpush1.bf16.msra.mxu1 %v14740_v59  ;;  %12570 = vmatprep.subr.bf16.mxu0 %v14763_v18  ;;  %v14908_v59 = vcombine.low %v3256_v41, %v3268_v43  ;;  %v14931_v18 = vcombine.high %v3279_v48, %v3291_v51  ;;  %v3435_v0 = vld [vmem:[%s16785_s19 + $0x1880] sm:$0xff]  ;;  %v3424_v41 = vld [vmem:[%s16785_s19 + $0x1828] sm:$0xff] }
 0x473   : > { %12734 = vmatprep.subr.bf16.mxu1 %v14765_v46  ;;  %v14933_v46 = vcombine.high %v3280_v52, %v3292_v55  ;;  %v3436_v43 = vld [vmem:[%s16785_s19 + $0x1888] sm:$0xff] }
 0x475   : > { %12571 = vmatpush1.bf16.msra.mxu0 %v14762_v26  ;;  %v14930_v26 = vcombine.low %v3279_v48, %v3291_v51  ;;  %v3447_v48 = vld [vmem:[%s16785_s19 + $0x18e0] sm:$0xff] }
 0x476   : > { %12735 = vmatpush1.bf16.msra.mxu1 %v14764_v20  ;;  %12572 = vmatprep.subr.bf16.mxu0 %v14787_v16  ;;  %v14932_v20 = vcombine.low %v3280_v52, %v3292_v55  ;;  %v14955_v16 = vcombine.high %v3303_v35, %v3315_v50  ;;  %v3459_v51 = vld [vmem:[%s16785_s19 + $0x1940] sm:$0xff]  ;;  %v15074_v52 = vcombine.low %v3423_v4, %v3435_v0  ;;  %v3448_v55 = vld [vmem:[%s16785_s19 + $0x18e8] sm:$0xff] }
 0x477   : > { %12736 = vmatprep.subr.bf16.mxu1 %v14789_v23  ;;  %v14957_v23 = vcombine.high %v3304_v53, %v3316_v47 }
 0x479   : > { %12573 = vmatpush1.bf16.msra.mxu0 %v14786_v63  ;;  %v14954_v63 = vcombine.low %v3303_v35, %v3315_v50  ;;  %v3483_v35 = vld [vmem:[%s16785_s19 + $0x1a00] sm:$0xff] }
 0x47a   : > { %12737 = vmatpush1.bf16.msra.mxu1 %v14788_v1  ;;  %12574 = vmatprep.subr.bf16.mxu0 %v14811_v60  ;;  %v14956_v1 = vcombine.low %v3304_v53, %v3316_v47  ;;  %v14979_v60 = vcombine.high %v3327_v27, %v3339_v61  ;;  %v3472_v53 = vld [vmem:[%s16785_s19 + $0x19a8] sm:$0xff] }
 0x47b   : > { %12738 = vmatprep.subr.bf16.mxu1 %v14813_v14  ;;  %v14981_v14 = vcombine.high %v3328_v13, %v3340_v56  ;;  %v3484_v47 = vld [vmem:[%s16785_s19 + $0x1a08] sm:$0xff] }
 0x47d   : > { %12575 = vmatpush1.bf16.msra.mxu0 %v14810_v10  ;;  %v14978_v10 = vcombine.low %v3327_v27, %v3339_v61  ;;  %v3495_v27 = vld [vmem:[%s16785_s19 + $0x1a60] sm:$0xff] }
 0x47e   : > { %12739 = vmatpush1.bf16.msra.mxu1 %v14812_v15  ;;  %12576 = vmatprep.subr.bf16.mxu0 %v14835_v21  ;;  %v14980_v15 = vcombine.low %v3328_v13, %v3340_v56  ;;  %v15003_v21 = vcombine.high %v3351_v5, %v3363_v22  ;;  %v3507_v61 = vld [vmem:[%s16785_s19 + $0x1ac0] sm:$0xff]  ;;  %v3496_v13 = vld [vmem:[%s16785_s19 + $0x1a68] sm:$0xff] }
 0x47f   : > { %12740 = vmatprep.subr.bf16.mxu1 %v14837_v3  ;;  %v15005_v3 = vcombine.high %v3352_v7, %v3364_v9  ;;  %v3508_v56 = vld [vmem:[%s16785_s19 + $0x1ac8] sm:$0xff] }
 0x481   : > { %12577 = vmatpush1.bf16.msra.mxu0 %v14834_v25  ;;  %v15002_v25 = vcombine.low %v3351_v5, %v3363_v22  ;;  %v3519_v5 = vld [vmem:[%s16785_s19 + $0x1b20] sm:$0xff] }
 0x482   : > { %12741 = vmatpush1.bf16.msra.mxu1 %v14836_v30  ;;  %12578 = vmatprep.subr.bf16.mxu0 %v14859_v31  ;;  %v15004_v30 = vcombine.low %v3352_v7, %v3364_v9  ;;  %v15027_v31 = vcombine.high %v3375_v34, %v3387_v24  ;;  %v3531_v22 = vld [vmem:[%s16785_s19 + $0x1b80] sm:$0xff]  ;;  %v3520_v7 = vld [vmem:[%s16785_s19 + $0x1b28] sm:$0xff] }
 0x483   : > { %12742 = vmatprep.subr.bf16.mxu1 %v14861_v32  ;;  %v15029_v32 = vcombine.high %v3376_v44, %v3388_v49  ;;  %v3532_v9 = vld [vmem:[%s16785_s19 + $0x1b88] sm:$0xff] }
 0x485   : > { %12579 = vmatpush1.bf16.msra.mxu0 %v14858_v37  ;;  %v15026_v37 = vcombine.low %v3375_v34, %v3387_v24  ;;  %v3543_v34 = vld [vmem:[%s16785_s19 + $0x1be0] sm:$0xff] }
 0x486   : > { %12743 = vmatpush1.bf16.msra.mxu1 %v14860_v38  ;;  %12580 = vmatprep.subr.bf16.mxu0 %v14883_v29  ;;  %v15028_v38 = vcombine.low %v3376_v44, %v3388_v49  ;;  %v15051_v29 = vcombine.high %v3399_v42, %v3411_v57  ;;  %v3555_v24 = vld [vmem:[%s16785_s19 + $0x1c40] sm:$0xff]  ;;  %v3544_v44 = vld [vmem:[%s16785_s19 + $0x1be8] sm:$0xff] }
 0x487   : > { %12744 = vmatprep.subr.bf16.mxu1 %v14885_v40  ;;  %v15053_v40 = vcombine.high %v3400_v33, %v3412_v36  ;;  %v3556_v49 = vld [vmem:[%s16785_s19 + $0x1c48] sm:$0xff] }
 0x489   : > { %12581 = vmatpush1.bf16.msra.mxu0 %v14882_v6  ;;  %v15050_v6 = vcombine.low %v3399_v42, %v3411_v57  ;;  %v3567_v42 = vld [vmem:[%s16785_s19 + $0x1ca0] sm:$0xff] }
 0x48a   : > { %12745 = vmatpush1.bf16.msra.mxu1 %v14884_v45  ;;  %12582 = vmatprep.subr.bf16.mxu0 %v14907_v2  ;;  %v15052_v45 = vcombine.low %v3400_v33, %v3412_v36  ;;  %v15075_v2 = vcombine.high %v3423_v4, %v3435_v0  ;;  %v3579_v57 = vld [vmem:[%s16785_s19 + $0x1d00] sm:$0xff]  ;;  %v3568_v33 = vld [vmem:[%s16785_s19 + $0x1ca8] sm:$0xff] }
 0x48b   : > { %12746 = vmatprep.subr.bf16.mxu1 %v14909_v8  ;;  %v15077_v8 = vcombine.high %v3424_v41, %v3436_v43  ;;  %v3580_v36 = vld [vmem:[%s16785_s19 + $0x1d08] sm:$0xff]  ;;  %v3591_v4 = vld [vmem:[%s16785_s19 + $0x1d60] sm:$0xff] }
 0x48c   : > { %v3603_v0 = vld [vmem:[%s16785_s19 + $0x1dc0] sm:$0xff] }
 0x48d   : > { %12583 = vmatpush1.bf16.msra.mxu0 %v14906_v58  ;;  %v3460_v58 = vld [vmem:[%s16785_s19 + $0x1948] sm:$0xff] }
 0x48e   : > { %12747 = vmatpush1.bf16.msra.mxu1 %v14908_v59  ;;  %12584 = vmatprep.subr.bf16.mxu0 %v14931_v18  ;;  %v15076_v59 = vcombine.low %v3424_v41, %v3436_v43  ;;  %v15099_v18 = vcombine.high %v3447_v48, %v3459_v51  ;;  %v15101_v50 = vcombine.high %v3448_v55, %v3460_v58  ;;  %v3592_v41 = vld [vmem:[%s16785_s19 + $0x1d68] sm:$0xff] }
 0x48f   : > { %12748 = vmatprep.subr.bf16.mxu1 %v14933_v46  ;;  %v3471_v46 = vld [vmem:[%s16785_s19 + $0x19a0] sm:$0xff]  ;;  %v3604_v43 = vld [vmem:[%s16785_s19 + $0x1dc8] sm:$0xff] }
 0x491   : > { %12585 = vmatpush1.bf16.msra.mxu0 %v14930_v26  ;;  %v15098_v26 = vcombine.low %v3447_v48, %v3459_v51  ;;  %v3615_v48 = vld [vmem:[%s16785_s19 + $0x1e20] sm:$0xff] }
 0x492   : > { %12749 = vmatpush1.bf16.msra.mxu1 %v14932_v20  ;;  %12586 = vmatprep.subr.bf16.mxu0 %v14955_v16  ;;  %v15100_v20 = vcombine.low %v3448_v55, %v3460_v58  ;;  %v15123_v16 = vcombine.high %v3471_v46, %v3483_v35  ;;  %v3627_v51 = vld [vmem:[%s16785_s19 + $0x1e80] sm:$0xff]  ;;  %v3628_v55 = vld [vmem:[%s16785_s19 + $0x1e88] sm:$0xff]  ;;  %v15242_v58 = vcombine.low %v3591_v4, %v3603_v0 }
 0x493   : > { %12750 = vmatprep.subr.bf16.mxu1 %v14957_v23  ;;  %v15125_v23 = vcombine.high %v3472_v53, %v3484_v47 }
 0x495   : > { %12587 = vmatpush1.bf16.msra.mxu0 %v14954_v63  ;;  %v15122_v63 = vcombine.low %v3471_v46, %v3483_v35  ;;  %v3639_v35 = vld [vmem:[%s16785_s19 + $0x1ee0] sm:$0xff] }
 0x496   : > { %12751 = vmatpush1.bf16.msra.mxu1 %v14956_v1  ;;  %12588 = vmatprep.subr.bf16.mxu0 %v14979_v60  ;;  %v15124_v1 = vcombine.low %v3472_v53, %v3484_v47  ;;  %v15147_v60 = vcombine.high %v3495_v27, %v3507_v61  ;;  %v3640_v53 = vld [vmem:[%s16785_s19 + $0x1ee8] sm:$0xff] }
 0x497   : > { %12752 = vmatprep.subr.bf16.mxu1 %v14981_v14  ;;  %v15149_v14 = vcombine.high %v3496_v13, %v3508_v56  ;;  %v3652_v47 = vld [vmem:[%s16785_s19 + $0x1f48] sm:$0xff] }
 0x499   : > { %12589 = vmatpush1.bf16.msra.mxu0 %v14978_v10  ;;  %v15146_v10 = vcombine.low %v3495_v27, %v3507_v61  ;;  %v3663_v27 = vld [vmem:[%s16785_s19 + $0x1fa0] sm:$0xff] }
 0x49a   : > { %12753 = vmatpush1.bf16.msra.mxu1 %v14980_v15  ;;  %12590 = vmatprep.subr.bf16.mxu0 %v15003_v21  ;;  %v15148_v15 = vcombine.low %v3496_v13, %v3508_v56  ;;  %v15171_v21 = vcombine.high %v3519_v5, %v3531_v22  ;;  %v3675_v61 = vld [vmem:[%s16785_s19 + $0x2000] sm:$0xff]  ;;  %v3664_v13 = vld [vmem:[%s16785_s19 + $0x1fa8] sm:$0xff] }
 0x49b   : > { %12754 = vmatprep.subr.bf16.mxu1 %v15005_v3  ;;  %v15173_v3 = vcombine.high %v3520_v7, %v3532_v9  ;;  %v3676_v56 = vld [vmem:[%s16785_s19 + $0x2008] sm:$0xff] }
 0x49d   : > { %12591 = vmatpush1.bf16.msra.mxu0 %v15002_v25  ;;  %v15170_v25 = vcombine.low %v3519_v5, %v3531_v22  ;;  %v3687_v5 = vld [vmem:[%s16785_s19 + $0x2060] sm:$0xff] }
 0x49e   : > { %12755 = vmatpush1.bf16.msra.mxu1 %v15004_v30  ;;  %12592 = vmatprep.subr.bf16.mxu0 %v15027_v31  ;;  %v15172_v30 = vcombine.low %v3520_v7, %v3532_v9  ;;  %v15195_v31 = vcombine.high %v3543_v34, %v3555_v24  ;;  %v3699_v22 = vld [vmem:[%s16785_s19 + $0x20c0] sm:$0xff]  ;;  %v3688_v7 = vld [vmem:[%s16785_s19 + $0x2068] sm:$0xff] }
 0x49f   : > { %12756 = vmatprep.subr.bf16.mxu1 %v15029_v32  ;;  %v15197_v32 = vcombine.high %v3544_v44, %v3556_v49  ;;  %v3700_v9 = vld [vmem:[%s16785_s19 + $0x20c8] sm:$0xff] }
 0x4a1   : > { %12593 = vmatpush1.bf16.msra.mxu0 %v15026_v37  ;;  %v15194_v37 = vcombine.low %v3543_v34, %v3555_v24  ;;  %v3711_v34 = vld [vmem:[%s16785_s19 + $0x2120] sm:$0xff] }
 0x4a2   : > { %12757 = vmatpush1.bf16.msra.mxu1 %v15028_v38  ;;  %12594 = vmatprep.subr.bf16.mxu0 %v15051_v29  ;;  %v15196_v38 = vcombine.low %v3544_v44, %v3556_v49  ;;  %v15219_v29 = vcombine.high %v3567_v42, %v3579_v57  ;;  %v3723_v24 = vld [vmem:[%s16785_s19 + $0x2180] sm:$0xff]  ;;  %v3712_v44 = vld [vmem:[%s16785_s19 + $0x2128] sm:$0xff] }
 0x4a3   : > { %12758 = vmatprep.subr.bf16.mxu1 %v15053_v40  ;;  %v15221_v40 = vcombine.high %v3568_v33, %v3580_v36  ;;  %v3724_v49 = vld [vmem:[%s16785_s19 + $0x2188] sm:$0xff] }
 0x4a5   : > { %12595 = vmatpush1.bf16.msra.mxu0 %v15050_v6  ;;  %v15218_v6 = vcombine.low %v3567_v42, %v3579_v57  ;;  %v3735_v42 = vld [vmem:[%s16785_s19 + $0x21e0] sm:$0xff] }
 0x4a6   : > { %12759 = vmatpush1.bf16.msra.mxu1 %v15052_v45  ;;  %12605 = vmatprep.subr.bf16.mxu0 %v15075_v2  ;;  %v15220_v45 = vcombine.low %v3568_v33, %v3580_v36  ;;  %v15243_v2 = vcombine.high %v3591_v4, %v3603_v0  ;;  %v3747_v57 = vld [vmem:[%s16785_s19 + $0x2240] sm:$0xff]  ;;  %v3736_v33 = vld [vmem:[%s16785_s19 + $0x21e8] sm:$0xff] }
 0x4a7   : > { %12769 = vmatprep.subr.bf16.mxu1 %v15077_v8  ;;  %v15245_v8 = vcombine.high %v3592_v41, %v3604_v43  ;;  %v3748_v36 = vld [vmem:[%s16785_s19 + $0x2248] sm:$0xff]  ;;  %v3759_v4 = vld [vmem:[%s16785_s19 + $0x22a0] sm:$0xff] }
 0x4a8   : > { %12597 = vmatmul.mubr.bf16.vlgmr.msra.gmra.mrb[16].mxu0 %v17094_v12  ;;  %v3771_v0 = vld [vmem:[%s16785_s19 + $0x2300] sm:$0xff] }
 0x4a9   : > { %12761 = vmatmul.mubr.bf16.vlgmr.msra.gmra.mrb[16].mxu1 %v17094_v12  ;;  %12606 = vmatpush1.bf16.msra.mxu0 %v15074_v52  ;;  %v3616_v52 = vld [vmem:[%s16785_s19 + $0x1e28] sm:$0xff] }
 0x4aa   : > { %12637 = vmatprep.mubr.bf16.mxu0 %v17212_v11  ;;  %12770 = vmatpush1.bf16.msra.mxu1 %v15076_v59  ;;  %v15244_v59 = vcombine.low %v3592_v41, %v3604_v43  ;;  %v15269_v46 = vcombine.high %v3616_v52, %v3628_v55  ;;  %v3760_v41 = vld [vmem:[%s16785_s19 + $0x22a8] sm:$0xff] }
 0x4ab   : > { %12801 = vmatprep.mubr.bf16.mxu1 %v17212_v11  ;;  %12607 = vmatprep.subr.bf16.mxu0 %v15099_v18  ;;  %v15267_v18 = vcombine.high %v3615_v48, %v3627_v51  ;;  %v3772_v43 = vld [vmem:[%s16785_s19 + $0x2308] sm:$0xff] }
 0x4ac   : > { %12771 = vmatprep.subr.bf16.mxu1 %v15101_v50  ;;  %v3651_v50 = vld [vmem:[%s16785_s19 + $0x1f40] sm:$0xff] }
 0x4ad   : > { %12608 = vmatpush1.bf16.msra.mxu0 %v15098_v26  ;;  %v15266_v26 = vcombine.low %v3615_v48, %v3627_v51  ;;  %v3783_v48 = vld [vmem:[%s16785_s19 + $0x2360] sm:$0xff] }
 0x4ae   : > { %12772 = vmatpush1.bf16.msra.mxu1 %v15100_v20  ;;  %12609 = vmatprep.subr.bf16.mxu0 %v15123_v16  ;;  %v15268_v20 = vcombine.low %v3616_v52, %v3628_v55  ;;  %v15291_v16 = vcombine.high %v3639_v35, %v3651_v50  ;;  %v3795_v51 = vld [vmem:[%s16785_s19 + $0x23c0] sm:$0xff]  ;;  %v3784_v52 = vld [vmem:[%s16785_s19 + $0x2368] sm:$0xff] }
 0x4af   : > { %12773 = vmatprep.subr.bf16.mxu1 %v15125_v23  ;;  %v15293_v23 = vcombine.high %v3640_v53, %v3652_v47  ;;  %v3796_v55 = vld [vmem:[%s16785_s19 + $0x23c8] sm:$0xff] }
 0x4b1   : > { %12610 = vmatpush1.bf16.msra.mxu0 %v15122_v63  ;;  %v15290_v63 = vcombine.low %v3639_v35, %v3651_v50  ;;  %v3807_v35 = vld [vmem:[%s16785_s19 + $0x2420] sm:$0xff] }
 0x4b2   : > { %12774 = vmatpush1.bf16.msra.mxu1 %v15124_v1  ;;  %12611 = vmatprep.subr.bf16.mxu0 %v15147_v60  ;;  %v15292_v1 = vcombine.low %v3640_v53, %v3652_v47  ;;  %v15315_v60 = vcombine.high %v3663_v27, %v3675_v61  ;;  %v3819_v50 = vld [vmem:[%s16785_s19 + $0x2480] sm:$0xff]  ;;  %v3808_v53 = vld [vmem:[%s16785_s19 + $0x2428] sm:$0xff] }
 0x4b3   : > { %12775 = vmatprep.subr.bf16.mxu1 %v15149_v14  ;;  %v15317_v14 = vcombine.high %v3664_v13, %v3676_v56  ;;  %v3820_v47 = vld [vmem:[%s16785_s19 + $0x2488] sm:$0xff] }
 0x4b5   : > { %12612 = vmatpush1.bf16.msra.mxu0 %v15146_v10  ;;  %v15314_v10 = vcombine.low %v3663_v27, %v3675_v61  ;;  %v3831_v27 = vld [vmem:[%s16785_s19 + $0x24e0] sm:$0xff] }
 0x4b6   : > { %12776 = vmatpush1.bf16.msra.mxu1 %v15148_v15  ;;  %12613 = vmatprep.subr.bf16.mxu0 %v15171_v21  ;;  %v15316_v15 = vcombine.low %v3664_v13, %v3676_v56  ;;  %v15339_v21 = vcombine.high %v3687_v5, %v3699_v22  ;;  %v3843_v61 = vld [vmem:[%s16785_s19 + $0x2540] sm:$0xff]  ;;  %v15458_v13 = vcombine.low %v3807_v35, %v3819_v50  ;;  %v3832_v56 = vld [vmem:[%s16785_s19 + $0x24e8] sm:$0xff] }
 0x4b7   : > { %12777 = vmatprep.subr.bf16.mxu1 %v15173_v3  ;;  %v15341_v3 = vcombine.high %v3688_v7, %v3700_v9 }
 0x4b9   : > { %12614 = vmatpush1.bf16.msra.mxu0 %v15170_v25  ;;  %v15338_v25 = vcombine.low %v3687_v5, %v3699_v22  ;;  %v3867_v5 = vld [vmem:[%s16785_s19 + $0x2600] sm:$0xff] }
 0x4ba   : > { %12778 = vmatpush1.bf16.msra.mxu1 %v15172_v30  ;;  %12615 = vmatprep.subr.bf16.mxu0 %v15195_v31  ;;  %v15340_v30 = vcombine.low %v3688_v7, %v3700_v9  ;;  %v15363_v31 = vcombine.high %v3711_v34, %v3723_v24  ;;  %v3856_v7 = vld [vmem:[%s16785_s19 + $0x25a8] sm:$0xff] }
 0x4bb   : > { %12779 = vmatprep.subr.bf16.mxu1 %v15197_v32  ;;  %v15365_v32 = vcombine.high %v3712_v44, %v3724_v49  ;;  %v3868_v9 = vld [vmem:[%s16785_s19 + $0x2608] sm:$0xff] }
 0x4bd   : > { %12616 = vmatpush1.bf16.msra.mxu0 %v15194_v37  ;;  %v15362_v37 = vcombine.low %v3711_v34, %v3723_v24  ;;  %v3879_v34 = vld [vmem:[%s16785_s19 + $0x2660] sm:$0xff] }
 0x4be   : > { %12780 = vmatpush1.bf16.msra.mxu1 %v15196_v38  ;;  %12617 = vmatprep.subr.bf16.mxu0 %v15219_v29  ;;  %v15364_v38 = vcombine.low %v3712_v44, %v3724_v49  ;;  %v15387_v29 = vcombine.high %v3735_v42, %v3747_v57  ;;  %v3891_v24 = vld [vmem:[%s16785_s19 + $0x26c0] sm:$0xff]  ;;  %v3880_v44 = vld [vmem:[%s16785_s19 + $0x2668] sm:$0xff] }
 0x4bf   : > { %12781 = vmatprep.subr.bf16.mxu1 %v15221_v40  ;;  %v15389_v40 = vcombine.high %v3736_v33, %v3748_v36  ;;  %v3892_v49 = vld [vmem:[%s16785_s19 + $0x26c8] sm:$0xff] }
 0x4c1   : > { %12618 = vmatpush1.bf16.msra.mxu0 %v15218_v6  ;;  %v15386_v6 = vcombine.low %v3735_v42, %v3747_v57  ;;  %v3903_v42 = vld [vmem:[%s16785_s19 + $0x2720] sm:$0xff] }
 0x4c2   : > { %12782 = vmatpush1.bf16.msra.mxu1 %v15220_v45  ;;  %12619 = vmatprep.subr.bf16.mxu0 %v15243_v2  ;;  %v15388_v45 = vcombine.low %v3736_v33, %v3748_v36  ;;  %v15411_v2 = vcombine.high %v3759_v4, %v3771_v0  ;;  %v3915_v57 = vld [vmem:[%s16785_s19 + $0x2780] sm:$0xff]  ;;  %v3904_v33 = vld [vmem:[%s16785_s19 + $0x2728] sm:$0xff] }
 0x4c3   : > { %12783 = vmatprep.subr.bf16.mxu1 %v15245_v8  ;;  %v15413_v8 = vcombine.high %v3760_v41, %v3772_v43  ;;  %v3916_v36 = vld [vmem:[%s16785_s19 + $0x2788] sm:$0xff] }
 0x4c5   : > { %12620 = vmatpush1.bf16.msra.mxu0 %v15242_v58  ;;  %v15410_v58 = vcombine.low %v3759_v4, %v3771_v0  ;;  %v3927_v4 = vld [vmem:[%s16785_s19 + $0x27e0] sm:$0xff] }
 0x4c6   : > { %12784 = vmatpush1.bf16.msra.mxu1 %v15244_v59  ;;  %12621 = vmatprep.subr.bf16.mxu0 %v15267_v18  ;;  %v15412_v59 = vcombine.low %v3760_v41, %v3772_v43  ;;  %v15435_v18 = vcombine.high %v3783_v48, %v3795_v51  ;;  %v3939_v0 = vld [vmem:[%s16785_s19 + $0x2840] sm:$0xff]  ;;  %v3928_v41 = vld [vmem:[%s16785_s19 + $0x27e8] sm:$0xff] }
 0x4c7   : > { %12785 = vmatprep.subr.bf16.mxu1 %v15269_v46  ;;  %v15437_v46 = vcombine.high %v3784_v52, %v3796_v55  ;;  %v3940_v43 = vld [vmem:[%s16785_s19 + $0x2848] sm:$0xff] }
 0x4c9   : > { %12622 = vmatpush1.bf16.msra.mxu0 %v15266_v26  ;;  %v15434_v26 = vcombine.low %v3783_v48, %v3795_v51  ;;  %v3951_v48 = vld [vmem:[%s16785_s19 + $0x28a0] sm:$0xff] }
 0x4ca   : > { %12786 = vmatpush1.bf16.msra.mxu1 %v15268_v20  ;;  %12623 = vmatprep.subr.bf16.mxu0 %v15291_v16  ;;  %v15436_v20 = vcombine.low %v3784_v52, %v3796_v55  ;;  %v15459_v16 = vcombine.high %v3807_v35, %v3819_v50  ;;  %v3963_v51 = vld [vmem:[%s16785_s19 + $0x2900] sm:$0xff]  ;;  %v3952_v52 = vld [vmem:[%s16785_s19 + $0x28a8] sm:$0xff] }
 0x4cb   : > { %12787 = vmatprep.subr.bf16.mxu1 %v15293_v23  ;;  %v15461_v23 = vcombine.high %v3808_v53, %v3820_v47  ;;  %v3964_v55 = vld [vmem:[%s16785_s19 + $0x2908] sm:$0xff]  ;;  %v3975_v50 = vld [vmem:[%s16785_s19 + $0x2960] sm:$0xff] }
 0x4cc   : > { %v15605_v35 = vcombine.high %v3952_v52, %v3964_v55 }
 0x4cd   : > { %12624 = vmatpush1.bf16.msra.mxu0 %v15290_v63  ;;  %v3844_v63 = vld [vmem:[%s16785_s19 + $0x2548] sm:$0xff] }
 0x4ce   : > { %12788 = vmatpush1.bf16.msra.mxu1 %v15292_v1  ;;  %12625 = vmatprep.subr.bf16.mxu0 %v15315_v60  ;;  %v15460_v1 = vcombine.low %v3808_v53, %v3820_v47  ;;  %v15483_v60 = vcombine.high %v3831_v27, %v3843_v61  ;;  %v15485_v22 = vcombine.high %v3832_v56, %v3844_v63  ;;  %v3987_v53 = vld [vmem:[%s16785_s19 + $0x29c0] sm:$0xff] }
 0x4cf   : > { %12789 = vmatprep.subr.bf16.mxu1 %v15317_v14  ;;  %v3855_v14 = vld [vmem:[%s16785_s19 + $0x25a0] sm:$0xff] }
 0x4d1   : > { %12626 = vmatpush1.bf16.msra.mxu0 %v15314_v10  ;;  %v15482_v10 = vcombine.low %v3831_v27, %v3843_v61  ;;  %v15602_v61 = vcombine.low %v3951_v48, %v3963_v51 }
 0x4d2   : > { %12790 = vmatpush1.bf16.msra.mxu1 %v15316_v15  ;;  %12627 = vmatprep.subr.bf16.mxu0 %v15339_v21  ;;  %v15484_v15 = vcombine.low %v3832_v56, %v3844_v63  ;;  %v15507_v21 = vcombine.high %v3855_v14, %v3867_v5  ;;  %v15604_v63 = vcombine.low %v3952_v52, %v3964_v55 }
 0x4d3   : > { %12791 = vmatprep.subr.bf16.mxu1 %v15341_v3  ;;  %v15509_v3 = vcombine.high %v3856_v7, %v3868_v9 }
 0x4d5   : > { %12628 = vmatpush1.bf16.msra.mxu0 %v15338_v25  ;;  %v15506_v25 = vcombine.low %v3855_v14, %v3867_v5  ;;  %v3999_v5 = vld [vmem:[%s16785_s19 + $0x2a20] sm:$0xff] }
 0x4d6   : > { %12792 = vmatpush1.bf16.msra.mxu1 %v15340_v30  ;;  %12629 = vmatprep.subr.bf16.mxu0 %v15363_v31  ;;  %v15508_v30 = vcombine.low %v3856_v7, %v3868_v9  ;;  %v15531_v31 = vcombine.high %v3879_v34, %v3891_v24  ;;  %v4000_v7 = vld [vmem:[%s16785_s19 + $0x2a28] sm:$0xff] }
 0x4d7   : > { %12793 = vmatprep.subr.bf16.mxu1 %v15365_v32  ;;  %v15533_v32 = vcombine.high %v3880_v44, %v3892_v49  ;;  %v4012_v9 = vld [vmem:[%s16785_s19 + $0x2a88] sm:$0xff] }
 0x4d9   : > { %12630 = vmatpush1.bf16.msra.mxu0 %v15362_v37  ;;  %v15530_v37 = vcombine.low %v3879_v34, %v3891_v24  ;;  %v4023_v34 = vld [vmem:[%s16785_s19 + $0x2ae0] sm:$0xff] }
 0x4da   : > { %12794 = vmatpush1.bf16.msra.mxu1 %v15364_v38  ;;  %12631 = vmatprep.subr.bf16.mxu0 %v15387_v29  ;;  %v15532_v38 = vcombine.low %v3880_v44, %v3892_v49  ;;  %v15555_v29 = vcombine.high %v3903_v42, %v3915_v57  ;;  %v4035_v24 = vld [vmem:[%s16785_s19 + $0x2b40] sm:$0xff]  ;;  %v4024_v44 = vld [vmem:[%s16785_s19 + $0x2ae8] sm:$0xff] }
 0x4db   : > { %12795 = vmatprep.subr.bf16.mxu1 %v15389_v40  ;;  %v15557_v40 = vcombine.high %v3904_v33, %v3916_v36  ;;  %v4036_v49 = vld [vmem:[%s16785_s19 + $0x2b48] sm:$0xff] }
 0x4dd   : > { %12632 = vmatpush1.bf16.msra.mxu0 %v15386_v6  ;;  %v15554_v6 = vcombine.low %v3903_v42, %v3915_v57  ;;  %v15677_v57 = vcombine.high %v4024_v44, %v4036_v49 }
 0x4de   : > { %12796 = vmatpush1.bf16.msra.mxu1 %v15388_v45  ;;  %12633 = vmatprep.subr.bf16.mxu0 %v15411_v2  ;;  %v15556_v45 = vcombine.low %v3904_v33, %v3916_v36  ;;  %v15579_v2 = vcombine.high %v3927_v4, %v3939_v0  ;;  %v4047_v33 = vld [vmem:[%s16785_s19 + $0x2ba0] sm:$0xff] }
 0x4df   : > { %12797 = vmatprep.subr.bf16.mxu1 %v15413_v8  ;;  %v15581_v8 = vcombine.high %v3928_v41, %v3940_v43  ;;  %v4059_v36 = vld [vmem:[%s16785_s19 + $0x2c00] sm:$0xff] }
 0x4e1   : > { %12634 = vmatpush1.bf16.msra.mxu0 %v15410_v58  ;;  %v15578_v58 = vcombine.low %v3927_v4, %v3939_v0  ;;  %v15674_v4 = vcombine.low %v4023_v34, %v4035_v24  ;;  %v15676_v0 = vcombine.low %v4024_v44, %v4036_v49 }
 0x4e2   : > { %12798 = vmatpush1.bf16.msra.mxu1 %v15412_v59  ;;  %12635 = vmatprep.subr.bf16.mxu0 %v15435_v18  ;;  %v15580_v59 = vcombine.low %v3928_v41, %v3940_v43  ;;  %v15603_v18 = vcombine.high %v3951_v48, %v3963_v51  ;;  %v15699_v41 = vcombine.high %v4047_v33, %v4059_v36 }
 0x4e3   : > { %12799 = vmatprep.subr.bf16.mxu1 %v15437_v46  ;;  %v15698_v48 = vcombine.low %v4047_v33, %v4059_v36 }
 0x4e5   : > { %12636 = vmatpush1.bf16.msra.mxu0 %v15434_v26 }
 0x4e6   : > { %12800 = vmatpush1.bf16.msra.mxu1 %v15436_v20  ;;  %12646 = vmatprep.subr.bf16.mxu0 %v15459_v16  ;;  %v3976_v20 = vld [vmem:[%s16785_s19 + $0x2968] sm:$0xff] }
 0x4e7   : > { %12810 = vmatprep.subr.bf16.mxu1 %v15461_v23  ;;  %v3988_v16 = vld [vmem:[%s16785_s19 + $0x29c8] sm:$0xff] }
 0x4e8   : > { %12638 = vmatmul.mubr.bf16.vlgmr.msra.gmra.mrb[16].mxu0 %v17214_v17  ;;  %v15629_v14 = vcombine.high %v3976_v20, %v3988_v16 }
 0x4e9   : > { %12802 = vmatmul.mubr.bf16.vlgmr.msra.gmra.mrb[16].mxu1 %v17214_v17  ;;  %12647 = vmatpush1.bf16.msra.mxu0 %v15458_v13 }
 0x4ea   : > { %12678 = vmatprep.mubr.bf16.mxu0 %v17222_v28  ;;  %12811 = vmatpush1.bf16.msra.mxu1 %v15460_v1  ;;  %v15627_v1 = vcombine.high %v3975_v50, %v3987_v53 }
 0x4eb   : > { %12842 = vmatprep.mubr.bf16.mxu1 %v17222_v28  ;;  %12648 = vmatprep.subr.bf16.mxu0 %v15483_v60 }
 0x4ec   : > { %12812 = vmatprep.subr.bf16.mxu1 %v15485_v22  ;;  %v4011_v22 = vld [vmem:[%s16785_s19 + $0x2a80] sm:$0xff] }
 0x4ed   : > { %12649 = vmatpush1.bf16.msra.mxu0 %v15482_v10  ;;  %v15626_v10 = vcombine.low %v3975_v50, %v3987_v53 }
 0x4ee   : > { %12813 = vmatpush1.bf16.msra.mxu1 %v15484_v15  ;;  %12650 = vmatprep.subr.bf16.mxu0 %v15507_v21  ;;  %v15628_v15 = vcombine.low %v3976_v20, %v3988_v16  ;;  %v15651_v21 = vcombine.high %v3999_v5, %v4011_v22  ;;  %v4131_v20 = vld [vmem:[%s16785_s19 + $0x2e40] sm:$0xff]  ;;  %v4120_v16 = vld [vmem:[%s16785_s19 + $0x2de8] sm:$0xff] }
 0x4ef   : > { %12814 = vmatprep.subr.bf16.mxu1 %v15509_v3  ;;  %v15653_v3 = vcombine.high %v4000_v7, %v4012_v9 }
 0x4f1   : > { %12651 = vmatpush1.bf16.msra.mxu0 %v15506_v25  ;;  %v15650_v25 = vcombine.low %v3999_v5, %v4011_v22 }
 0x4f2   : > { %12815 = vmatpush1.bf16.msra.mxu1 %v15508_v30  ;;  %12652 = vmatprep.subr.bf16.mxu0 %v15531_v31  ;;  %v15652_v31 = vcombine.low %v4000_v7, %v4012_v9 }
 0x4f3   : > { %12816 = vmatprep.subr.bf16.mxu1 %v15533_v32  ;;  %v15675_v32 = vcombine.high %v4023_v34, %v4035_v24 }
 0x4f5   : > { %12653 = vmatpush1.bf16.msra.mxu0 %v15530_v37 }
 0x4f6   : > { %12817 = vmatpush1.bf16.msra.mxu1 %v15532_v38  ;;  %12654 = vmatprep.subr.bf16.mxu0 %v15555_v29  ;;  %v4048_v38 = vld [vmem:[%s16785_s19 + $0x2ba8] sm:$0xff] }
 0x4f7   : > { %12818 = vmatprep.subr.bf16.mxu1 %v15557_v40  ;;  %v4060_v29 = vld [vmem:[%s16785_s19 + $0x2c08] sm:$0xff] }
 0x4f8   : > { %v15701_v43 = vcombine.high %v4048_v38, %v4060_v29  ;;  %v15700_v51 = vcombine.low %v4048_v38, %v4060_v29  ;;  %v2693_v38 = vld [vmem:[%s16785_s19 + $0x150] sm:$0xff] }
 0x4f9   : > { %12655 = vmatpush1.bf16.msra.mxu0 %v15554_v6  ;;  %v4071_v6 = vld [vmem:[%s16785_s19 + $0x2c60] sm:$0xff] }
 0x4fa   : > { %12819 = vmatpush1.bf16.msra.mxu1 %v15556_v45  ;;  %12656 = vmatprep.subr.bf16.mxu0 %v15579_v2  ;;  %v4083_v45 = vld [vmem:[%s16785_s19 + $0x2cc0] sm:$0xff]  ;;  %v4072_v2 = vld [vmem:[%s16785_s19 + $0x2c68] sm:$0xff] }
 0x4fb   : > { %v12352_v46 = vpop.f32.mrb[12].mxu0  ;;  %12820 = vmatprep.subr.bf16.mxu1 %v15581_v8  ;;  %v4084_v8 = vld [vmem:[%s16785_s19 + $0x2cc8] sm:$0xff]  ;;  %v15723_v52 = vcombine.high %v4071_v6, %v4083_v45 }
 0x4fc   : > { %16146 = vtanh.f32 %v12352_v46  ;;  %v12516_v47 = vpop.f32.mrb[12].mxu1  ;;  %v12354_v26 = vpop.f32.mrb[13].mxu0  ;;  %v15725_v55 = vcombine.high %v4072_v2, %v4084_v8  ;;  %v4108_v46 = vld [vmem:[%s16785_s19 + $0x2d88] sm:$0xff]  ;;  %v15724_v50 = vcombine.low %v4072_v2, %v4084_v8  ;;  %v2706_v2 = vld [vmem:[%s16785_s19 + $0x1b8] sm:$0xff] }
 0x4fd   : > { %16148 = vtanh.f32 %v12516_v47  ;;  %v12518_v23 = vpop.f32.mrb[13].mxu1  ;;  %v12356_v27 = vpop.f32.mrb[14].mxu0  ;;  %12657 = vmatpush1.bf16.msra.mxu0 %v15578_v58  ;;  %v4095_v58 = vld [vmem:[%s16785_s19 + $0x2d20] sm:$0xff]  ;;  %v2718_v8 = vld [vmem:[%s16785_s19 + $0x218] sm:$0xff] }
 0x4fe   : > { %16150 = vtanh.f32 %v12354_v26  ;;  %v12520_v13 = vpop.f32.mrb[14].mxu1  ;;  %12821 = vmatpush1.bf16.msra.mxu1 %v15580_v59  ;;  %v12357_v56 = vpop.f32.mrb[15].mxu0  ;;  %12658 = vmatprep.subr.bf16.mxu0 %v15603_v18  ;;  %v4107_v59 = vld [vmem:[%s16785_s19 + $0x2d80] sm:$0xff]  ;;  %v4096_v18 = vld [vmem:[%s16785_s19 + $0x2d28] sm:$0xff] }
 0x4ff   : > { %16152 = vtanh.f32 %v12518_v23  ;;  %v12521_v60 = vpop.f32.mrb[15].mxu1  ;;  %12822 = vmatprep.subr.bf16.mxu1 %v15605_v35  ;;  %v15722_v35 = vcombine.low %v4071_v6, %v4083_v45  ;;  %v15747_v53 = vcombine.high %v4095_v58, %v4107_v59  ;;  %v15749_v47 = vcombine.high %v4096_v18, %v4108_v46  ;;  %v4119_v26 = vld [vmem:[%s16785_s19 + $0x2de0] sm:$0xff]  ;;  %v4132_v23 = vld [vmem:[%s16785_s19 + $0x2e48] sm:$0xff]  ;;  %v2717_v6 = vld [vmem:[%s16785_s19 + $0x210] sm:$0xff] }
 0x500   : > { %v15746_v27 = vcombine.low %v4095_v58, %v4107_v59  ;;  %v15771_v13 = vcombine.high %v4119_v26, %v4131_v20  ;;  %v15773_v56 = vcombine.high %v4120_v16, %v4132_v23  ;;  %v4144_v60 = vld [vmem:[%s16785_s19 + $0x2ea8] sm:$0xff]  ;;  %v15770_v5 = vcombine.low %v4119_v26, %v4131_v20  ;;  %v2729_v58 = vld [vmem:[%s16785_s19 + $0x270] sm:$0xff] }
 0x501   : > { %12659 = vmatpush1.bf16.msra.mxu0 %v15602_v61  ;;  %v15748_v61 = vcombine.low %v4096_v18, %v4108_v46  ;;  %v15772_v22 = vcombine.low %v4120_v16, %v4132_v23  ;;  %v2741_v59 = vld [vmem:[%s16785_s19 + $0x2d0] sm:$0xff]  ;;  %v2730_v18 = vld [vmem:[%s16785_s19 + $0x278] sm:$0xff] }
 0x502   : > { %12823 = vmatpush1.bf16.msra.mxu1 %v15604_v63  ;;  %12660 = vmatprep.subr.bf16.mxu0 %v15627_v1  ;;  %v4143_v63 = vld [vmem:[%s16785_s19 + $0x2ea0] sm:$0xff]  ;;  %v2742_v46 = vld [vmem:[%s16785_s19 + $0x2d8] sm:$0xff]  ;;  %v2753_v26 = vld [vmem:[%s16785_s19 + $0x330] sm:$0xff] }
 0x503   : > { %12824 = vmatprep.subr.bf16.mxu1 %v15629_v14  ;;  %v4155_v1 = vld [vmem:[%s16785_s19 + $0x2f00] sm:$0xff]  ;;  %v4156_v14 = vld [vmem:[%s16785_s19 + $0x2f08] sm:$0xff]  ;;  %v2765_v20 = vld [vmem:[%s16785_s19 + $0x390] sm:$0xff] }
 0x504   : > { %v15795_v7 = vcombine.high %v4143_v63, %v4155_v1  ;;  %v15797_v9 = vcombine.high %v4144_v60, %v4156_v14  ;;  %v15794_v34 = vcombine.low %v4143_v63, %v4155_v1  ;;  %v15796_v24 = vcombine.low %v4144_v60, %v4156_v14  ;;  %v2754_v16 = vld [vmem:[%s16785_s19 + $0x338] sm:$0xff]  ;;  %v2777_v63 = vld [vmem:[%s16785_s19 + $0x3f0] sm:$0xff] }
 0x505   : > { %12661 = vmatpush1.bf16.msra.mxu0 %v15626_v10  ;;  %v4167_v10 = vld [vmem:[%s16785_s19 + $0x2f60] sm:$0xff]  ;;  %v2766_v23 = vld [vmem:[%s16785_s19 + $0x398] sm:$0xff]  ;;  %v2789_v1 = vld [vmem:[%s16785_s19 + $0x450] sm:$0xff] }
 0x506   : > { %v16147_v30 = vpop.eup %16146  ;;  %12825 = vmatpush1.bf16.msra.mxu1 %v15628_v15  ;;  %12662 = vmatprep.subr.bf16.mxu0 %v15651_v21  ;;  %v4179_v15 = vld [vmem:[%s16785_s19 + $0x2fc0] sm:$0xff]  ;;  %v4168_v21 = vld [vmem:[%s16785_s19 + $0x2f68] sm:$0xff]  ;;  %v2778_v60 = vld [vmem:[%s16785_s19 + $0x3f8] sm:$0xff] }
 0x507   : > { %v16149_v42 = vpop.eup %16148  ;;  %13863 = vst [vmem:[%s17535_s29 + $0x20] sm:$0xff] %v16147_v30  ;;  %12826 = vmatprep.subr.bf16.mxu1 %v15653_v3  ;;  %v4180_v3 = vld [vmem:[%s16785_s19 + $0x2fc8] sm:$0xff]  ;;  %v15819_v44 = vcombine.high %v4167_v10, %v4179_v15  ;;  %v2669_v30 = vld [vmem:[%s16785_s19 + $0x90] sm:$0xff]  ;;  %v2790_v14 = vld [vmem:[%s16785_s19 + $0x458] sm:$0xff] }
 0x508   : > { %v16151_v37 = vpop.eup %16150  ;;  %13865 = vst [vmem:[%s17535_s29 + $0x30] sm:$0xff] %v16149_v42  ;;  %v15821_v49 = vcombine.high %v4168_v21, %v4180_v3  ;;  %v15818_v42 = vcombine.low %v4167_v10, %v4179_v15  ;;  %v2801_v10 = vld [vmem:[%s16785_s19 + $0x4b0] sm:$0xff] }
 0x509   : > { %v16153_v40 = vpop.eup %16152  ;;  %13864 = vst [vmem:[%s17535_s29 + $0x28] sm:$0xff] %v16151_v37  ;;  %12663 = vmatpush1.bf16.msra.mxu0 %v15650_v25  ;;  %v2657_v25 = vld [vmem:[%s16785_s19 + $0x30] sm:$0xff] }
 0x50a   : > { %13866 = vst [vmem:[%s17535_s29 + $0x38] sm:$0xff] %v16153_v40  ;;  %12827 = vmatpush1.bf16.msra.mxu1 %v15652_v31  ;;  %12664 = vmatprep.subr.bf16.mxu0 %v15675_v32  ;;  %v2658_v31 = vld [vmem:[%s16785_s19 + $0x38] sm:$0xff]  ;;  %v14311_v33 = vcombine.high %v2657_v25, %v2669_v30  ;;  %v2681_v37 = vld [vmem:[%s16785_s19 + $0xf0] sm:$0xff]  ;;  %v14310_v29 = vcombine.low %v2657_v25, %v2669_v30 }
 0x50b   : > { %12828 = vmatprep.subr.bf16.mxu1 %v15677_v57  ;;  %v2670_v32 = vld [vmem:[%s16785_s19 + $0x98] sm:$0xff]  ;;  %v15820_v57 = vcombine.low %v4168_v21, %v4180_v3  ;;  %v2813_v15 = vld [vmem:[%s16785_s19 + $0x510] sm:$0xff] }
 0x50c   : > { %v14313_v36 = vcombine.high %v2658_v31, %v2670_v32  ;;  %v2682_v40 = vld [vmem:[%s16785_s19 + $0xf8] sm:$0xff]  ;;  %v2825_v25 = vld [vmem:[%s16785_s19 + $0x570] sm:$0xff] }
 0x50d   : > { %12665 = vmatpush1.bf16.msra.mxu0 %v15674_v4  ;;  %v2694_v4 = vld [vmem:[%s16785_s19 + $0x158] sm:$0xff]  ;;  %v2837_v30 = vld [vmem:[%s16785_s19 + $0x5d0] sm:$0xff] }
 0x50e   : > { %12829 = vmatpush1.bf16.msra.mxu1 %v15676_v0  ;;  %12666 = vmatprep.subr.bf16.mxu0 %v15699_v41  ;;  %v14312_v0 = vcombine.low %v2658_v31, %v2670_v32  ;;  %v14335_v41 = vcombine.high %v2681_v37, %v2693_v38  ;;  %v14337_v45 = vcombine.high %v2682_v40, %v2694_v4  ;;  %v2802_v21 = vld [vmem:[%s16785_s19 + $0x4b8] sm:$0xff] }
 0x50f   : > { %12830 = vmatprep.subr.bf16.mxu1 %v15701_v43  ;;  %v2705_v43 = vld [vmem:[%s16785_s19 + $0x1b0] sm:$0xff]  ;;  %v2814_v3 = vld [vmem:[%s16785_s19 + $0x518] sm:$0xff] }
 0x510   : > { %v2826_v31 = vld [vmem:[%s16785_s19 + $0x578] sm:$0xff] }
 0x511   : > { %12667 = vmatpush1.bf16.msra.mxu0 %v15698_v48  ;;  %v14334_v48 = vcombine.low %v2681_v37, %v2693_v38  ;;  %v2838_v32 = vld [vmem:[%s16785_s19 + $0x5d8] sm:$0xff]  ;;  %v2849_v37 = vld [vmem:[%s16785_s19 + $0x630] sm:$0xff] }
 0x512   : > { %12831 = vmatpush1.bf16.msra.mxu1 %v15700_v51  ;;  %12668 = vmatprep.subr.bf16.mxu0 %v15723_v52  ;;  %v14336_v51 = vcombine.low %v2682_v40, %v2694_v4  ;;  %v14359_v52 = vcombine.high %v2705_v43, %v2717_v6  ;;  %v2861_v38 = vld [vmem:[%s16785_s19 + $0x690] sm:$0xff]  ;;  %v2862_v40 = vld [vmem:[%s16785_s19 + $0x698] sm:$0xff]  ;;  %v14478_v4 = vcombine.low %v2825_v25, %v2837_v30 }
 0x513   : > { %12832 = vmatprep.subr.bf16.mxu1 %v15725_v55  ;;  %v14361_v55 = vcombine.high %v2706_v2, %v2718_v8 }
 0x515   : > { %12669 = vmatpush1.bf16.msra.mxu0 %v15722_v35  ;;  %v14358_v35 = vcombine.low %v2705_v43, %v2717_v6  ;;  %v2873_v6 = vld [vmem:[%s16785_s19 + $0x6f0] sm:$0xff] }
 0x516   : > { %12833 = vmatpush1.bf16.msra.mxu1 %v15724_v50  ;;  %12670 = vmatprep.subr.bf16.mxu0 %v15747_v53  ;;  %v14360_v50 = vcombine.low %v2706_v2, %v2718_v8  ;;  %v14383_v53 = vcombine.high %v2729_v58, %v2741_v59  ;;  %v2874_v2 = vld [vmem:[%s16785_s19 + $0x6f8] sm:$0xff] }
 0x517   : > { %12834 = vmatprep.subr.bf16.mxu1 %v15749_v47  ;;  %v14385_v47 = vcombine.high %v2730_v18, %v2742_v46  ;;  %v2886_v8 = vld [vmem:[%s16785_s19 + $0x758] sm:$0xff] }
 0x519   : > { %12671 = vmatpush1.bf16.msra.mxu0 %v15746_v27  ;;  %v14382_v27 = vcombine.low %v2729_v58, %v2741_v59  ;;  %v2897_v58 = vld [vmem:[%s16785_s19 + $0x7b0] sm:$0xff] }
 0x51a   : > { %12835 = vmatpush1.bf16.msra.mxu1 %v15748_v61  ;;  %12672 = vmatprep.subr.bf16.mxu0 %v15771_v13  ;;  %v14384_v61 = vcombine.low %v2730_v18, %v2742_v46  ;;  %v14407_v13 = vcombine.high %v2753_v26, %v2765_v20  ;;  %v2909_v59 = vld [vmem:[%s16785_s19 + $0x810] sm:$0xff]  ;;  %v2898_v18 = vld [vmem:[%s16785_s19 + $0x7b8] sm:$0xff] }
 0x51b   : > { %12836 = vmatprep.subr.bf16.mxu1 %v15773_v56  ;;  %v14409_v56 = vcombine.high %v2754_v16, %v2766_v23  ;;  %v2910_v46 = vld [vmem:[%s16785_s19 + $0x818] sm:$0xff] }
 0x51d   : > { %12673 = vmatpush1.bf16.msra.mxu0 %v15770_v5  ;;  %v14406_v5 = vcombine.low %v2753_v26, %v2765_v20  ;;  %v2921_v26 = vld [vmem:[%s16785_s19 + $0x870] sm:$0xff] }
 0x51e   : > { %12837 = vmatpush1.bf16.msra.mxu1 %v15772_v22  ;;  %12674 = vmatprep.subr.bf16.mxu0 %v15795_v7  ;;  %v14408_v22 = vcombine.low %v2754_v16, %v2766_v23  ;;  %v14431_v7 = vcombine.high %v2777_v63, %v2789_v1  ;;  %v2933_v20 = vld [vmem:[%s16785_s19 + $0x8d0] sm:$0xff]  ;;  %v2922_v16 = vld [vmem:[%s16785_s19 + $0x878] sm:$0xff] }
 0x51f   : > { %12838 = vmatprep.subr.bf16.mxu1 %v15797_v9  ;;  %v14433_v9 = vcombine.high %v2778_v60, %v2790_v14  ;;  %v2934_v23 = vld [vmem:[%s16785_s19 + $0x8d8] sm:$0xff] }
 0x521   : > { %12675 = vmatpush1.bf16.msra.mxu0 %v15794_v34  ;;  %v14430_v34 = vcombine.low %v2777_v63, %v2789_v1  ;;  %v2945_v63 = vld [vmem:[%s16785_s19 + $0x930] sm:$0xff] }
 0x522   : > { %12839 = vmatpush1.bf16.msra.mxu1 %v15796_v24  ;;  %12676 = vmatprep.subr.bf16.mxu0 %v15819_v44  ;;  %v14432_v24 = vcombine.low %v2778_v60, %v2790_v14  ;;  %v14455_v44 = vcombine.high %v2801_v10, %v2813_v15  ;;  %v2957_v1 = vld [vmem:[%s16785_s19 + $0x990] sm:$0xff]  ;;  %v2946_v60 = vld [vmem:[%s16785_s19 + $0x938] sm:$0xff] }
 0x523   : > { %12840 = vmatprep.subr.bf16.mxu1 %v15821_v49  ;;  %v14457_v49 = vcombine.high %v2802_v21, %v2814_v3  ;;  %v2958_v14 = vld [vmem:[%s16785_s19 + $0x998] sm:$0xff] }
 0x525   : > { %12677 = vmatpush1.bf16.msra.mxu0 %v15818_v42  ;;  %v14454_v42 = vcombine.low %v2801_v10, %v2813_v15  ;;  %v2969_v10 = vld [vmem:[%s16785_s19 + $0x9f0] sm:$0xff] }
 0x526   : > { %12841 = vmatpush1.bf16.msra.mxu1 %v15820_v57  ;;  %12851 = vmatprep.subr.bf16.mxu0 %v14311_v33  ;;  %v14456_v57 = vcombine.low %v2802_v21, %v2814_v3  ;;  %v14479_v33 = vcombine.high %v2825_v25, %v2837_v30  ;;  %v2981_v15 = vld [vmem:[%s16785_s19 + $0xa50] sm:$0xff]  ;;  %v2970_v21 = vld [vmem:[%s16785_s19 + $0x9f8] sm:$0xff] }
 0x527   : > { %13015 = vmatprep.subr.bf16.mxu1 %v14313_v36  ;;  %v14481_v36 = vcombine.high %v2826_v31, %v2838_v32  ;;  %v2982_v3 = vld [vmem:[%s16785_s19 + $0xa58] sm:$0xff]  ;;  %v2993_v25 = vld [vmem:[%s16785_s19 + $0xab0] sm:$0xff] }
 0x528   : > { %12679 = vmatmul.mubr.bf16.vlgmr.msra.gmra.mrb[16].mxu0 %v17292_v19  ;;  %v3005_v30 = vld [vmem:[%s16785_s19 + $0xb10] sm:$0xff] }
 0x529   : > { %12843 = vmatmul.mubr.bf16.vlgmr.msra.gmra.mrb[16].mxu1 %v17292_v19  ;;  %12852 = vmatpush1.bf16.msra.mxu0 %v14310_v29  ;;  %v2850_v29 = vld [vmem:[%s16785_s19 + $0x638] sm:$0xff] }
 0x52a   : > { %12883 = vmatprep.mubr.bf16.mxu0 %v17005_v62  ;;  %13016 = vmatpush1.bf16.msra.mxu1 %v14312_v0  ;;  %v14480_v0 = vcombine.low %v2826_v31, %v2838_v32  ;;  %v14505_v43 = vcombine.high %v2850_v29, %v2862_v40  ;;  %v2994_v31 = vld [vmem:[%s16785_s19 + $0xab8] sm:$0xff] }
 0x52b   : > { %13047 = vmatprep.mubr.bf16.mxu1 %v17005_v62  ;;  %12853 = vmatprep.subr.bf16.mxu0 %v14335_v41  ;;  %v14503_v41 = vcombine.high %v2849_v37, %v2861_v38  ;;  %v3006_v32 = vld [vmem:[%s16785_s19 + $0xb18] sm:$0xff] }
 0x52c   : > { %13017 = vmatprep.subr.bf16.mxu1 %v14337_v45  ;;  %v2885_v45 = vld [vmem:[%s16785_s19 + $0x750] sm:$0xff] }
 0x52d   : > { %12854 = vmatpush1.bf16.msra.mxu0 %v14334_v48  ;;  %v14502_v48 = vcombine.low %v2849_v37, %v2861_v38  ;;  %v3017_v37 = vld [vmem:[%s16785_s19 + $0xb70] sm:$0xff] }
 0x52e   : > { %13018 = vmatpush1.bf16.msra.mxu1 %v14336_v51  ;;  %12855 = vmatprep.subr.bf16.mxu0 %v14359_v52  ;;  %v14504_v51 = vcombine.low %v2850_v29, %v2862_v40  ;;  %v14527_v52 = vcombine.high %v2873_v6, %v2885_v45  ;;  %v3029_v38 = vld [vmem:[%s16785_s19 + $0xbd0] sm:$0xff]  ;;  %v3018_v29 = vld [vmem:[%s16785_s19 + $0xb78] sm:$0xff] }
 0x52f   : > { %13019 = vmatprep.subr.bf16.mxu1 %v14361_v55  ;;  %v14529_v55 = vcombine.high %v2874_v2, %v2886_v8  ;;  %v3030_v40 = vld [vmem:[%s16785_s19 + $0xbd8] sm:$0xff] }
 0x531   : > { %12856 = vmatpush1.bf16.msra.mxu0 %v14358_v35  ;;  %v14526_v35 = vcombine.low %v2873_v6, %v2885_v45  ;;  %v3041_v6 = vld [vmem:[%s16785_s19 + $0xc30] sm:$0xff] }
 0x532   : > { %13020 = vmatpush1.bf16.msra.mxu1 %v14360_v50  ;;  %12857 = vmatprep.subr.bf16.mxu0 %v14383_v53  ;;  %v14528_v50 = vcombine.low %v2874_v2, %v2886_v8  ;;  %v14551_v53 = vcombine.high %v2897_v58, %v2909_v59  ;;  %v3053_v45 = vld [vmem:[%s16785_s19 + $0xc90] sm:$0xff]  ;;  %v3042_v2 = vld [vmem:[%s16785_s19 + $0xc38] sm:$0xff] }
 0x533   : > { %13021 = vmatprep.subr.bf16.mxu1 %v14385_v47  ;;  %v14553_v47 = vcombine.high %v2898_v18, %v2910_v46  ;;  %v3054_v8 = vld [vmem:[%s16785_s19 + $0xc98] sm:$0xff] }
 0x535   : > { %12858 = vmatpush1.bf16.msra.mxu0 %v14382_v27  ;;  %v14550_v27 = vcombine.low %v2897_v58, %v2909_v59  ;;  %v3065_v58 = vld [vmem:[%s16785_s19 + $0xcf0] sm:$0xff] }
 0x536   : > { %13022 = vmatpush1.bf16.msra.mxu1 %v14384_v61  ;;  %12859 = vmatprep.subr.bf16.mxu0 %v14407_v13  ;;  %v14552_v61 = vcombine.low %v2898_v18, %v2910_v46  ;;  %v14575_v13 = vcombine.high %v2921_v26, %v2933_v20  ;;  %v3077_v59 = vld [vmem:[%s16785_s19 + $0xd50] sm:$0xff]  ;;  %v14694_v18 = vcombine.low %v3041_v6, %v3053_v45  ;;  %v3066_v46 = vld [vmem:[%s16785_s19 + $0xcf8] sm:$0xff] }
 0x537   : > { %13023 = vmatprep.subr.bf16.mxu1 %v14409_v56  ;;  %v14577_v56 = vcombine.high %v2922_v16, %v2934_v23 }
 0x539   : > { %12860 = vmatpush1.bf16.msra.mxu0 %v14406_v5  ;;  %v14574_v5 = vcombine.low %v2921_v26, %v2933_v20  ;;  %v3101_v26 = vld [vmem:[%s16785_s19 + $0xe10] sm:$0xff] }
 0x53a   : > { %13024 = vmatpush1.bf16.msra.mxu1 %v14408_v22  ;;  %12861 = vmatprep.subr.bf16.mxu0 %v14431_v7  ;;  %v14576_v22 = vcombine.low %v2922_v16, %v2934_v23  ;;  %v14599_v7 = vcombine.high %v2945_v63, %v2957_v1  ;;  %v3090_v16 = vld [vmem:[%s16785_s19 + $0xdb8] sm:$0xff] }
 0x53b   : > { %13025 = vmatprep.subr.bf16.mxu1 %v14433_v9  ;;  %v14601_v9 = vcombine.high %v2946_v60, %v2958_v14  ;;  %v3102_v23 = vld [vmem:[%s16785_s19 + $0xe18] sm:$0xff] }
 0x53d   : > { %12862 = vmatpush1.bf16.msra.mxu0 %v14430_v34  ;;  %v14598_v34 = vcombine.low %v2945_v63, %v2957_v1  ;;  %v3113_v63 = vld [vmem:[%s16785_s19 + $0xe70] sm:$0xff] }
 0x53e   : > { %13026 = vmatpush1.bf16.msra.mxu1 %v14432_v24  ;;  %12863 = vmatprep.subr.bf16.mxu0 %v14455_v44  ;;  %v14600_v24 = vcombine.low %v2946_v60, %v2958_v14  ;;  %v14623_v44 = vcombine.high %v2969_v10, %v2981_v15  ;;  %v3125_v1 = vld [vmem:[%s16785_s19 + $0xed0] sm:$0xff]  ;;  %v3114_v60 = vld [vmem:[%s16785_s19 + $0xe78] sm:$0xff] }
 0x53f   : > { %13027 = vmatprep.subr.bf16.mxu1 %v14457_v49  ;;  %v14625_v49 = vcombine.high %v2970_v21, %v2982_v3  ;;  %v3126_v14 = vld [vmem:[%s16785_s19 + $0xed8] sm:$0xff] }
 0x541   : > { %12864 = vmatpush1.bf16.msra.mxu0 %v14454_v42  ;;  %v14622_v42 = vcombine.low %v2969_v10, %v2981_v15  ;;  %v3137_v10 = vld [vmem:[%s16785_s19 + $0xf30] sm:$0xff] }
 0x542   : > { %13028 = vmatpush1.bf16.msra.mxu1 %v14456_v57  ;;  %12865 = vmatprep.subr.bf16.mxu0 %v14479_v33  ;;  %v14624_v57 = vcombine.low %v2970_v21, %v2982_v3  ;;  %v14647_v33 = vcombine.high %v2993_v25, %v3005_v30  ;;  %v3149_v15 = vld [vmem:[%s16785_s19 + $0xf90] sm:$0xff]  ;;  %v3138_v21 = vld [vmem:[%s16785_s19 + $0xf38] sm:$0xff] }
 0x543   : > { %13029 = vmatprep.subr.bf16.mxu1 %v14481_v36  ;;  %v14649_v36 = vcombine.high %v2994_v31, %v3006_v32  ;;  %v3150_v3 = vld [vmem:[%s16785_s19 + $0xf98] sm:$0xff] }
 0x545   : > { %12866 = vmatpush1.bf16.msra.mxu0 %v14478_v4  ;;  %v14646_v4 = vcombine.low %v2993_v25, %v3005_v30  ;;  %v3161_v25 = vld [vmem:[%s16785_s19 + $0xff0] sm:$0xff] }
 0x546   : > { %13030 = vmatpush1.bf16.msra.mxu1 %v14480_v0  ;;  %12867 = vmatprep.subr.bf16.mxu0 %v14503_v41  ;;  %v14648_v0 = vcombine.low %v2994_v31, %v3006_v32  ;;  %v14671_v41 = vcombine.high %v3017_v37, %v3029_v38  ;;  %v3173_v30 = vld [vmem:[%s16785_s19 + $0x1050] sm:$0xff]  ;;  %v3162_v31 = vld [vmem:[%s16785_s19 + $0xff8] sm:$0xff] }
 0x547   : > { %13031 = vmatprep.subr.bf16.mxu1 %v14505_v43  ;;  %v14673_v43 = vcombine.high %v3018_v29, %v3030_v40  ;;  %v3174_v32 = vld [vmem:[%s16785_s19 + $0x1058] sm:$0xff] }
 0x549   : > { %12868 = vmatpush1.bf16.msra.mxu0 %v14502_v48  ;;  %v14670_v48 = vcombine.low %v3017_v37, %v3029_v38  ;;  %v3185_v37 = vld [vmem:[%s16785_s19 + $0x10b0] sm:$0xff] }
 0x54a   : > { %13032 = vmatpush1.bf16.msra.mxu1 %v14504_v51  ;;  %12869 = vmatprep.subr.bf16.mxu0 %v14527_v52  ;;  %v14672_v51 = vcombine.low %v3018_v29, %v3030_v40  ;;  %v14695_v52 = vcombine.high %v3041_v6, %v3053_v45  ;;  %v3197_v38 = vld [vmem:[%s16785_s19 + $0x1110] sm:$0xff]  ;;  %v3186_v29 = vld [vmem:[%s16785_s19 + $0x10b8] sm:$0xff] }
 0x54b   : > { %13033 = vmatprep.subr.bf16.mxu1 %v14529_v55  ;;  %v14697_v55 = vcombine.high %v3042_v2, %v3054_v8  ;;  %v3198_v40 = vld [vmem:[%s16785_s19 + $0x1118] sm:$0xff]  ;;  %v3209_v6 = vld [vmem:[%s16785_s19 + $0x1170] sm:$0xff] }
 0x54c   : > { %v3221_v45 = vld [vmem:[%s16785_s19 + $0x11d0] sm:$0xff] }
 0x54d   : > { %12870 = vmatpush1.bf16.msra.mxu0 %v14526_v35  ;;  %v3078_v35 = vld [vmem:[%s16785_s19 + $0xd58] sm:$0xff] }
 0x54e   : > { %13034 = vmatpush1.bf16.msra.mxu1 %v14528_v50  ;;  %12871 = vmatprep.subr.bf16.mxu0 %v14551_v53  ;;  %v14696_v50 = vcombine.low %v3042_v2, %v3054_v8  ;;  %v14719_v53 = vcombine.high %v3065_v58, %v3077_v59  ;;  %v14721_v20 = vcombine.high %v3066_v46, %v3078_v35  ;;  %v3210_v2 = vld [vmem:[%s16785_s19 + $0x1178] sm:$0xff] }
 0x54f   : > { %13035 = vmatprep.subr.bf16.mxu1 %v14553_v47  ;;  %v3089_v47 = vld [vmem:[%s16785_s19 + $0xdb0] sm:$0xff]  ;;  %v3222_v8 = vld [vmem:[%s16785_s19 + $0x11d8] sm:$0xff] }
 0x551   : > { %12872 = vmatpush1.bf16.msra.mxu0 %v14550_v27  ;;  %v14718_v27 = vcombine.low %v3065_v58, %v3077_v59  ;;  %v3233_v58 = vld [vmem:[%s16785_s19 + $0x1230] sm:$0xff] }
 0x552   : > { %13036 = vmatpush1.bf16.msra.mxu1 %v14552_v61  ;;  %12873 = vmatprep.subr.bf16.mxu0 %v14575_v13  ;;  %v14720_v61 = vcombine.low %v3066_v46, %v3078_v35  ;;  %v14743_v13 = vcombine.high %v3089_v47, %v3101_v26  ;;  %v3245_v59 = vld [vmem:[%s16785_s19 + $0x1290] sm:$0xff]  ;;  %v3246_v46 = vld [vmem:[%s16785_s19 + $0x1298] sm:$0xff]  ;;  %v14862_v35 = vcombine.low %v3209_v6, %v3221_v45 }
 0x553   : > { %13037 = vmatprep.subr.bf16.mxu1 %v14577_v56  ;;  %v14745_v56 = vcombine.high %v3090_v16, %v3102_v23 }
 0x555   : > { %12874 = vmatpush1.bf16.msra.mxu0 %v14574_v5  ;;  %v14742_v5 = vcombine.low %v3089_v47, %v3101_v26  ;;  %v3257_v26 = vld [vmem:[%s16785_s19 + $0x12f0] sm:$0xff] }
 0x556   : > { %13038 = vmatpush1.bf16.msra.mxu1 %v14576_v22  ;;  %12875 = vmatprep.subr.bf16.mxu0 %v14599_v7  ;;  %v14744_v22 = vcombine.low %v3090_v16, %v3102_v23  ;;  %v14767_v7 = vcombine.high %v3113_v63, %v3125_v1  ;;  %v3258_v16 = vld [vmem:[%s16785_s19 + $0x12f8] sm:$0xff] }
 0x557   : > { %13039 = vmatprep.subr.bf16.mxu1 %v14601_v9  ;;  %v14769_v9 = vcombine.high %v3114_v60, %v3126_v14  ;;  %v3270_v23 = vld [vmem:[%s16785_s19 + $0x1358] sm:$0xff] }
 0x559   : > { %12876 = vmatpush1.bf16.msra.mxu0 %v14598_v34  ;;  %v14766_v34 = vcombine.low %v3113_v63, %v3125_v1  ;;  %v3281_v63 = vld [vmem:[%s16785_s19 + $0x13b0] sm:$0xff] }
 0x55a   : > { %13040 = vmatpush1.bf16.msra.mxu1 %v14600_v24  ;;  %12877 = vmatprep.subr.bf16.mxu0 %v14623_v44  ;;  %v14768_v24 = vcombine.low %v3114_v60, %v3126_v14  ;;  %v14791_v44 = vcombine.high %v3137_v10, %v3149_v15  ;;  %v3293_v1 = vld [vmem:[%s16785_s19 + $0x1410] sm:$0xff]  ;;  %v3282_v60 = vld [vmem:[%s16785_s19 + $0x13b8] sm:$0xff] }
 0x55b   : > { %13041 = vmatprep.subr.bf16.mxu1 %v14625_v49  ;;  %v14793_v49 = vcombine.high %v3138_v21, %v3150_v3  ;;  %v3294_v14 = vld [vmem:[%s16785_s19 + $0x1418] sm:$0xff] }
 0x55d   : > { %12878 = vmatpush1.bf16.msra.mxu0 %v14622_v42  ;;  %v14790_v42 = vcombine.low %v3137_v10, %v3149_v15  ;;  %v3305_v10 = vld [vmem:[%s16785_s19 + $0x1470] sm:$0xff] }
 0x55e   : > { %13042 = vmatpush1.bf16.msra.mxu1 %v14624_v57  ;;  %12879 = vmatprep.subr.bf16.mxu0 %v14647_v33  ;;  %v14792_v57 = vcombine.low %v3138_v21, %v3150_v3  ;;  %v14815_v33 = vcombine.high %v3161_v25, %v3173_v30  ;;  %v3317_v15 = vld [vmem:[%s16785_s19 + $0x14d0] sm:$0xff]  ;;  %v3306_v21 = vld [vmem:[%s16785_s19 + $0x1478] sm:$0xff] }
 0x55f   : > { %13043 = vmatprep.subr.bf16.mxu1 %v14649_v36  ;;  %v14817_v36 = vcombine.high %v3162_v31, %v3174_v32  ;;  %v3318_v3 = vld [vmem:[%s16785_s19 + $0x14d8] sm:$0xff] }
 0x561   : > { %12880 = vmatpush1.bf16.msra.mxu0 %v14646_v4  ;;  %v14814_v4 = vcombine.low %v3161_v25, %v3173_v30  ;;  %v3329_v25 = vld [vmem:[%s16785_s19 + $0x1530] sm:$0xff] }
 0x562   : > { %13044 = vmatpush1.bf16.msra.mxu1 %v14648_v0  ;;  %12881 = vmatprep.subr.bf16.mxu0 %v14671_v41  ;;  %v14816_v0 = vcombine.low %v3162_v31, %v3174_v32  ;;  %v14839_v41 = vcombine.high %v3185_v37, %v3197_v38  ;;  %v3341_v30 = vld [vmem:[%s16785_s19 + $0x1590] sm:$0xff]  ;;  %v3330_v31 = vld [vmem:[%s16785_s19 + $0x1538] sm:$0xff] }
 0x563   : > { %13045 = vmatprep.subr.bf16.mxu1 %v14673_v43  ;;  %v14841_v43 = vcombine.high %v3186_v29, %v3198_v40  ;;  %v3342_v32 = vld [vmem:[%s16785_s19 + $0x1598] sm:$0xff] }
 0x565   : > { %12882 = vmatpush1.bf16.msra.mxu0 %v14670_v48  ;;  %v14838_v48 = vcombine.low %v3185_v37, %v3197_v38  ;;  %v3353_v37 = vld [vmem:[%s16785_s19 + $0x15f0] sm:$0xff] }
 0x566   : > { %13046 = vmatpush1.bf16.msra.mxu1 %v14672_v51  ;;  %12892 = vmatprep.subr.bf16.mxu0 %v14695_v52  ;;  %v14840_v51 = vcombine.low %v3186_v29, %v3198_v40  ;;  %v14863_v52 = vcombine.high %v3209_v6, %v3221_v45  ;;  %v3365_v38 = vld [vmem:[%s16785_s19 + $0x1650] sm:$0xff]  ;;  %v3354_v29 = vld [vmem:[%s16785_s19 + $0x15f8] sm:$0xff] }
 0x567   : > { %13056 = vmatprep.subr.bf16.mxu1 %v14697_v55  ;;  %v14865_v55 = vcombine.high %v3210_v2, %v3222_v8  ;;  %v3366_v40 = vld [vmem:[%s16785_s19 + $0x1658] sm:$0xff]  ;;  %v3377_v6 = vld [vmem:[%s16785_s19 + $0x16b0] sm:$0xff] }
 0x568   : > { %12884 = vmatmul.mubr.bf16.vlgmr.msra.gmra.mrb[20].mxu0 %v17007_v39  ;;  %v3389_v45 = vld [vmem:[%s16785_s19 + $0x1710] sm:$0xff] }
 0x569   : > { %13048 = vmatmul.mubr.bf16.vlgmr.msra.gmra.mrb[20].mxu1 %v17007_v39  ;;  %12893 = vmatpush1.bf16.msra.mxu0 %v14694_v18  ;;  %v3234_v18 = vld [vmem:[%s16785_s19 + $0x1238] sm:$0xff] }
 0x56a   : > { %12924 = vmatprep.mubr.bf16.mxu0 %v17015_v54  ;;  %13057 = vmatpush1.bf16.msra.mxu1 %v14696_v50  ;;  %v14864_v50 = vcombine.low %v3210_v2, %v3222_v8  ;;  %v14889_v47 = vcombine.high %v3234_v18, %v3246_v46  ;;  %v3378_v2 = vld [vmem:[%s16785_s19 + $0x16b8] sm:$0xff] }
 0x56b   : > { %13088 = vmatprep.mubr.bf16.mxu1 %v17015_v54  ;;  %12894 = vmatprep.subr.bf16.mxu0 %v14719_v53  ;;  %v14887_v53 = vcombine.high %v3233_v58, %v3245_v59  ;;  %v3390_v8 = vld [vmem:[%s16785_s19 + $0x1718] sm:$0xff] }
 0x56c   : > { %13058 = vmatprep.subr.bf16.mxu1 %v14721_v20  ;;  %v3269_v20 = vld [vmem:[%s16785_s19 + $0x1350] sm:$0xff] }
 0x56d   : > { %12895 = vmatpush1.bf16.msra.mxu0 %v14718_v27  ;;  %v14886_v27 = vcombine.low %v3233_v58, %v3245_v59  ;;  %v3401_v58 = vld [vmem:[%s16785_s19 + $0x1770] sm:$0xff] }
 0x56e   : > { %13059 = vmatpush1.bf16.msra.mxu1 %v14720_v61  ;;  %12896 = vmatprep.subr.bf16.mxu0 %v14743_v13  ;;  %v14888_v61 = vcombine.low %v3234_v18, %v3246_v46  ;;  %v14911_v13 = vcombine.high %v3257_v26, %v3269_v20  ;;  %v3413_v59 = vld [vmem:[%s16785_s19 + $0x17d0] sm:$0xff]  ;;  %v3402_v18 = vld [vmem:[%s16785_s19 + $0x1778] sm:$0xff] }
 0x56f   : > { %13060 = vmatprep.subr.bf16.mxu1 %v14745_v56  ;;  %v14913_v56 = vcombine.high %v3258_v16, %v3270_v23  ;;  %v3414_v46 = vld [vmem:[%s16785_s19 + $0x17d8] sm:$0xff] }
 0x571   : > { %12897 = vmatpush1.bf16.msra.mxu0 %v14742_v5  ;;  %v14910_v5 = vcombine.low %v3257_v26, %v3269_v20  ;;  %v3425_v26 = vld [vmem:[%s16785_s19 + $0x1830] sm:$0xff] }
 0x572   : > { %13061 = vmatpush1.bf16.msra.mxu1 %v14744_v22  ;;  %12898 = vmatprep.subr.bf16.mxu0 %v14767_v7  ;;  %v14912_v22 = vcombine.low %v3258_v16, %v3270_v23  ;;  %v14935_v7 = vcombine.high %v3281_v63, %v3293_v1  ;;  %v3437_v20 = vld [vmem:[%s16785_s19 + $0x1890] sm:$0xff]  ;;  %v3426_v16 = vld [vmem:[%s16785_s19 + $0x1838] sm:$0xff] }
 0x573   : > { %13062 = vmatprep.subr.bf16.mxu1 %v14769_v9  ;;  %v14937_v9 = vcombine.high %v3282_v60, %v3294_v14  ;;  %v3438_v23 = vld [vmem:[%s16785_s19 + $0x1898] sm:$0xff] }
 0x575   : > { %12899 = vmatpush1.bf16.msra.mxu0 %v14766_v34  ;;  %v14934_v34 = vcombine.low %v3281_v63, %v3293_v1  ;;  %v3449_v63 = vld [vmem:[%s16785_s19 + $0x18f0] sm:$0xff] }
 0x576   : > { %13063 = vmatpush1.bf16.msra.mxu1 %v14768_v24  ;;  %12900 = vmatprep.subr.bf16.mxu0 %v14791_v44  ;;  %v14936_v24 = vcombine.low %v3282_v60, %v3294_v14  ;;  %v14959_v44 = vcombine.high %v3305_v10, %v3317_v15  ;;  %v3461_v1 = vld [vmem:[%s16785_s19 + $0x1950] sm:$0xff]  ;;  %v15078_v60 = vcombine.low %v3425_v26, %v3437_v20  ;;  %v3450_v14 = vld [vmem:[%s16785_s19 + $0x18f8] sm:$0xff] }
 0x577   : > { %13064 = vmatprep.subr.bf16.mxu1 %v14793_v49  ;;  %v14961_v49 = vcombine.high %v3306_v21, %v3318_v3 }
 0x579   : > { %12901 = vmatpush1.bf16.msra.mxu0 %v14790_v42  ;;  %v14958_v42 = vcombine.low %v3305_v10, %v3317_v15  ;;  %v3485_v10 = vld [vmem:[%s16785_s19 + $0x1a10] sm:$0xff] }
 0x57a   : > { %13065 = vmatpush1.bf16.msra.mxu1 %v14792_v57  ;;  %12902 = vmatprep.subr.bf16.mxu0 %v14815_v33  ;;  %v14960_v57 = vcombine.low %v3306_v21, %v3318_v3  ;;  %v14983_v33 = vcombine.high %v3329_v25, %v3341_v30  ;;  %v3474_v21 = vld [vmem:[%s16785_s19 + $0x19b8] sm:$0xff] }
 0x57b   : > { %13066 = vmatprep.subr.bf16.mxu1 %v14817_v36  ;;  %v14985_v36 = vcombine.high %v3330_v31, %v3342_v32  ;;  %v3486_v3 = vld [vmem:[%s16785_s19 + $0x1a18] sm:$0xff] }
 0x57d   : > { %12903 = vmatpush1.bf16.msra.mxu0 %v14814_v4  ;;  %v14982_v4 = vcombine.low %v3329_v25, %v3341_v30  ;;  %v3497_v25 = vld [vmem:[%s16785_s19 + $0x1a70] sm:$0xff] }
 0x57e   : > { %13067 = vmatpush1.bf16.msra.mxu1 %v14816_v0  ;;  %12904 = vmatprep.subr.bf16.mxu0 %v14839_v41  ;;  %v14984_v0 = vcombine.low %v3330_v31, %v3342_v32  ;;  %v15007_v41 = vcombine.high %v3353_v37, %v3365_v38  ;;  %v3509_v30 = vld [vmem:[%s16785_s19 + $0x1ad0] sm:$0xff]  ;;  %v3498_v31 = vld [vmem:[%s16785_s19 + $0x1a78] sm:$0xff] }
 0x57f   : > { %13068 = vmatprep.subr.bf16.mxu1 %v14841_v43  ;;  %v15009_v43 = vcombine.high %v3354_v29, %v3366_v40  ;;  %v3510_v32 = vld [vmem:[%s16785_s19 + $0x1ad8] sm:$0xff] }
 0x581   : > { %12905 = vmatpush1.bf16.msra.mxu0 %v14838_v48  ;;  %v15006_v48 = vcombine.low %v3353_v37, %v3365_v38  ;;  %v3521_v37 = vld [vmem:[%s16785_s19 + $0x1b30] sm:$0xff] }
 0x582   : > { %13069 = vmatpush1.bf16.msra.mxu1 %v14840_v51  ;;  %12906 = vmatprep.subr.bf16.mxu0 %v14863_v52  ;;  %v15008_v51 = vcombine.low %v3354_v29, %v3366_v40  ;;  %v15031_v52 = vcombine.high %v3377_v6, %v3389_v45  ;;  %v3533_v38 = vld [vmem:[%s16785_s19 + $0x1b90] sm:$0xff]  ;;  %v3522_v29 = vld [vmem:[%s16785_s19 + $0x1b38] sm:$0xff] }
 0x583   : > { %13070 = vmatprep.subr.bf16.mxu1 %v14865_v55  ;;  %v15033_v55 = vcombine.high %v3378_v2, %v3390_v8  ;;  %v3534_v40 = vld [vmem:[%s16785_s19 + $0x1b98] sm:$0xff] }
 0x585   : > { %12907 = vmatpush1.bf16.msra.mxu0 %v14862_v35  ;;  %v15030_v35 = vcombine.low %v3377_v6, %v3389_v45  ;;  %v3545_v6 = vld [vmem:[%s16785_s19 + $0x1bf0] sm:$0xff] }
 0x586   : > { %13071 = vmatpush1.bf16.msra.mxu1 %v14864_v50  ;;  %12908 = vmatprep.subr.bf16.mxu0 %v14887_v53  ;;  %v15032_v50 = vcombine.low %v3378_v2, %v3390_v8  ;;  %v15055_v53 = vcombine.high %v3401_v58, %v3413_v59  ;;  %v3557_v45 = vld [vmem:[%s16785_s19 + $0x1c50] sm:$0xff]  ;;  %v3546_v2 = vld [vmem:[%s16785_s19 + $0x1bf8] sm:$0xff] }
 0x587   : > { %13072 = vmatprep.subr.bf16.mxu1 %v14889_v47  ;;  %v15057_v47 = vcombine.high %v3402_v18, %v3414_v46  ;;  %v3558_v8 = vld [vmem:[%s16785_s19 + $0x1c58] sm:$0xff] }
 0x589   : > { %12909 = vmatpush1.bf16.msra.mxu0 %v14886_v27  ;;  %v15054_v27 = vcombine.low %v3401_v58, %v3413_v59  ;;  %v3569_v58 = vld [vmem:[%s16785_s19 + $0x1cb0] sm:$0xff] }
 0x58a   : > { %13073 = vmatpush1.bf16.msra.mxu1 %v14888_v61  ;;  %12910 = vmatprep.subr.bf16.mxu0 %v14911_v13  ;;  %v15056_v61 = vcombine.low %v3402_v18, %v3414_v46  ;;  %v15079_v13 = vcombine.high %v3425_v26, %v3437_v20  ;;  %v3581_v59 = vld [vmem:[%s16785_s19 + $0x1d10] sm:$0xff]  ;;  %v3570_v18 = vld [vmem:[%s16785_s19 + $0x1cb8] sm:$0xff] }
 0x58b   : > { %13074 = vmatprep.subr.bf16.mxu1 %v14913_v56  ;;  %v15081_v56 = vcombine.high %v3426_v16, %v3438_v23  ;;  %v3582_v46 = vld [vmem:[%s16785_s19 + $0x1d18] sm:$0xff]  ;;  %v3593_v26 = vld [vmem:[%s16785_s19 + $0x1d70] sm:$0xff] }
 0x58c   : > { %v3605_v20 = vld [vmem:[%s16785_s19 + $0x1dd0] sm:$0xff] }
 0x58d   : > { %12911 = vmatpush1.bf16.msra.mxu0 %v14910_v5  ;;  %v3462_v5 = vld [vmem:[%s16785_s19 + $0x1958] sm:$0xff] }
 0x58e   : > { %13075 = vmatpush1.bf16.msra.mxu1 %v14912_v22  ;;  %12912 = vmatprep.subr.bf16.mxu0 %v14935_v7  ;;  %v15080_v22 = vcombine.low %v3426_v16, %v3438_v23  ;;  %v15103_v7 = vcombine.high %v3449_v63, %v3461_v1  ;;  %v15105_v15 = vcombine.high %v3450_v14, %v3462_v5  ;;  %v3594_v16 = vld [vmem:[%s16785_s19 + $0x1d78] sm:$0xff] }
 0x58f   : > { %13076 = vmatprep.subr.bf16.mxu1 %v14937_v9  ;;  %v3473_v9 = vld [vmem:[%s16785_s19 + $0x19b0] sm:$0xff]  ;;  %v3606_v23 = vld [vmem:[%s16785_s19 + $0x1dd8] sm:$0xff] }
 0x591   : > { %12913 = vmatpush1.bf16.msra.mxu0 %v14934_v34  ;;  %v15102_v34 = vcombine.low %v3449_v63, %v3461_v1  ;;  %v3617_v63 = vld [vmem:[%s16785_s19 + $0x1e30] sm:$0xff] }
 0x592   : > { %13077 = vmatpush1.bf16.msra.mxu1 %v14936_v24  ;;  %12914 = vmatprep.subr.bf16.mxu0 %v14959_v44  ;;  %v15104_v24 = vcombine.low %v3450_v14, %v3462_v5  ;;  %v15127_v44 = vcombine.high %v3473_v9, %v3485_v10  ;;  %v3629_v1 = vld [vmem:[%s16785_s19 + $0x1e90] sm:$0xff]  ;;  %v3630_v14 = vld [vmem:[%s16785_s19 + $0x1e98] sm:$0xff]  ;;  %v15246_v5 = vcombine.low %v3593_v26, %v3605_v20 }
 0x593   : > { %13078 = vmatprep.subr.bf16.mxu1 %v14961_v49  ;;  %v15129_v49 = vcombine.high %v3474_v21, %v3486_v3 }
 0x595   : > { %12915 = vmatpush1.bf16.msra.mxu0 %v14958_v42  ;;  %v15126_v42 = vcombine.low %v3473_v9, %v3485_v10  ;;  %v3641_v10 = vld [vmem:[%s16785_s19 + $0x1ef0] sm:$0xff] }
 0x596   : > { %13079 = vmatpush1.bf16.msra.mxu1 %v14960_v57  ;;  %12916 = vmatprep.subr.bf16.mxu0 %v14983_v33  ;;  %v15128_v57 = vcombine.low %v3474_v21, %v3486_v3  ;;  %v15151_v33 = vcombine.high %v3497_v25, %v3509_v30  ;;  %v3642_v21 = vld [vmem:[%s16785_s19 + $0x1ef8] sm:$0xff] }
 0x597   : > { %13080 = vmatprep.subr.bf16.mxu1 %v14985_v36  ;;  %v15153_v36 = vcombine.high %v3498_v31, %v3510_v32  ;;  %v3654_v3 = vld [vmem:[%s16785_s19 + $0x1f58] sm:$0xff] }
 0x599   : > { %12917 = vmatpush1.bf16.msra.mxu0 %v14982_v4  ;;  %v15150_v4 = vcombine.low %v3497_v25, %v3509_v30  ;;  %v3665_v25 = vld [vmem:[%s16785_s19 + $0x1fb0] sm:$0xff] }
 0x59a   : > { %13081 = vmatpush1.bf16.msra.mxu1 %v14984_v0  ;;  %12918 = vmatprep.subr.bf16.mxu0 %v15007_v41  ;;  %v15152_v0 = vcombine.low %v3498_v31, %v3510_v32  ;;  %v15175_v41 = vcombine.high %v3521_v37, %v3533_v38  ;;  %v3677_v30 = vld [vmem:[%s16785_s19 + $0x2010] sm:$0xff]  ;;  %v3666_v31 = vld [vmem:[%s16785_s19 + $0x1fb8] sm:$0xff] }
 0x59b   : > { %13082 = vmatprep.subr.bf16.mxu1 %v15009_v43  ;;  %v15177_v43 = vcombine.high %v3522_v29, %v3534_v40  ;;  %v3678_v32 = vld [vmem:[%s16785_s19 + $0x2018] sm:$0xff] }
 0x59d   : > { %12919 = vmatpush1.bf16.msra.mxu0 %v15006_v48  ;;  %v15174_v48 = vcombine.low %v3521_v37, %v3533_v38  ;;  %v3689_v37 = vld [vmem:[%s16785_s19 + $0x2070] sm:$0xff] }
 0x59e   : > { %13083 = vmatpush1.bf16.msra.mxu1 %v15008_v51  ;;  %12920 = vmatprep.subr.bf16.mxu0 %v15031_v52  ;;  %v15176_v51 = vcombine.low %v3522_v29, %v3534_v40  ;;  %v15199_v52 = vcombine.high %v3545_v6, %v3557_v45  ;;  %v3701_v38 = vld [vmem:[%s16785_s19 + $0x20d0] sm:$0xff]  ;;  %v3690_v29 = vld [vmem:[%s16785_s19 + $0x2078] sm:$0xff] }
 0x59f   : > { %13084 = vmatprep.subr.bf16.mxu1 %v15033_v55  ;;  %v15201_v55 = vcombine.high %v3546_v2, %v3558_v8  ;;  %v3702_v40 = vld [vmem:[%s16785_s19 + $0x20d8] sm:$0xff] }
 0x5a1   : > { %12921 = vmatpush1.bf16.msra.mxu0 %v15030_v35  ;;  %v15198_v35 = vcombine.low %v3545_v6, %v3557_v45  ;;  %v3713_v6 = vld [vmem:[%s16785_s19 + $0x2130] sm:$0xff] }
 0x5a2   : > { %13085 = vmatpush1.bf16.msra.mxu1 %v15032_v50  ;;  %12922 = vmatprep.subr.bf16.mxu0 %v15055_v53  ;;  %v15200_v50 = vcombine.low %v3546_v2, %v3558_v8  ;;  %v15223_v53 = vcombine.high %v3569_v58, %v3581_v59  ;;  %v3725_v45 = vld [vmem:[%s16785_s19 + $0x2190] sm:$0xff]  ;;  %v3714_v2 = vld [vmem:[%s16785_s19 + $0x2138] sm:$0xff] }
 0x5a3   : > { %13086 = vmatprep.subr.bf16.mxu1 %v15057_v47  ;;  %v15225_v47 = vcombine.high %v3570_v18, %v3582_v46  ;;  %v3726_v8 = vld [vmem:[%s16785_s19 + $0x2198] sm:$0xff] }
 0x5a5   : > { %12923 = vmatpush1.bf16.msra.mxu0 %v15054_v27  ;;  %v15222_v27 = vcombine.low %v3569_v58, %v3581_v59  ;;  %v3737_v58 = vld [vmem:[%s16785_s19 + $0x21f0] sm:$0xff] }
 0x5a6   : > { %13087 = vmatpush1.bf16.msra.mxu1 %v15056_v61  ;;  %12933 = vmatprep.subr.bf16.mxu0 %v15079_v13  ;;  %v15224_v61 = vcombine.low %v3570_v18, %v3582_v46  ;;  %v15247_v13 = vcombine.high %v3593_v26, %v3605_v20  ;;  %v3749_v59 = vld [vmem:[%s16785_s19 + $0x2250] sm:$0xff]  ;;  %v3738_v18 = vld [vmem:[%s16785_s19 + $0x21f8] sm:$0xff] }
 0x5a7   : > { %13097 = vmatprep.subr.bf16.mxu1 %v15081_v56  ;;  %v15249_v56 = vcombine.high %v3594_v16, %v3606_v23  ;;  %v3750_v46 = vld [vmem:[%s16785_s19 + $0x2258] sm:$0xff]  ;;  %v3761_v26 = vld [vmem:[%s16785_s19 + $0x22b0] sm:$0xff] }
 0x5a8   : > { %12925 = vmatmul.mubr.bf16.vlgmr.msra.gmra.mrb[20].mxu0 %v17094_v12  ;;  %v3773_v20 = vld [vmem:[%s16785_s19 + $0x2310] sm:$0xff] }
 0x5a9   : > { %13089 = vmatmul.mubr.bf16.vlgmr.msra.gmra.mrb[20].mxu1 %v17094_v12  ;;  %12934 = vmatpush1.bf16.msra.mxu0 %v15078_v60  ;;  %v3618_v60 = vld [vmem:[%s16785_s19 + $0x1e38] sm:$0xff] }
 0x5aa   : > { %12965 = vmatprep.mubr.bf16.mxu0 %v17212_v11  ;;  %13098 = vmatpush1.bf16.msra.mxu1 %v15080_v22  ;;  %v15248_v22 = vcombine.low %v3594_v16, %v3606_v23  ;;  %v15273_v9 = vcombine.high %v3618_v60, %v3630_v14  ;;  %v3762_v16 = vld [vmem:[%s16785_s19 + $0x22b8] sm:$0xff] }
 0x5ab   : > { %13129 = vmatprep.mubr.bf16.mxu1 %v17212_v11  ;;  %12935 = vmatprep.subr.bf16.mxu0 %v15103_v7  ;;  %v15271_v7 = vcombine.high %v3617_v63, %v3629_v1  ;;  %v3774_v23 = vld [vmem:[%s16785_s19 + $0x2318] sm:$0xff] }
 0x5ac   : > { %13099 = vmatprep.subr.bf16.mxu1 %v15105_v15  ;;  %v3653_v15 = vld [vmem:[%s16785_s19 + $0x1f50] sm:$0xff] }
 0x5ad   : > { %12936 = vmatpush1.bf16.msra.mxu0 %v15102_v34  ;;  %v15270_v34 = vcombine.low %v3617_v63, %v3629_v1  ;;  %v3785_v63 = vld [vmem:[%s16785_s19 + $0x2370] sm:$0xff] }
 0x5ae   : > { %13100 = vmatpush1.bf16.msra.mxu1 %v15104_v24  ;;  %12937 = vmatprep.subr.bf16.mxu0 %v15127_v44  ;;  %v15272_v24 = vcombine.low %v3618_v60, %v3630_v14  ;;  %v15295_v44 = vcombine.high %v3641_v10, %v3653_v15  ;;  %v3797_v1 = vld [vmem:[%s16785_s19 + $0x23d0] sm:$0xff]  ;;  %v3786_v60 = vld [vmem:[%s16785_s19 + $0x2378] sm:$0xff] }
 0x5af   : > { %13101 = vmatprep.subr.bf16.mxu1 %v15129_v49  ;;  %v15297_v49 = vcombine.high %v3642_v21, %v3654_v3  ;;  %v3798_v14 = vld [vmem:[%s16785_s19 + $0x23d8] sm:$0xff] }
 0x5b1   : > { %12938 = vmatpush1.bf16.msra.mxu0 %v15126_v42  ;;  %v15294_v42 = vcombine.low %v3641_v10, %v3653_v15  ;;  %v3809_v10 = vld [vmem:[%s16785_s19 + $0x2430] sm:$0xff] }
 0x5b2   : > { %13102 = vmatpush1.bf16.msra.mxu1 %v15128_v57  ;;  %12939 = vmatprep.subr.bf16.mxu0 %v15151_v33  ;;  %v15296_v57 = vcombine.low %v3642_v21, %v3654_v3  ;;  %v15319_v33 = vcombine.high %v3665_v25, %v3677_v30  ;;  %v3821_v15 = vld [vmem:[%s16785_s19 + $0x2490] sm:$0xff]  ;;  %v3810_v21 = vld [vmem:[%s16785_s19 + $0x2438] sm:$0xff] }
 0x5b3   : > { %13103 = vmatprep.subr.bf16.mxu1 %v15153_v36  ;;  %v15321_v36 = vcombine.high %v3666_v31, %v3678_v32  ;;  %v3822_v3 = vld [vmem:[%s16785_s19 + $0x2498] sm:$0xff] }
 0x5b5   : > { %12940 = vmatpush1.bf16.msra.mxu0 %v15150_v4  ;;  %v15318_v4 = vcombine.low %v3665_v25, %v3677_v30  ;;  %v3833_v25 = vld [vmem:[%s16785_s19 + $0x24f0] sm:$0xff] }
 0x5b6   : > { %13104 = vmatpush1.bf16.msra.mxu1 %v15152_v0  ;;  %12941 = vmatprep.subr.bf16.mxu0 %v15175_v41  ;;  %v15320_v0 = vcombine.low %v3666_v31, %v3678_v32  ;;  %v15343_v41 = vcombine.high %v3689_v37, %v3701_v38  ;;  %v3845_v30 = vld [vmem:[%s16785_s19 + $0x2550] sm:$0xff]  ;;  %v15462_v31 = vcombine.low %v3809_v10, %v3821_v15  ;;  %v3834_v32 = vld [vmem:[%s16785_s19 + $0x24f8] sm:$0xff] }
 0x5b7   : > { %13105 = vmatprep.subr.bf16.mxu1 %v15177_v43  ;;  %v15345_v43 = vcombine.high %v3690_v29, %v3702_v40 }
 0x5b9   : > { %12942 = vmatpush1.bf16.msra.mxu0 %v15174_v48  ;;  %v15342_v48 = vcombine.low %v3689_v37, %v3701_v38  ;;  %v3869_v37 = vld [vmem:[%s16785_s19 + $0x2610] sm:$0xff] }
 0x5ba   : > { %13106 = vmatpush1.bf16.msra.mxu1 %v15176_v51  ;;  %12943 = vmatprep.subr.bf16.mxu0 %v15199_v52  ;;  %v15344_v51 = vcombine.low %v3690_v29, %v3702_v40  ;;  %v15367_v52 = vcombine.high %v3713_v6, %v3725_v45  ;;  %v3858_v29 = vld [vmem:[%s16785_s19 + $0x25b8] sm:$0xff] }
 0x5bb   : > { %13107 = vmatprep.subr.bf16.mxu1 %v15201_v55  ;;  %v15369_v55 = vcombine.high %v3714_v2, %v3726_v8  ;;  %v3870_v40 = vld [vmem:[%s16785_s19 + $0x2618] sm:$0xff] }
 0x5bd   : > { %12944 = vmatpush1.bf16.msra.mxu0 %v15198_v35  ;;  %v15366_v35 = vcombine.low %v3713_v6, %v3725_v45  ;;  %v3881_v6 = vld [vmem:[%s16785_s19 + $0x2670] sm:$0xff] }
 0x5be   : > { %13108 = vmatpush1.bf16.msra.mxu1 %v15200_v50  ;;  %12945 = vmatprep.subr.bf16.mxu0 %v15223_v53  ;;  %v15368_v50 = vcombine.low %v3714_v2, %v3726_v8  ;;  %v15391_v53 = vcombine.high %v3737_v58, %v3749_v59  ;;  %v3893_v45 = vld [vmem:[%s16785_s19 + $0x26d0] sm:$0xff]  ;;  %v3882_v2 = vld [vmem:[%s16785_s19 + $0x2678] sm:$0xff] }
 0x5bf   : > { %13109 = vmatprep.subr.bf16.mxu1 %v15225_v47  ;;  %v15393_v47 = vcombine.high %v3738_v18, %v3750_v46  ;;  %v3894_v8 = vld [vmem:[%s16785_s19 + $0x26d8] sm:$0xff] }
 0x5c1   : > { %12946 = vmatpush1.bf16.msra.mxu0 %v15222_v27  ;;  %v15390_v27 = vcombine.low %v3737_v58, %v3749_v59  ;;  %v3905_v58 = vld [vmem:[%s16785_s19 + $0x2730] sm:$0xff] }
 0x5c2   : > { %13110 = vmatpush1.bf16.msra.mxu1 %v15224_v61  ;;  %12947 = vmatprep.subr.bf16.mxu0 %v15247_v13  ;;  %v15392_v61 = vcombine.low %v3738_v18, %v3750_v46  ;;  %v15415_v13 = vcombine.high %v3761_v26, %v3773_v20  ;;  %v3917_v59 = vld [vmem:[%s16785_s19 + $0x2790] sm:$0xff]  ;;  %v3906_v18 = vld [vmem:[%s16785_s19 + $0x2738] sm:$0xff] }
 0x5c3   : > { %13111 = vmatprep.subr.bf16.mxu1 %v15249_v56  ;;  %v15417_v56 = vcombine.high %v3762_v16, %v3774_v23  ;;  %v3918_v46 = vld [vmem:[%s16785_s19 + $0x2798] sm:$0xff] }
 0x5c5   : > { %12948 = vmatpush1.bf16.msra.mxu0 %v15246_v5  ;;  %v15414_v5 = vcombine.low %v3761_v26, %v3773_v20  ;;  %v3929_v26 = vld [vmem:[%s16785_s19 + $0x27f0] sm:$0xff] }
 0x5c6   : > { %13112 = vmatpush1.bf16.msra.mxu1 %v15248_v22  ;;  %12949 = vmatprep.subr.bf16.mxu0 %v15271_v7  ;;  %v15416_v22 = vcombine.low %v3762_v16, %v3774_v23  ;;  %v15439_v7 = vcombine.high %v3785_v63, %v3797_v1  ;;  %v3941_v20 = vld [vmem:[%s16785_s19 + $0x2850] sm:$0xff]  ;;  %v3930_v16 = vld [vmem:[%s16785_s19 + $0x27f8] sm:$0xff] }
 0x5c7   : > { %13113 = vmatprep.subr.bf16.mxu1 %v15273_v9  ;;  %v15441_v9 = vcombine.high %v3786_v60, %v3798_v14  ;;  %v3942_v23 = vld [vmem:[%s16785_s19 + $0x2858] sm:$0xff] }
 0x5c9   : > { %12950 = vmatpush1.bf16.msra.mxu0 %v15270_v34  ;;  %v15438_v34 = vcombine.low %v3785_v63, %v3797_v1  ;;  %v3953_v63 = vld [vmem:[%s16785_s19 + $0x28b0] sm:$0xff] }
 0x5ca   : > { %13114 = vmatpush1.bf16.msra.mxu1 %v15272_v24  ;;  %12951 = vmatprep.subr.bf16.mxu0 %v15295_v44  ;;  %v15440_v24 = vcombine.low %v3786_v60, %v3798_v14  ;;  %v15463_v44 = vcombine.high %v3809_v10, %v3821_v15  ;;  %v3965_v1 = vld [vmem:[%s16785_s19 + $0x2910] sm:$0xff]  ;;  %v3954_v60 = vld [vmem:[%s16785_s19 + $0x28b8] sm:$0xff] }
 0x5cb   : > { %13115 = vmatprep.subr.bf16.mxu1 %v15297_v49  ;;  %v15465_v49 = vcombine.high %v3810_v21, %v3822_v3  ;;  %v3966_v14 = vld [vmem:[%s16785_s19 + $0x2918] sm:$0xff]  ;;  %v3977_v15 = vld [vmem:[%s16785_s19 + $0x2970] sm:$0xff] }
 0x5cc   : > { %v15609_v10 = vcombine.high %v3954_v60, %v3966_v14 }
 0x5cd   : > { %12952 = vmatpush1.bf16.msra.mxu0 %v15294_v42  ;;  %v3846_v42 = vld [vmem:[%s16785_s19 + $0x2558] sm:$0xff] }
 0x5ce   : > { %13116 = vmatpush1.bf16.msra.mxu1 %v15296_v57  ;;  %12953 = vmatprep.subr.bf16.mxu0 %v15319_v33  ;;  %v15464_v57 = vcombine.low %v3810_v21, %v3822_v3  ;;  %v15487_v33 = vcombine.high %v3833_v25, %v3845_v30  ;;  %v15489_v38 = vcombine.high %v3834_v32, %v3846_v42  ;;  %v3989_v21 = vld [vmem:[%s16785_s19 + $0x29d0] sm:$0xff] }
 0x5cf   : > { %13117 = vmatprep.subr.bf16.mxu1 %v15321_v36  ;;  %v3857_v36 = vld [vmem:[%s16785_s19 + $0x25b0] sm:$0xff] }
 0x5d1   : > { %12954 = vmatpush1.bf16.msra.mxu0 %v15318_v4  ;;  %v15486_v4 = vcombine.low %v3833_v25, %v3845_v30  ;;  %v15606_v30 = vcombine.low %v3953_v63, %v3965_v1 }
 0x5d2   : > { %13118 = vmatpush1.bf16.msra.mxu1 %v15320_v0  ;;  %12955 = vmatprep.subr.bf16.mxu0 %v15343_v41  ;;  %v15488_v0 = vcombine.low %v3834_v32, %v3846_v42  ;;  %v15511_v41 = vcombine.high %v3857_v36, %v3869_v37  ;;  %v15608_v42 = vcombine.low %v3954_v60, %v3966_v14 }
 0x5d3   : > { %13119 = vmatprep.subr.bf16.mxu1 %v15345_v43  ;;  %v15513_v43 = vcombine.high %v3858_v29, %v3870_v40 }
 0x5d5   : > { %12956 = vmatpush1.bf16.msra.mxu0 %v15342_v48  ;;  %v15510_v48 = vcombine.low %v3857_v36, %v3869_v37  ;;  %v4001_v37 = vld [vmem:[%s16785_s19 + $0x2a30] sm:$0xff] }
 0x5d6   : > { %13120 = vmatpush1.bf16.msra.mxu1 %v15344_v51  ;;  %12957 = vmatprep.subr.bf16.mxu0 %v15367_v52  ;;  %v15512_v51 = vcombine.low %v3858_v29, %v3870_v40  ;;  %v15535_v52 = vcombine.high %v3881_v6, %v3893_v45  ;;  %v4002_v29 = vld [vmem:[%s16785_s19 + $0x2a38] sm:$0xff] }
 0x5d7   : > { %13121 = vmatprep.subr.bf16.mxu1 %v15369_v55  ;;  %v15537_v55 = vcombine.high %v3882_v2, %v3894_v8  ;;  %v4014_v40 = vld [vmem:[%s16785_s19 + $0x2a98] sm:$0xff] }
 0x5d9   : > { %12958 = vmatpush1.bf16.msra.mxu0 %v15366_v35  ;;  %v15534_v35 = vcombine.low %v3881_v6, %v3893_v45  ;;  %v4025_v6 = vld [vmem:[%s16785_s19 + $0x2af0] sm:$0xff] }
 0x5da   : > { %13122 = vmatpush1.bf16.msra.mxu1 %v15368_v50  ;;  %12959 = vmatprep.subr.bf16.mxu0 %v15391_v53  ;;  %v15536_v50 = vcombine.low %v3882_v2, %v3894_v8  ;;  %v15559_v53 = vcombine.high %v3905_v58, %v3917_v59  ;;  %v4037_v45 = vld [vmem:[%s16785_s19 + $0x2b50] sm:$0xff]  ;;  %v4026_v2 = vld [vmem:[%s16785_s19 + $0x2af8] sm:$0xff] }
 0x5db   : > { %13123 = vmatprep.subr.bf16.mxu1 %v15393_v47  ;;  %v15561_v47 = vcombine.high %v3906_v18, %v3918_v46  ;;  %v4038_v8 = vld [vmem:[%s16785_s19 + $0x2b58] sm:$0xff] }
 0x5dd   : > { %12960 = vmatpush1.bf16.msra.mxu0 %v15390_v27  ;;  %v15558_v27 = vcombine.low %v3905_v58, %v3917_v59  ;;  %v15681_v59 = vcombine.high %v4026_v2, %v4038_v8 }
 0x5de   : > { %13124 = vmatpush1.bf16.msra.mxu1 %v15392_v61  ;;  %12961 = vmatprep.subr.bf16.mxu0 %v15415_v13  ;;  %v15560_v61 = vcombine.low %v3906_v18, %v3918_v46  ;;  %v15583_v13 = vcombine.high %v3929_v26, %v3941_v20  ;;  %v4049_v18 = vld [vmem:[%s16785_s19 + $0x2bb0] sm:$0xff] }
 0x5df   : > { %13125 = vmatprep.subr.bf16.mxu1 %v15417_v56  ;;  %v15585_v56 = vcombine.high %v3930_v16, %v3942_v23  ;;  %v4061_v46 = vld [vmem:[%s16785_s19 + $0x2c10] sm:$0xff] }
 0x5e1   : > { %12962 = vmatpush1.bf16.msra.mxu0 %v15414_v5  ;;  %v15582_v5 = vcombine.low %v3929_v26, %v3941_v20  ;;  %v15678_v26 = vcombine.low %v4025_v6, %v4037_v45  ;;  %v15680_v20 = vcombine.low %v4026_v2, %v4038_v8 }
 0x5e2   : > { %13126 = vmatpush1.bf16.msra.mxu1 %v15416_v22  ;;  %12963 = vmatprep.subr.bf16.mxu0 %v15439_v7  ;;  %v15584_v22 = vcombine.low %v3930_v16, %v3942_v23  ;;  %v15607_v7 = vcombine.high %v3953_v63, %v3965_v1  ;;  %v15703_v16 = vcombine.high %v4049_v18, %v4061_v46 }
 0x5e3   : > { %13127 = vmatprep.subr.bf16.mxu1 %v15441_v9  ;;  %v15702_v63 = vcombine.low %v4049_v18, %v4061_v46 }
 0x5e5   : > { %12964 = vmatpush1.bf16.msra.mxu0 %v15438_v34 }
 0x5e6   : > { %13128 = vmatpush1.bf16.msra.mxu1 %v15440_v24  ;;  %12974 = vmatprep.subr.bf16.mxu0 %v15463_v44  ;;  %v3978_v24 = vld [vmem:[%s16785_s19 + $0x2978] sm:$0xff] }
 0x5e7   : > { %13138 = vmatprep.subr.bf16.mxu1 %v15465_v49  ;;  %v3990_v44 = vld [vmem:[%s16785_s19 + $0x29d8] sm:$0xff] }
 0x5e8   : > { %12966 = vmatmul.mubr.bf16.vlgmr.msra.gmra.mrb[20].mxu0 %v17214_v17  ;;  %v15633_v36 = vcombine.high %v3978_v24, %v3990_v44 }
 0x5e9   : > { %13130 = vmatmul.mubr.bf16.vlgmr.msra.gmra.mrb[20].mxu1 %v17214_v17  ;;  %12975 = vmatpush1.bf16.msra.mxu0 %v15462_v31 }
 0x5ea   : > { %13006 = vmatprep.mubr.bf16.mxu0 %v17222_v28  ;;  %13139 = vmatpush1.bf16.msra.mxu1 %v15464_v57  ;;  %v15631_v57 = vcombine.high %v3977_v15, %v3989_v21 }
 0x5eb   : > { %13170 = vmatprep.mubr.bf16.mxu1 %v17222_v28  ;;  %12976 = vmatprep.subr.bf16.mxu0 %v15487_v33 }
 0x5ec   : > { %13140 = vmatprep.subr.bf16.mxu1 %v15489_v38  ;;  %v4013_v38 = vld [vmem:[%s16785_s19 + $0x2a90] sm:$0xff] }
 0x5ed   : > { %12977 = vmatpush1.bf16.msra.mxu0 %v15486_v4  ;;  %v15630_v4 = vcombine.low %v3977_v15, %v3989_v21 }
 0x5ee   : > { %13141 = vmatpush1.bf16.msra.mxu1 %v15488_v0  ;;  %12978 = vmatprep.subr.bf16.mxu0 %v15511_v41  ;;  %v15632_v0 = vcombine.low %v3978_v24, %v3990_v44  ;;  %v15655_v41 = vcombine.high %v4001_v37, %v4013_v38  ;;  %v4133_v24 = vld [vmem:[%s16785_s19 + $0x2e50] sm:$0xff]  ;;  %v4122_v44 = vld [vmem:[%s16785_s19 + $0x2df8] sm:$0xff] }
 0x5ef   : > { %13142 = vmatprep.subr.bf16.mxu1 %v15513_v43  ;;  %v15657_v43 = vcombine.high %v4002_v29, %v4014_v40 }
 0x5f1   : > { %12979 = vmatpush1.bf16.msra.mxu0 %v15510_v48  ;;  %v15654_v48 = vcombine.low %v4001_v37, %v4013_v38 }
 0x5f2   : > { %13143 = vmatpush1.bf16.msra.mxu1 %v15512_v51  ;;  %12980 = vmatprep.subr.bf16.mxu0 %v15535_v52  ;;  %v15656_v52 = vcombine.low %v4002_v29, %v4014_v40 }
 0x5f3   : > { %13144 = vmatprep.subr.bf16.mxu1 %v15537_v55  ;;  %v15679_v55 = vcombine.high %v4025_v6, %v4037_v45 }
 0x5f5   : > { %12981 = vmatpush1.bf16.msra.mxu0 %v15534_v35 }
 0x5f6   : > { %13145 = vmatpush1.bf16.msra.mxu1 %v15536_v50  ;;  %12982 = vmatprep.subr.bf16.mxu0 %v15559_v53  ;;  %v4050_v50 = vld [vmem:[%s16785_s19 + $0x2bb8] sm:$0xff] }
 0x5f7   : > { %13146 = vmatprep.subr.bf16.mxu1 %v15561_v47  ;;  %v4062_v53 = vld [vmem:[%s16785_s19 + $0x2c18] sm:$0xff] }
 0x5f8   : > { %v15705_v23 = vcombine.high %v4050_v50, %v4062_v53  ;;  %v15704_v1 = vcombine.low %v4050_v50, %v4062_v53  ;;  %v2695_v50 = vld [vmem:[%s16785_s19 + $0x160] sm:$0xff] }
 0x5f9   : > { %12983 = vmatpush1.bf16.msra.mxu0 %v15558_v27  ;;  %v4073_v27 = vld [vmem:[%s16785_s19 + $0x2c70] sm:$0xff] }
 0x5fa   : > { %13147 = vmatpush1.bf16.msra.mxu1 %v15560_v61  ;;  %12984 = vmatprep.subr.bf16.mxu0 %v15583_v13  ;;  %v4085_v61 = vld [vmem:[%s16785_s19 + $0x2cd0] sm:$0xff]  ;;  %v4074_v13 = vld [vmem:[%s16785_s19 + $0x2c78] sm:$0xff] }
 0x5fb   : > { %v12680_v9 = vpop.f32.mrb[16].mxu0  ;;  %13148 = vmatprep.subr.bf16.mxu1 %v15585_v56  ;;  %v4086_v56 = vld [vmem:[%s16785_s19 + $0x2cd8] sm:$0xff]  ;;  %v15727_v60 = vcombine.high %v4073_v27, %v4085_v61 }
 0x5fc   : > { %16154 = vtanh.f32 %v12680_v9  ;;  %v12844_v3 = vpop.f32.mrb[16].mxu1  ;;  %v12682_v34 = vpop.f32.mrb[17].mxu0  ;;  %v15729_v14 = vcombine.high %v4074_v13, %v4086_v56  ;;  %v4110_v9 = vld [vmem:[%s16785_s19 + $0x2d98] sm:$0xff]  ;;  %v15728_v15 = vcombine.low %v4074_v13, %v4086_v56  ;;  %v2708_v13 = vld [vmem:[%s16785_s19 + $0x1c8] sm:$0xff] }
 0x5fd   : > { %16156 = vtanh.f32 %v12844_v3  ;;  %v12846_v49 = vpop.f32.mrb[17].mxu1  ;;  %v12684_v25 = vpop.f32.mrb[18].mxu0  ;;  %12985 = vmatpush1.bf16.msra.mxu0 %v15582_v5  ;;  %v4097_v5 = vld [vmem:[%s16785_s19 + $0x2d30] sm:$0xff]  ;;  %v2720_v56 = vld [vmem:[%s16785_s19 + $0x228] sm:$0xff] }
 0x5fe   : > { %16158 = vtanh.f32 %v12682_v34  ;;  %v12848_v31 = vpop.f32.mrb[18].mxu1  ;;  %13149 = vmatpush1.bf16.msra.mxu1 %v15584_v22  ;;  %v12685_v32 = vpop.f32.mrb[19].mxu0  ;;  %12986 = vmatprep.subr.bf16.mxu0 %v15607_v7  ;;  %v4109_v22 = vld [vmem:[%s16785_s19 + $0x2d90] sm:$0xff]  ;;  %v4098_v7 = vld [vmem:[%s16785_s19 + $0x2d38] sm:$0xff] }
 0x5ff   : > { %16160 = vtanh.f32 %v12846_v49  ;;  %v12849_v33 = vpop.f32.mrb[19].mxu1  ;;  %13150 = vmatprep.subr.bf16.mxu1 %v15609_v10  ;;  %v15726_v10 = vcombine.low %v4073_v27, %v4085_v61  ;;  %v15751_v21 = vcombine.high %v4097_v5, %v4109_v22  ;;  %v15753_v3 = vcombine.high %v4098_v7, %v4110_v9  ;;  %v4121_v34 = vld [vmem:[%s16785_s19 + $0x2df0] sm:$0xff]  ;;  %v4134_v49 = vld [vmem:[%s16785_s19 + $0x2e58] sm:$0xff]  ;;  %v2719_v27 = vld [vmem:[%s16785_s19 + $0x220] sm:$0xff] }
 0x600   : > { %v15750_v25 = vcombine.low %v4097_v5, %v4109_v22  ;;  %v15775_v31 = vcombine.high %v4121_v34, %v4133_v24  ;;  %v15777_v32 = vcombine.high %v4122_v44, %v4134_v49  ;;  %v4146_v33 = vld [vmem:[%s16785_s19 + $0x2eb8] sm:$0xff]  ;;  %v15774_v37 = vcombine.low %v4121_v34, %v4133_v24  ;;  %v2731_v5 = vld [vmem:[%s16785_s19 + $0x280] sm:$0xff] }
 0x601   : > { %12987 = vmatpush1.bf16.msra.mxu0 %v15606_v30  ;;  %v15752_v30 = vcombine.low %v4098_v7, %v4110_v9  ;;  %v15776_v38 = vcombine.low %v4122_v44, %v4134_v49  ;;  %v2743_v22 = vld [vmem:[%s16785_s19 + $0x2e0] sm:$0xff]  ;;  %v2732_v7 = vld [vmem:[%s16785_s19 + $0x288] sm:$0xff] }
 0x602   : > { %13151 = vmatpush1.bf16.msra.mxu1 %v15608_v42  ;;  %12988 = vmatprep.subr.bf16.mxu0 %v15631_v57  ;;  %v4145_v42 = vld [vmem:[%s16785_s19 + $0x2eb0] sm:$0xff]  ;;  %v2744_v9 = vld [vmem:[%s16785_s19 + $0x2e8] sm:$0xff]  ;;  %v2755_v34 = vld [vmem:[%s16785_s19 + $0x340] sm:$0xff] }
 0x603   : > { %13152 = vmatprep.subr.bf16.mxu1 %v15633_v36  ;;  %v4157_v57 = vld [vmem:[%s16785_s19 + $0x2f10] sm:$0xff]  ;;  %v4158_v36 = vld [vmem:[%s16785_s19 + $0x2f18] sm:$0xff]  ;;  %v2767_v24 = vld [vmem:[%s16785_s19 + $0x3a0] sm:$0xff] }
 0x604   : > { %v15799_v29 = vcombine.high %v4145_v42, %v4157_v57  ;;  %v15801_v40 = vcombine.high %v4146_v33, %v4158_v36  ;;  %v15798_v6 = vcombine.low %v4145_v42, %v4157_v57  ;;  %v15800_v45 = vcombine.low %v4146_v33, %v4158_v36  ;;  %v2756_v44 = vld [vmem:[%s16785_s19 + $0x348] sm:$0xff]  ;;  %v2779_v42 = vld [vmem:[%s16785_s19 + $0x400] sm:$0xff] }
 0x605   : > { %12989 = vmatpush1.bf16.msra.mxu0 %v15630_v4  ;;  %v4169_v4 = vld [vmem:[%s16785_s19 + $0x2f70] sm:$0xff]  ;;  %v2768_v49 = vld [vmem:[%s16785_s19 + $0x3a8] sm:$0xff]  ;;  %v2791_v57 = vld [vmem:[%s16785_s19 + $0x460] sm:$0xff] }
 0x606   : > { %v16155_v51 = vpop.eup %16154  ;;  %13153 = vmatpush1.bf16.msra.mxu1 %v15632_v0  ;;  %12990 = vmatprep.subr.bf16.mxu0 %v15655_v41  ;;  %v4181_v0 = vld [vmem:[%s16785_s19 + $0x2fd0] sm:$0xff]  ;;  %v4170_v41 = vld [vmem:[%s16785_s19 + $0x2f78] sm:$0xff]  ;;  %v2780_v33 = vld [vmem:[%s16785_s19 + $0x408] sm:$0xff] }
 0x607   : > { %v16157_v58 = vpop.eup %16156  ;;  %13867 = vst [vmem:[%s17535_s29 + $0x40] sm:$0xff] %v16155_v51  ;;  %13154 = vmatprep.subr.bf16.mxu1 %v15657_v43  ;;  %v4182_v43 = vld [vmem:[%s16785_s19 + $0x2fd8] sm:$0xff]  ;;  %v15823_v2 = vcombine.high %v4169_v4, %v4181_v0  ;;  %v2671_v51 = vld [vmem:[%s16785_s19 + $0xa0] sm:$0xff]  ;;  %v2792_v36 = vld [vmem:[%s16785_s19 + $0x468] sm:$0xff] }
 0x608   : > { %v16159_v35 = vpop.eup %16158  ;;  %13869 = vst [vmem:[%s17535_s29 + $0x50] sm:$0xff] %v16157_v58  ;;  %v15825_v8 = vcombine.high %v4170_v41, %v4182_v43  ;;  %v15822_v58 = vcombine.low %v4169_v4, %v4181_v0  ;;  %v2803_v4 = vld [vmem:[%s16785_s19 + $0x4c0] sm:$0xff] }
 0x609   : > { %v16161_v47 = vpop.eup %16160  ;;  %13868 = vst [vmem:[%s17535_s29 + $0x48] sm:$0xff] %v16159_v35  ;;  %12991 = vmatpush1.bf16.msra.mxu0 %v15654_v48  ;;  %v2659_v48 = vld [vmem:[%s16785_s19 + $0x40] sm:$0xff] }
 0x60a   : > { %13870 = vst [vmem:[%s17535_s29 + $0x58] sm:$0xff] %v16161_v47  ;;  %13155 = vmatpush1.bf16.msra.mxu1 %v15656_v52  ;;  %12992 = vmatprep.subr.bf16.mxu0 %v15679_v55  ;;  %v2660_v52 = vld [vmem:[%s16785_s19 + $0x48] sm:$0xff]  ;;  %v14315_v18 = vcombine.high %v2659_v48, %v2671_v51  ;;  %v2683_v35 = vld [vmem:[%s16785_s19 + $0x100] sm:$0xff]  ;;  %v14314_v53 = vcombine.low %v2659_v48, %v2671_v51 }
 0x60b   : > { %13156 = vmatprep.subr.bf16.mxu1 %v15681_v59  ;;  %v2672_v55 = vld [vmem:[%s16785_s19 + $0xa8] sm:$0xff]  ;;  %v15824_v59 = vcombine.low %v4170_v41, %v4182_v43  ;;  %v2815_v0 = vld [vmem:[%s16785_s19 + $0x520] sm:$0xff] }
 0x60c   : > { %v14317_v46 = vcombine.high %v2660_v52, %v2672_v55  ;;  %v2684_v47 = vld [vmem:[%s16785_s19 + $0x108] sm:$0xff]  ;;  %v2827_v48 = vld [vmem:[%s16785_s19 + $0x580] sm:$0xff] }
 0x60d   : > { %12993 = vmatpush1.bf16.msra.mxu0 %v15678_v26  ;;  %v2696_v26 = vld [vmem:[%s16785_s19 + $0x168] sm:$0xff]  ;;  %v2839_v51 = vld [vmem:[%s16785_s19 + $0x5e0] sm:$0xff] }
 0x60e   : > { %13157 = vmatpush1.bf16.msra.mxu1 %v15680_v20  ;;  %12994 = vmatprep.subr.bf16.mxu0 %v15703_v16  ;;  %v14316_v20 = vcombine.low %v2660_v52, %v2672_v55  ;;  %v14339_v16 = vcombine.high %v2683_v35, %v2695_v50  ;;  %v14341_v61 = vcombine.high %v2684_v47, %v2696_v26  ;;  %v2804_v41 = vld [vmem:[%s16785_s19 + $0x4c8] sm:$0xff] }
 0x60f   : > { %13158 = vmatprep.subr.bf16.mxu1 %v15705_v23  ;;  %v2707_v23 = vld [vmem:[%s16785_s19 + $0x1c0] sm:$0xff]  ;;  %v2816_v43 = vld [vmem:[%s16785_s19 + $0x528] sm:$0xff] }
 0x610   : > { %v2828_v52 = vld [vmem:[%s16785_s19 + $0x588] sm:$0xff] }
 0x611   : > { %12995 = vmatpush1.bf16.msra.mxu0 %v15702_v63  ;;  %v14338_v63 = vcombine.low %v2683_v35, %v2695_v50  ;;  %v2840_v55 = vld [vmem:[%s16785_s19 + $0x5e8] sm:$0xff]  ;;  %v2851_v35 = vld [vmem:[%s16785_s19 + $0x640] sm:$0xff] }
 0x612   : > { %13159 = vmatpush1.bf16.msra.mxu1 %v15704_v1  ;;  %12996 = vmatprep.subr.bf16.mxu0 %v15727_v60  ;;  %v14340_v1 = vcombine.low %v2684_v47, %v2696_v26  ;;  %v14363_v60 = vcombine.high %v2707_v23, %v2719_v27  ;;  %v2863_v50 = vld [vmem:[%s16785_s19 + $0x6a0] sm:$0xff]  ;;  %v2864_v47 = vld [vmem:[%s16785_s19 + $0x6a8] sm:$0xff]  ;;  %v14482_v26 = vcombine.low %v2827_v48, %v2839_v51 }
 0x613   : > { %13160 = vmatprep.subr.bf16.mxu1 %v15729_v14  ;;  %v14365_v14 = vcombine.high %v2708_v13, %v2720_v56 }
 0x615   : > { %12997 = vmatpush1.bf16.msra.mxu0 %v15726_v10  ;;  %v14362_v10 = vcombine.low %v2707_v23, %v2719_v27  ;;  %v2875_v27 = vld [vmem:[%s16785_s19 + $0x700] sm:$0xff] }
 0x616   : > { %13161 = vmatpush1.bf16.msra.mxu1 %v15728_v15  ;;  %12998 = vmatprep.subr.bf16.mxu0 %v15751_v21  ;;  %v14364_v15 = vcombine.low %v2708_v13, %v2720_v56  ;;  %v14387_v21 = vcombine.high %v2731_v5, %v2743_v22  ;;  %v2876_v13 = vld [vmem:[%s16785_s19 + $0x708] sm:$0xff] }
 0x617   : > { %13162 = vmatprep.subr.bf16.mxu1 %v15753_v3  ;;  %v14389_v3 = vcombine.high %v2732_v7, %v2744_v9  ;;  %v2888_v56 = vld [vmem:[%s16785_s19 + $0x768] sm:$0xff] }
 0x619   : > { %12999 = vmatpush1.bf16.msra.mxu0 %v15750_v25  ;;  %v14386_v25 = vcombine.low %v2731_v5, %v2743_v22  ;;  %v2899_v5 = vld [vmem:[%s16785_s19 + $0x7c0] sm:$0xff] }
 0x61a   : > { %13163 = vmatpush1.bf16.msra.mxu1 %v15752_v30  ;;  %13000 = vmatprep.subr.bf16.mxu0 %v15775_v31  ;;  %v14388_v30 = vcombine.low %v2732_v7, %v2744_v9  ;;  %v14411_v31 = vcombine.high %v2755_v34, %v2767_v24  ;;  %v2911_v22 = vld [vmem:[%s16785_s19 + $0x820] sm:$0xff]  ;;  %v2900_v7 = vld [vmem:[%s16785_s19 + $0x7c8] sm:$0xff] }
 0x61b   : > { %13164 = vmatprep.subr.bf16.mxu1 %v15777_v32  ;;  %v14413_v32 = vcombine.high %v2756_v44, %v2768_v49  ;;  %v2912_v9 = vld [vmem:[%s16785_s19 + $0x828] sm:$0xff] }
 0x61d   : > { %13001 = vmatpush1.bf16.msra.mxu0 %v15774_v37  ;;  %v14410_v37 = vcombine.low %v2755_v34, %v2767_v24  ;;  %v2923_v34 = vld [vmem:[%s16785_s19 + $0x880] sm:$0xff] }
 0x61e   : > { %13165 = vmatpush1.bf16.msra.mxu1 %v15776_v38  ;;  %13002 = vmatprep.subr.bf16.mxu0 %v15799_v29  ;;  %v14412_v38 = vcombine.low %v2756_v44, %v2768_v49  ;;  %v14435_v29 = vcombine.high %v2779_v42, %v2791_v57  ;;  %v2935_v24 = vld [vmem:[%s16785_s19 + $0x8e0] sm:$0xff]  ;;  %v2924_v44 = vld [vmem:[%s16785_s19 + $0x888] sm:$0xff] }
 0x61f   : > { %13166 = vmatprep.subr.bf16.mxu1 %v15801_v40  ;;  %v14437_v40 = vcombine.high %v2780_v33, %v2792_v36  ;;  %v2936_v49 = vld [vmem:[%s16785_s19 + $0x8e8] sm:$0xff] }
 0x621   : > { %13003 = vmatpush1.bf16.msra.mxu0 %v15798_v6  ;;  %v14434_v6 = vcombine.low %v2779_v42, %v2791_v57  ;;  %v2947_v42 = vld [vmem:[%s16785_s19 + $0x940] sm:$0xff] }
 0x622   : > { %13167 = vmatpush1.bf16.msra.mxu1 %v15800_v45  ;;  %13004 = vmatprep.subr.bf16.mxu0 %v15823_v2  ;;  %v14436_v45 = vcombine.low %v2780_v33, %v2792_v36  ;;  %v14459_v2 = vcombine.high %v2803_v4, %v2815_v0  ;;  %v2959_v57 = vld [vmem:[%s16785_s19 + $0x9a0] sm:$0xff]  ;;  %v2948_v33 = vld [vmem:[%s16785_s19 + $0x948] sm:$0xff] }
 0x623   : > { %13168 = vmatprep.subr.bf16.mxu1 %v15825_v8  ;;  %v14461_v8 = vcombine.high %v2804_v41, %v2816_v43  ;;  %v2960_v36 = vld [vmem:[%s16785_s19 + $0x9a8] sm:$0xff] }
 0x625   : > { %13005 = vmatpush1.bf16.msra.mxu0 %v15822_v58  ;;  %v14458_v58 = vcombine.low %v2803_v4, %v2815_v0  ;;  %v2971_v4 = vld [vmem:[%s16785_s19 + $0xa00] sm:$0xff] }
 0x626   : > { %13169 = vmatpush1.bf16.msra.mxu1 %v15824_v59  ;;  %13179 = vmatprep.subr.bf16.mxu0 %v14315_v18  ;;  %v14460_v59 = vcombine.low %v2804_v41, %v2816_v43  ;;  %v14483_v18 = vcombine.high %v2827_v48, %v2839_v51  ;;  %v2983_v0 = vld [vmem:[%s16785_s19 + $0xa60] sm:$0xff]  ;;  %v2972_v41 = vld [vmem:[%s16785_s19 + $0xa08] sm:$0xff] }
 0x627   : > { %13343 = vmatprep.subr.bf16.mxu1 %v14317_v46  ;;  %v14485_v46 = vcombine.high %v2828_v52, %v2840_v55  ;;  %v2984_v43 = vld [vmem:[%s16785_s19 + $0xa68] sm:$0xff]  ;;  %v2995_v48 = vld [vmem:[%s16785_s19 + $0xac0] sm:$0xff] }
 0x628   : > { %13007 = vmatmul.mubr.bf16.vlgmr.msra.gmra.mrb[20].mxu0 %v17292_v19  ;;  %v3007_v51 = vld [vmem:[%s16785_s19 + $0xb20] sm:$0xff] }
 0x629   : > { %13171 = vmatmul.mubr.bf16.vlgmr.msra.gmra.mrb[20].mxu1 %v17292_v19  ;;  %13180 = vmatpush1.bf16.msra.mxu0 %v14314_v53  ;;  %v2852_v53 = vld [vmem:[%s16785_s19 + $0x648] sm:$0xff] }
 0x62a   : > { %13211 = vmatprep.mubr.bf16.mxu0 %v17005_v62  ;;  %13344 = vmatpush1.bf16.msra.mxu1 %v14316_v20  ;;  %v14484_v20 = vcombine.low %v2828_v52, %v2840_v55  ;;  %v14509_v23 = vcombine.high %v2852_v53, %v2864_v47  ;;  %v2996_v52 = vld [vmem:[%s16785_s19 + $0xac8] sm:$0xff] }
 0x62b   : > { %13375 = vmatprep.mubr.bf16.mxu1 %v17005_v62  ;;  %13181 = vmatprep.subr.bf16.mxu0 %v14339_v16  ;;  %v14507_v16 = vcombine.high %v2851_v35, %v2863_v50  ;;  %v3008_v55 = vld [vmem:[%s16785_s19 + $0xb28] sm:$0xff] }
 0x62c   : > { %13345 = vmatprep.subr.bf16.mxu1 %v14341_v61  ;;  %v2887_v61 = vld [vmem:[%s16785_s19 + $0x760] sm:$0xff] }
 0x62d   : > { %13182 = vmatpush1.bf16.msra.mxu0 %v14338_v63  ;;  %v14506_v63 = vcombine.low %v2851_v35, %v2863_v50  ;;  %v3019_v35 = vld [vmem:[%s16785_s19 + $0xb80] sm:$0xff] }
 0x62e   : > { %13346 = vmatpush1.bf16.msra.mxu1 %v14340_v1  ;;  %13183 = vmatprep.subr.bf16.mxu0 %v14363_v60  ;;  %v14508_v1 = vcombine.low %v2852_v53, %v2864_v47  ;;  %v14531_v60 = vcombine.high %v2875_v27, %v2887_v61  ;;  %v3031_v50 = vld [vmem:[%s16785_s19 + $0xbe0] sm:$0xff]  ;;  %v3020_v53 = vld [vmem:[%s16785_s19 + $0xb88] sm:$0xff] }
 0x62f   : > { %13347 = vmatprep.subr.bf16.mxu1 %v14365_v14  ;;  %v14533_v14 = vcombine.high %v2876_v13, %v2888_v56  ;;  %v3032_v47 = vld [vmem:[%s16785_s19 + $0xbe8] sm:$0xff] }
 0x631   : > { %13184 = vmatpush1.bf16.msra.mxu0 %v14362_v10  ;;  %v14530_v10 = vcombine.low %v2875_v27, %v2887_v61  ;;  %v3043_v27 = vld [vmem:[%s16785_s19 + $0xc40] sm:$0xff] }
 0x632   : > { %13348 = vmatpush1.bf16.msra.mxu1 %v14364_v15  ;;  %13185 = vmatprep.subr.bf16.mxu0 %v14387_v21  ;;  %v14532_v15 = vcombine.low %v2876_v13, %v2888_v56  ;;  %v14555_v21 = vcombine.high %v2899_v5, %v2911_v22  ;;  %v3055_v61 = vld [vmem:[%s16785_s19 + $0xca0] sm:$0xff]  ;;  %v3044_v13 = vld [vmem:[%s16785_s19 + $0xc48] sm:$0xff] }
 0x633   : > { %13349 = vmatprep.subr.bf16.mxu1 %v14389_v3  ;;  %v14557_v3 = vcombine.high %v2900_v7, %v2912_v9  ;;  %v3056_v56 = vld [vmem:[%s16785_s19 + $0xca8] sm:$0xff] }
 0x635   : > { %13186 = vmatpush1.bf16.msra.mxu0 %v14386_v25  ;;  %v14554_v25 = vcombine.low %v2899_v5, %v2911_v22  ;;  %v3067_v5 = vld [vmem:[%s16785_s19 + $0xd00] sm:$0xff] }
 0x636   : > { %13350 = vmatpush1.bf16.msra.mxu1 %v14388_v30  ;;  %13187 = vmatprep.subr.bf16.mxu0 %v14411_v31  ;;  %v14556_v30 = vcombine.low %v2900_v7, %v2912_v9  ;;  %v14579_v31 = vcombine.high %v2923_v34, %v2935_v24  ;;  %v3079_v22 = vld [vmem:[%s16785_s19 + $0xd60] sm:$0xff]  ;;  %v14698_v7 = vcombine.low %v3043_v27, %v3055_v61  ;;  %v3068_v9 = vld [vmem:[%s16785_s19 + $0xd08] sm:$0xff] }
 0x637   : > { %13351 = vmatprep.subr.bf16.mxu1 %v14413_v32  ;;  %v14581_v32 = vcombine.high %v2924_v44, %v2936_v49 }
 0x639   : > { %13188 = vmatpush1.bf16.msra.mxu0 %v14410_v37  ;;  %v14578_v37 = vcombine.low %v2923_v34, %v2935_v24  ;;  %v3103_v34 = vld [vmem:[%s16785_s19 + $0xe20] sm:$0xff] }
 0x63a   : > { %13352 = vmatpush1.bf16.msra.mxu1 %v14412_v38  ;;  %13189 = vmatprep.subr.bf16.mxu0 %v14435_v29  ;;  %v14580_v38 = vcombine.low %v2924_v44, %v2936_v49  ;;  %v14603_v29 = vcombine.high %v2947_v42, %v2959_v57  ;;  %v3092_v44 = vld [vmem:[%s16785_s19 + $0xdc8] sm:$0xff] }
 0x63b   : > { %13353 = vmatprep.subr.bf16.mxu1 %v14437_v40  ;;  %v14605_v40 = vcombine.high %v2948_v33, %v2960_v36  ;;  %v3104_v49 = vld [vmem:[%s16785_s19 + $0xe28] sm:$0xff] }
 0x63d   : > { %13190 = vmatpush1.bf16.msra.mxu0 %v14434_v6  ;;  %v14602_v6 = vcombine.low %v2947_v42, %v2959_v57  ;;  %v3115_v42 = vld [vmem:[%s16785_s19 + $0xe80] sm:$0xff] }
 0x63e   : > { %13354 = vmatpush1.bf16.msra.mxu1 %v14436_v45  ;;  %13191 = vmatprep.subr.bf16.mxu0 %v14459_v2  ;;  %v14604_v45 = vcombine.low %v2948_v33, %v2960_v36  ;;  %v14627_v2 = vcombine.high %v2971_v4, %v2983_v0  ;;  %v3127_v57 = vld [vmem:[%s16785_s19 + $0xee0] sm:$0xff]  ;;  %v3116_v33 = vld [vmem:[%s16785_s19 + $0xe88] sm:$0xff] }
 0x63f   : > { %13355 = vmatprep.subr.bf16.mxu1 %v14461_v8  ;;  %v14629_v8 = vcombine.high %v2972_v41, %v2984_v43  ;;  %v3128_v36 = vld [vmem:[%s16785_s19 + $0xee8] sm:$0xff] }
 0x641   : > { %13192 = vmatpush1.bf16.msra.mxu0 %v14458_v58  ;;  %v14626_v58 = vcombine.low %v2971_v4, %v2983_v0  ;;  %v3139_v4 = vld [vmem:[%s16785_s19 + $0xf40] sm:$0xff] }
 0x642   : > { %13356 = vmatpush1.bf16.msra.mxu1 %v14460_v59  ;;  %13193 = vmatprep.subr.bf16.mxu0 %v14483_v18  ;;  %v14628_v59 = vcombine.low %v2972_v41, %v2984_v43  ;;  %v14651_v18 = vcombine.high %v2995_v48, %v3007_v51  ;;  %v3151_v0 = vld [vmem:[%s16785_s19 + $0xfa0] sm:$0xff]  ;;  %v3140_v41 = vld [vmem:[%s16785_s19 + $0xf48] sm:$0xff] }
 0x643   : > { %13357 = vmatprep.subr.bf16.mxu1 %v14485_v46  ;;  %v14653_v46 = vcombine.high %v2996_v52, %v3008_v55  ;;  %v3152_v43 = vld [vmem:[%s16785_s19 + $0xfa8] sm:$0xff] }
 0x645   : > { %13194 = vmatpush1.bf16.msra.mxu0 %v14482_v26  ;;  %v14650_v26 = vcombine.low %v2995_v48, %v3007_v51  ;;  %v3163_v48 = vld [vmem:[%s16785_s19 + $0x1000] sm:$0xff] }
 0x646   : > { %13358 = vmatpush1.bf16.msra.mxu1 %v14484_v20  ;;  %13195 = vmatprep.subr.bf16.mxu0 %v14507_v16  ;;  %v14652_v20 = vcombine.low %v2996_v52, %v3008_v55  ;;  %v14675_v16 = vcombine.high %v3019_v35, %v3031_v50  ;;  %v3175_v51 = vld [vmem:[%s16785_s19 + $0x1060] sm:$0xff]  ;;  %v3164_v52 = vld [vmem:[%s16785_s19 + $0x1008] sm:$0xff] }
 0x647   : > { %13359 = vmatprep.subr.bf16.mxu1 %v14509_v23  ;;  %v14677_v23 = vcombine.high %v3020_v53, %v3032_v47  ;;  %v3176_v55 = vld [vmem:[%s16785_s19 + $0x1068] sm:$0xff] }
 0x649   : > { %13196 = vmatpush1.bf16.msra.mxu0 %v14506_v63  ;;  %v14674_v63 = vcombine.low %v3019_v35, %v3031_v50  ;;  %v3187_v35 = vld [vmem:[%s16785_s19 + $0x10c0] sm:$0xff] }
 0x64a   : > { %13360 = vmatpush1.bf16.msra.mxu1 %v14508_v1  ;;  %13197 = vmatprep.subr.bf16.mxu0 %v14531_v60  ;;  %v14676_v1 = vcombine.low %v3020_v53, %v3032_v47  ;;  %v14699_v60 = vcombine.high %v3043_v27, %v3055_v61  ;;  %v3199_v50 = vld [vmem:[%s16785_s19 + $0x1120] sm:$0xff]  ;;  %v3188_v53 = vld [vmem:[%s16785_s19 + $0x10c8] sm:$0xff] }
 0x64b   : > { %13361 = vmatprep.subr.bf16.mxu1 %v14533_v14  ;;  %v14701_v14 = vcombine.high %v3044_v13, %v3056_v56  ;;  %v3200_v47 = vld [vmem:[%s16785_s19 + $0x1128] sm:$0xff]  ;;  %v3211_v27 = vld [vmem:[%s16785_s19 + $0x1180] sm:$0xff] }
 0x64c   : > { %v3223_v61 = vld [vmem:[%s16785_s19 + $0x11e0] sm:$0xff] }
 0x64d   : > { %13198 = vmatpush1.bf16.msra.mxu0 %v14530_v10  ;;  %v3080_v10 = vld [vmem:[%s16785_s19 + $0xd68] sm:$0xff] }
 0x64e   : > { %13362 = vmatpush1.bf16.msra.mxu1 %v14532_v15  ;;  %13199 = vmatprep.subr.bf16.mxu0 %v14555_v21  ;;  %v14700_v15 = vcombine.low %v3044_v13, %v3056_v56  ;;  %v14723_v21 = vcombine.high %v3067_v5, %v3079_v22  ;;  %v14725_v24 = vcombine.high %v3068_v9, %v3080_v10  ;;  %v3212_v13 = vld [vmem:[%s16785_s19 + $0x1188] sm:$0xff] }
 0x64f   : > { %13363 = vmatprep.subr.bf16.mxu1 %v14557_v3  ;;  %v3091_v3 = vld [vmem:[%s16785_s19 + $0xdc0] sm:$0xff]  ;;  %v3224_v56 = vld [vmem:[%s16785_s19 + $0x11e8] sm:$0xff] }
 0x651   : > { %13200 = vmatpush1.bf16.msra.mxu0 %v14554_v25  ;;  %v14722_v25 = vcombine.low %v3067_v5, %v3079_v22  ;;  %v3235_v5 = vld [vmem:[%s16785_s19 + $0x1240] sm:$0xff] }
 0x652   : > { %13364 = vmatpush1.bf16.msra.mxu1 %v14556_v30  ;;  %13201 = vmatprep.subr.bf16.mxu0 %v14579_v31  ;;  %v14724_v30 = vcombine.low %v3068_v9, %v3080_v10  ;;  %v14747_v31 = vcombine.high %v3091_v3, %v3103_v34  ;;  %v3247_v22 = vld [vmem:[%s16785_s19 + $0x12a0] sm:$0xff]  ;;  %v3248_v9 = vld [vmem:[%s16785_s19 + $0x12a8] sm:$0xff]  ;;  %v14866_v10 = vcombine.low %v3211_v27, %v3223_v61 }
 0x653   : > { %13365 = vmatprep.subr.bf16.mxu1 %v14581_v32  ;;  %v14749_v32 = vcombine.high %v3092_v44, %v3104_v49 }
 0x655   : > { %13202 = vmatpush1.bf16.msra.mxu0 %v14578_v37  ;;  %v14746_v37 = vcombine.low %v3091_v3, %v3103_v34  ;;  %v3259_v34 = vld [vmem:[%s16785_s19 + $0x1300] sm:$0xff] }
 0x656   : > { %13366 = vmatpush1.bf16.msra.mxu1 %v14580_v38  ;;  %13203 = vmatprep.subr.bf16.mxu0 %v14603_v29  ;;  %v14748_v38 = vcombine.low %v3092_v44, %v3104_v49  ;;  %v14771_v29 = vcombine.high %v3115_v42, %v3127_v57  ;;  %v3260_v44 = vld [vmem:[%s16785_s19 + $0x1308] sm:$0xff] }
 0x657   : > { %13367 = vmatprep.subr.bf16.mxu1 %v14605_v40  ;;  %v14773_v40 = vcombine.high %v3116_v33, %v3128_v36  ;;  %v3272_v49 = vld [vmem:[%s16785_s19 + $0x1368] sm:$0xff] }
 0x659   : > { %13204 = vmatpush1.bf16.msra.mxu0 %v14602_v6  ;;  %v14770_v6 = vcombine.low %v3115_v42, %v3127_v57  ;;  %v3283_v42 = vld [vmem:[%s16785_s19 + $0x13c0] sm:$0xff] }
 0x65a   : > { %13368 = vmatpush1.bf16.msra.mxu1 %v14604_v45  ;;  %13205 = vmatprep.subr.bf16.mxu0 %v14627_v2  ;;  %v14772_v45 = vcombine.low %v3116_v33, %v3128_v36  ;;  %v14795_v2 = vcombine.high %v3139_v4, %v3151_v0  ;;  %v3295_v57 = vld [vmem:[%s16785_s19 + $0x1420] sm:$0xff]  ;;  %v3284_v33 = vld [vmem:[%s16785_s19 + $0x13c8] sm:$0xff] }
 0x65b   : > { %13369 = vmatprep.subr.bf16.mxu1 %v14629_v8  ;;  %v14797_v8 = vcombine.high %v3140_v41, %v3152_v43  ;;  %v3296_v36 = vld [vmem:[%s16785_s19 + $0x1428] sm:$0xff] }
 0x65d   : > { %13206 = vmatpush1.bf16.msra.mxu0 %v14626_v58  ;;  %v14794_v58 = vcombine.low %v3139_v4, %v3151_v0  ;;  %v3307_v4 = vld [vmem:[%s16785_s19 + $0x1480] sm:$0xff] }
 0x65e   : > { %13370 = vmatpush1.bf16.msra.mxu1 %v14628_v59  ;;  %13207 = vmatprep.subr.bf16.mxu0 %v14651_v18  ;;  %v14796_v59 = vcombine.low %v3140_v41, %v3152_v43  ;;  %v14819_v18 = vcombine.high %v3163_v48, %v3175_v51  ;;  %v3319_v0 = vld [vmem:[%s16785_s19 + $0x14e0] sm:$0xff]  ;;  %v3308_v41 = vld [vmem:[%s16785_s19 + $0x1488] sm:$0xff] }
 0x65f   : > { %13371 = vmatprep.subr.bf16.mxu1 %v14653_v46  ;;  %v14821_v46 = vcombine.high %v3164_v52, %v3176_v55  ;;  %v3320_v43 = vld [vmem:[%s16785_s19 + $0x14e8] sm:$0xff] }
 0x661   : > { %13208 = vmatpush1.bf16.msra.mxu0 %v14650_v26  ;;  %v14818_v26 = vcombine.low %v3163_v48, %v3175_v51  ;;  %v3331_v48 = vld [vmem:[%s16785_s19 + $0x1540] sm:$0xff] }
 0x662   : > { %13372 = vmatpush1.bf16.msra.mxu1 %v14652_v20  ;;  %13209 = vmatprep.subr.bf16.mxu0 %v14675_v16  ;;  %v14820_v20 = vcombine.low %v3164_v52, %v3176_v55  ;;  %v14843_v16 = vcombine.high %v3187_v35, %v3199_v50  ;;  %v3343_v51 = vld [vmem:[%s16785_s19 + $0x15a0] sm:$0xff]  ;;  %v3332_v52 = vld [vmem:[%s16785_s19 + $0x1548] sm:$0xff] }
 0x663   : > { %13373 = vmatprep.subr.bf16.mxu1 %v14677_v23  ;;  %v14845_v23 = vcombine.high %v3188_v53, %v3200_v47  ;;  %v3344_v55 = vld [vmem:[%s16785_s19 + $0x15a8] sm:$0xff] }
 0x665   : > { %13210 = vmatpush1.bf16.msra.mxu0 %v14674_v63  ;;  %v14842_v63 = vcombine.low %v3187_v35, %v3199_v50  ;;  %v3355_v35 = vld [vmem:[%s16785_s19 + $0x1600] sm:$0xff] }
 0x666   : > { %13374 = vmatpush1.bf16.msra.mxu1 %v14676_v1  ;;  %13220 = vmatprep.subr.bf16.mxu0 %v14699_v60  ;;  %v14844_v1 = vcombine.low %v3188_v53, %v3200_v47  ;;  %v14867_v60 = vcombine.high %v3211_v27, %v3223_v61  ;;  %v3367_v50 = vld [vmem:[%s16785_s19 + $0x1660] sm:$0xff]  ;;  %v3356_v53 = vld [vmem:[%s16785_s19 + $0x1608] sm:$0xff] }
 0x667   : > { %13384 = vmatprep.subr.bf16.mxu1 %v14701_v14  ;;  %v14869_v14 = vcombine.high %v3212_v13, %v3224_v56  ;;  %v3368_v47 = vld [vmem:[%s16785_s19 + $0x1668] sm:$0xff]  ;;  %v3379_v27 = vld [vmem:[%s16785_s19 + $0x16c0] sm:$0xff] }
 0x668   : > { %13212 = vmatmul.mubr.bf16.vlgmr.msra.gmra.mrb[24].mxu0 %v17007_v39  ;;  %v3391_v61 = vld [vmem:[%s16785_s19 + $0x1720] sm:$0xff] }
 0x669   : > { %13376 = vmatmul.mubr.bf16.vlgmr.msra.gmra.mrb[24].mxu1 %v17007_v39  ;;  %13221 = vmatpush1.bf16.msra.mxu0 %v14698_v7  ;;  %v3236_v7 = vld [vmem:[%s16785_s19 + $0x1248] sm:$0xff] }
 0x66a   : > { %13252 = vmatprep.mubr.bf16.mxu0 %v17015_v54  ;;  %13385 = vmatpush1.bf16.msra.mxu1 %v14700_v15  ;;  %v14868_v15 = vcombine.low %v3212_v13, %v3224_v56  ;;  %v14893_v3 = vcombine.high %v3236_v7, %v3248_v9  ;;  %v3380_v13 = vld [vmem:[%s16785_s19 + $0x16c8] sm:$0xff] }
 0x66b   : > { %13416 = vmatprep.mubr.bf16.mxu1 %v17015_v54  ;;  %13222 = vmatprep.subr.bf16.mxu0 %v14723_v21  ;;  %v14891_v21 = vcombine.high %v3235_v5, %v3247_v22  ;;  %v3392_v56 = vld [vmem:[%s16785_s19 + $0x1728] sm:$0xff] }
 0x66c   : > { %13386 = vmatprep.subr.bf16.mxu1 %v14725_v24  ;;  %v3271_v24 = vld [vmem:[%s16785_s19 + $0x1360] sm:$0xff] }
 0x66d   : > { %13223 = vmatpush1.bf16.msra.mxu0 %v14722_v25  ;;  %v14890_v25 = vcombine.low %v3235_v5, %v3247_v22  ;;  %v3403_v5 = vld [vmem:[%s16785_s19 + $0x1780] sm:$0xff] }
 0x66e   : > { %13387 = vmatpush1.bf16.msra.mxu1 %v14724_v30  ;;  %13224 = vmatprep.subr.bf16.mxu0 %v14747_v31  ;;  %v14892_v30 = vcombine.low %v3236_v7, %v3248_v9  ;;  %v14915_v31 = vcombine.high %v3259_v34, %v3271_v24  ;;  %v3415_v22 = vld [vmem:[%s16785_s19 + $0x17e0] sm:$0xff]  ;;  %v3404_v7 = vld [vmem:[%s16785_s19 + $0x1788] sm:$0xff] }
 0x66f   : > { %13388 = vmatprep.subr.bf16.mxu1 %v14749_v32  ;;  %v14917_v32 = vcombine.high %v3260_v44, %v3272_v49  ;;  %v3416_v9 = vld [vmem:[%s16785_s19 + $0x17e8] sm:$0xff] }
 0x671   : > { %13225 = vmatpush1.bf16.msra.mxu0 %v14746_v37  ;;  %v14914_v37 = vcombine.low %v3259_v34, %v3271_v24  ;;  %v3427_v34 = vld [vmem:[%s16785_s19 + $0x1840] sm:$0xff] }
 0x672   : > { %13389 = vmatpush1.bf16.msra.mxu1 %v14748_v38  ;;  %13226 = vmatprep.subr.bf16.mxu0 %v14771_v29  ;;  %v14916_v38 = vcombine.low %v3260_v44, %v3272_v49  ;;  %v14939_v29 = vcombine.high %v3283_v42, %v3295_v57  ;;  %v3439_v24 = vld [vmem:[%s16785_s19 + $0x18a0] sm:$0xff]  ;;  %v3428_v44 = vld [vmem:[%s16785_s19 + $0x1848] sm:$0xff] }
 0x673   : > { %13390 = vmatprep.subr.bf16.mxu1 %v14773_v40  ;;  %v14941_v40 = vcombine.high %v3284_v33, %v3296_v36  ;;  %v3440_v49 = vld [vmem:[%s16785_s19 + $0x18a8] sm:$0xff] }
 0x675   : > { %13227 = vmatpush1.bf16.msra.mxu0 %v14770_v6  ;;  %v14938_v6 = vcombine.low %v3283_v42, %v3295_v57  ;;  %v3451_v42 = vld [vmem:[%s16785_s19 + $0x1900] sm:$0xff] }
 0x676   : > { %13391 = vmatpush1.bf16.msra.mxu1 %v14772_v45  ;;  %13228 = vmatprep.subr.bf16.mxu0 %v14795_v2  ;;  %v14940_v45 = vcombine.low %v3284_v33, %v3296_v36  ;;  %v14963_v2 = vcombine.high %v3307_v4, %v3319_v0  ;;  %v3463_v57 = vld [vmem:[%s16785_s19 + $0x1960] sm:$0xff]  ;;  %v15082_v33 = vcombine.low %v3427_v34, %v3439_v24  ;;  %v3452_v36 = vld [vmem:[%s16785_s19 + $0x1908] sm:$0xff] }
 0x677   : > { %13392 = vmatprep.subr.bf16.mxu1 %v14797_v8  ;;  %v14965_v8 = vcombine.high %v3308_v41, %v3320_v43 }
 0x679   : > { %13229 = vmatpush1.bf16.msra.mxu0 %v14794_v58  ;;  %v14962_v58 = vcombine.low %v3307_v4, %v3319_v0  ;;  %v3487_v4 = vld [vmem:[%s16785_s19 + $0x1a20] sm:$0xff] }
 0x67a   : > { %13393 = vmatpush1.bf16.msra.mxu1 %v14796_v59  ;;  %13230 = vmatprep.subr.bf16.mxu0 %v14819_v18  ;;  %v14964_v59 = vcombine.low %v3308_v41, %v3320_v43  ;;  %v14987_v18 = vcombine.high %v3331_v48, %v3343_v51  ;;  %v3476_v41 = vld [vmem:[%s16785_s19 + $0x19c8] sm:$0xff] }
 0x67b   : > { %13394 = vmatprep.subr.bf16.mxu1 %v14821_v46  ;;  %v14989_v46 = vcombine.high %v3332_v52, %v3344_v55  ;;  %v3488_v43 = vld [vmem:[%s16785_s19 + $0x1a28] sm:$0xff] }
 0x67d   : > { %13231 = vmatpush1.bf16.msra.mxu0 %v14818_v26  ;;  %v14986_v26 = vcombine.low %v3331_v48, %v3343_v51  ;;  %v3499_v48 = vld [vmem:[%s16785_s19 + $0x1a80] sm:$0xff] }
 0x67e   : > { %13395 = vmatpush1.bf16.msra.mxu1 %v14820_v20  ;;  %13232 = vmatprep.subr.bf16.mxu0 %v14843_v16  ;;  %v14988_v20 = vcombine.low %v3332_v52, %v3344_v55  ;;  %v15011_v16 = vcombine.high %v3355_v35, %v3367_v50  ;;  %v3511_v51 = vld [vmem:[%s16785_s19 + $0x1ae0] sm:$0xff]  ;;  %v3500_v52 = vld [vmem:[%s16785_s19 + $0x1a88] sm:$0xff] }
 0x67f   : > { %13396 = vmatprep.subr.bf16.mxu1 %v14845_v23  ;;  %v15013_v23 = vcombine.high %v3356_v53, %v3368_v47  ;;  %v3512_v55 = vld [vmem:[%s16785_s19 + $0x1ae8] sm:$0xff] }
 0x681   : > { %13233 = vmatpush1.bf16.msra.mxu0 %v14842_v63  ;;  %v15010_v63 = vcombine.low %v3355_v35, %v3367_v50  ;;  %v3523_v35 = vld [vmem:[%s16785_s19 + $0x1b40] sm:$0xff] }
 0x682   : > { %13397 = vmatpush1.bf16.msra.mxu1 %v14844_v1  ;;  %13234 = vmatprep.subr.bf16.mxu0 %v14867_v60  ;;  %v15012_v1 = vcombine.low %v3356_v53, %v3368_v47  ;;  %v15035_v60 = vcombine.high %v3379_v27, %v3391_v61  ;;  %v3535_v50 = vld [vmem:[%s16785_s19 + $0x1ba0] sm:$0xff]  ;;  %v3524_v53 = vld [vmem:[%s16785_s19 + $0x1b48] sm:$0xff] }
 0x683   : > { %13398 = vmatprep.subr.bf16.mxu1 %v14869_v14  ;;  %v15037_v14 = vcombine.high %v3380_v13, %v3392_v56  ;;  %v3536_v47 = vld [vmem:[%s16785_s19 + $0x1ba8] sm:$0xff] }
 0x685   : > { %13235 = vmatpush1.bf16.msra.mxu0 %v14866_v10  ;;  %v15034_v10 = vcombine.low %v3379_v27, %v3391_v61  ;;  %v3547_v27 = vld [vmem:[%s16785_s19 + $0x1c00] sm:$0xff] }
 0x686   : > { %13399 = vmatpush1.bf16.msra.mxu1 %v14868_v15  ;;  %13236 = vmatprep.subr.bf16.mxu0 %v14891_v21  ;;  %v15036_v15 = vcombine.low %v3380_v13, %v3392_v56  ;;  %v15059_v21 = vcombine.high %v3403_v5, %v3415_v22  ;;  %v3559_v61 = vld [vmem:[%s16785_s19 + $0x1c60] sm:$0xff]  ;;  %v3548_v13 = vld [vmem:[%s16785_s19 + $0x1c08] sm:$0xff] }
 0x687   : > { %13400 = vmatprep.subr.bf16.mxu1 %v14893_v3  ;;  %v15061_v3 = vcombine.high %v3404_v7, %v3416_v9  ;;  %v3560_v56 = vld [vmem:[%s16785_s19 + $0x1c68] sm:$0xff] }
 0x689   : > { %13237 = vmatpush1.bf16.msra.mxu0 %v14890_v25  ;;  %v15058_v25 = vcombine.low %v3403_v5, %v3415_v22  ;;  %v3571_v5 = vld [vmem:[%s16785_s19 + $0x1cc0] sm:$0xff] }
 0x68a   : > { %13401 = vmatpush1.bf16.msra.mxu1 %v14892_v30  ;;  %13238 = vmatprep.subr.bf16.mxu0 %v14915_v31  ;;  %v15060_v30 = vcombine.low %v3404_v7, %v3416_v9  ;;  %v15083_v31 = vcombine.high %v3427_v34, %v3439_v24  ;;  %v3583_v22 = vld [vmem:[%s16785_s19 + $0x1d20] sm:$0xff]  ;;  %v3572_v7 = vld [vmem:[%s16785_s19 + $0x1cc8] sm:$0xff] }
 0x68b   : > { %13402 = vmatprep.subr.bf16.mxu1 %v14917_v32  ;;  %v15085_v32 = vcombine.high %v3428_v44, %v3440_v49  ;;  %v3584_v9 = vld [vmem:[%s16785_s19 + $0x1d28] sm:$0xff]  ;;  %v3595_v34 = vld [vmem:[%s16785_s19 + $0x1d80] sm:$0xff] }
 0x68c   : > { %v3607_v24 = vld [vmem:[%s16785_s19 + $0x1de0] sm:$0xff] }
 0x68d   : > { %13239 = vmatpush1.bf16.msra.mxu0 %v14914_v37  ;;  %v3464_v37 = vld [vmem:[%s16785_s19 + $0x1968] sm:$0xff] }
 0x68e   : > { %13403 = vmatpush1.bf16.msra.mxu1 %v14916_v38  ;;  %13240 = vmatprep.subr.bf16.mxu0 %v14939_v29  ;;  %v15084_v38 = vcombine.low %v3428_v44, %v3440_v49  ;;  %v15107_v29 = vcombine.high %v3451_v42, %v3463_v57  ;;  %v15109_v0 = vcombine.high %v3452_v36, %v3464_v37  ;;  %v3596_v44 = vld [vmem:[%s16785_s19 + $0x1d88] sm:$0xff] }
 0x68f   : > { %13404 = vmatprep.subr.bf16.mxu1 %v14941_v40  ;;  %v3475_v40 = vld [vmem:[%s16785_s19 + $0x19c0] sm:$0xff]  ;;  %v3608_v49 = vld [vmem:[%s16785_s19 + $0x1de8] sm:$0xff] }
 0x691   : > { %13241 = vmatpush1.bf16.msra.mxu0 %v14938_v6  ;;  %v15106_v6 = vcombine.low %v3451_v42, %v3463_v57  ;;  %v3619_v42 = vld [vmem:[%s16785_s19 + $0x1e40] sm:$0xff] }
 0x692   : > { %13405 = vmatpush1.bf16.msra.mxu1 %v14940_v45  ;;  %13242 = vmatprep.subr.bf16.mxu0 %v14963_v2  ;;  %v15108_v45 = vcombine.low %v3452_v36, %v3464_v37  ;;  %v15131_v2 = vcombine.high %v3475_v40, %v3487_v4  ;;  %v3631_v57 = vld [vmem:[%s16785_s19 + $0x1ea0] sm:$0xff]  ;;  %v3632_v36 = vld [vmem:[%s16785_s19 + $0x1ea8] sm:$0xff]  ;;  %v15250_v37 = vcombine.low %v3595_v34, %v3607_v24 }
 0x693   : > { %13406 = vmatprep.subr.bf16.mxu1 %v14965_v8  ;;  %v15133_v8 = vcombine.high %v3476_v41, %v3488_v43 }
 0x695   : > { %13243 = vmatpush1.bf16.msra.mxu0 %v14962_v58  ;;  %v15130_v58 = vcombine.low %v3475_v40, %v3487_v4  ;;  %v3643_v4 = vld [vmem:[%s16785_s19 + $0x1f00] sm:$0xff] }
 0x696   : > { %13407 = vmatpush1.bf16.msra.mxu1 %v14964_v59  ;;  %13244 = vmatprep.subr.bf16.mxu0 %v14987_v18  ;;  %v15132_v59 = vcombine.low %v3476_v41, %v3488_v43  ;;  %v15155_v18 = vcombine.high %v3499_v48, %v3511_v51  ;;  %v3644_v41 = vld [vmem:[%s16785_s19 + $0x1f08] sm:$0xff] }
 0x697   : > { %13408 = vmatprep.subr.bf16.mxu1 %v14989_v46  ;;  %v15157_v46 = vcombine.high %v3500_v52, %v3512_v55  ;;  %v3656_v43 = vld [vmem:[%s16785_s19 + $0x1f68] sm:$0xff] }
 0x699   : > { %13245 = vmatpush1.bf16.msra.mxu0 %v14986_v26  ;;  %v15154_v26 = vcombine.low %v3499_v48, %v3511_v51  ;;  %v3667_v48 = vld [vmem:[%s16785_s19 + $0x1fc0] sm:$0xff] }
 0x69a   : > { %13409 = vmatpush1.bf16.msra.mxu1 %v14988_v20  ;;  %13246 = vmatprep.subr.bf16.mxu0 %v15011_v16  ;;  %v15156_v20 = vcombine.low %v3500_v52, %v3512_v55  ;;  %v15179_v16 = vcombine.high %v3523_v35, %v3535_v50  ;;  %v3679_v51 = vld [vmem:[%s16785_s19 + $0x2020] sm:$0xff]  ;;  %v3668_v52 = vld [vmem:[%s16785_s19 + $0x1fc8] sm:$0xff] }
 0x69b   : > { %13410 = vmatprep.subr.bf16.mxu1 %v15013_v23  ;;  %v15181_v23 = vcombine.high %v3524_v53, %v3536_v47  ;;  %v3680_v55 = vld [vmem:[%s16785_s19 + $0x2028] sm:$0xff] }
 0x69d   : > { %13247 = vmatpush1.bf16.msra.mxu0 %v15010_v63  ;;  %v15178_v63 = vcombine.low %v3523_v35, %v3535_v50  ;;  %v3691_v35 = vld [vmem:[%s16785_s19 + $0x2080] sm:$0xff] }
 0x69e   : > { %13411 = vmatpush1.bf16.msra.mxu1 %v15012_v1  ;;  %13248 = vmatprep.subr.bf16.mxu0 %v15035_v60  ;;  %v15180_v1 = vcombine.low %v3524_v53, %v3536_v47  ;;  %v15203_v60 = vcombine.high %v3547_v27, %v3559_v61  ;;  %v3703_v50 = vld [vmem:[%s16785_s19 + $0x20e0] sm:$0xff]  ;;  %v3692_v53 = vld [vmem:[%s16785_s19 + $0x2088] sm:$0xff] }
 0x69f   : > { %13412 = vmatprep.subr.bf16.mxu1 %v15037_v14  ;;  %v15205_v14 = vcombine.high %v3548_v13, %v3560_v56  ;;  %v3704_v47 = vld [vmem:[%s16785_s19 + $0x20e8] sm:$0xff] }
 0x6a1   : > { %13249 = vmatpush1.bf16.msra.mxu0 %v15034_v10  ;;  %v15202_v10 = vcombine.low %v3547_v27, %v3559_v61  ;;  %v3715_v27 = vld [vmem:[%s16785_s19 + $0x2140] sm:$0xff] }
 0x6a2   : > { %13413 = vmatpush1.bf16.msra.mxu1 %v15036_v15  ;;  %13250 = vmatprep.subr.bf16.mxu0 %v15059_v21  ;;  %v15204_v15 = vcombine.low %v3548_v13, %v3560_v56  ;;  %v15227_v21 = vcombine.high %v3571_v5, %v3583_v22  ;;  %v3727_v61 = vld [vmem:[%s16785_s19 + $0x21a0] sm:$0xff]  ;;  %v3716_v13 = vld [vmem:[%s16785_s19 + $0x2148] sm:$0xff] }
 0x6a3   : > { %13414 = vmatprep.subr.bf16.mxu1 %v15061_v3  ;;  %v15229_v3 = vcombine.high %v3572_v7, %v3584_v9  ;;  %v3728_v56 = vld [vmem:[%s16785_s19 + $0x21a8] sm:$0xff] }
 0x6a5   : > { %13251 = vmatpush1.bf16.msra.mxu0 %v15058_v25  ;;  %v15226_v25 = vcombine.low %v3571_v5, %v3583_v22  ;;  %v3739_v5 = vld [vmem:[%s16785_s19 + $0x2200] sm:$0xff] }
 0x6a6   : > { %13415 = vmatpush1.bf16.msra.mxu1 %v15060_v30  ;;  %13261 = vmatprep.subr.bf16.mxu0 %v15083_v31  ;;  %v15228_v30 = vcombine.low %v3572_v7, %v3584_v9  ;;  %v15251_v31 = vcombine.high %v3595_v34, %v3607_v24  ;;  %v3751_v22 = vld [vmem:[%s16785_s19 + $0x2260] sm:$0xff]  ;;  %v3740_v7 = vld [vmem:[%s16785_s19 + $0x2208] sm:$0xff] }
 0x6a7   : > { %13425 = vmatprep.subr.bf16.mxu1 %v15085_v32  ;;  %v15253_v32 = vcombine.high %v3596_v44, %v3608_v49  ;;  %v3752_v9 = vld [vmem:[%s16785_s19 + $0x2268] sm:$0xff]  ;;  %v3763_v34 = vld [vmem:[%s16785_s19 + $0x22c0] sm:$0xff] }
 0x6a8   : > { %13253 = vmatmul.mubr.bf16.vlgmr.msra.gmra.mrb[24].mxu0 %v17094_v12  ;;  %v3775_v24 = vld [vmem:[%s16785_s19 + $0x2320] sm:$0xff] }
 0x6a9   : > { %13417 = vmatmul.mubr.bf16.vlgmr.msra.gmra.mrb[24].mxu1 %v17094_v12  ;;  %13262 = vmatpush1.bf16.msra.mxu0 %v15082_v33  ;;  %v3620_v33 = vld [vmem:[%s16785_s19 + $0x1e48] sm:$0xff] }
 0x6aa   : > { %13293 = vmatprep.mubr.bf16.mxu0 %v17212_v11  ;;  %13426 = vmatpush1.bf16.msra.mxu1 %v15084_v38  ;;  %v15252_v38 = vcombine.low %v3596_v44, %v3608_v49  ;;  %v15277_v40 = vcombine.high %v3620_v33, %v3632_v36  ;;  %v3764_v44 = vld [vmem:[%s16785_s19 + $0x22c8] sm:$0xff] }
 0x6ab   : > { %13457 = vmatprep.mubr.bf16.mxu1 %v17212_v11  ;;  %13263 = vmatprep.subr.bf16.mxu0 %v15107_v29  ;;  %v15275_v29 = vcombine.high %v3619_v42, %v3631_v57  ;;  %v3776_v49 = vld [vmem:[%s16785_s19 + $0x2328] sm:$0xff] }
 0x6ac   : > { %13427 = vmatprep.subr.bf16.mxu1 %v15109_v0  ;;  %v3655_v0 = vld [vmem:[%s16785_s19 + $0x1f60] sm:$0xff] }
 0x6ad   : > { %13264 = vmatpush1.bf16.msra.mxu0 %v15106_v6  ;;  %v15274_v6 = vcombine.low %v3619_v42, %v3631_v57  ;;  %v3787_v42 = vld [vmem:[%s16785_s19 + $0x2380] sm:$0xff] }
 0x6ae   : > { %13428 = vmatpush1.bf16.msra.mxu1 %v15108_v45  ;;  %13265 = vmatprep.subr.bf16.mxu0 %v15131_v2  ;;  %v15276_v45 = vcombine.low %v3620_v33, %v3632_v36  ;;  %v15299_v2 = vcombine.high %v3643_v4, %v3655_v0  ;;  %v3799_v57 = vld [vmem:[%s16785_s19 + $0x23e0] sm:$0xff]  ;;  %v3788_v33 = vld [vmem:[%s16785_s19 + $0x2388] sm:$0xff] }
 0x6af   : > { %13429 = vmatprep.subr.bf16.mxu1 %v15133_v8  ;;  %v15301_v8 = vcombine.high %v3644_v41, %v3656_v43  ;;  %v3800_v36 = vld [vmem:[%s16785_s19 + $0x23e8] sm:$0xff] }
 0x6b1   : > { %13266 = vmatpush1.bf16.msra.mxu0 %v15130_v58  ;;  %v15298_v58 = vcombine.low %v3643_v4, %v3655_v0  ;;  %v3811_v4 = vld [vmem:[%s16785_s19 + $0x2440] sm:$0xff] }
 0x6b2   : > { %13430 = vmatpush1.bf16.msra.mxu1 %v15132_v59  ;;  %13267 = vmatprep.subr.bf16.mxu0 %v15155_v18  ;;  %v15300_v59 = vcombine.low %v3644_v41, %v3656_v43  ;;  %v15323_v18 = vcombine.high %v3667_v48, %v3679_v51  ;;  %v3823_v0 = vld [vmem:[%s16785_s19 + $0x24a0] sm:$0xff]  ;;  %v3812_v41 = vld [vmem:[%s16785_s19 + $0x2448] sm:$0xff] }
 0x6b3   : > { %13431 = vmatprep.subr.bf16.mxu1 %v15157_v46  ;;  %v15325_v46 = vcombine.high %v3668_v52, %v3680_v55  ;;  %v3824_v43 = vld [vmem:[%s16785_s19 + $0x24a8] sm:$0xff] }
 0x6b5   : > { %13268 = vmatpush1.bf16.msra.mxu0 %v15154_v26  ;;  %v15322_v26 = vcombine.low %v3667_v48, %v3679_v51  ;;  %v3835_v48 = vld [vmem:[%s16785_s19 + $0x2500] sm:$0xff] }
 0x6b6   : > { %13432 = vmatpush1.bf16.msra.mxu1 %v15156_v20  ;;  %13269 = vmatprep.subr.bf16.mxu0 %v15179_v16  ;;  %v15324_v20 = vcombine.low %v3668_v52, %v3680_v55  ;;  %v15347_v16 = vcombine.high %v3691_v35, %v3703_v50  ;;  %v3847_v51 = vld [vmem:[%s16785_s19 + $0x2560] sm:$0xff]  ;;  %v15466_v52 = vcombine.low %v3811_v4, %v3823_v0  ;;  %v3836_v55 = vld [vmem:[%s16785_s19 + $0x2508] sm:$0xff] }
 0x6b7   : > { %13433 = vmatprep.subr.bf16.mxu1 %v15181_v23  ;;  %v15349_v23 = vcombine.high %v3692_v53, %v3704_v47 }
 0x6b9   : > { %13270 = vmatpush1.bf16.msra.mxu0 %v15178_v63  ;;  %v15346_v63 = vcombine.low %v3691_v35, %v3703_v50  ;;  %v3871_v35 = vld [vmem:[%s16785_s19 + $0x2620] sm:$0xff] }
 0x6ba   : > { %13434 = vmatpush1.bf16.msra.mxu1 %v15180_v1  ;;  %13271 = vmatprep.subr.bf16.mxu0 %v15203_v60  ;;  %v15348_v1 = vcombine.low %v3692_v53, %v3704_v47  ;;  %v15371_v60 = vcombine.high %v3715_v27, %v3727_v61  ;;  %v3860_v53 = vld [vmem:[%s16785_s19 + $0x25c8] sm:$0xff] }
 0x6bb   : > { %13435 = vmatprep.subr.bf16.mxu1 %v15205_v14  ;;  %v15373_v14 = vcombine.high %v3716_v13, %v3728_v56  ;;  %v3872_v47 = vld [vmem:[%s16785_s19 + $0x2628] sm:$0xff] }
 0x6bd   : > { %13272 = vmatpush1.bf16.msra.mxu0 %v15202_v10  ;;  %v15370_v10 = vcombine.low %v3715_v27, %v3727_v61  ;;  %v3883_v27 = vld [vmem:[%s16785_s19 + $0x2680] sm:$0xff] }
 0x6be   : > { %13436 = vmatpush1.bf16.msra.mxu1 %v15204_v15  ;;  %13273 = vmatprep.subr.bf16.mxu0 %v15227_v21  ;;  %v15372_v15 = vcombine.low %v3716_v13, %v3728_v56  ;;  %v15395_v21 = vcombine.high %v3739_v5, %v3751_v22  ;;  %v3895_v61 = vld [vmem:[%s16785_s19 + $0x26e0] sm:$0xff]  ;;  %v3884_v13 = vld [vmem:[%s16785_s19 + $0x2688] sm:$0xff] }
 0x6bf   : > { %13437 = vmatprep.subr.bf16.mxu1 %v15229_v3  ;;  %v15397_v3 = vcombine.high %v3740_v7, %v3752_v9  ;;  %v3896_v56 = vld [vmem:[%s16785_s19 + $0x26e8] sm:$0xff] }
 0x6c1   : > { %13274 = vmatpush1.bf16.msra.mxu0 %v15226_v25  ;;  %v15394_v25 = vcombine.low %v3739_v5, %v3751_v22  ;;  %v3907_v5 = vld [vmem:[%s16785_s19 + $0x2740] sm:$0xff] }
 0x6c2   : > { %13438 = vmatpush1.bf16.msra.mxu1 %v15228_v30  ;;  %13275 = vmatprep.subr.bf16.mxu0 %v15251_v31  ;;  %v15396_v30 = vcombine.low %v3740_v7, %v3752_v9  ;;  %v15419_v31 = vcombine.high %v3763_v34, %v3775_v24  ;;  %v3919_v22 = vld [vmem:[%s16785_s19 + $0x27a0] sm:$0xff]  ;;  %v3908_v7 = vld [vmem:[%s16785_s19 + $0x2748] sm:$0xff] }
 0x6c3   : > { %13439 = vmatprep.subr.bf16.mxu1 %v15253_v32  ;;  %v15421_v32 = vcombine.high %v3764_v44, %v3776_v49  ;;  %v3920_v9 = vld [vmem:[%s16785_s19 + $0x27a8] sm:$0xff] }
 0x6c5   : > { %13276 = vmatpush1.bf16.msra.mxu0 %v15250_v37  ;;  %v15418_v37 = vcombine.low %v3763_v34, %v3775_v24  ;;  %v3931_v34 = vld [vmem:[%s16785_s19 + $0x2800] sm:$0xff] }
 0x6c6   : > { %13440 = vmatpush1.bf16.msra.mxu1 %v15252_v38  ;;  %13277 = vmatprep.subr.bf16.mxu0 %v15275_v29  ;;  %v15420_v38 = vcombine.low %v3764_v44, %v3776_v49  ;;  %v15443_v29 = vcombine.high %v3787_v42, %v3799_v57  ;;  %v3943_v24 = vld [vmem:[%s16785_s19 + $0x2860] sm:$0xff]  ;;  %v3932_v44 = vld [vmem:[%s16785_s19 + $0x2808] sm:$0xff] }
 0x6c7   : > { %13441 = vmatprep.subr.bf16.mxu1 %v15277_v40  ;;  %v15445_v40 = vcombine.high %v3788_v33, %v3800_v36  ;;  %v3944_v49 = vld [vmem:[%s16785_s19 + $0x2868] sm:$0xff] }
 0x6c9   : > { %13278 = vmatpush1.bf16.msra.mxu0 %v15274_v6  ;;  %v15442_v6 = vcombine.low %v3787_v42, %v3799_v57  ;;  %v3955_v42 = vld [vmem:[%s16785_s19 + $0x28c0] sm:$0xff] }
 0x6ca   : > { %13442 = vmatpush1.bf16.msra.mxu1 %v15276_v45  ;;  %13279 = vmatprep.subr.bf16.mxu0 %v15299_v2  ;;  %v15444_v45 = vcombine.low %v3788_v33, %v3800_v36  ;;  %v15467_v2 = vcombine.high %v3811_v4, %v3823_v0  ;;  %v3967_v57 = vld [vmem:[%s16785_s19 + $0x2920] sm:$0xff]  ;;  %v3956_v33 = vld [vmem:[%s16785_s19 + $0x28c8] sm:$0xff] }
 0x6cb   : > { %13443 = vmatprep.subr.bf16.mxu1 %v15301_v8  ;;  %v15469_v8 = vcombine.high %v3812_v41, %v3824_v43  ;;  %v3968_v36 = vld [vmem:[%s16785_s19 + $0x2928] sm:$0xff]  ;;  %v3979_v0 = vld [vmem:[%s16785_s19 + $0x2980] sm:$0xff] }
 0x6cc   : > { %v15613_v4 = vcombine.high %v3956_v33, %v3968_v36 }
 0x6cd   : > { %13280 = vmatpush1.bf16.msra.mxu0 %v15298_v58  ;;  %v3848_v58 = vld [vmem:[%s16785_s19 + $0x2568] sm:$0xff] }
 0x6ce   : > { %13444 = vmatpush1.bf16.msra.mxu1 %v15300_v59  ;;  %13281 = vmatprep.subr.bf16.mxu0 %v15323_v18  ;;  %v15468_v59 = vcombine.low %v3812_v41, %v3824_v43  ;;  %v15491_v18 = vcombine.high %v3835_v48, %v3847_v51  ;;  %v15493_v50 = vcombine.high %v3836_v55, %v3848_v58  ;;  %v3991_v41 = vld [vmem:[%s16785_s19 + $0x29e0] sm:$0xff] }
 0x6cf   : > { %13445 = vmatprep.subr.bf16.mxu1 %v15325_v46  ;;  %v3859_v46 = vld [vmem:[%s16785_s19 + $0x25c0] sm:$0xff] }
 0x6d1   : > { %13282 = vmatpush1.bf16.msra.mxu0 %v15322_v26  ;;  %v15490_v26 = vcombine.low %v3835_v48, %v3847_v51  ;;  %v15610_v51 = vcombine.low %v3955_v42, %v3967_v57 }
 0x6d2   : > { %13446 = vmatpush1.bf16.msra.mxu1 %v15324_v20  ;;  %13283 = vmatprep.subr.bf16.mxu0 %v15347_v16  ;;  %v15492_v20 = vcombine.low %v3836_v55, %v3848_v58  ;;  %v15515_v16 = vcombine.high %v3859_v46, %v3871_v35  ;;  %v15612_v58 = vcombine.low %v3956_v33, %v3968_v36 }
 0x6d3   : > { %13447 = vmatprep.subr.bf16.mxu1 %v15349_v23  ;;  %v15517_v23 = vcombine.high %v3860_v53, %v3872_v47 }
 0x6d5   : > { %13284 = vmatpush1.bf16.msra.mxu0 %v15346_v63  ;;  %v15514_v63 = vcombine.low %v3859_v46, %v3871_v35  ;;  %v4003_v35 = vld [vmem:[%s16785_s19 + $0x2a40] sm:$0xff] }
 0x6d6   : > { %13448 = vmatpush1.bf16.msra.mxu1 %v15348_v1  ;;  %13285 = vmatprep.subr.bf16.mxu0 %v15371_v60  ;;  %v15516_v1 = vcombine.low %v3860_v53, %v3872_v47  ;;  %v15539_v60 = vcombine.high %v3883_v27, %v3895_v61  ;;  %v4004_v53 = vld [vmem:[%s16785_s19 + $0x2a48] sm:$0xff] }
 0x6d7   : > { %13449 = vmatprep.subr.bf16.mxu1 %v15373_v14  ;;  %v15541_v14 = vcombine.high %v3884_v13, %v3896_v56  ;;  %v4016_v47 = vld [vmem:[%s16785_s19 + $0x2aa8] sm:$0xff] }
 0x6d9   : > { %13286 = vmatpush1.bf16.msra.mxu0 %v15370_v10  ;;  %v15538_v10 = vcombine.low %v3883_v27, %v3895_v61  ;;  %v4027_v27 = vld [vmem:[%s16785_s19 + $0x2b00] sm:$0xff] }
 0x6da   : > { %13450 = vmatpush1.bf16.msra.mxu1 %v15372_v15  ;;  %13287 = vmatprep.subr.bf16.mxu0 %v15395_v21  ;;  %v15540_v15 = vcombine.low %v3884_v13, %v3896_v56  ;;  %v15563_v21 = vcombine.high %v3907_v5, %v3919_v22  ;;  %v4039_v61 = vld [vmem:[%s16785_s19 + $0x2b60] sm:$0xff]  ;;  %v4028_v13 = vld [vmem:[%s16785_s19 + $0x2b08] sm:$0xff] }
 0x6db   : > { %13451 = vmatprep.subr.bf16.mxu1 %v15397_v3  ;;  %v15565_v3 = vcombine.high %v3908_v7, %v3920_v9  ;;  %v4040_v56 = vld [vmem:[%s16785_s19 + $0x2b68] sm:$0xff] }
 0x6dd   : > { %13288 = vmatpush1.bf16.msra.mxu0 %v15394_v25  ;;  %v15562_v25 = vcombine.low %v3907_v5, %v3919_v22  ;;  %v15685_v22 = vcombine.high %v4028_v13, %v4040_v56 }
 0x6de   : > { %13452 = vmatpush1.bf16.msra.mxu1 %v15396_v30  ;;  %13289 = vmatprep.subr.bf16.mxu0 %v15419_v31  ;;  %v15564_v30 = vcombine.low %v3908_v7, %v3920_v9  ;;  %v15587_v31 = vcombine.high %v3931_v34, %v3943_v24  ;;  %v4051_v7 = vld [vmem:[%s16785_s19 + $0x2bc0] sm:$0xff] }
 0x6df   : > { %13453 = vmatprep.subr.bf16.mxu1 %v15421_v32  ;;  %v15589_v32 = vcombine.high %v3932_v44, %v3944_v49  ;;  %v4063_v9 = vld [vmem:[%s16785_s19 + $0x2c20] sm:$0xff] }
 0x6e1   : > { %13290 = vmatpush1.bf16.msra.mxu0 %v15418_v37  ;;  %v15586_v37 = vcombine.low %v3931_v34, %v3943_v24  ;;  %v15682_v34 = vcombine.low %v4027_v27, %v4039_v61  ;;  %v15684_v24 = vcombine.low %v4028_v13, %v4040_v56 }
 0x6e2   : > { %13454 = vmatpush1.bf16.msra.mxu1 %v15420_v38  ;;  %13291 = vmatprep.subr.bf16.mxu0 %v15443_v29  ;;  %v15588_v38 = vcombine.low %v3932_v44, %v3944_v49  ;;  %v15611_v29 = vcombine.high %v3955_v42, %v3967_v57  ;;  %v15707_v44 = vcombine.high %v4051_v7, %v4063_v9 }
 0x6e3   : > { %13455 = vmatprep.subr.bf16.mxu1 %v15445_v40  ;;  %v15706_v42 = vcombine.low %v4051_v7, %v4063_v9 }
 0x6e5   : > { %13292 = vmatpush1.bf16.msra.mxu0 %v15442_v6 }
 0x6e6   : > { %13456 = vmatpush1.bf16.msra.mxu1 %v15444_v45  ;;  %13302 = vmatprep.subr.bf16.mxu0 %v15467_v2  ;;  %v3980_v45 = vld [vmem:[%s16785_s19 + $0x2988] sm:$0xff] }
 0x6e7   : > { %13466 = vmatprep.subr.bf16.mxu1 %v15469_v8  ;;  %v3992_v2 = vld [vmem:[%s16785_s19 + $0x29e8] sm:$0xff] }
 0x6e8   : > { %13294 = vmatmul.mubr.bf16.vlgmr.msra.gmra.mrb[24].mxu0 %v17214_v17  ;;  %v15637_v46 = vcombine.high %v3980_v45, %v3992_v2 }
 0x6e9   : > { %13458 = vmatmul.mubr.bf16.vlgmr.msra.gmra.mrb[24].mxu1 %v17214_v17  ;;  %13303 = vmatpush1.bf16.msra.mxu0 %v15466_v52 }
 0x6ea   : > { %13334 = vmatprep.mubr.bf16.mxu0 %v17222_v28  ;;  %13467 = vmatpush1.bf16.msra.mxu1 %v15468_v59  ;;  %v15635_v59 = vcombine.high %v3979_v0, %v3991_v41 }
 0x6eb   : > { %13498 = vmatprep.mubr.bf16.mxu1 %v17222_v28  ;;  %13304 = vmatprep.subr.bf16.mxu0 %v15491_v18 }
 0x6ec   : > { %13468 = vmatprep.subr.bf16.mxu1 %v15493_v50  ;;  %v4015_v50 = vld [vmem:[%s16785_s19 + $0x2aa0] sm:$0xff] }
 0x6ed   : > { %13305 = vmatpush1.bf16.msra.mxu0 %v15490_v26  ;;  %v15634_v26 = vcombine.low %v3979_v0, %v3991_v41 }
 0x6ee   : > { %13469 = vmatpush1.bf16.msra.mxu1 %v15492_v20  ;;  %13306 = vmatprep.subr.bf16.mxu0 %v15515_v16  ;;  %v15636_v20 = vcombine.low %v3980_v45, %v3992_v2  ;;  %v15659_v16 = vcombine.high %v4003_v35, %v4015_v50  ;;  %v4135_v45 = vld [vmem:[%s16785_s19 + $0x2e60] sm:$0xff]  ;;  %v4124_v2 = vld [vmem:[%s16785_s19 + $0x2e08] sm:$0xff] }
 0x6ef   : > { %13470 = vmatprep.subr.bf16.mxu1 %v15517_v23  ;;  %v15661_v23 = vcombine.high %v4004_v53, %v4016_v47 }
 0x6f1   : > { %13307 = vmatpush1.bf16.msra.mxu0 %v15514_v63  ;;  %v15658_v63 = vcombine.low %v4003_v35, %v4015_v50 }
 0x6f2   : > { %13471 = vmatpush1.bf16.msra.mxu1 %v15516_v1  ;;  %13308 = vmatprep.subr.bf16.mxu0 %v15539_v60  ;;  %v15660_v60 = vcombine.low %v4004_v53, %v4016_v47 }
 0x6f3   : > { %13472 = vmatprep.subr.bf16.mxu1 %v15541_v14  ;;  %v15683_v14 = vcombine.high %v4027_v27, %v4039_v61 }
 0x6f5   : > { %13309 = vmatpush1.bf16.msra.mxu0 %v15538_v10 }
 0x6f6   : > { %13473 = vmatpush1.bf16.msra.mxu1 %v15540_v15  ;;  %13310 = vmatprep.subr.bf16.mxu0 %v15563_v21  ;;  %v4052_v15 = vld [vmem:[%s16785_s19 + $0x2bc8] sm:$0xff] }
 0x6f7   : > { %13474 = vmatprep.subr.bf16.mxu1 %v15565_v3  ;;  %v4064_v21 = vld [vmem:[%s16785_s19 + $0x2c28] sm:$0xff] }
 0x6f8   : > { %v15709_v49 = vcombine.high %v4052_v15, %v4064_v21  ;;  %v15708_v57 = vcombine.low %v4052_v15, %v4064_v21  ;;  %v2697_v15 = vld [vmem:[%s16785_s19 + $0x170] sm:$0xff] }
 0x6f9   : > { %13311 = vmatpush1.bf16.msra.mxu0 %v15562_v25  ;;  %v4075_v25 = vld [vmem:[%s16785_s19 + $0x2c80] sm:$0xff] }
 0x6fa   : > { %13475 = vmatpush1.bf16.msra.mxu1 %v15564_v30  ;;  %13312 = vmatprep.subr.bf16.mxu0 %v15587_v31  ;;  %v4087_v30 = vld [vmem:[%s16785_s19 + $0x2ce0] sm:$0xff]  ;;  %v4076_v31 = vld [vmem:[%s16785_s19 + $0x2c88] sm:$0xff] }
 0x6fb   : > { %v13008_v40 = vpop.f32.mrb[20].mxu0  ;;  %13476 = vmatprep.subr.bf16.mxu1 %v15589_v32  ;;  %v4088_v32 = vld [vmem:[%s16785_s19 + $0x2ce8] sm:$0xff]  ;;  %v15731_v33 = vcombine.high %v4075_v25, %v4087_v30 }
 0x6fc   : > { %16162 = vtanh.f32 %v13008_v40  ;;  %v13172_v43 = vpop.f32.mrb[20].mxu1  ;;  %v13010_v6 = vpop.f32.mrb[21].mxu0  ;;  %v15733_v36 = vcombine.high %v4076_v31, %v4088_v32  ;;  %v4112_v40 = vld [vmem:[%s16785_s19 + $0x2da8] sm:$0xff]  ;;  %v15732_v0 = vcombine.low %v4076_v31, %v4088_v32  ;;  %v2710_v31 = vld [vmem:[%s16785_s19 + $0x1d8] sm:$0xff] }
 0x6fd   : > { %16164 = vtanh.f32 %v13172_v43  ;;  %v13174_v8 = vpop.f32.mrb[21].mxu1  ;;  %v13012_v48 = vpop.f32.mrb[22].mxu0  ;;  %13313 = vmatpush1.bf16.msra.mxu0 %v15586_v37  ;;  %v4099_v37 = vld [vmem:[%s16785_s19 + $0x2d40] sm:$0xff]  ;;  %v2722_v32 = vld [vmem:[%s16785_s19 + $0x238] sm:$0xff] }
 0x6fe   : > { %16166 = vtanh.f32 %v13010_v6  ;;  %v13176_v52 = vpop.f32.mrb[22].mxu1  ;;  %13477 = vmatpush1.bf16.msra.mxu1 %v15588_v38  ;;  %v13013_v55 = vpop.f32.mrb[23].mxu0  ;;  %13314 = vmatprep.subr.bf16.mxu0 %v15611_v29  ;;  %v4111_v38 = vld [vmem:[%s16785_s19 + $0x2da0] sm:$0xff]  ;;  %v4100_v29 = vld [vmem:[%s16785_s19 + $0x2d48] sm:$0xff] }
 0x6ff   : > { %16168 = vtanh.f32 %v13174_v8  ;;  %v13177_v18 = vpop.f32.mrb[23].mxu1  ;;  %13478 = vmatprep.subr.bf16.mxu1 %v15613_v4  ;;  %v15730_v4 = vcombine.low %v4075_v25, %v4087_v30  ;;  %v15755_v41 = vcombine.high %v4099_v37, %v4111_v38  ;;  %v15757_v43 = vcombine.high %v4100_v29, %v4112_v40  ;;  %v4123_v6 = vld [vmem:[%s16785_s19 + $0x2e00] sm:$0xff]  ;;  %v4136_v8 = vld [vmem:[%s16785_s19 + $0x2e68] sm:$0xff]  ;;  %v2721_v25 = vld [vmem:[%s16785_s19 + $0x230] sm:$0xff] }
 0x700   : > { %v15754_v48 = vcombine.low %v4099_v37, %v4111_v38  ;;  %v15779_v52 = vcombine.high %v4123_v6, %v4135_v45  ;;  %v15781_v55 = vcombine.high %v4124_v2, %v4136_v8  ;;  %v4148_v18 = vld [vmem:[%s16785_s19 + $0x2ec8] sm:$0xff]  ;;  %v15778_v35 = vcombine.low %v4123_v6, %v4135_v45  ;;  %v2733_v37 = vld [vmem:[%s16785_s19 + $0x290] sm:$0xff]  ;;  %v2758_v45 = vld [vmem:[%s16785_s19 + $0x358] sm:$0xff] }
 0x701   : > { %13315 = vmatpush1.bf16.msra.mxu0 %v15610_v51  ;;  %v15756_v51 = vcombine.low %v4100_v29, %v4112_v40  ;;  %v15780_v50 = vcombine.low %v4124_v2, %v4136_v8  ;;  %v2745_v38 = vld [vmem:[%s16785_s19 + $0x2f0] sm:$0xff]  ;;  %v2734_v29 = vld [vmem:[%s16785_s19 + $0x298] sm:$0xff] }
 0x702   : > { %13479 = vmatpush1.bf16.msra.mxu1 %v15612_v58  ;;  %13316 = vmatprep.subr.bf16.mxu0 %v15635_v59  ;;  %v4147_v58 = vld [vmem:[%s16785_s19 + $0x2ec0] sm:$0xff]  ;;  %v2746_v40 = vld [vmem:[%s16785_s19 + $0x2f8] sm:$0xff]  ;;  %v2769_v6 = vld [vmem:[%s16785_s19 + $0x3b0] sm:$0xff]  ;;  %v14390_v8 = vcombine.low %v2733_v37, %v2745_v38 }
 0x703   : > { %13480 = vmatprep.subr.bf16.mxu1 %v15637_v46  ;;  %v4159_v59 = vld [vmem:[%s16785_s19 + $0x2f20] sm:$0xff]  ;;  %v4160_v46 = vld [vmem:[%s16785_s19 + $0x2f28] sm:$0xff]  ;;  %v2770_v2 = vld [vmem:[%s16785_s19 + $0x3b8] sm:$0xff] }
 0x704   : > { %v15803_v53 = vcombine.high %v4147_v58, %v4159_v59  ;;  %v15805_v47 = vcombine.high %v4148_v18, %v4160_v46  ;;  %v15802_v27 = vcombine.low %v4147_v58, %v4159_v59  ;;  %v15804_v61 = vcombine.low %v4148_v18, %v4160_v46  ;;  %v2793_v58 = vld [vmem:[%s16785_s19 + $0x470] sm:$0xff]  ;;  %v2782_v59 = vld [vmem:[%s16785_s19 + $0x418] sm:$0xff] }
 0x705   : > { %13317 = vmatpush1.bf16.msra.mxu0 %v15634_v26  ;;  %v4171_v26 = vld [vmem:[%s16785_s19 + $0x2f80] sm:$0xff]  ;;  %v2794_v18 = vld [vmem:[%s16785_s19 + $0x478] sm:$0xff] }
 0x706   : > { %v16163_v1 = vpop.eup %16162  ;;  %13481 = vmatpush1.bf16.msra.mxu1 %v15636_v20  ;;  %13318 = vmatprep.subr.bf16.mxu0 %v15659_v16  ;;  %v4183_v20 = vld [vmem:[%s16785_s19 + $0x2fe0] sm:$0xff]  ;;  %v4172_v16 = vld [vmem:[%s16785_s19 + $0x2f88] sm:$0xff] }
 0x707   : > { %v16165_v5 = vpop.eup %16164  ;;  %13871 = vst [vmem:[%s17535_s29 + $0x60] sm:$0xff] %v16163_v1  ;;  %13482 = vmatprep.subr.bf16.mxu1 %v15661_v23  ;;  %v4184_v23 = vld [vmem:[%s16785_s19 + $0x2fe8] sm:$0xff]  ;;  %v15827_v13 = vcombine.high %v4171_v26, %v4183_v20  ;;  %v2673_v1 = vld [vmem:[%s16785_s19 + $0xb0] sm:$0xff] }
 0x708   : > { %v16167_v10 = vpop.eup %16166  ;;  %13873 = vst [vmem:[%s17535_s29 + $0x70] sm:$0xff] %v16165_v5  ;;  %v15829_v56 = vcombine.high %v4172_v16, %v4184_v23  ;;  %v15826_v5 = vcombine.low %v4171_v26, %v4183_v20  ;;  %v2817_v26 = vld [vmem:[%s16785_s19 + $0x530] sm:$0xff]  ;;  %v2806_v20 = vld [vmem:[%s16785_s19 + $0x4d8] sm:$0xff] }
 0x709   : > { %v16169_v3 = vpop.eup %16168  ;;  %13872 = vst [vmem:[%s17535_s29 + $0x68] sm:$0xff] %v16167_v10  ;;  %13319 = vmatpush1.bf16.msra.mxu0 %v15658_v63  ;;  %v2661_v63 = vld [vmem:[%s16785_s19 + $0x50] sm:$0xff] }
 0x70a   : > { %13874 = vst [vmem:[%s17535_s29 + $0x78] sm:$0xff] %v16169_v3  ;;  %13483 = vmatpush1.bf16.msra.mxu1 %v15660_v60  ;;  %13320 = vmatprep.subr.bf16.mxu0 %v15683_v14  ;;  %v2662_v60 = vld [vmem:[%s16785_s19 + $0x58] sm:$0xff]  ;;  %v14319_v7 = vcombine.high %v2661_v63, %v2673_v1  ;;  %v2685_v10 = vld [vmem:[%s16785_s19 + $0x110] sm:$0xff]  ;;  %v14318_v21 = vcombine.low %v2661_v63, %v2673_v1 }
 0x70b   : > { %13484 = vmatprep.subr.bf16.mxu1 %v15685_v22  ;;  %v2674_v14 = vld [vmem:[%s16785_s19 + $0xb8] sm:$0xff]  ;;  %v15828_v22 = vcombine.low %v4172_v16, %v4184_v23  ;;  %v2841_v63 = vld [vmem:[%s16785_s19 + $0x5f0] sm:$0xff] }
 0x70c   : > { %v14321_v9 = vcombine.high %v2662_v60, %v2674_v14  ;;  %v2686_v3 = vld [vmem:[%s16785_s19 + $0x118] sm:$0xff] }
 0x70d   : > { %13321 = vmatpush1.bf16.msra.mxu0 %v15682_v34  ;;  %v2698_v34 = vld [vmem:[%s16785_s19 + $0x178] sm:$0xff] }
 0x70e   : > { %13485 = vmatpush1.bf16.msra.mxu1 %v15684_v24  ;;  %13322 = vmatprep.subr.bf16.mxu0 %v15707_v44  ;;  %v14320_v24 = vcombine.low %v2662_v60, %v2674_v14  ;;  %v14343_v44 = vcombine.high %v2685_v10, %v2697_v15  ;;  %v14345_v30 = vcombine.high %v2686_v3, %v2698_v34  ;;  %v2818_v16 = vld [vmem:[%s16785_s19 + $0x538] sm:$0xff] }
 0x70f   : > { %13486 = vmatprep.subr.bf16.mxu1 %v15709_v49  ;;  %v2709_v49 = vld [vmem:[%s16785_s19 + $0x1d0] sm:$0xff]  ;;  %v2830_v1 = vld [vmem:[%s16785_s19 + $0x598] sm:$0xff] }
 0x710   : > { %v2842_v60 = vld [vmem:[%s16785_s19 + $0x5f8] sm:$0xff] }
 0x711   : > { %13323 = vmatpush1.bf16.msra.mxu0 %v15706_v42  ;;  %v14342_v42 = vcombine.low %v2685_v10, %v2697_v15  ;;  %v2865_v10 = vld [vmem:[%s16785_s19 + $0x6b0] sm:$0xff]  ;;  %v2854_v15 = vld [vmem:[%s16785_s19 + $0x658] sm:$0xff] }
 0x712   : > { %13487 = vmatpush1.bf16.msra.mxu1 %v15708_v57  ;;  %13324 = vmatprep.subr.bf16.mxu0 %v15731_v33  ;;  %v14344_v57 = vcombine.low %v2686_v3, %v2698_v34  ;;  %v14367_v33 = vcombine.high %v2709_v49, %v2721_v25  ;;  %v14488_v34 = vcombine.low %v2830_v1, %v2842_v60 }
 0x713   : > { %13488 = vmatprep.subr.bf16.mxu1 %v15733_v36  ;;  %v14369_v36 = vcombine.high %v2710_v31, %v2722_v32 }
 0x715   : > { %13325 = vmatpush1.bf16.msra.mxu0 %v15730_v4  ;;  %v14366_v4 = vcombine.low %v2709_v49, %v2721_v25  ;;  %v2877_v49 = vld [vmem:[%s16785_s19 + $0x710] sm:$0xff] }
 0x716   : > { %13489 = vmatpush1.bf16.msra.mxu1 %v15732_v0  ;;  %13326 = vmatprep.subr.bf16.mxu0 %v15755_v41  ;;  %v14368_v0 = vcombine.low %v2710_v31, %v2722_v32  ;;  %v14391_v41 = vcombine.high %v2733_v37, %v2745_v38  ;;  %v2889_v25 = vld [vmem:[%s16785_s19 + $0x770] sm:$0xff]  ;;  %v2890_v31 = vld [vmem:[%s16785_s19 + $0x778] sm:$0xff] }
 0x717   : > { %13490 = vmatprep.subr.bf16.mxu1 %v15757_v43  ;;  %v2757_v43 = vld [vmem:[%s16785_s19 + $0x350] sm:$0xff]  ;;  %v2902_v38 = vld [vmem:[%s16785_s19 + $0x7d8] sm:$0xff] }
 0x718   : > { %v14414_v46 = vcombine.low %v2757_v43, %v2769_v6  ;;  %v2913_v37 = vld [vmem:[%s16785_s19 + $0x830] sm:$0xff] }
 0x719   : > { %13327 = vmatpush1.bf16.msra.mxu0 %v15754_v48  ;;  %v14392_v48 = vcombine.low %v2734_v29, %v2746_v40 }
 0x71a   : > { %13491 = vmatpush1.bf16.msra.mxu1 %v15756_v51  ;;  %13328 = vmatprep.subr.bf16.mxu0 %v15779_v52  ;;  %v14415_v51 = vcombine.high %v2757_v43, %v2769_v6  ;;  %v14417_v52 = vcombine.high %v2758_v45, %v2770_v2  ;;  %v2937_v43 = vld [vmem:[%s16785_s19 + $0x8f0] sm:$0xff]  ;;  %v2926_v6 = vld [vmem:[%s16785_s19 + $0x898] sm:$0xff] }
 0x71b   : > { %13492 = vmatprep.subr.bf16.mxu1 %v15781_v55  ;;  %v2781_v55 = vld [vmem:[%s16785_s19 + $0x410] sm:$0xff] }
 0x71c   : > { %v14438_v23 = vcombine.low %v2781_v55, %v2793_v58 }
 0x71d   : > { %13329 = vmatpush1.bf16.msra.mxu0 %v15778_v35  ;;  %v14416_v35 = vcombine.low %v2758_v45, %v2770_v2  ;;  %v2938_v45 = vld [vmem:[%s16785_s19 + $0x8f8] sm:$0xff] }
 0x71e   : > { %13493 = vmatpush1.bf16.msra.mxu1 %v15780_v50  ;;  %13330 = vmatprep.subr.bf16.mxu0 %v15803_v53  ;;  %v14439_v50 = vcombine.high %v2781_v55, %v2793_v58  ;;  %v14441_v53 = vcombine.high %v2782_v59, %v2794_v18  ;;  %v2961_v55 = vld [vmem:[%s16785_s19 + $0x9b0] sm:$0xff]  ;;  %v2950_v58 = vld [vmem:[%s16785_s19 + $0x958] sm:$0xff] }
 0x71f   : > { %13494 = vmatprep.subr.bf16.mxu1 %v15805_v47  ;;  %v2805_v47 = vld [vmem:[%s16785_s19 + $0x4d0] sm:$0xff] }
 0x720   : > { %v14462_v14 = vcombine.low %v2805_v47, %v2817_v26 }
 0x721   : > { %13331 = vmatpush1.bf16.msra.mxu0 %v15802_v27  ;;  %v14440_v27 = vcombine.low %v2782_v59, %v2794_v18  ;;  %v2962_v59 = vld [vmem:[%s16785_s19 + $0x9b8] sm:$0xff] }
 0x722   : > { %13495 = vmatpush1.bf16.msra.mxu1 %v15804_v61  ;;  %13332 = vmatprep.subr.bf16.mxu0 %v15827_v13  ;;  %v14463_v61 = vcombine.high %v2805_v47, %v2817_v26  ;;  %v14465_v13 = vcombine.high %v2806_v20, %v2818_v16  ;;  %v2985_v47 = vld [vmem:[%s16785_s19 + $0xa70] sm:$0xff]  ;;  %v2974_v26 = vld [vmem:[%s16785_s19 + $0xa18] sm:$0xff] }
 0x723   : > { %13496 = vmatprep.subr.bf16.mxu1 %v15829_v56  ;;  %v2829_v56 = vld [vmem:[%s16785_s19 + $0x590] sm:$0xff] }
 0x724   : > { %v14486_v3 = vcombine.low %v2829_v56, %v2841_v63 }
 0x725   : > { %13333 = vmatpush1.bf16.msra.mxu0 %v15826_v5  ;;  %v14464_v5 = vcombine.low %v2806_v20, %v2818_v16  ;;  %v2986_v20 = vld [vmem:[%s16785_s19 + $0xa78] sm:$0xff] }
 0x726   : > { %13497 = vmatpush1.bf16.msra.mxu1 %v15828_v22  ;;  %13507 = vmatprep.subr.bf16.mxu0 %v14319_v7  ;;  %v14487_v22 = vcombine.high %v2829_v56, %v2841_v63  ;;  %v14489_v7 = vcombine.high %v2830_v1, %v2842_v60  ;;  %v3009_v56 = vld [vmem:[%s16785_s19 + $0xb30] sm:$0xff]  ;;  %v2998_v63 = vld [vmem:[%s16785_s19 + $0xad8] sm:$0xff] }
 0x727   : > { %13671 = vmatprep.subr.bf16.mxu1 %v14321_v9  ;;  %v2853_v9 = vld [vmem:[%s16785_s19 + $0x650] sm:$0xff]  ;;  %v3010_v1 = vld [vmem:[%s16785_s19 + $0xb38] sm:$0xff] }
 0x728   : > { %13335 = vmatmul.mubr.bf16.vlgmr.msra.gmra.mrb[24].mxu0 %v17292_v19  ;;  %v14510_v32 = vcombine.low %v2853_v9, %v2865_v10 }
 0x729   : > { %13499 = vmatmul.mubr.bf16.vlgmr.msra.gmra.mrb[24].mxu1 %v17292_v19  ;;  %13508 = vmatpush1.bf16.msra.mxu0 %v14318_v21  ;;  %v2866_v21 = vld [vmem:[%s16785_s19 + $0x6b8] sm:$0xff] }
 0x72a   : > { %13539 = vmatprep.mubr.bf16.mxu0 %v17005_v62  ;;  %13672 = vmatpush1.bf16.msra.mxu1 %v14320_v24  ;;  %v14511_v24 = vcombine.high %v2853_v9, %v2865_v10  ;;  %v3033_v9 = vld [vmem:[%s16785_s19 + $0xbf0] sm:$0xff]  ;;  %v3022_v10 = vld [vmem:[%s16785_s19 + $0xb98] sm:$0xff] }
 0x72b   : > { %13703 = vmatprep.mubr.bf16.mxu1 %v17005_v62  ;;  %13509 = vmatprep.subr.bf16.mxu0 %v14343_v44  ;;  %v14393_v62 = vcombine.high %v2734_v29, %v2746_v40  ;;  %v14513_v44 = vcombine.high %v2854_v15, %v2866_v21  ;;  %v2914_v29 = vld [vmem:[%s16785_s19 + $0x838] sm:$0xff]  ;;  %v14534_v40 = vcombine.low %v2877_v49, %v2889_v25 }
 0x72c   : > { %13673 = vmatprep.subr.bf16.mxu1 %v14345_v30  ;;  %v2878_v30 = vld [vmem:[%s16785_s19 + $0x718] sm:$0xff] }
 0x72d   : > { %13510 = vmatpush1.bf16.msra.mxu0 %v14342_v42  ;;  %v14512_v42 = vcombine.low %v2854_v15, %v2866_v21  ;;  %v3034_v15 = vld [vmem:[%s16785_s19 + $0xbf8] sm:$0xff] }
 0x72e   : > { %13674 = vmatpush1.bf16.msra.mxu1 %v14344_v57  ;;  %13511 = vmatprep.subr.bf16.mxu0 %v14367_v33  ;;  %v14535_v57 = vcombine.high %v2877_v49, %v2889_v25  ;;  %v14537_v33 = vcombine.high %v2878_v30, %v2890_v31  ;;  %v3057_v49 = vld [vmem:[%s16785_s19 + $0xcb0] sm:$0xff]  ;;  %v3046_v25 = vld [vmem:[%s16785_s19 + $0xc58] sm:$0xff] }
 0x72f   : > { %13675 = vmatprep.subr.bf16.mxu1 %v14369_v36  ;;  %v2901_v36 = vld [vmem:[%s16785_s19 + $0x7d0] sm:$0xff] }
 0x730   : > { %v14558_v2 = vcombine.low %v2901_v36, %v2913_v37 }
 0x731   : > { %13512 = vmatpush1.bf16.msra.mxu0 %v14366_v4  ;;  %v14536_v4 = vcombine.low %v2878_v30, %v2890_v31  ;;  %v3058_v30 = vld [vmem:[%s16785_s19 + $0xcb8] sm:$0xff] }
 0x732   : > { %13676 = vmatpush1.bf16.msra.mxu1 %v14368_v0  ;;  %13513 = vmatprep.subr.bf16.mxu0 %v14391_v41  ;;  %v14559_v0 = vcombine.high %v2901_v36, %v2913_v37  ;;  %v14561_v41 = vcombine.high %v2902_v38, %v2914_v29  ;;  %v3081_v36 = vld [vmem:[%s16785_s19 + $0xd70] sm:$0xff] }
 0x733   : > { %13677 = vmatprep.subr.bf16.mxu1 %v14393_v62  ;;  %v2925_v62 = vld [vmem:[%s16785_s19 + $0x890] sm:$0xff] }
 0x734   : > { %v14582_v18 = vcombine.low %v2925_v62, %v2937_v43 }
 0x735   : > { %13514 = vmatpush1.bf16.msra.mxu0 %v14390_v8  ;;  %v14560_v8 = vcombine.low %v2902_v38, %v2914_v29  ;;  %v3070_v38 = vld [vmem:[%s16785_s19 + $0xd18] sm:$0xff] }
 0x736   : > { %13678 = vmatpush1.bf16.msra.mxu1 %v14392_v48  ;;  %13515 = vmatprep.subr.bf16.mxu0 %v14415_v51  ;;  %v14583_v48 = vcombine.high %v2925_v62, %v2937_v43  ;;  %v14585_v51 = vcombine.high %v2926_v6, %v2938_v45  ;;  %v3082_v29 = vld [vmem:[%s16785_s19 + $0xd78] sm:$0xff] }
 0x737   : > { %13679 = vmatprep.subr.bf16.mxu1 %v14417_v52  ;;  %v2949_v52 = vld [vmem:[%s16785_s19 + $0x950] sm:$0xff]  ;;  %v14729_v62 = vcombine.high %v3070_v38, %v3082_v29  ;;  %v3094_v43 = vld [vmem:[%s16785_s19 + $0xdd8] sm:$0xff] }
 0x738   : > { %v14606_v16 = vcombine.low %v2949_v52, %v2961_v55 }
 0x739   : > { %13516 = vmatpush1.bf16.msra.mxu0 %v14414_v46  ;;  %v14584_v46 = vcombine.low %v2926_v6, %v2938_v45  ;;  %v3106_v6 = vld [vmem:[%s16785_s19 + $0xe38] sm:$0xff] }
 0x73a   : > { %13680 = vmatpush1.bf16.msra.mxu1 %v14416_v35  ;;  %13517 = vmatprep.subr.bf16.mxu0 %v14439_v50  ;;  %v14607_v35 = vcombine.high %v2949_v52, %v2961_v55  ;;  %v14609_v50 = vcombine.high %v2950_v58, %v2962_v59  ;;  %v3129_v52 = vld [vmem:[%s16785_s19 + $0xef0] sm:$0xff]  ;;  %v3118_v55 = vld [vmem:[%s16785_s19 + $0xe98] sm:$0xff] }
 0x73b   : > { %13681 = vmatprep.subr.bf16.mxu1 %v14441_v53  ;;  %v2973_v53 = vld [vmem:[%s16785_s19 + $0xa10] sm:$0xff] }
 0x73c   : > { %v14630_v60 = vcombine.low %v2973_v53, %v2985_v47 }
 0x73d   : > { %13518 = vmatpush1.bf16.msra.mxu0 %v14438_v23  ;;  %v14608_v23 = vcombine.low %v2950_v58, %v2962_v59  ;;  %v14752_v59 = vcombine.low %v3094_v43, %v3106_v6 }
 0x73e   : > { %13682 = vmatpush1.bf16.msra.mxu1 %v14440_v27  ;;  %13519 = vmatprep.subr.bf16.mxu0 %v14463_v61  ;;  %v14631_v27 = vcombine.high %v2973_v53, %v2985_v47  ;;  %v14633_v61 = vcombine.high %v2974_v26, %v2986_v20  ;;  %v3154_v53 = vld [vmem:[%s16785_s19 + $0xfb8] sm:$0xff] }
 0x73f   : > { %13683 = vmatprep.subr.bf16.mxu1 %v14465_v13  ;;  %v2997_v13 = vld [vmem:[%s16785_s19 + $0xad0] sm:$0xff] }
 0x740   : > { %v14654_v21 = vcombine.low %v2997_v13, %v3009_v56 }
 0x741   : > { %13520 = vmatpush1.bf16.msra.mxu0 %v14462_v14  ;;  %v14632_v14 = vcombine.low %v2974_v26, %v2986_v20 }
 0x742   : > { %13684 = vmatpush1.bf16.msra.mxu1 %v14464_v5  ;;  %13521 = vmatprep.subr.bf16.mxu0 %v14487_v22  ;;  %v14655_v5 = vcombine.high %v2997_v13, %v3009_v56  ;;  %v14657_v22 = vcombine.high %v2998_v63, %v3010_v1  ;;  %v3178_v13 = vld [vmem:[%s16785_s19 + $0x1078] sm:$0xff] }
 0x743   : > { %13685 = vmatprep.subr.bf16.mxu1 %v14489_v7  ;;  %v3021_v7 = vld [vmem:[%s16785_s19 + $0xb90] sm:$0xff] }
 0x744   : > { %v14678_v31 = vcombine.low %v3021_v7, %v3033_v9 }
 0x745   : > { %13522 = vmatpush1.bf16.msra.mxu0 %v14486_v3  ;;  %v14656_v3 = vcombine.low %v2998_v63, %v3010_v1 }
 0x746   : > { %13686 = vmatpush1.bf16.msra.mxu1 %v14488_v34  ;;  %13523 = vmatprep.subr.bf16.mxu0 %v14511_v24  ;;  %v14679_v34 = vcombine.high %v3021_v7, %v3033_v9  ;;  %v14681_v24 = vcombine.high %v3022_v10, %v3034_v15  ;;  %v3202_v7 = vld [vmem:[%s16785_s19 + $0x1138] sm:$0xff] }
 0x747   : > { %13687 = vmatprep.subr.bf16.mxu1 %v14513_v44  ;;  %v3045_v44 = vld [vmem:[%s16785_s19 + $0xc50] sm:$0xff] }
 0x748   : > { %v14702_v37 = vcombine.low %v3045_v44, %v3057_v49 }
 0x749   : > { %13524 = vmatpush1.bf16.msra.mxu0 %v14510_v32  ;;  %v14680_v32 = vcombine.low %v3022_v10, %v3034_v15 }
 0x74a   : > { %13688 = vmatpush1.bf16.msra.mxu1 %v14512_v42  ;;  %13525 = vmatprep.subr.bf16.mxu0 %v14535_v57  ;;  %v14703_v42 = vcombine.high %v3045_v44, %v3057_v49  ;;  %v14705_v57 = vcombine.high %v3046_v25, %v3058_v30  ;;  %v3226_v44 = vld [vmem:[%s16785_s19 + $0x11f8] sm:$0xff] }
 0x74b   : > { %13689 = vmatprep.subr.bf16.mxu1 %v14537_v33  ;;  %v3069_v33 = vld [vmem:[%s16785_s19 + $0xd10] sm:$0xff] }
 0x74c   : > { %v14726_v45 = vcombine.low %v3069_v33, %v3081_v36 }
 0x74d   : > { %13526 = vmatpush1.bf16.msra.mxu0 %v14534_v40  ;;  %v14704_v40 = vcombine.low %v3046_v25, %v3058_v30 }
 0x74e   : > { %13690 = vmatpush1.bf16.msra.mxu1 %v14536_v4  ;;  %13527 = vmatprep.subr.bf16.mxu0 %v14559_v0  ;;  %v14727_v4 = vcombine.high %v3069_v33, %v3081_v36  ;;  %v3093_v0 = vld [vmem:[%s16785_s19 + $0xdd0] sm:$0xff]  ;;  %v3250_v33 = vld [vmem:[%s16785_s19 + $0x12b8] sm:$0xff] }
 0x74f   : > { %13691 = vmatprep.subr.bf16.mxu1 %v14561_v41  ;;  %v3105_v41 = vld [vmem:[%s16785_s19 + $0xe30] sm:$0xff] }
 0x750   : > { %v14750_v58 = vcombine.low %v3093_v0, %v3105_v41 }
 0x751   : > { %13528 = vmatpush1.bf16.msra.mxu0 %v14558_v2  ;;  %v14728_v2 = vcombine.low %v3070_v38, %v3082_v29 }
 0x752   : > { %13692 = vmatpush1.bf16.msra.mxu1 %v14560_v8  ;;  %13529 = vmatprep.subr.bf16.mxu0 %v14583_v48  ;;  %v14751_v8 = vcombine.high %v3093_v0, %v3105_v41  ;;  %v14753_v48 = vcombine.high %v3094_v43, %v3106_v6  ;;  %v3262_v0 = vld [vmem:[%s16785_s19 + $0x1318] sm:$0xff] }
 0x753   : > { %13693 = vmatprep.subr.bf16.mxu1 %v14585_v51  ;;  %v3117_v51 = vld [vmem:[%s16785_s19 + $0xe90] sm:$0xff]  ;;  %v3274_v41 = vld [vmem:[%s16785_s19 + $0x1378] sm:$0xff] }
 0x754   : > { %v14774_v47 = vcombine.low %v3117_v51, %v3129_v52 }
 0x755   : > { %13530 = vmatpush1.bf16.msra.mxu0 %v14582_v18  ;;  %v14775_v18 = vcombine.high %v3117_v51, %v3129_v52  ;;  %v3298_v51 = vld [vmem:[%s16785_s19 + $0x1438] sm:$0xff] }
 0x756   : > { %13694 = vmatpush1.bf16.msra.mxu1 %v14584_v46  ;;  %13531 = vmatprep.subr.bf16.mxu0 %v14607_v35  ;;  %v3141_v46 = vld [vmem:[%s16785_s19 + $0xf50] sm:$0xff] }
 0x757   : > { %13695 = vmatprep.subr.bf16.mxu1 %v14609_v50  ;;  %v3153_v35 = vld [vmem:[%s16785_s19 + $0xfb0] sm:$0xff]  ;;  %v3142_v50 = vld [vmem:[%s16785_s19 + $0xf58] sm:$0xff] }
 0x758   : > { %v14799_v20 = vcombine.high %v3141_v46, %v3153_v35  ;;  %v14798_v56 = vcombine.low %v3141_v46, %v3153_v35  ;;  %v14800_v63 = vcombine.low %v3142_v50, %v3154_v53  ;;  %v3322_v46 = vld [vmem:[%s16785_s19 + $0x14f8] sm:$0xff] }
 0x759   : > { %13532 = vmatpush1.bf16.msra.mxu0 %v14606_v16  ;;  %v14801_v16 = vcombine.high %v3142_v50, %v3154_v53 }
 0x75a   : > { %13696 = vmatpush1.bf16.msra.mxu1 %v14608_v23  ;;  %13533 = vmatprep.subr.bf16.mxu0 %v14631_v27  ;;  %v3165_v23 = vld [vmem:[%s16785_s19 + $0x1010] sm:$0xff] }
 0x75b   : > { %13697 = vmatprep.subr.bf16.mxu1 %v14633_v61  ;;  %v3177_v27 = vld [vmem:[%s16785_s19 + $0x1070] sm:$0xff]  ;;  %v3166_v61 = vld [vmem:[%s16785_s19 + $0x1018] sm:$0xff] }
 0x75c   : > { %v14823_v1 = vcombine.high %v3165_v23, %v3177_v27  ;;  %v14822_v9 = vcombine.low %v3165_v23, %v3177_v27  ;;  %v14824_v10 = vcombine.low %v3166_v61, %v3178_v13  ;;  %v3346_v23 = vld [vmem:[%s16785_s19 + $0x15b8] sm:$0xff] }
 0x75d   : > { %13534 = vmatpush1.bf16.msra.mxu0 %v14630_v60  ;;  %v14825_v60 = vcombine.high %v3166_v61, %v3178_v13 }
 0x75e   : > { %13698 = vmatpush1.bf16.msra.mxu1 %v14632_v14  ;;  %13535 = vmatprep.subr.bf16.mxu0 %v14655_v5  ;;  %v3189_v14 = vld [vmem:[%s16785_s19 + $0x10d0] sm:$0xff] }
 0x75f   : > { %13699 = vmatprep.subr.bf16.mxu1 %v14657_v22  ;;  %v3201_v5 = vld [vmem:[%s16785_s19 + $0x1130] sm:$0xff]  ;;  %v3190_v22 = vld [vmem:[%s16785_s19 + $0x10d8] sm:$0xff] }
 0x760   : > { %v14847_v15 = vcombine.high %v3189_v14, %v3201_v5  ;;  %v14846_v49 = vcombine.low %v3189_v14, %v3201_v5  ;;  %v14848_v25 = vcombine.low %v3190_v22, %v3202_v7  ;;  %v3370_v14 = vld [vmem:[%s16785_s19 + $0x1678] sm:$0xff] }
 0x761   : > { %13536 = vmatpush1.bf16.msra.mxu0 %v14654_v21  ;;  %v14849_v21 = vcombine.high %v3190_v22, %v3202_v7 }
 0x762   : > { %13700 = vmatpush1.bf16.msra.mxu1 %v14656_v3  ;;  %13537 = vmatprep.subr.bf16.mxu0 %v14679_v34  ;;  %v3213_v3 = vld [vmem:[%s16785_s19 + $0x1190] sm:$0xff] }
 0x763   : > { %13701 = vmatprep.subr.bf16.mxu1 %v14681_v24  ;;  %v3225_v34 = vld [vmem:[%s16785_s19 + $0x11f0] sm:$0xff]  ;;  %v3214_v24 = vld [vmem:[%s16785_s19 + $0x1198] sm:$0xff] }
 0x764   : > { %v14871_v30 = vcombine.high %v3213_v3, %v3225_v34  ;;  %v14870_v36 = vcombine.low %v3213_v3, %v3225_v34  ;;  %v3394_v3 = vld [vmem:[%s16785_s19 + $0x1738] sm:$0xff] }
 0x765   : > { %13538 = vmatpush1.bf16.msra.mxu0 %v14678_v31  ;;  %v14873_v31 = vcombine.high %v3214_v24, %v3226_v44 }
 0x766   : > { %13702 = vmatpush1.bf16.msra.mxu1 %v14680_v32  ;;  %13548 = vmatprep.subr.bf16.mxu0 %v14703_v42  ;;  %v3237_v32 = vld [vmem:[%s16785_s19 + $0x1250] sm:$0xff] }
 0x767   : > { %13712 = vmatprep.subr.bf16.mxu1 %v14705_v57  ;;  %v3249_v42 = vld [vmem:[%s16785_s19 + $0x12b0] sm:$0xff]  ;;  %v3238_v57 = vld [vmem:[%s16785_s19 + $0x1258] sm:$0xff] }
 0x768   : > { %13540 = vmatmul.mubr.bf16.vlgmr.msra.gmra.mrb[28].mxu0 %v17007_v39  ;;  %v14895_v38 = vcombine.high %v3237_v32, %v3249_v42  ;;  %v14897_v29 = vcombine.high %v3238_v57, %v3250_v33  ;;  %v14896_v43 = vcombine.low %v3238_v57, %v3250_v33 }
 0x769   : > { %13704 = vmatmul.mubr.bf16.vlgmr.msra.gmra.mrb[28].mxu1 %v17007_v39  ;;  %13549 = vmatpush1.bf16.msra.mxu0 %v14702_v37  ;;  %v3130_v39 = vld [vmem:[%s16785_s19 + $0xef8] sm:$0xff]  ;;  %v14872_v37 = vcombine.low %v3214_v24, %v3226_v44 }
 0x76a   : > { %13580 = vmatprep.mubr.bf16.mxu0 %v17015_v54  ;;  %13713 = vmatpush1.bf16.msra.mxu1 %v14704_v40  ;;  %v14776_v26 = vcombine.low %v3118_v55, %v3130_v39  ;;  %v3261_v40 = vld [vmem:[%s16785_s19 + $0x1310] sm:$0xff] }
 0x76b   : > { %13744 = vmatprep.mubr.bf16.mxu1 %v17015_v54  ;;  %13550 = vmatprep.subr.bf16.mxu0 %v14727_v4  ;;  %v14777_v54 = vcombine.high %v3118_v55, %v3130_v39  ;;  %v3273_v4 = vld [vmem:[%s16785_s19 + $0x1370] sm:$0xff]  ;;  %v14920_v55 = vcombine.low %v3262_v0, %v3274_v41 }
 0x76c   : > { %13714 = vmatprep.subr.bf16.mxu1 %v14729_v62  ;;  %v14894_v62 = vcombine.low %v3237_v32, %v3249_v42  ;;  %v14919_v6 = vcombine.high %v3261_v40, %v3273_v4  ;;  %v14918_v52 = vcombine.low %v3261_v40, %v3273_v4  ;;  %v3418_v32 = vld [vmem:[%s16785_s19 + $0x17f8] sm:$0xff] }
 0x76d   : > { %13551 = vmatpush1.bf16.msra.mxu0 %v14726_v45  ;;  %v14921_v45 = vcombine.high %v3262_v0, %v3274_v41  ;;  %v3442_v40 = vld [vmem:[%s16785_s19 + $0x18b8] sm:$0xff] }
 0x76e   : > { %13715 = vmatpush1.bf16.msra.mxu1 %v14728_v2  ;;  %13552 = vmatprep.subr.bf16.mxu0 %v14751_v8  ;;  %v3285_v2 = vld [vmem:[%s16785_s19 + $0x13d0] sm:$0xff] }
 0x76f   : > { %13716 = vmatprep.subr.bf16.mxu1 %v14753_v48  ;;  %v3297_v8 = vld [vmem:[%s16785_s19 + $0x1430] sm:$0xff]  ;;  %v3286_v48 = vld [vmem:[%s16785_s19 + $0x13d8] sm:$0xff] }
 0x770   : > { %v14943_v39 = vcombine.high %v3285_v2, %v3297_v8  ;;  %v14942_v35 = vcombine.low %v3285_v2, %v3297_v8  ;;  %v14944_v50 = vcombine.low %v3286_v48, %v3298_v51  ;;  %v3454_v2 = vld [vmem:[%s16785_s19 + $0x1918] sm:$0xff] }
 0x771   : > { %13553 = vmatpush1.bf16.msra.mxu0 %v14750_v58  ;;  %v14945_v58 = vcombine.high %v3286_v48, %v3298_v51  ;;  %v3466_v8 = vld [vmem:[%s16785_s19 + $0x1978] sm:$0xff] }
 0x772   : > { %13717 = vmatpush1.bf16.msra.mxu1 %v14752_v59  ;;  %13554 = vmatprep.subr.bf16.mxu0 %v14775_v18  ;;  %v3309_v59 = vld [vmem:[%s16785_s19 + $0x1490] sm:$0xff] }
 0x773   : > { %13718 = vmatprep.subr.bf16.mxu1 %v14777_v54  ;;  %v3321_v18 = vld [vmem:[%s16785_s19 + $0x14f0] sm:$0xff]  ;;  %v3310_v54 = vld [vmem:[%s16785_s19 + $0x1498] sm:$0xff] }
 0x774   : > { %v14967_v53 = vcombine.high %v3309_v59, %v3321_v18  ;;  %v14966_v27 = vcombine.low %v3309_v59, %v3321_v18  ;;  %v14968_v61 = vcombine.low %v3310_v54, %v3322_v46  ;;  %v3490_v59 = vld [vmem:[%s16785_s19 + $0x1a38] sm:$0xff] }
 0x775   : > { %13555 = vmatpush1.bf16.msra.mxu0 %v14774_v47  ;;  %v14969_v47 = vcombine.high %v3310_v54, %v3322_v46  ;;  %v15112_v54 = vcombine.low %v3454_v2, %v3466_v8 }
 0x776   : > { %13719 = vmatpush1.bf16.msra.mxu1 %v14776_v26  ;;  %13556 = vmatprep.subr.bf16.mxu0 %v14799_v20  ;;  %v3333_v26 = vld [vmem:[%s16785_s19 + $0x1550] sm:$0xff] }
 0x777   : > { %13720 = vmatprep.subr.bf16.mxu1 %v14801_v16  ;;  %v3345_v20 = vld [vmem:[%s16785_s19 + $0x15b0] sm:$0xff]  ;;  %v3334_v16 = vld [vmem:[%s16785_s19 + $0x1558] sm:$0xff] }
 0x778   : > { %v14991_v13 = vcombine.high %v3333_v26, %v3345_v20  ;;  %v14990_v5 = vcombine.low %v3333_v26, %v3345_v20  ;;  %v14992_v22 = vcombine.low %v3334_v16, %v3346_v23 }
 0x779   : > { %13557 = vmatpush1.bf16.msra.mxu0 %v14798_v56  ;;  %v14993_v56 = vcombine.high %v3334_v16, %v3346_v23  ;;  %v3525_v23 = vld [vmem:[%s16785_s19 + $0x1b50] sm:$0xff] }
 0x77a   : > { %13721 = vmatpush1.bf16.msra.mxu1 %v14800_v63  ;;  %13558 = vmatprep.subr.bf16.mxu0 %v14823_v1  ;;  %v3357_v63 = vld [vmem:[%s16785_s19 + $0x1610] sm:$0xff] }
 0x77b   : > { %13722 = vmatprep.subr.bf16.mxu1 %v14825_v60  ;;  %v3369_v1 = vld [vmem:[%s16785_s19 + $0x1670] sm:$0xff]  ;;  %v3358_v60 = vld [vmem:[%s16785_s19 + $0x1618] sm:$0xff] }
 0x77c   : > { %v15015_v7 = vcombine.high %v3357_v63, %v3369_v1  ;;  %v15014_v34 = vcombine.low %v3357_v63, %v3369_v1  ;;  %v15016_v24 = vcombine.low %v3358_v60, %v3370_v14 }
 0x77d   : > { %13559 = vmatpush1.bf16.msra.mxu0 %v14822_v9  ;;  %v15017_v9 = vcombine.high %v3358_v60, %v3370_v14  ;;  %v3549_v14 = vld [vmem:[%s16785_s19 + $0x1c10] sm:$0xff] }
 0x77e   : > { %13723 = vmatpush1.bf16.msra.mxu1 %v14824_v10  ;;  %13560 = vmatprep.subr.bf16.mxu0 %v14847_v15  ;;  %v3381_v10 = vld [vmem:[%s16785_s19 + $0x16d0] sm:$0xff] }
 0x77f   : > { %13724 = vmatprep.subr.bf16.mxu1 %v14849_v21  ;;  %v3393_v15 = vld [vmem:[%s16785_s19 + $0x1730] sm:$0xff]  ;;  %v3382_v21 = vld [vmem:[%s16785_s19 + $0x16d8] sm:$0xff] }
 0x780   : > { %v15039_v44 = vcombine.high %v3381_v10, %v3393_v15  ;;  %v15038_v42 = vcombine.low %v3381_v10, %v3393_v15  ;;  %v15040_v57 = vcombine.low %v3382_v21, %v3394_v3 }
 0x781   : > { %13561 = vmatpush1.bf16.msra.mxu0 %v14846_v49  ;;  %v15041_v49 = vcombine.high %v3382_v21, %v3394_v3  ;;  %v3573_v3 = vld [vmem:[%s16785_s19 + $0x1cd0] sm:$0xff] }
 0x782   : > { %13725 = vmatpush1.bf16.msra.mxu1 %v14848_v25  ;;  %13562 = vmatprep.subr.bf16.mxu0 %v14871_v30  ;;  %v3405_v25 = vld [vmem:[%s16785_s19 + $0x1790] sm:$0xff] }
 0x783   : > { %13726 = vmatprep.subr.bf16.mxu1 %v14873_v31  ;;  %v3417_v30 = vld [vmem:[%s16785_s19 + $0x17f0] sm:$0xff]  ;;  %v3406_v31 = vld [vmem:[%s16785_s19 + $0x1798] sm:$0xff] }
 0x784   : > { %v15063_v33 = vcombine.high %v3405_v25, %v3417_v30  ;;  %v15062_v4 = vcombine.low %v3405_v25, %v3417_v30  ;;  %v15064_v0 = vcombine.low %v3406_v31, %v3418_v32 }
 0x785   : > { %13563 = vmatpush1.bf16.msra.mxu0 %v14870_v36  ;;  %v15065_v36 = vcombine.high %v3406_v31, %v3418_v32  ;;  %v3597_v32 = vld [vmem:[%s16785_s19 + $0x1d90] sm:$0xff] }
 0x786   : > { %13727 = vmatpush1.bf16.msra.mxu1 %v14872_v37  ;;  %13564 = vmatprep.subr.bf16.mxu0 %v14895_v38  ;;  %v3429_v37 = vld [vmem:[%s16785_s19 + $0x1850] sm:$0xff] }
 0x787   : > { %13728 = vmatprep.subr.bf16.mxu1 %v14897_v29  ;;  %v3441_v38 = vld [vmem:[%s16785_s19 + $0x18b0] sm:$0xff]  ;;  %v3430_v29 = vld [vmem:[%s16785_s19 + $0x1858] sm:$0xff] }
 0x788   : > { %v15087_v41 = vcombine.high %v3429_v37, %v3441_v38  ;;  %v15088_v48 = vcombine.low %v3430_v29, %v3442_v40 }
 0x789   : > { %13565 = vmatpush1.bf16.msra.mxu0 %v14894_v62  ;;  %v15089_v62 = vcombine.high %v3430_v29, %v3442_v40  ;;  %v3621_v40 = vld [vmem:[%s16785_s19 + $0x1e50] sm:$0xff] }
 0x78a   : > { %13729 = vmatpush1.bf16.msra.mxu1 %v14896_v43  ;;  %13566 = vmatprep.subr.bf16.mxu0 %v14919_v6  ;;  %v3453_v43 = vld [vmem:[%s16785_s19 + $0x1910] sm:$0xff] }
 0x78b   : > { %13730 = vmatprep.subr.bf16.mxu1 %v14921_v45  ;;  %v3465_v6 = vld [vmem:[%s16785_s19 + $0x1970] sm:$0xff]  ;;  %v15086_v45 = vcombine.low %v3429_v37, %v3441_v38 }
 0x78c   : > { %v15111_v51 = vcombine.high %v3453_v43, %v3465_v6  ;;  %v15110_v18 = vcombine.low %v3453_v43, %v3465_v6 }
 0x78d   : > { %13567 = vmatpush1.bf16.msra.mxu0 %v14918_v52  ;;  %v3477_v52 = vld [vmem:[%s16785_s19 + $0x19d0] sm:$0xff] }
 0x78e   : > { %13731 = vmatpush1.bf16.msra.mxu1 %v14920_v55  ;;  %13568 = vmatprep.subr.bf16.mxu0 %v14943_v39  ;;  %v3489_v55 = vld [vmem:[%s16785_s19 + $0x1a30] sm:$0xff]  ;;  %v15113_v39 = vcombine.high %v3454_v2, %v3466_v8 }
 0x78f   : > { %13732 = vmatprep.subr.bf16.mxu1 %v14945_v58  ;;  %v3478_v58 = vld [vmem:[%s16785_s19 + $0x19d8] sm:$0xff]  ;;  %v15135_v46 = vcombine.high %v3477_v52, %v3489_v55  ;;  %v15134_v26 = vcombine.low %v3477_v52, %v3489_v55  ;;  %v3645_v2 = vld [vmem:[%s16785_s19 + $0x1f10] sm:$0xff] }
 0x790   : > { %v15136_v20 = vcombine.low %v3478_v58, %v3490_v59  ;;  %v3657_v8 = vld [vmem:[%s16785_s19 + $0x1f70] sm:$0xff] }
 0x791   : > { %13569 = vmatpush1.bf16.msra.mxu0 %v14942_v35  ;;  %v15137_v35 = vcombine.high %v3478_v58, %v3490_v59  ;;  %v3669_v59 = vld [vmem:[%s16785_s19 + $0x1fd0] sm:$0xff] }
 0x792   : > { %13733 = vmatpush1.bf16.msra.mxu1 %v14944_v50  ;;  %13570 = vmatprep.subr.bf16.mxu0 %v14967_v53  ;;  %v3501_v50 = vld [vmem:[%s16785_s19 + $0x1a90] sm:$0xff] }
 0x793   : > { %13734 = vmatprep.subr.bf16.mxu1 %v14969_v47  ;;  %v3513_v53 = vld [vmem:[%s16785_s19 + $0x1af0] sm:$0xff]  ;;  %v3502_v47 = vld [vmem:[%s16785_s19 + $0x1a98] sm:$0xff] }
 0x794   : > { %v15159_v16 = vcombine.high %v3501_v50, %v3513_v53 }
 0x795   : > { %13571 = vmatpush1.bf16.msra.mxu0 %v14966_v27  ;;  %v3537_v27 = vld [vmem:[%s16785_s19 + $0x1bb0] sm:$0xff] }
 0x796   : > { %13735 = vmatpush1.bf16.msra.mxu1 %v14968_v61  ;;  %13572 = vmatprep.subr.bf16.mxu0 %v14991_v13  ;;  %v3526_v61 = vld [vmem:[%s16785_s19 + $0x1b58] sm:$0xff]  ;;  %v15183_v1 = vcombine.high %v3525_v23, %v3537_v27 }
 0x797   : > { %13736 = vmatprep.subr.bf16.mxu1 %v14993_v56  ;;  %v3538_v13 = vld [vmem:[%s16785_s19 + $0x1bb8] sm:$0xff]  ;;  %v15158_v56 = vcombine.low %v3501_v50, %v3513_v53 }
 0x798   : > { %v15185_v60 = vcombine.high %v3526_v61, %v3538_v13  ;;  %v15184_v10 = vcombine.low %v3526_v61, %v3538_v13  ;;  %v3717_v13 = vld [vmem:[%s16785_s19 + $0x2150] sm:$0xff] }
 0x799   : > { %13573 = vmatpush1.bf16.msra.mxu0 %v14990_v5  ;;  %v3561_v5 = vld [vmem:[%s16785_s19 + $0x1c70] sm:$0xff] }
 0x79a   : > { %13737 = vmatpush1.bf16.msra.mxu1 %v14992_v22  ;;  %13574 = vmatprep.subr.bf16.mxu0 %v15015_v7  ;;  %v3550_v22 = vld [vmem:[%s16785_s19 + $0x1c18] sm:$0xff]  ;;  %v15207_v15 = vcombine.high %v3549_v14, %v3561_v5 }
 0x79b   : > { %13738 = vmatprep.subr.bf16.mxu1 %v15017_v9  ;;  %v3562_v7 = vld [vmem:[%s16785_s19 + $0x1c78] sm:$0xff]  ;;  %v15182_v9 = vcombine.low %v3525_v23, %v3537_v27 }
 0x79c   : > { %v15209_v21 = vcombine.high %v3550_v22, %v3562_v7  ;;  %v15208_v25 = vcombine.low %v3550_v22, %v3562_v7  ;;  %v3741_v7 = vld [vmem:[%s16785_s19 + $0x2210] sm:$0xff] }
 0x79d   : > { %13575 = vmatpush1.bf16.msra.mxu0 %v15014_v34  ;;  %v3585_v34 = vld [vmem:[%s16785_s19 + $0x1d30] sm:$0xff] }
 0x79e   : > { %13739 = vmatpush1.bf16.msra.mxu1 %v15016_v24  ;;  %13576 = vmatprep.subr.bf16.mxu0 %v15039_v44  ;;  %v3574_v24 = vld [vmem:[%s16785_s19 + $0x1cd8] sm:$0xff]  ;;  %v15231_v30 = vcombine.high %v3573_v3, %v3585_v34 }
 0x79f   : > { %13740 = vmatprep.subr.bf16.mxu1 %v15041_v49  ;;  %v3586_v44 = vld [vmem:[%s16785_s19 + $0x1d38] sm:$0xff]  ;;  %v15206_v49 = vcombine.low %v3549_v14, %v3561_v5 }
 0x7a0   : > { %v15233_v31 = vcombine.high %v3574_v24, %v3586_v44  ;;  %v15232_v37 = vcombine.low %v3574_v24, %v3586_v44  ;;  %v3765_v44 = vld [vmem:[%s16785_s19 + $0x22d0] sm:$0xff] }
 0x7a1   : > { %13577 = vmatpush1.bf16.msra.mxu0 %v15038_v42  ;;  %v3609_v42 = vld [vmem:[%s16785_s19 + $0x1df0] sm:$0xff] }
 0x7a2   : > { %13741 = vmatpush1.bf16.msra.mxu1 %v15040_v57  ;;  %13578 = vmatprep.subr.bf16.mxu0 %v15063_v33  ;;  %v3598_v57 = vld [vmem:[%s16785_s19 + $0x1d98] sm:$0xff]  ;;  %v15255_v38 = vcombine.high %v3597_v32, %v3609_v42 }
 0x7a3   : > { %13742 = vmatprep.subr.bf16.mxu1 %v15065_v36  ;;  %v3610_v33 = vld [vmem:[%s16785_s19 + $0x1df8] sm:$0xff]  ;;  %v15230_v36 = vcombine.low %v3573_v3, %v3585_v34 }
 0x7a4   : > { %v15257_v29 = vcombine.high %v3598_v57, %v3610_v33  ;;  %v15256_v43 = vcombine.low %v3598_v57, %v3610_v33  ;;  %v3789_v33 = vld [vmem:[%s16785_s19 + $0x2390] sm:$0xff] }
 0x7a5   : > { %13579 = vmatpush1.bf16.msra.mxu0 %v15062_v4  ;;  %v3633_v4 = vld [vmem:[%s16785_s19 + $0x1eb0] sm:$0xff] }
 0x7a6   : > { %13743 = vmatpush1.bf16.msra.mxu1 %v15064_v0  ;;  %13589 = vmatprep.subr.bf16.mxu0 %v15087_v41  ;;  %v3622_v0 = vld [vmem:[%s16785_s19 + $0x1e58] sm:$0xff]  ;;  %v15279_v6 = vcombine.high %v3621_v40, %v3633_v4  ;;  %v15278_v52 = vcombine.low %v3621_v40, %v3633_v4 }
 0x7a7   : > { %13753 = vmatprep.subr.bf16.mxu1 %v15089_v62  ;;  %v3634_v41 = vld [vmem:[%s16785_s19 + $0x1eb8] sm:$0xff]  ;;  %v15254_v62 = vcombine.low %v3597_v32, %v3609_v42 }
 0x7a8   : > { %13581 = vmatmul.mubr.bf16.vlgmr.msra.gmra.mrb[28].mxu0 %v17094_v12  ;;  %v15280_v55 = vcombine.low %v3622_v0, %v3634_v41 }
 0x7a9   : > { %13745 = vmatmul.mubr.bf16.vlgmr.msra.gmra.mrb[28].mxu1 %v17094_v12  ;;  %13590 = vmatpush1.bf16.msra.mxu0 %v15086_v45  ;;  %v3514_v12 = vld [vmem:[%s16785_s19 + $0x1af8] sm:$0xff]  ;;  %v15281_v45 = vcombine.high %v3622_v0, %v3634_v41  ;;  %v3813_v41 = vld [vmem:[%s16785_s19 + $0x2450] sm:$0xff] }
 0x7aa   : > { %13621 = vmatprep.mubr.bf16.mxu0 %v17212_v11  ;;  %13754 = vmatpush1.bf16.msra.mxu1 %v15088_v48  ;;  %v15160_v63 = vcombine.low %v3502_v47, %v3514_v12  ;;  %v3646_v48 = vld [vmem:[%s16785_s19 + $0x1f18] sm:$0xff] }
 0x7ab   : > { %13785 = vmatprep.mubr.bf16.mxu1 %v17212_v11  ;;  %13591 = vmatprep.subr.bf16.mxu0 %v15111_v51  ;;  %v15161_v11 = vcombine.high %v3502_v47, %v3514_v12  ;;  %v3658_v51 = vld [vmem:[%s16785_s19 + $0x1f78] sm:$0xff]  ;;  %v3693_v12 = vld [vmem:[%s16785_s19 + $0x2090] sm:$0xff] }
 0x7ac   : > { %13755 = vmatprep.subr.bf16.mxu1 %v15113_v39  ;;  %v15303_v39 = vcombine.high %v3645_v2, %v3657_v8  ;;  %v15305_v58 = vcombine.high %v3646_v48, %v3658_v51  ;;  %v15304_v50 = vcombine.low %v3646_v48, %v3658_v51  ;;  %v3837_v51 = vld [vmem:[%s16785_s19 + $0x2510] sm:$0xff] }
 0x7ad   : > { %13592 = vmatpush1.bf16.msra.mxu0 %v15110_v18  ;;  %v3681_v18 = vld [vmem:[%s16785_s19 + $0x2030] sm:$0xff] }
 0x7ae   : > { %13756 = vmatpush1.bf16.msra.mxu1 %v15112_v54  ;;  %13593 = vmatprep.subr.bf16.mxu0 %v15135_v46  ;;  %v3670_v54 = vld [vmem:[%s16785_s19 + $0x1fd8] sm:$0xff]  ;;  %v15327_v53 = vcombine.high %v3669_v59, %v3681_v18 }
 0x7af   : > { %13757 = vmatprep.subr.bf16.mxu1 %v15137_v35  ;;  %v3682_v46 = vld [vmem:[%s16785_s19 + $0x2038] sm:$0xff]  ;;  %v15302_v35 = vcombine.low %v3645_v2, %v3657_v8 }
 0x7b0   : > { %v15329_v47 = vcombine.high %v3670_v54, %v3682_v46  ;;  %v15328_v23 = vcombine.low %v3670_v54, %v3682_v46  ;;  %v3861_v54 = vld [vmem:[%s16785_s19 + $0x25d0] sm:$0xff] }
 0x7b1   : > { %13594 = vmatpush1.bf16.msra.mxu0 %v15134_v26  ;;  %v3705_v26 = vld [vmem:[%s16785_s19 + $0x20f0] sm:$0xff] }
 0x7b2   : > { %13758 = vmatpush1.bf16.msra.mxu1 %v15136_v20  ;;  %13595 = vmatprep.subr.bf16.mxu0 %v15159_v16  ;;  %v3694_v20 = vld [vmem:[%s16785_s19 + $0x2098] sm:$0xff]  ;;  %v15351_v27 = vcombine.high %v3693_v12, %v3705_v26  ;;  %v3873_v46 = vld [vmem:[%s16785_s19 + $0x2630] sm:$0xff] }
 0x7b3   : > { %13759 = vmatprep.subr.bf16.mxu1 %v15161_v11  ;;  %v3706_v16 = vld [vmem:[%s16785_s19 + $0x20f8] sm:$0xff]  ;;  %v15326_v11 = vcombine.low %v3669_v59, %v3681_v18 }
 0x7b4   : > { %v15353_v61 = vcombine.high %v3694_v20, %v3706_v16  ;;  %v15352_v14 = vcombine.low %v3694_v20, %v3706_v16  ;;  %v3885_v16 = vld [vmem:[%s16785_s19 + $0x2690] sm:$0xff] }
 0x7b5   : > { %13596 = vmatpush1.bf16.msra.mxu0 %v15158_v56  ;;  %v3729_v56 = vld [vmem:[%s16785_s19 + $0x21b0] sm:$0xff] }
 0x7b6   : > { %13760 = vmatpush1.bf16.msra.mxu1 %v15160_v63  ;;  %13597 = vmatprep.subr.bf16.mxu0 %v15183_v1  ;;  %v3718_v63 = vld [vmem:[%s16785_s19 + $0x2158] sm:$0xff]  ;;  %v15375_v5 = vcombine.high %v3717_v13, %v3729_v56 }
 0x7b7   : > { %13761 = vmatprep.subr.bf16.mxu1 %v15185_v60  ;;  %v3730_v1 = vld [vmem:[%s16785_s19 + $0x21b8] sm:$0xff]  ;;  %v15350_v60 = vcombine.low %v3693_v12, %v3705_v26  ;;  %v15519_v26 = vcombine.high %v3861_v54, %v3873_v46 }
 0x7b8   : > { %v15377_v22 = vcombine.high %v3718_v63, %v3730_v1  ;;  %v15376_v3 = vcombine.low %v3718_v63, %v3730_v1  ;;  %v3921_v63 = vld [vmem:[%s16785_s19 + $0x27b0] sm:$0xff]  ;;  %v3910_v1 = vld [vmem:[%s16785_s19 + $0x2758] sm:$0xff] }
 0x7b9   : > { %13598 = vmatpush1.bf16.msra.mxu0 %v15182_v9  ;;  %v3753_v9 = vld [vmem:[%s16785_s19 + $0x2270] sm:$0xff] }
 0x7ba   : > { %13762 = vmatpush1.bf16.msra.mxu1 %v15184_v10  ;;  %13599 = vmatprep.subr.bf16.mxu0 %v15207_v15  ;;  %v3742_v10 = vld [vmem:[%s16785_s19 + $0x2218] sm:$0xff]  ;;  %v15399_v34 = vcombine.high %v3741_v7, %v3753_v9 }
 0x7bb   : > { %13763 = vmatprep.subr.bf16.mxu1 %v15209_v21  ;;  %v3754_v15 = vld [vmem:[%s16785_s19 + $0x2278] sm:$0xff]  ;;  %v15374_v21 = vcombine.low %v3717_v13, %v3729_v56  ;;  %v3909_v56 = vld [vmem:[%s16785_s19 + $0x2750] sm:$0xff] }
 0x7bc   : > { %v15401_v24 = vcombine.high %v3742_v10, %v3754_v15  ;;  %v15400_v32 = vcombine.low %v3742_v10, %v3754_v15  ;;  %v3945_v10 = vld [vmem:[%s16785_s19 + $0x2870] sm:$0xff]  ;;  %v3934_v15 = vld [vmem:[%s16785_s19 + $0x2818] sm:$0xff] }
 0x7bd   : > { %13600 = vmatpush1.bf16.msra.mxu0 %v15206_v49  ;;  %v3777_v49 = vld [vmem:[%s16785_s19 + $0x2330] sm:$0xff] }
 0x7be   : > { %13764 = vmatpush1.bf16.msra.mxu1 %v15208_v25  ;;  %13601 = vmatprep.subr.bf16.mxu0 %v15231_v30  ;;  %v3766_v25 = vld [vmem:[%s16785_s19 + $0x22d8] sm:$0xff]  ;;  %v15423_v42 = vcombine.high %v3765_v44, %v3777_v49 }
 0x7bf   : > { %13765 = vmatprep.subr.bf16.mxu1 %v15233_v31  ;;  %v3778_v30 = vld [vmem:[%s16785_s19 + $0x2338] sm:$0xff]  ;;  %v15398_v31 = vcombine.low %v3741_v7, %v3753_v9  ;;  %v3933_v9 = vld [vmem:[%s16785_s19 + $0x2810] sm:$0xff] }
 0x7c0   : > { %v15425_v57 = vcombine.high %v3766_v25, %v3778_v30  ;;  %v15424_v40 = vcombine.low %v3766_v25, %v3778_v30  ;;  %v3969_v25 = vld [vmem:[%s16785_s19 + $0x2930] sm:$0xff]  ;;  %v3958_v30 = vld [vmem:[%s16785_s19 + $0x28d8] sm:$0xff] }
 0x7c1   : > { %13602 = vmatpush1.bf16.msra.mxu0 %v15230_v36  ;;  %v3801_v36 = vld [vmem:[%s16785_s19 + $0x23f0] sm:$0xff] }
 0x7c2   : > { %13766 = vmatpush1.bf16.msra.mxu1 %v15232_v37  ;;  %13603 = vmatprep.subr.bf16.mxu0 %v15255_v38  ;;  %v3790_v37 = vld [vmem:[%s16785_s19 + $0x2398] sm:$0xff]  ;;  %v15447_v4 = vcombine.high %v3789_v33, %v3801_v36 }
 0x7c3   : > { %13767 = vmatprep.subr.bf16.mxu1 %v15257_v29  ;;  %v3802_v38 = vld [vmem:[%s16785_s19 + $0x23f8] sm:$0xff]  ;;  %v15422_v29 = vcombine.low %v3765_v44, %v3777_v49  ;;  %v3957_v49 = vld [vmem:[%s16785_s19 + $0x28d0] sm:$0xff] }
 0x7c4   : > { %v15449_v0 = vcombine.high %v3790_v37, %v3802_v38  ;;  %v15448_v2 = vcombine.low %v3790_v37, %v3802_v38  ;;  %v3981_v37 = vld [vmem:[%s16785_s19 + $0x2990] sm:$0xff] }
 0x7c5   : > { %13604 = vmatpush1.bf16.msra.mxu0 %v15254_v62  ;;  %v3825_v62 = vld [vmem:[%s16785_s19 + $0x24b0] sm:$0xff] }
 0x7c6   : > { %13768 = vmatpush1.bf16.msra.mxu1 %v15256_v43  ;;  %13605 = vmatprep.subr.bf16.mxu0 %v15279_v6  ;;  %v3814_v43 = vld [vmem:[%s16785_s19 + $0x2458] sm:$0xff]  ;;  %v15471_v8 = vcombine.high %v3813_v41, %v3825_v62  ;;  %v3993_v38 = vld [vmem:[%s16785_s19 + $0x29f0] sm:$0xff] }
 0x7c7   : > { %13769 = vmatprep.subr.bf16.mxu1 %v15281_v45  ;;  %v3826_v6 = vld [vmem:[%s16785_s19 + $0x24b8] sm:$0xff]  ;;  %v15446_v45 = vcombine.low %v3789_v33, %v3801_v36 }
 0x7c8   : > { %v15473_v48 = vcombine.high %v3814_v43, %v3826_v6  ;;  %v15472_v59 = vcombine.low %v3814_v43, %v3826_v6  ;;  %v15614_v43 = vcombine.low %v3957_v49, %v3969_v25 }
 0x7c9   : > { %13606 = vmatpush1.bf16.msra.mxu0 %v15278_v52  ;;  %v3849_v52 = vld [vmem:[%s16785_s19 + $0x2570] sm:$0xff] }
 0x7ca   : > { %13770 = vmatpush1.bf16.msra.mxu1 %v15280_v55  ;;  %13607 = vmatprep.subr.bf16.mxu0 %v15303_v39  ;;  %v15470_v55 = vcombine.low %v3813_v41, %v3825_v62  ;;  %v3838_v39 = vld [vmem:[%s16785_s19 + $0x2518] sm:$0xff]  ;;  %v15495_v18 = vcombine.high %v3837_v51, %v3849_v52 }
 0x7cb   : > { %13771 = vmatprep.subr.bf16.mxu1 %v15305_v58  ;;  %v3850_v58 = vld [vmem:[%s16785_s19 + $0x2578] sm:$0xff] }
 0x7cc   : > { %v15496_v12 = vcombine.low %v3838_v39, %v3850_v58 }
 0x7cd   : > { %13608 = vmatpush1.bf16.msra.mxu0 %v15302_v35  ;;  %v15497_v35 = vcombine.high %v3838_v39, %v3850_v58  ;;  %v4006_v39 = vld [vmem:[%s16785_s19 + $0x2a58] sm:$0xff] }
 0x7ce   : > { %13772 = vmatpush1.bf16.msra.mxu1 %v15304_v50  ;;  %13609 = vmatprep.subr.bf16.mxu0 %v15327_v53  ;;  %v3862_v50 = vld [vmem:[%s16785_s19 + $0x25d8] sm:$0xff] }
 0x7cf   : > { %13773 = vmatprep.subr.bf16.mxu1 %v15329_v47  ;;  %v3874_v53 = vld [vmem:[%s16785_s19 + $0x2638] sm:$0xff]  ;;  %v15494_v47 = vcombine.low %v3837_v51, %v3849_v52  ;;  %v4005_v52 = vld [vmem:[%s16785_s19 + $0x2a50] sm:$0xff] }
 0x7d0   : > { %v15521_v20 = vcombine.high %v3862_v50, %v3874_v53  ;;  %v4018_v58 = vld [vmem:[%s16785_s19 + $0x2ab8] sm:$0xff] }
 0x7d1   : > { %13610 = vmatpush1.bf16.msra.mxu0 %v15326_v11  ;;  %v3897_v11 = vld [vmem:[%s16785_s19 + $0x26f0] sm:$0xff] }
 0x7d2   : > { %13774 = vmatpush1.bf16.msra.mxu1 %v15328_v23  ;;  %13611 = vmatprep.subr.bf16.mxu0 %v15351_v27  ;;  %v3886_v23 = vld [vmem:[%s16785_s19 + $0x2698] sm:$0xff]  ;;  %v15518_v27 = vcombine.low %v3861_v54, %v3873_v46  ;;  %v15543_v13 = vcombine.high %v3885_v16, %v3897_v11  ;;  %v15665_v46 = vcombine.high %v4006_v39, %v4018_v58 }
 0x7d3   : > { %13775 = vmatprep.subr.bf16.mxu1 %v15353_v61  ;;  %v15520_v61 = vcombine.low %v3862_v50, %v3874_v53  ;;  %v4041_v50 = vld [vmem:[%s16785_s19 + $0x2b70] sm:$0xff]  ;;  %v4030_v53 = vld [vmem:[%s16785_s19 + $0x2b18] sm:$0xff] }
 0x7d5   : > { %13612 = vmatpush1.bf16.msra.mxu0 %v15350_v60  ;;  %v3922_v60 = vld [vmem:[%s16785_s19 + $0x27b8] sm:$0xff] }
 0x7d6   : > { %13776 = vmatpush1.bf16.msra.mxu1 %v15352_v14  ;;  %13613 = vmatprep.subr.bf16.mxu0 %v15375_v5  ;;  %v15542_v14 = vcombine.low %v3885_v16, %v3897_v11  ;;  %v15569_v7 = vcombine.high %v3910_v1, %v3922_v60 }
 0x7d7   : > { %13777 = vmatprep.subr.bf16.mxu1 %v15377_v22  ;;  %v15567_v22 = vcombine.high %v3909_v56, %v3921_v63 }
 0x7d9   : > { %13614 = vmatpush1.bf16.msra.mxu0 %v15374_v21  ;;  %v3946_v21 = vld [vmem:[%s16785_s19 + $0x2878] sm:$0xff] }
 0x7da   : > { %13778 = vmatpush1.bf16.msra.mxu1 %v15376_v3  ;;  %13615 = vmatprep.subr.bf16.mxu0 %v15399_v34  ;;  %v15566_v3 = vcombine.low %v3909_v56, %v3921_v63  ;;  %v15568_v34 = vcombine.low %v3910_v1, %v3922_v60  ;;  %v15593_v44 = vcombine.high %v3934_v15, %v3946_v21 }
 0x7db   : > { %13779 = vmatprep.subr.bf16.mxu1 %v15401_v24  ;;  %v15591_v24 = vcombine.high %v3933_v9, %v3945_v10 }
 0x7dd   : > { %13616 = vmatpush1.bf16.msra.mxu0 %v15398_v31  ;;  %v3970_v31 = vld [vmem:[%s16785_s19 + $0x2938] sm:$0xff] }
 0x7de   : > { %13780 = vmatpush1.bf16.msra.mxu1 %v15400_v32  ;;  %13617 = vmatprep.subr.bf16.mxu0 %v15423_v42  ;;  %v15590_v32 = vcombine.low %v3933_v9, %v3945_v10  ;;  %v15592_v42 = vcombine.low %v3934_v15, %v3946_v21  ;;  %v15617_v36 = vcombine.high %v3958_v30, %v3970_v31  ;;  %v4090_v9 = vld [vmem:[%s16785_s19 + $0x2cf8] sm:$0xff] }
 0x7df   : > { %13781 = vmatprep.subr.bf16.mxu1 %v15425_v57  ;;  %v15615_v57 = vcombine.high %v3957_v49, %v3969_v25  ;;  %v4114_v49 = vld [vmem:[%s16785_s19 + $0x2db8] sm:$0xff] }
 0x7e1   : > { %13618 = vmatpush1.bf16.msra.mxu0 %v15422_v29 }
 0x7e2   : > { %13782 = vmatpush1.bf16.msra.mxu1 %v15424_v40  ;;  %13619 = vmatprep.subr.bf16.mxu0 %v15447_v4  ;;  %v3982_v4 = vld [vmem:[%s16785_s19 + $0x2998] sm:$0xff] }
 0x7e3   : > { %13783 = vmatprep.subr.bf16.mxu1 %v15449_v0  ;;  %v3994_v0 = vld [vmem:[%s16785_s19 + $0x29f8] sm:$0xff] }
 0x7e4   : > { %v15641_v51 = vcombine.high %v3982_v4, %v3994_v0 }
 0x7e5   : > { %13620 = vmatpush1.bf16.msra.mxu0 %v15446_v45 }
 0x7e6   : > { %13784 = vmatpush1.bf16.msra.mxu1 %v15448_v2  ;;  %13630 = vmatprep.subr.bf16.mxu0 %v15471_v8  ;;  %v15616_v2 = vcombine.low %v3958_v30, %v3970_v31  ;;  %v15639_v8 = vcombine.high %v3981_v37, %v3993_v38 }
 0x7e7   : > { %13794 = vmatprep.subr.bf16.mxu1 %v15473_v48 }
 0x7e8   : > { %13622 = vmatmul.mubr.bf16.vlgmr.msra.gmra.mrb[28].mxu0 %v17214_v17 }
 0x7e9   : > { %13786 = vmatmul.mubr.bf16.vlgmr.msra.gmra.mrb[28].mxu1 %v17214_v17  ;;  %13631 = vmatpush1.bf16.msra.mxu0 %v15470_v55  ;;  %v3898_v17 = vld [vmem:[%s16785_s19 + $0x26f8] sm:$0xff]  ;;  %v4017_v55 = vld [vmem:[%s16785_s19 + $0x2ab0] sm:$0xff] }
 0x7ea   : > { %13662 = vmatprep.mubr.bf16.mxu0 %v17222_v28  ;;  %13795 = vmatpush1.bf16.msra.mxu1 %v15472_v59  ;;  %v15544_v5 = vcombine.low %v3886_v23, %v3898_v17  ;;  %v15638_v59 = vcombine.low %v3981_v37, %v3993_v38  ;;  %v15663_v54 = vcombine.high %v4005_v52, %v4017_v55 }
 0x7eb   : > { %13826 = vmatprep.mubr.bf16.mxu1 %v17222_v28  ;;  %13632 = vmatprep.subr.bf16.mxu0 %v15495_v18  ;;  %v15545_v28 = vcombine.high %v3886_v23, %v3898_v17  ;;  %v15640_v18 = vcombine.low %v3982_v4, %v3994_v0  ;;  %v4053_v17 = vld [vmem:[%s16785_s19 + $0x2bd0] sm:$0xff] }
 0x7ec   : > { %13796 = vmatprep.subr.bf16.mxu1 %v15497_v35  ;;  %v4029_v35 = vld [vmem:[%s16785_s19 + $0x2b10] sm:$0xff] }
 0x7ed   : > { %13633 = vmatpush1.bf16.msra.mxu0 %v15494_v47  ;;  %v4042_v47 = vld [vmem:[%s16785_s19 + $0x2b78] sm:$0xff]  ;;  %v15687_v16 = vcombine.high %v4029_v35, %v4041_v50  ;;  %v15686_v63 = vcombine.low %v4029_v35, %v4041_v50  ;;  %v4149_v4 = vld [vmem:[%s16785_s19 + $0x2ed0] sm:$0xff] }
 0x7ee   : > { %13797 = vmatpush1.bf16.msra.mxu1 %v15496_v12  ;;  %13634 = vmatprep.subr.bf16.mxu0 %v15519_v26  ;;  %v15662_v12 = vcombine.low %v4005_v52, %v4017_v55  ;;  %v15689_v23 = vcombine.high %v4030_v53, %v4042_v47  ;;  %v15688_v1 = vcombine.low %v4030_v53, %v4042_v47  ;;  %v4161_v0 = vld [vmem:[%s16785_s19 + $0x2f30] sm:$0xff]  ;;  %v4186_v52 = vld [vmem:[%s16785_s19 + $0x2ff8] sm:$0xff] }
 0x7ef   : > { %13798 = vmatprep.subr.bf16.mxu1 %v15521_v20  ;;  %v15664_v20 = vcombine.low %v4006_v39, %v4018_v58  ;;  %v15806_v55 = vcombine.low %v4149_v4, %v4161_v0 }
 0x7f1   : > { %13635 = vmatpush1.bf16.msra.mxu0 %v15518_v27  ;;  %v4065_v27 = vld [vmem:[%s16785_s19 + $0x2c30] sm:$0xff] }
 0x7f2   : > { %13799 = vmatpush1.bf16.msra.mxu1 %v15520_v61  ;;  %13636 = vmatprep.subr.bf16.mxu0 %v15543_v13  ;;  %v4054_v13 = vld [vmem:[%s16785_s19 + $0x2bd8] sm:$0xff]  ;;  %v15711_v60 = vcombine.high %v4053_v17, %v4065_v27  ;;  %v15710_v10 = vcombine.low %v4053_v17, %v4065_v27 }
 0x7f3   : > { %13800 = vmatprep.subr.bf16.mxu1 %v15545_v28  ;;  %v4066_v28 = vld [vmem:[%s16785_s19 + $0x2c38] sm:$0xff] }
 0x7f4   : > { %v15712_v15 = vcombine.low %v4054_v13, %v4066_v28 }
 0x7f5   : > { %13637 = vmatpush1.bf16.msra.mxu0 %v15542_v14  ;;  %v15713_v14 = vcombine.high %v4054_v13, %v4066_v28 }
 0x7f6   : > { %13801 = vmatpush1.bf16.msra.mxu1 %v15544_v5  ;;  %13638 = vmatprep.subr.bf16.mxu0 %v15567_v22  ;;  %v4077_v5 = vld [vmem:[%s16785_s19 + $0x2c90] sm:$0xff] }
 0x7f7   : > { %13802 = vmatprep.subr.bf16.mxu1 %v15569_v7  ;;  %v4089_v22 = vld [vmem:[%s16785_s19 + $0x2cf0] sm:$0xff]  ;;  %v4078_v7 = vld [vmem:[%s16785_s19 + $0x2c98] sm:$0xff] }
 0x7f8   : > { %v15735_v21 = vcombine.high %v4077_v5, %v4089_v22  ;;  %v15734_v25 = vcombine.low %v4077_v5, %v4089_v22  ;;  %v15736_v30 = vcombine.low %v4078_v7, %v4090_v9 }
 0x7f9   : > { %13639 = vmatpush1.bf16.msra.mxu0 %v15566_v3  ;;  %v15737_v3 = vcombine.high %v4078_v7, %v4090_v9 }
 0x7fa   : > { %13803 = vmatpush1.bf16.msra.mxu1 %v15568_v34  ;;  %13640 = vmatprep.subr.bf16.mxu0 %v15591_v24  ;;  %v4101_v34 = vld [vmem:[%s16785_s19 + $0x2d50] sm:$0xff] }
 0x7fb   : > { %v13336_v33 = vpop.f32.mrb[24].mxu0  ;;  %13804 = vmatprep.subr.bf16.mxu1 %v15593_v44  ;;  %v4113_v24 = vld [vmem:[%s16785_s19 + $0x2db0] sm:$0xff]  ;;  %v4102_v44 = vld [vmem:[%s16785_s19 + $0x2d58] sm:$0xff] }
 0x7fc   : > { %16170 = vtanh.f32 %v13336_v33  ;;  %v13500_v29 = vpop.f32.mrb[24].mxu1  ;;  %v13338_v40 = vpop.f32.mrb[25].mxu0  ;;  %v15759_v31 = vcombine.high %v4101_v34, %v4113_v24  ;;  %v4126_v33 = vld [vmem:[%s16785_s19 + $0x2e18] sm:$0xff]  ;;  %v15758_v37 = vcombine.low %v4101_v34, %v4113_v24  ;;  %v15760_v38 = vcombine.low %v4102_v44, %v4114_v49 }
 0x7fd   : > { %16172 = vtanh.f32 %v13500_v29  ;;  %v13502_v41 = vpop.f32.mrb[25].mxu1  ;;  %v13340_v62 = vpop.f32.mrb[26].mxu0  ;;  %13641 = vmatpush1.bf16.msra.mxu0 %v15590_v32  ;;  %v15761_v32 = vcombine.high %v4102_v44, %v4114_v49 }
 0x7fe   : > { %16174 = vtanh.f32 %v13338_v40  ;;  %v13504_v6 = vpop.f32.mrb[26].mxu1  ;;  %13805 = vmatpush1.bf16.msra.mxu1 %v15592_v42  ;;  %v13341_v45 = vpop.f32.mrb[27].mxu0  ;;  %13642 = vmatprep.subr.bf16.mxu0 %v15615_v57  ;;  %v4125_v42 = vld [vmem:[%s16785_s19 + $0x2e10] sm:$0xff]  ;;  %v4162_v62 = vld [vmem:[%s16785_s19 + $0x2f38] sm:$0xff] }
 0x7ff   : > { %16176 = vtanh.f32 %v13502_v41  ;;  %v13505_v48 = vpop.f32.mrb[27].mxu1  ;;  %13806 = vmatprep.subr.bf16.mxu1 %v15617_v36  ;;  %v4137_v57 = vld [vmem:[%s16785_s19 + $0x2e70] sm:$0xff]  ;;  %v4138_v36 = vld [vmem:[%s16785_s19 + $0x2e78] sm:$0xff]  ;;  %v15807_v45 = vcombine.high %v4149_v4, %v4161_v0 }
 0x800   : > { %v15783_v29 = vcombine.high %v4125_v42, %v4137_v57  ;;  %v15785_v40 = vcombine.high %v4126_v33, %v4138_v36  ;;  %v4150_v41 = vld [vmem:[%s16785_s19 + $0x2ed8] sm:$0xff]  ;;  %v15784_v6 = vcombine.low %v4126_v33, %v4138_v36  ;;  %v4185_v48 = vld [vmem:[%s16785_s19 + $0x2ff0] sm:$0xff] }
 0x801   : > { %13643 = vmatpush1.bf16.msra.mxu0 %v15614_v43  ;;  %v15782_v43 = vcombine.low %v4125_v42, %v4137_v57  ;;  %v15808_v39 = vcombine.low %v4150_v41, %v4162_v62 }
 0x802   : > { %13807 = vmatpush1.bf16.msra.mxu1 %v15616_v2  ;;  %13644 = vmatprep.subr.bf16.mxu0 %v15639_v8  ;;  %v15809_v2 = vcombine.high %v4150_v41, %v4162_v62  ;;  %v4173_v8 = vld [vmem:[%s16785_s19 + $0x2f90] sm:$0xff] }
 0x803   : > { %13808 = vmatprep.subr.bf16.mxu1 %v15641_v51  ;;  %v4174_v51 = vld [vmem:[%s16785_s19 + $0x2f98] sm:$0xff]  ;;  %v15831_v58 = vcombine.high %v4173_v8, %v4185_v48 }
 0x805   : > { %13645 = vmatpush1.bf16.msra.mxu0 %v15638_v59  ;;  %v15833_v59 = vcombine.high %v4174_v51, %v4186_v52 }
 0x806   : > { %v16171_v26 = vpop.eup %16170  ;;  %13809 = vmatpush1.bf16.msra.mxu1 %v15640_v18  ;;  %13646 = vmatprep.subr.bf16.mxu0 %v15663_v54  ;;  %v15830_v18 = vcombine.low %v4173_v8, %v4185_v48  ;;  %v15832_v54 = vcombine.low %v4174_v51, %v4186_v52 }
 0x807   : > { %v16173_v11 = vpop.eup %16172  ;;  %13875 = vst [vmem:[%s17535_s29 + $0x80] sm:$0xff] %v16171_v26  ;;  %13810 = vmatprep.subr.bf16.mxu1 %v15665_v46 }
 0x808   : > { %v16175_v61 = vpop.eup %16174  ;;  %13877 = vst [vmem:[%s17535_s29 + $0x90] sm:$0xff] %v16173_v11 }
 0x809   : > { %v16177_v56 = vpop.eup %16176  ;;  %13876 = vst [vmem:[%s17535_s29 + $0x88] sm:$0xff] %v16175_v61  ;;  %13647 = vmatpush1.bf16.msra.mxu0 %v15662_v12 }
 0x80a   : > { %13878 = vst [vmem:[%s17535_s29 + $0x98] sm:$0xff] %v16177_v56  ;;  %13811 = vmatpush1.bf16.msra.mxu1 %v15664_v20  ;;  %13648 = vmatprep.subr.bf16.mxu0 %v15687_v16 }
 0x80b   : > { %13812 = vmatprep.subr.bf16.mxu1 %v15689_v23 }
 0x80d   : > { %13649 = vmatpush1.bf16.msra.mxu0 %v15686_v63 }
 0x80e   : > { %13813 = vmatpush1.bf16.msra.mxu1 %v15688_v1  ;;  %13650 = vmatprep.subr.bf16.mxu0 %v15711_v60 }
 0x80f   : > { %13814 = vmatprep.subr.bf16.mxu1 %v15713_v14 }
 0x811   : > { %13651 = vmatpush1.bf16.msra.mxu0 %v15710_v10 }
 0x812   : > { %13815 = vmatpush1.bf16.msra.mxu1 %v15712_v15  ;;  %13652 = vmatprep.subr.bf16.mxu0 %v15735_v21 }
 0x813   : > { %13816 = vmatprep.subr.bf16.mxu1 %v15737_v3 }
 0x815   : > { %13653 = vmatpush1.bf16.msra.mxu0 %v15734_v25 }
 0x816   : > { %13817 = vmatpush1.bf16.msra.mxu1 %v15736_v30  ;;  %13654 = vmatprep.subr.bf16.mxu0 %v15759_v31 }
 0x817   : > { %13818 = vmatprep.subr.bf16.mxu1 %v15761_v32 }
 0x819   : > { %13655 = vmatpush1.bf16.msra.mxu0 %v15758_v37 }
 0x81a   : > { %13819 = vmatpush1.bf16.msra.mxu1 %v15760_v38  ;;  %13656 = vmatprep.subr.bf16.mxu0 %v15783_v29 }
 0x81b   : > { %13820 = vmatprep.subr.bf16.mxu1 %v15785_v40 }
 0x81d   : > { %13657 = vmatpush1.bf16.msra.mxu0 %v15782_v43 }
 0x81e   : > { %13821 = vmatpush1.bf16.msra.mxu1 %v15784_v6  ;;  %13658 = vmatprep.subr.bf16.mxu0 %v15807_v45 }
 0x81f   : > { %13822 = vmatprep.subr.bf16.mxu1 %v15809_v2 }
 0x821   : > { %13659 = vmatpush1.bf16.msra.mxu0 %v15806_v55 }
 0x822   : > { %13823 = vmatpush1.bf16.msra.mxu1 %v15808_v39  ;;  %13660 = vmatprep.subr.bf16.mxu0 %v15831_v58 }
 0x823   : > { %13824 = vmatprep.subr.bf16.mxu1 %v15833_v59 }
 0x825   : > { %13661 = vmatpush1.bf16.msra.mxu0 %v15830_v18 }
 0x826   : > { %13825 = vmatpush1.bf16.msra.mxu1 %v15832_v54 }
 0x828   : > { %13663 = vmatmul.mubr.bf16.vlgmr.msra.gmra.mrb[28].mxu0 %v17292_v19 }
 0x829   : > { %13827 = vmatmul.mubr.bf16.vlgmr.msra.gmra.mrb[28].mxu1 %v17292_v19 }
 0x8fb   : > { %v13664_v46 = vpop.f32.mrb[28].mxu0 }
 0x8fc   : > { %16178 = vtanh.f32 %v13664_v46  ;;  %v13828_v35 = vpop.f32.mrb[28].mxu1  ;;  %v13666_v50 = vpop.f32.mrb[29].mxu0 }
 0x8fd   : > { %16180 = vtanh.f32 %v13828_v35  ;;  %v13830_v53 = vpop.f32.mrb[29].mxu1  ;;  %v13668_v47 = vpop.f32.mrb[30].mxu0 }
 0x8fe   : > { %16182 = vtanh.f32 %v13666_v50  ;;  %v13832_v12 = vpop.f32.mrb[30].mxu1  ;;  %v13669_v26 = vpop.f32.mrb[31].mxu0 }
 0x8ff   : > { %16184 = vtanh.f32 %v13830_v53  ;;  %v13833_v20 = vpop.f32.mrb[31].mxu1 }
 0x906   : > { %v16179_v19 = vpop.eup %16178 }
 0x907   : > { %v16181_v16 = vpop.eup %16180  ;;  %13879 = vst [vmem:[%s17535_s29 + $0xa0] sm:$0xff] %v16179_v19 }
 0x908   : > { %v16183_v11 = vpop.eup %16182  ;;  %13881 = vst [vmem:[%s17535_s29 + $0xb0] sm:$0xff] %v16181_v16 }
 0x909   : > { %v16185_v23 = vpop.eup %16184  ;;  %13880 = vst [vmem:[%s17535_s29 + $0xa8] sm:$0xff] %v16183_v11 }
 0x90a   : > { %13882 = vst [vmem:[%s17535_s29 + $0xb8] sm:$0xff] %v16185_v23 }
 0x90b   : > { %16399 = shalt.err (!%p16396_p5)
}
 0x90c   : > { %s16400_s0 = scalar_lea.hbm %s18678_s11, 3072  ;;  %s16404_s19 = scalar_lea.hbm %s18730_s7, 12288 }
 0x90d   : > { %p16401_p13 = scmp.ne.s32.totalorder %s18678_s11, %s16400_s0  ;;  %p16405_p2 = scmp.lt.u32.totalorder %s18678_s11, %s18730_s7 }
 0x90e   : > { %p16406_p12 = scmp.lt.u32.totalorder %s16404_s19, %s16400_s0  ;;  %p16408_p10 = scmp.lt.u32.totalorder %s16400_s0, %s18678_s11 }
 0x90f   : > { %p16402_p0 = pnand %p16401_p13, %p18753_p6 }
 0x910   : > { %p16407_p4 = por %p16406_p12, %p16405_p2 }
 0x911   : > { %p16403_p11 = pneg %p16402_p0 }
 0x912   : > { %p16409_p9 = por %p16408_p10, %p16407_p4 }
 0x914   : > { %p16410_p1 = pnand %p16409_p9, %p16403_p11 }
 0x916   : > { %16413 = shalt.err (!%p16410_p1)
}
 0x917   : > { %16028 = dma.vmem_to_hbm [thread:$0]  (%p18753_p6), %s18680_s15, 3072, %s18678_s11, %s13884_s30  }
 0x918 PF: > { %p16070_p3 = scmp.ge.s32.totalorder %s16468_s27, 2  ;;  %s13910_s20 = sand.u32 1, %s16456_s24  }
 0x919   : > { %p18754_p7 = scmp.ne.s32.totalorder %s18742_s12, 0  ;;  %s13911_s17 = scalar_lea.sflag [#allocation4], %s13910_s20 }
 0x91b   : > { %p16054_p8 = pnand %p16070_p3, %p18754_p7 }
 0x91d   : > { %16451 = dma.done.wait (!%p16054_p8), %s13911_s17, 3072  }
 0x91e   : > { %16453 = vsyncadd (!%p16054_p8), %s13911_s17, 4294964224  ;;  %p21_p5 = scmp.ge.s32.totalorder %s16691_s13, 6   ;;  %s18755_s24 = smov %s16460_s25 }
 0x91f   : > { %s18756_s25 = smov %s16464_s26  ;;  %s18757_s26 = smov %s16702_s21 }
 0x920   : > { %s18758_s27 = smov %s16691_s13  ;;  %23 = sbr.rel (!%p21_p5) target bundleno = 9 (0x9), region = 116 }
 0x927   :  { %13916 = vsyncpa [#allocation3], 1 }
 0x928   :  { %13918 = vsyncpa [#allocation3 + $0x1], 1 }
 0x929   :  { %13919 = vsyncpa [#allocation6], 1 }
 0x92a   :  { %13920 = vsyncpa [#allocation9], 1 }
 0x92b   :  { %13921 = vsyncpa [#allocation12], 1 }
 0x92c   :  { %13922 = vsyncpa [#allocation4], 1 }
 0x92d   :  { %13924 = vsyncpa [#allocation4 + $0x1], 1 }

</bundles_post_ra>
